<compile_context>
chip_gen: v6e
topology: v6e:2x2x1
jax: 0.10.0
libtpu: 0.0.40
codegen_flags: <defaults>
</compile_context>

<pallas_src>
import math

import jax
import jax.numpy as jnp
from jax.experimental import pallas as pl
from jax.experimental.pallas import tpu as pltpu

_LOG_2PI = math.log(2.0 * math.pi)
_EPS = 1e-20


def masked_mix_kernel(z_ref, mu_ref, nhiv_ref, bias_ref, sp_ref, sn_ref, out_ref):
    d, tb = z_ref.shape            # (D, tb): batch on lanes
    md = mu_ref.shape[0]           # M*D
    m = md // d
    log_m = math.log(float(m))

    # z replicated over the M mixture components: rows i*D + d hold z[:, d].
    # Concat of (D, tb) pieces along sublanes is tile-aligned (D % 8 == 0).
    z_big = jnp.concatenate([z_ref[...]] * m, axis=0)            # (M*D, tb)

    # One lane-dense exp for the per-dim densities pd = exp(lps[n, i, d]);
    # the sigmoid weights are folded in with two VPU multiplies (factored exp).
    diff = z_big - mu_ref[...]                                   # (M*D, tb)
    pd = jnp.exp(diff * diff * nhiv_ref[...] + bias_ref[...])    # exp(lps)
    ep = sp_ref[...] * pd                                        # exp(logsig(+a) + lps)
    en = sn_ref[...] * pd                                        # exp(logsig(-a) + lps)

    # Pairwise (i, j) mix on 32-row tile-aligned blocks: add -> clamp -> log
    # (the log is the dominant, fully lane-dense EUP work), then the d-sum is a
    # plain sublane reduction.  No MXU, no sub-128-lane gathers anywhere.
    lp_rows = []
    for i in range(m):
        ep_i = ep[i * d:(i + 1) * d, :]                          # (D, tb)
        s_rows = []
        for j in range(m):
            en_j = en[j * d:(j + 1) * d, :]                      # (D, tb)
            mixed = jnp.log(jnp.maximum(ep_i + en_j, _EPS))      # (D, tb)
            s_rows.append(jnp.sum(mixed, axis=0, keepdims=True))  # (1, tb): sum over d
        s_i = jnp.concatenate(s_rows, axis=0)                    # (M, tb)
        # logsumexp over j (rows of s_i), lane-dense.
        mx = jnp.max(s_i, axis=0, keepdims=True)                 # (1, tb)
        tot = jnp.sum(jnp.exp(s_i - mx), axis=0, keepdims=True)  # (1, tb)
        lp_rows.append(mx + jnp.log(tot) - log_m)                # (1, tb)

    out_ref[...] = jnp.concatenate(lp_rows, axis=0).astype(out_ref.dtype)  # (M, tb)


def masked_mix_dist_forward(z, means, log_stds, alphas, *, tb=256):
    """MaskedMixDist.forward for a class-conditional diagonal-Gaussian base dist.

    Returns (z, lp) with lp of shape (N, M).  tb is the batch tile on the lane
    axis (multiple of 128; 256-512 on v7x, up to 1024 on v5e/v6e for large N)."""
    n, d = z.shape
    m = means.shape[0]
    md = m * d
    f32 = jnp.float32

    means = means.astype(f32)
    log_stds = log_stds.astype(f32)
    alphas = alphas.astype(f32)

    # --- hoisted per-(component, dim) constants, as resident (M*D, 1) columns ---
    mu_col = means.reshape(md, 1)                                         # mu[i,d]
    nhiv_col = (-0.5 * jnp.exp(-2.0 * log_stds)).reshape(md, 1)           # -0.5/var
    bias_col = (-log_stds - 0.5 * _LOG_2PI).reshape(md, 1)                # -log_std - log(2pi)/2
    sp_col = jnp.tile(jax.nn.sigmoid(alphas), m).reshape(md, 1)           # sigmoid(+a_d)
    sn_col = jnp.tile(jax.nn.sigmoid(-alphas), m).reshape(md, 1)          # sigmoid(-a_d)

    # --- batch tiling: batch goes on the lane axis, padded to a tile multiple ---
    tb = max(128, (min(tb, 1024) // 128) * 128)
    n_pad = pl.cdiv(n, tb) * tb
    z_t = z.astype(f32).T                                                 # (D, N)
    if n_pad != n:
        z_t = jnp.pad(z_t, ((0, 0), (0, n_pad - n)))

    lp_t = pl.pallas_call(
        masked_mix_kernel,
        out_shape=jax.ShapeDtypeStruct((m, n_pad), f32),
        grid_spec=pltpu.PrefetchScalarGridSpec(
            num_scalar_prefetch=0,
            grid=(n_pad // tb,),
            in_specs=[
                pl.BlockSpec((d, tb), lambda b: (0, b)),    # z^T        (streamed)
                pl.BlockSpec((md, 1), lambda b: (0, 0)),    # means      (resident)
                pl.BlockSpec((md, 1), lambda b: (0, 0)),    # -0.5/var   (resident)
                pl.BlockSpec((md, 1), lambda b: (0, 0)),    # bias       (resident)
                pl.BlockSpec((md, 1), lambda b: (0, 0)),    # sigmoid(+a)(resident)
                pl.BlockSpec((md, 1), lambda b: (0, 0)),    # sigmoid(-a)(resident)
            ],
            out_specs=pl.BlockSpec((m, tb), lambda b: (0, b)),
        ),
        compiler_params=pltpu.CompilerParams(
            dimension_semantics=("parallel",),
            vmem_limit_bytes=48 * 1024 * 1024,
        ),
    )(z_t, mu_col, nhiv_col, bias_col, sp_col, sn_col)

    lp = lp_t[:, :n].T                                                    # (N, M)
    return z, lp


def reference_lp(z, means, log_stds, alphas):
    """Pure-JAX mirror of the PyTorch forward (incl. the (N,M,M,D) broadcast)."""
    diff = z[:, None, :] - means[None, :, :]
    lps = (-0.5 * diff * diff * jnp.exp(-2.0 * log_stds)[None]
           - log_stds[None] - 0.5 * _LOG_2PI)                             # (N, M, D)
    pos = jax.nn.log_sigmoid(alphas)[None, None, :] + lps
    neg = jax.nn.log_sigmoid(-alphas)[None, None, :] + lps
    mixed = jnp.log(jnp.maximum(jnp.exp(pos)[:, :, None, :]
                                + jnp.exp(neg)[:, None, :, :], _EPS))     # (N, M, M, D)
    lp = (jax.scipy.special.logsumexp(jnp.sum(mixed, axis=-1), axis=2)
          - math.log(mixed.shape[1]))
    return lp


if __name__ == "__main__":
    N, M, D = 512, 8, 32  # batch, mixture components (from dist), n_dims

    key = jax.random.PRNGKey(0)
    kz, km, ks, ka = jax.random.split(key, 4)
    z = jax.random.normal(kz, (N, D), dtype=jnp.float32)
    # deterministic synthetic params for the injected `dist` (diag Gaussian per class)
    means = 0.5 * jax.random.normal(km, (M, D), dtype=jnp.float32)
    log_stds = 0.1 * jax.random.normal(ks, (M, D), dtype=jnp.float32)
    # module parameter self.alphas (init is zeros; use a small nonzero value to
    # exercise the asymmetric mixing path)
    alphas = 0.3 * jax.random.normal(ka, (D,), dtype=jnp.float32)

    z_out, lp = masked_mix_dist_forward(z, means, log_stds, alphas)  # tb=256 -> grid (2,)
    lp = jax.block_until_ready(lp)

    ref = reference_lp(z, means, log_stds, alphas)
    assert lp.shape == (N, M), lp.shape
    err = float(jnp.max(jnp.abs(lp - ref)))
    assert jnp.allclose(lp, ref, rtol=1e-4, atol=1e-3), err
    print("KERNEL_OK")
</pallas_src>

<mosaic_0001>
module attributes {stable_mosaic.version = 11 : i64} {
  func.func @masked_mix_kernel(%arg0: i32, %arg1: memref<32x256xf32, #tpu.memory_space<vmem>>, %arg2: memref<256x1xf32, #tpu.memory_space<vmem>>, %arg3: memref<256x1xf32, #tpu.memory_space<vmem>>, %arg4: memref<256x1xf32, #tpu.memory_space<vmem>>, %arg5: memref<256x1xf32, #tpu.memory_space<vmem>>, %arg6: memref<256x1xf32, #tpu.memory_space<vmem>>, %arg7: memref<8x256xf32, #tpu.memory_space<vmem>>) attributes {dimension_semantics = [#tpu.dimension_semantics<parallel>], iteration_bounds = array<i64: 2>, scalar_prefetch = 0 : i64, scratch_operands = 0 : i64, tpu.core_type = #tpu.core_type<tc>, window_params = [{transform_indices = @transform_0, window_bounds = array<i64: 32, 256>}, {pipeline_mode = #tpu.pipeline_mode<synchronous>, transform_indices = @transform_1, window_bounds = array<i64: 256, 1>}, {pipeline_mode = #tpu.pipeline_mode<synchronous>, transform_indices = @transform_2, window_bounds = array<i64: 256, 1>}, {pipeline_mode = #tpu.pipeline_mode<synchronous>, transform_indices = @transform_3, window_bounds = array<i64: 256, 1>}, {pipeline_mode = #tpu.pipeline_mode<synchronous>, transform_indices = @transform_4, window_bounds = array<i64: 256, 1>}, {pipeline_mode = #tpu.pipeline_mode<synchronous>, transform_indices = @transform_5, window_bounds = array<i64: 256, 1>}, {transform_indices = @transform_6, window_bounds = array<i64: 8, 256>}]} {
    %c0 = arith.constant 0 : index
    %c0_0 = arith.constant 0 : index
    %0 = vector.load %arg1[%c0, %c0_0] : memref<32x256xf32, #tpu.memory_space<vmem>>, vector<32x256xf32>
    %1 = tpu.concatenate %0, %0, %0, %0, %0, %0, %0, %0 in 0 : vector<32x256xf32>, vector<32x256xf32>, vector<32x256xf32>, vector<32x256xf32>, vector<32x256xf32>, vector<32x256xf32>, vector<32x256xf32>, vector<32x256xf32> -> vector<256x256xf32>
    %c0_1 = arith.constant 0 : index
    %c0_2 = arith.constant 0 : index
    %2 = vector.load %arg2[%c0_1, %c0_2] : memref<256x1xf32, #tpu.memory_space<vmem>>, vector<256x1xf32>
    %3 = vector.broadcast %2 : vector<256x1xf32> to vector<256x256xf32>
    %4 = arith.subf %1, %3 : vector<256x256xf32>
    %5 = arith.mulf %4, %4 : vector<256x256xf32>
    %c0_3 = arith.constant 0 : index
    %c0_4 = arith.constant 0 : index
    %6 = vector.load %arg3[%c0_3, %c0_4] : memref<256x1xf32, #tpu.memory_space<vmem>>, vector<256x1xf32>
    %7 = vector.broadcast %6 : vector<256x1xf32> to vector<256x256xf32>
    %8 = arith.mulf %5, %7 : vector<256x256xf32>
    %c0_5 = arith.constant 0 : index
    %c0_6 = arith.constant 0 : index
    %9 = vector.load %arg4[%c0_5, %c0_6] : memref<256x1xf32, #tpu.memory_space<vmem>>, vector<256x1xf32>
    %10 = vector.broadcast %9 : vector<256x1xf32> to vector<256x256xf32>
    %11 = arith.addf %8, %10 : vector<256x256xf32>
    %12 = math.exp %11 : vector<256x256xf32>
    %c0_7 = arith.constant 0 : index
    %c0_8 = arith.constant 0 : index
    %13 = vector.load %arg5[%c0_7, %c0_8] : memref<256x1xf32, #tpu.memory_space<vmem>>, vector<256x1xf32>
    %14 = vector.broadcast %13 : vector<256x1xf32> to vector<256x256xf32>
    %15 = arith.mulf %14, %12 : vector<256x256xf32>
    %c0_9 = arith.constant 0 : index
    %c0_10 = arith.constant 0 : index
    %16 = vector.load %arg6[%c0_9, %c0_10] : memref<256x1xf32, #tpu.memory_space<vmem>>, vector<256x1xf32>
    %17 = vector.broadcast %16 : vector<256x1xf32> to vector<256x256xf32>
    %18 = arith.mulf %17, %12 : vector<256x256xf32>
    %19 = vector.extract_strided_slice %15 {offsets = [0, 0], sizes = [32, 256], strides = [1, 1]} : vector<256x256xf32> to vector<32x256xf32>
    %20 = vector.extract_strided_slice %18 {offsets = [0, 0], sizes = [32, 256], strides = [1, 1]} : vector<256x256xf32> to vector<32x256xf32>
    %21 = arith.addf %19, %20 : vector<32x256xf32>
    %cst = arith.constant 9.99999968E-21 : f32
    %22 = vector.broadcast %cst : f32 to vector<32x256xf32>
    %23 = arith.maximumf %21, %22 : vector<32x256xf32>
    %24 = math.log %23 : vector<32x256xf32>
    %cst_11 = arith.constant dense<0.000000e+00> : vector<256xf32>
    %25 = vector.multi_reduction <add>, %24, %cst_11 [0] : vector<32x256xf32> to vector<256xf32>
    %26 = vector.shape_cast %25 : vector<256xf32> to vector<1x256xf32>
    %27 = vector.extract_strided_slice %18 {offsets = [32, 0], sizes = [32, 256], strides = [1, 1]} : vector<256x256xf32> to vector<32x256xf32>
    %28 = arith.addf %19, %27 : vector<32x256xf32>
    %cst_12 = arith.constant 9.99999968E-21 : f32
    %29 = vector.broadcast %cst_12 : f32 to vector<32x256xf32>
    %30 = arith.maximumf %28, %29 : vector<32x256xf32>
    %31 = math.log %30 : vector<32x256xf32>
    %cst_13 = arith.constant dense<0.000000e+00> : vector<256xf32>
    %32 = vector.multi_reduction <add>, %31, %cst_13 [0] : vector<32x256xf32> to vector<256xf32>
    %33 = vector.shape_cast %32 : vector<256xf32> to vector<1x256xf32>
    %34 = vector.extract_strided_slice %18 {offsets = [64, 0], sizes = [32, 256], strides = [1, 1]} : vector<256x256xf32> to vector<32x256xf32>
    %35 = arith.addf %19, %34 : vector<32x256xf32>
    %cst_14 = arith.constant 9.99999968E-21 : f32
    %36 = vector.broadcast %cst_14 : f32 to vector<32x256xf32>
    %37 = arith.maximumf %35, %36 : vector<32x256xf32>
    %38 = math.log %37 : vector<32x256xf32>
    %cst_15 = arith.constant dense<0.000000e+00> : vector<256xf32>
    %39 = vector.multi_reduction <add>, %38, %cst_15 [0] : vector<32x256xf32> to vector<256xf32>
    %40 = vector.shape_cast %39 : vector<256xf32> to vector<1x256xf32>
    %41 = vector.extract_strided_slice %18 {offsets = [96, 0], sizes = [32, 256], strides = [1, 1]} : vector<256x256xf32> to vector<32x256xf32>
    %42 = arith.addf %19, %41 : vector<32x256xf32>
    %cst_16 = arith.constant 9.99999968E-21 : f32
    %43 = vector.broadcast %cst_16 : f32 to vector<32x256xf32>
    %44 = arith.maximumf %42, %43 : vector<32x256xf32>
    %45 = math.log %44 : vector<32x256xf32>
    %cst_17 = arith.constant dense<0.000000e+00> : vector<256xf32>
    %46 = vector.multi_reduction <add>, %45, %cst_17 [0] : vector<32x256xf32> to vector<256xf32>
    %47 = vector.shape_cast %46 : vector<256xf32> to vector<1x256xf32>
    %48 = vector.extract_strided_slice %18 {offsets = [128, 0], sizes = [32, 256], strides = [1, 1]} : vector<256x256xf32> to vector<32x256xf32>
    %49 = arith.addf %19, %48 : vector<32x256xf32>
    %cst_18 = arith.constant 9.99999968E-21 : f32
    %50 = vector.broadcast %cst_18 : f32 to vector<32x256xf32>
    %51 = arith.maximumf %49, %50 : vector<32x256xf32>
    %52 = math.log %51 : vector<32x256xf32>
    %cst_19 = arith.constant dense<0.000000e+00> : vector<256xf32>
    %53 = vector.multi_reduction <add>, %52, %cst_19 [0] : vector<32x256xf32> to vector<256xf32>
    %54 = vector.shape_cast %53 : vector<256xf32> to vector<1x256xf32>
    %55 = vector.extract_strided_slice %18 {offsets = [160, 0], sizes = [32, 256], strides = [1, 1]} : vector<256x256xf32> to vector<32x256xf32>
    %56 = arith.addf %19, %55 : vector<32x256xf32>
    %cst_20 = arith.constant 9.99999968E-21 : f32
    %57 = vector.broadcast %cst_20 : f32 to vector<32x256xf32>
    %58 = arith.maximumf %56, %57 : vector<32x256xf32>
    %59 = math.log %58 : vector<32x256xf32>
    %cst_21 = arith.constant dense<0.000000e+00> : vector<256xf32>
    %60 = vector.multi_reduction <add>, %59, %cst_21 [0] : vector<32x256xf32> to vector<256xf32>
    %61 = vector.shape_cast %60 : vector<256xf32> to vector<1x256xf32>
    %62 = vector.extract_strided_slice %18 {offsets = [192, 0], sizes = [32, 256], strides = [1, 1]} : vector<256x256xf32> to vector<32x256xf32>
    %63 = arith.addf %19, %62 : vector<32x256xf32>
    %cst_22 = arith.constant 9.99999968E-21 : f32
    %64 = vector.broadcast %cst_22 : f32 to vector<32x256xf32>
    %65 = arith.maximumf %63, %64 : vector<32x256xf32>
    %66 = math.log %65 : vector<32x256xf32>
    %cst_23 = arith.constant dense<0.000000e+00> : vector<256xf32>
    %67 = vector.multi_reduction <add>, %66, %cst_23 [0] : vector<32x256xf32> to vector<256xf32>
    %68 = vector.shape_cast %67 : vector<256xf32> to vector<1x256xf32>
    %69 = vector.extract_strided_slice %18 {offsets = [224, 0], sizes = [32, 256], strides = [1, 1]} : vector<256x256xf32> to vector<32x256xf32>
    %70 = arith.addf %19, %69 : vector<32x256xf32>
    %cst_24 = arith.constant 9.99999968E-21 : f32
    %71 = vector.broadcast %cst_24 : f32 to vector<32x256xf32>
    %72 = arith.maximumf %70, %71 : vector<32x256xf32>
    %73 = math.log %72 : vector<32x256xf32>
    %cst_25 = arith.constant dense<0.000000e+00> : vector<256xf32>
    %74 = vector.multi_reduction <add>, %73, %cst_25 [0] : vector<32x256xf32> to vector<256xf32>
    %75 = vector.shape_cast %74 : vector<256xf32> to vector<1x256xf32>
    %76 = tpu.concatenate %26, %33, %40, %47, %54, %61, %68, %75 in 0 : vector<1x256xf32>, vector<1x256xf32>, vector<1x256xf32>, vector<1x256xf32>, vector<1x256xf32>, vector<1x256xf32>, vector<1x256xf32>, vector<1x256xf32> -> vector<8x256xf32>
    %cst_26 = arith.constant dense<0xFF800000> : vector<256xf32>
    %77 = vector.multi_reduction <maximumf>, %76, %cst_26 [0] : vector<8x256xf32> to vector<256xf32>
    %78 = vector.shape_cast %77 : vector<256xf32> to vector<1x256xf32>
    %79 = vector.broadcast %78 : vector<1x256xf32> to vector<8x256xf32>
    %80 = arith.subf %76, %79 : vector<8x256xf32>
    %81 = math.exp %80 : vector<8x256xf32>
    %cst_27 = arith.constant dense<0.000000e+00> : vector<256xf32>
    %82 = vector.multi_reduction <add>, %81, %cst_27 [0] : vector<8x256xf32> to vector<256xf32>
    %83 = vector.shape_cast %82 : vector<256xf32> to vector<1x256xf32>
    %84 = math.log %83 : vector<1x256xf32>
    %85 = arith.addf %78, %84 : vector<1x256xf32>
    %cst_28 = arith.constant 2.07944155 : f32
    %86 = vector.broadcast %cst_28 : f32 to vector<1x256xf32>
    %87 = arith.subf %85, %86 : vector<1x256xf32>
    %88 = vector.extract_strided_slice %15 {offsets = [32, 0], sizes = [32, 256], strides = [1, 1]} : vector<256x256xf32> to vector<32x256xf32>
    %89 = vector.extract_strided_slice %18 {offsets = [0, 0], sizes = [32, 256], strides = [1, 1]} : vector<256x256xf32> to vector<32x256xf32>
    %90 = arith.addf %88, %89 : vector<32x256xf32>
    %cst_29 = arith.constant 9.99999968E-21 : f32
    %91 = vector.broadcast %cst_29 : f32 to vector<32x256xf32>
    %92 = arith.maximumf %90, %91 : vector<32x256xf32>
    %93 = math.log %92 : vector<32x256xf32>
    %cst_30 = arith.constant dense<0.000000e+00> : vector<256xf32>
    %94 = vector.multi_reduction <add>, %93, %cst_30 [0] : vector<32x256xf32> to vector<256xf32>
    %95 = vector.shape_cast %94 : vector<256xf32> to vector<1x256xf32>
    %96 = vector.extract_strided_slice %18 {offsets = [32, 0], sizes = [32, 256], strides = [1, 1]} : vector<256x256xf32> to vector<32x256xf32>
    %97 = arith.addf %88, %96 : vector<32x256xf32>
    %cst_31 = arith.constant 9.99999968E-21 : f32
    %98 = vector.broadcast %cst_31 : f32 to vector<32x256xf32>
    %99 = arith.maximumf %97, %98 : vector<32x256xf32>
    %100 = math.log %99 : vector<32x256xf32>
    %cst_32 = arith.constant dense<0.000000e+00> : vector<256xf32>
    %101 = vector.multi_reduction <add>, %100, %cst_32 [0] : vector<32x256xf32> to vector<256xf32>
    %102 = vector.shape_cast %101 : vector<256xf32> to vector<1x256xf32>
    %103 = vector.extract_strided_slice %18 {offsets = [64, 0], sizes = [32, 256], strides = [1, 1]} : vector<256x256xf32> to vector<32x256xf32>
    %104 = arith.addf %88, %103 : vector<32x256xf32>
    %cst_33 = arith.constant 9.99999968E-21 : f32
    %105 = vector.broadcast %cst_33 : f32 to vector<32x256xf32>
    %106 = arith.maximumf %104, %105 : vector<32x256xf32>
    %107 = math.log %106 : vector<32x256xf32>
    %cst_34 = arith.constant dense<0.000000e+00> : vector<256xf32>
    %108 = vector.multi_reduction <add>, %107, %cst_34 [0] : vector<32x256xf32> to vector<256xf32>
    %109 = vector.shape_cast %108 : vector<256xf32> to vector<1x256xf32>
    %110 = vector.extract_strided_slice %18 {offsets = [96, 0], sizes = [32, 256], strides = [1, 1]} : vector<256x256xf32> to vector<32x256xf32>
    %111 = arith.addf %88, %110 : vector<32x256xf32>
    %cst_35 = arith.constant 9.99999968E-21 : f32
    %112 = vector.broadcast %cst_35 : f32 to vector<32x256xf32>
    %113 = arith.maximumf %111, %112 : vector<32x256xf32>
    %114 = math.log %113 : vector<32x256xf32>
    %cst_36 = arith.constant dense<0.000000e+00> : vector<256xf32>
    %115 = vector.multi_reduction <add>, %114, %cst_36 [0] : vector<32x256xf32> to vector<256xf32>
    %116 = vector.shape_cast %115 : vector<256xf32> to vector<1x256xf32>
    %117 = vector.extract_strided_slice %18 {offsets = [128, 0], sizes = [32, 256], strides = [1, 1]} : vector<256x256xf32> to vector<32x256xf32>
    %118 = arith.addf %88, %117 : vector<32x256xf32>
    %cst_37 = arith.constant 9.99999968E-21 : f32
    %119 = vector.broadcast %cst_37 : f32 to vector<32x256xf32>
    %120 = arith.maximumf %118, %119 : vector<32x256xf32>
    %121 = math.log %120 : vector<32x256xf32>
    %cst_38 = arith.constant dense<0.000000e+00> : vector<256xf32>
    %122 = vector.multi_reduction <add>, %121, %cst_38 [0] : vector<32x256xf32> to vector<256xf32>
    %123 = vector.shape_cast %122 : vector<256xf32> to vector<1x256xf32>
    %124 = vector.extract_strided_slice %18 {offsets = [160, 0], sizes = [32, 256], strides = [1, 1]} : vector<256x256xf32> to vector<32x256xf32>
    %125 = arith.addf %88, %124 : vector<32x256xf32>
    %cst_39 = arith.constant 9.99999968E-21 : f32
    %126 = vector.broadcast %cst_39 : f32 to vector<32x256xf32>
    %127 = arith.maximumf %125, %126 : vector<32x256xf32>
    %128 = math.log %127 : vector<32x256xf32>
    %cst_40 = arith.constant dense<0.000000e+00> : vector<256xf32>
    %129 = vector.multi_reduction <add>, %128, %cst_40 [0] : vector<32x256xf32> to vector<256xf32>
    %130 = vector.shape_cast %129 : vector<256xf32> to vector<1x256xf32>
    %131 = vector.extract_strided_slice %18 {offsets = [192, 0], sizes = [32, 256], strides = [1, 1]} : vector<256x256xf32> to vector<32x256xf32>
    %132 = arith.addf %88, %131 : vector<32x256xf32>
    %cst_41 = arith.constant 9.99999968E-21 : f32
    %133 = vector.broadcast %cst_41 : f32 to vector<32x256xf32>
    %134 = arith.maximumf %132, %133 : vector<32x256xf32>
    %135 = math.log %134 : vector<32x256xf32>
    %cst_42 = arith.constant dense<0.000000e+00> : vector<256xf32>
    %136 = vector.multi_reduction <add>, %135, %cst_42 [0] : vector<32x256xf32> to vector<256xf32>
    %137 = vector.shape_cast %136 : vector<256xf32> to vector<1x256xf32>
    %138 = vector.extract_strided_slice %18 {offsets = [224, 0], sizes = [32, 256], strides = [1, 1]} : vector<256x256xf32> to vector<32x256xf32>
    %139 = arith.addf %88, %138 : vector<32x256xf32>
    %cst_43 = arith.constant 9.99999968E-21 : f32
    %140 = vector.broadcast %cst_43 : f32 to vector<32x256xf32>
    %141 = arith.maximumf %139, %140 : vector<32x256xf32>
    %142 = math.log %141 : vector<32x256xf32>
    %cst_44 = arith.constant dense<0.000000e+00> : vector<256xf32>
    %143 = vector.multi_reduction <add>, %142, %cst_44 [0] : vector<32x256xf32> to vector<256xf32>
    %144 = vector.shape_cast %143 : vector<256xf32> to vector<1x256xf32>
    %145 = tpu.concatenate %95, %102, %109, %116, %123, %130, %137, %144 in 0 : vector<1x256xf32>, vector<1x256xf32>, vector<1x256xf32>, vector<1x256xf32>, vector<1x256xf32>, vector<1x256xf32>, vector<1x256xf32>, vector<1x256xf32> -> vector<8x256xf32>
    %cst_45 = arith.constant dense<0xFF800000> : vector<256xf32>
    %146 = vector.multi_reduction <maximumf>, %145, %cst_45 [0] : vector<8x256xf32> to vector<256xf32>
    %147 = vector.shape_cast %146 : vector<256xf32> to vector<1x256xf32>
    %148 = vector.broadcast %147 : vector<1x256xf32> to vector<8x256xf32>
    %149 = arith.subf %145, %148 : vector<8x256xf32>
    %150 = math.exp %149 : vector<8x256xf32>
    %cst_46 = arith.constant dense<0.000000e+00> : vector<256xf32>
    %151 = vector.multi_reduction <add>, %150, %cst_46 [0] : vector<8x256xf32> to vector<256xf32>
    %152 = vector.shape_cast %151 : vector<256xf32> to vector<1x256xf32>
    %153 = math.log %152 : vector<1x256xf32>
    %154 = arith.addf %147, %153 : vector<1x256xf32>
    %cst_47 = arith.constant 2.07944155 : f32
    %155 = vector.broadcast %cst_47 : f32 to vector<1x256xf32>
    %156 = arith.subf %154, %155 : vector<1x256xf32>
    %157 = vector.extract_strided_slice %15 {offsets = [64, 0], sizes = [32, 256], strides = [1, 1]} : vector<256x256xf32> to vector<32x256xf32>
    %158 = vector.extract_strided_slice %18 {offsets = [0, 0], sizes = [32, 256], strides = [1, 1]} : vector<256x256xf32> to vector<32x256xf32>
    %159 = arith.addf %157, %158 : vector<32x256xf32>
    %cst_48 = arith.constant 9.99999968E-21 : f32
    %160 = vector.broadcast %cst_48 : f32 to vector<32x256xf32>
    %161 = arith.maximumf %159, %160 : vector<32x256xf32>
    %162 = math.log %161 : vector<32x256xf32>
    %cst_49 = arith.constant dense<0.000000e+00> : vector<256xf32>
    %163 = vector.multi_reduction <add>, %162, %cst_49 [0] : vector<32x256xf32> to vector<256xf32>
    %164 = vector.shape_cast %163 : vector<256xf32> to vector<1x256xf32>
    %165 = vector.extract_strided_slice %18 {offsets = [32, 0], sizes = [32, 256], strides = [1, 1]} : vector<256x256xf32> to vector<32x256xf32>
    %166 = arith.addf %157, %165 : vector<32x256xf32>
    %cst_50 = arith.constant 9.99999968E-21 : f32
    %167 = vector.broadcast %cst_50 : f32 to vector<32x256xf32>
    %168 = arith.maximumf %166, %167 : vector<32x256xf32>
    %169 = math.log %168 : vector<32x256xf32>
    %cst_51 = arith.constant dense<0.000000e+00> : vector<256xf32>
    %170 = vector.multi_reduction <add>, %169, %cst_51 [0] : vector<32x256xf32> to vector<256xf32>
    %171 = vector.shape_cast %170 : vector<256xf32> to vector<1x256xf32>
    %172 = vector.extract_strided_slice %18 {offsets = [64, 0], sizes = [32, 256], strides = [1, 1]} : vector<256x256xf32> to vector<32x256xf32>
    %173 = arith.addf %157, %172 : vector<32x256xf32>
    %cst_52 = arith.constant 9.99999968E-21 : f32
    %174 = vector.broadcast %cst_52 : f32 to vector<32x256xf32>
    %175 = arith.maximumf %173, %174 : vector<32x256xf32>
    %176 = math.log %175 : vector<32x256xf32>
    %cst_53 = arith.constant dense<0.000000e+00> : vector<256xf32>
    %177 = vector.multi_reduction <add>, %176, %cst_53 [0] : vector<32x256xf32> to vector<256xf32>
    %178 = vector.shape_cast %177 : vector<256xf32> to vector<1x256xf32>
    %179 = vector.extract_strided_slice %18 {offsets = [96, 0], sizes = [32, 256], strides = [1, 1]} : vector<256x256xf32> to vector<32x256xf32>
    %180 = arith.addf %157, %179 : vector<32x256xf32>
    %cst_54 = arith.constant 9.99999968E-21 : f32
    %181 = vector.broadcast %cst_54 : f32 to vector<32x256xf32>
    %182 = arith.maximumf %180, %181 : vector<32x256xf32>
    %183 = math.log %182 : vector<32x256xf32>
    %cst_55 = arith.constant dense<0.000000e+00> : vector<256xf32>
    %184 = vector.multi_reduction <add>, %183, %cst_55 [0] : vector<32x256xf32> to vector<256xf32>
    %185 = vector.shape_cast %184 : vector<256xf32> to vector<1x256xf32>
    %186 = vector.extract_strided_slice %18 {offsets = [128, 0], sizes = [32, 256], strides = [1, 1]} : vector<256x256xf32> to vector<32x256xf32>
    %187 = arith.addf %157, %186 : vector<32x256xf32>
    %cst_56 = arith.constant 9.99999968E-21 : f32
    %188 = vector.broadcast %cst_56 : f32 to vector<32x256xf32>
    %189 = arith.maximumf %187, %188 : vector<32x256xf32>
    %190 = math.log %189 : vector<32x256xf32>
    %cst_57 = arith.constant dense<0.000000e+00> : vector<256xf32>
    %191 = vector.multi_reduction <add>, %190, %cst_57 [0] : vector<32x256xf32> to vector<256xf32>
    %192 = vector.shape_cast %191 : vector<256xf32> to vector<1x256xf32>
    %193 = vector.extract_strided_slice %18 {offsets = [160, 0], sizes = [32, 256], strides = [1, 1]} : vector<256x256xf32> to vector<32x256xf32>
    %194 = arith.addf %157, %193 : vector<32x256xf32>
    %cst_58 = arith.constant 9.99999968E-21 : f32
    %195 = vector.broadcast %cst_58 : f32 to vector<32x256xf32>
    %196 = arith.maximumf %194, %195 : vector<32x256xf32>
    %197 = math.log %196 : vector<32x256xf32>
    %cst_59 = arith.constant dense<0.000000e+00> : vector<256xf32>
    %198 = vector.multi_reduction <add>, %197, %cst_59 [0] : vector<32x256xf32> to vector<256xf32>
    %199 = vector.shape_cast %198 : vector<256xf32> to vector<1x256xf32>
    %200 = vector.extract_strided_slice %18 {offsets = [192, 0], sizes = [32, 256], strides = [1, 1]} : vector<256x256xf32> to vector<32x256xf32>
    %201 = arith.addf %157, %200 : vector<32x256xf32>
    %cst_60 = arith.constant 9.99999968E-21 : f32
    %202 = vector.broadcast %cst_60 : f32 to vector<32x256xf32>
    %203 = arith.maximumf %201, %202 : vector<32x256xf32>
    %204 = math.log %203 : vector<32x256xf32>
    %cst_61 = arith.constant dense<0.000000e+00> : vector<256xf32>
    %205 = vector.multi_reduction <add>, %204, %cst_61 [0] : vector<32x256xf32> to vector<256xf32>
    %206 = vector.shape_cast %205 : vector<256xf32> to vector<1x256xf32>
    %207 = vector.extract_strided_slice %18 {offsets = [224, 0], sizes = [32, 256], strides = [1, 1]} : vector<256x256xf32> to vector<32x256xf32>
    %208 = arith.addf %157, %207 : vector<32x256xf32>
    %cst_62 = arith.constant 9.99999968E-21 : f32
    %209 = vector.broadcast %cst_62 : f32 to vector<32x256xf32>
    %210 = arith.maximumf %208, %209 : vector<32x256xf32>
    %211 = math.log %210 : vector<32x256xf32>
    %cst_63 = arith.constant dense<0.000000e+00> : vector<256xf32>
    %212 = vector.multi_reduction <add>, %211, %cst_63 [0] : vector<32x256xf32> to vector<256xf32>
    %213 = vector.shape_cast %212 : vector<256xf32> to vector<1x256xf32>
    %214 = tpu.concatenate %164, %171, %178, %185, %192, %199, %206, %213 in 0 : vector<1x256xf32>, vector<1x256xf32>, vector<1x256xf32>, vector<1x256xf32>, vector<1x256xf32>, vector<1x256xf32>, vector<1x256xf32>, vector<1x256xf32> -> vector<8x256xf32>
    %cst_64 = arith.constant dense<0xFF800000> : vector<256xf32>
    %215 = vector.multi_reduction <maximumf>, %214, %cst_64 [0] : vector<8x256xf32> to vector<256xf32>
    %216 = vector.shape_cast %215 : vector<256xf32> to vector<1x256xf32>
    %217 = vector.broadcast %216 : vector<1x256xf32> to vector<8x256xf32>
    %218 = arith.subf %214, %217 : vector<8x256xf32>
    %219 = math.exp %218 : vector<8x256xf32>
    %cst_65 = arith.constant dense<0.000000e+00> : vector<256xf32>
    %220 = vector.multi_reduction <add>, %219, %cst_65 [0] : vector<8x256xf32> to vector<256xf32>
    %221 = vector.shape_cast %220 : vector<256xf32> to vector<1x256xf32>
    %222 = math.log %221 : vector<1x256xf32>
    %223 = arith.addf %216, %222 : vector<1x256xf32>
    %cst_66 = arith.constant 2.07944155 : f32
    %224 = vector.broadcast %cst_66 : f32 to vector<1x256xf32>
    %225 = arith.subf %223, %224 : vector<1x256xf32>
    %226 = vector.extract_strided_slice %15 {offsets = [96, 0], sizes = [32, 256], strides = [1, 1]} : vector<256x256xf32> to vector<32x256xf32>
    %227 = vector.extract_strided_slice %18 {offsets = [0, 0], sizes = [32, 256], strides = [1, 1]} : vector<256x256xf32> to vector<32x256xf32>
    %228 = arith.addf %226, %227 : vector<32x256xf32>
    %cst_67 = arith.constant 9.99999968E-21 : f32
    %229 = vector.broadcast %cst_67 : f32 to vector<32x256xf32>
    %230 = arith.maximumf %228, %229 : vector<32x256xf32>
    %231 = math.log %230 : vector<32x256xf32>
    %cst_68 = arith.constant dense<0.000000e+00> : vector<256xf32>
    %232 = vector.multi_reduction <add>, %231, %cst_68 [0] : vector<32x256xf32> to vector<256xf32>
    %233 = vector.shape_cast %232 : vector<256xf32> to vector<1x256xf32>
    %234 = vector.extract_strided_slice %18 {offsets = [32, 0], sizes = [32, 256], strides = [1, 1]} : vector<256x256xf32> to vector<32x256xf32>
    %235 = arith.addf %226, %234 : vector<32x256xf32>
    %cst_69 = arith.constant 9.99999968E-21 : f32
    %236 = vector.broadcast %cst_69 : f32 to vector<32x256xf32>
    %237 = arith.maximumf %235, %236 : vector<32x256xf32>
    %238 = math.log %237 : vector<32x256xf32>
    %cst_70 = arith.constant dense<0.000000e+00> : vector<256xf32>
    %239 = vector.multi_reduction <add>, %238, %cst_70 [0] : vector<32x256xf32> to vector<256xf32>
    %240 = vector.shape_cast %239 : vector<256xf32> to vector<1x256xf32>
    %241 = vector.extract_strided_slice %18 {offsets = [64, 0], sizes = [32, 256], strides = [1, 1]} : vector<256x256xf32> to vector<32x256xf32>
    %242 = arith.addf %226, %241 : vector<32x256xf32>
    %cst_71 = arith.constant 9.99999968E-21 : f32
    %243 = vector.broadcast %cst_71 : f32 to vector<32x256xf32>
    %244 = arith.maximumf %242, %243 : vector<32x256xf32>
    %245 = math.log %244 : vector<32x256xf32>
    %cst_72 = arith.constant dense<0.000000e+00> : vector<256xf32>
    %246 = vector.multi_reduction <add>, %245, %cst_72 [0] : vector<32x256xf32> to vector<256xf32>
    %247 = vector.shape_cast %246 : vector<256xf32> to vector<1x256xf32>
    %248 = vector.extract_strided_slice %18 {offsets = [96, 0], sizes = [32, 256], strides = [1, 1]} : vector<256x256xf32> to vector<32x256xf32>
    %249 = arith.addf %226, %248 : vector<32x256xf32>
    %cst_73 = arith.constant 9.99999968E-21 : f32
    %250 = vector.broadcast %cst_73 : f32 to vector<32x256xf32>
    %251 = arith.maximumf %249, %250 : vector<32x256xf32>
    %252 = math.log %251 : vector<32x256xf32>
    %cst_74 = arith.constant dense<0.000000e+00> : vector<256xf32>
    %253 = vector.multi_reduction <add>, %252, %cst_74 [0] : vector<32x256xf32> to vector<256xf32>
    %254 = vector.shape_cast %253 : vector<256xf32> to vector<1x256xf32>
    %255 = vector.extract_strided_slice %18 {offsets = [128, 0], sizes = [32, 256], strides = [1, 1]} : vector<256x256xf32> to vector<32x256xf32>
    %256 = arith.addf %226, %255 : vector<32x256xf32>
    %cst_75 = arith.constant 9.99999968E-21 : f32
    %257 = vector.broadcast %cst_75 : f32 to vector<32x256xf32>
    %258 = arith.maximumf %256, %257 : vector<32x256xf32>
    %259 = math.log %258 : vector<32x256xf32>
    %cst_76 = arith.constant dense<0.000000e+00> : vector<256xf32>
    %260 = vector.multi_reduction <add>, %259, %cst_76 [0] : vector<32x256xf32> to vector<256xf32>
    %261 = vector.shape_cast %260 : vector<256xf32> to vector<1x256xf32>
    %262 = vector.extract_strided_slice %18 {offsets = [160, 0], sizes = [32, 256], strides = [1, 1]} : vector<256x256xf32> to vector<32x256xf32>
    %263 = arith.addf %226, %262 : vector<32x256xf32>
    %cst_77 = arith.constant 9.99999968E-21 : f32
    %264 = vector.broadcast %cst_77 : f32 to vector<32x256xf32>
    %265 = arith.maximumf %263, %264 : vector<32x256xf32>
    %266 = math.log %265 : vector<32x256xf32>
    %cst_78 = arith.constant dense<0.000000e+00> : vector<256xf32>
    %267 = vector.multi_reduction <add>, %266, %cst_78 [0] : vector<32x256xf32> to vector<256xf32>
    %268 = vector.shape_cast %267 : vector<256xf32> to vector<1x256xf32>
    %269 = vector.extract_strided_slice %18 {offsets = [192, 0], sizes = [32, 256], strides = [1, 1]} : vector<256x256xf32> to vector<32x256xf32>
    %270 = arith.addf %226, %269 : vector<32x256xf32>
    %cst_79 = arith.constant 9.99999968E-21 : f32
    %271 = vector.broadcast %cst_79 : f32 to vector<32x256xf32>
    %272 = arith.maximumf %270, %271 : vector<32x256xf32>
    %273 = math.log %272 : vector<32x256xf32>
    %cst_80 = arith.constant dense<0.000000e+00> : vector<256xf32>
    %274 = vector.multi_reduction <add>, %273, %cst_80 [0] : vector<32x256xf32> to vector<256xf32>
    %275 = vector.shape_cast %274 : vector<256xf32> to vector<1x256xf32>
    %276 = vector.extract_strided_slice %18 {offsets = [224, 0], sizes = [32, 256], strides = [1, 1]} : vector<256x256xf32> to vector<32x256xf32>
    %277 = arith.addf %226, %276 : vector<32x256xf32>
    %cst_81 = arith.constant 9.99999968E-21 : f32
    %278 = vector.broadcast %cst_81 : f32 to vector<32x256xf32>
    %279 = arith.maximumf %277, %278 : vector<32x256xf32>
    %280 = math.log %279 : vector<32x256xf32>
    %cst_82 = arith.constant dense<0.000000e+00> : vector<256xf32>
    %281 = vector.multi_reduction <add>, %280, %cst_82 [0] : vector<32x256xf32> to vector<256xf32>
    %282 = vector.shape_cast %281 : vector<256xf32> to vector<1x256xf32>
    %283 = tpu.concatenate %233, %240, %247, %254, %261, %268, %275, %282 in 0 : vector<1x256xf32>, vector<1x256xf32>, vector<1x256xf32>, vector<1x256xf32>, vector<1x256xf32>, vector<1x256xf32>, vector<1x256xf32>, vector<1x256xf32> -> vector<8x256xf32>
    %cst_83 = arith.constant dense<0xFF800000> : vector<256xf32>
    %284 = vector.multi_reduction <maximumf>, %283, %cst_83 [0] : vector<8x256xf32> to vector<256xf32>
    %285 = vector.shape_cast %284 : vector<256xf32> to vector<1x256xf32>
    %286 = vector.broadcast %285 : vector<1x256xf32> to vector<8x256xf32>
    %287 = arith.subf %283, %286 : vector<8x256xf32>
    %288 = math.exp %287 : vector<8x256xf32>
    %cst_84 = arith.constant dense<0.000000e+00> : vector<256xf32>
    %289 = vector.multi_reduction <add>, %288, %cst_84 [0] : vector<8x256xf32> to vector<256xf32>
    %290 = vector.shape_cast %289 : vector<256xf32> to vector<1x256xf32>
    %291 = math.log %290 : vector<1x256xf32>
    %292 = arith.addf %285, %291 : vector<1x256xf32>
    %cst_85 = arith.constant 2.07944155 : f32
    %293 = vector.broadcast %cst_85 : f32 to vector<1x256xf32>
    %294 = arith.subf %292, %293 : vector<1x256xf32>
    %295 = vector.extract_strided_slice %15 {offsets = [128, 0], sizes = [32, 256], strides = [1, 1]} : vector<256x256xf32> to vector<32x256xf32>
    %296 = vector.extract_strided_slice %18 {offsets = [0, 0], sizes = [32, 256], strides = [1, 1]} : vector<256x256xf32> to vector<32x256xf32>
    %297 = arith.addf %295, %296 : vector<32x256xf32>
    %cst_86 = arith.constant 9.99999968E-21 : f32
    %298 = vector.broadcast %cst_86 : f32 to vector<32x256xf32>
    %299 = arith.maximumf %297, %298 : vector<32x256xf32>
    %300 = math.log %299 : vector<32x256xf32>
    %cst_87 = arith.constant dense<0.000000e+00> : vector<256xf32>
    %301 = vector.multi_reduction <add>, %300, %cst_87 [0] : vector<32x256xf32> to vector<256xf32>
    %302 = vector.shape_cast %301 : vector<256xf32> to vector<1x256xf32>
    %303 = vector.extract_strided_slice %18 {offsets = [32, 0], sizes = [32, 256], strides = [1, 1]} : vector<256x256xf32> to vector<32x256xf32>
    %304 = arith.addf %295, %303 : vector<32x256xf32>
    %cst_88 = arith.constant 9.99999968E-21 : f32
    %305 = vector.broadcast %cst_88 : f32 to vector<32x256xf32>
    %306 = arith.maximumf %304, %305 : vector<32x256xf32>
    %307 = math.log %306 : vector<32x256xf32>
    %cst_89 = arith.constant dense<0.000000e+00> : vector<256xf32>
    %308 = vector.multi_reduction <add>, %307, %cst_89 [0] : vector<32x256xf32> to vector<256xf32>
    %309 = vector.shape_cast %308 : vector<256xf32> to vector<1x256xf32>
    %310 = vector.extract_strided_slice %18 {offsets = [64, 0], sizes = [32, 256], strides = [1, 1]} : vector<256x256xf32> to vector<32x256xf32>
    %311 = arith.addf %295, %310 : vector<32x256xf32>
    %cst_90 = arith.constant 9.99999968E-21 : f32
    %312 = vector.broadcast %cst_90 : f32 to vector<32x256xf32>
    %313 = arith.maximumf %311, %312 : vector<32x256xf32>
    %314 = math.log %313 : vector<32x256xf32>
    %cst_91 = arith.constant dense<0.000000e+00> : vector<256xf32>
    %315 = vector.multi_reduction <add>, %314, %cst_91 [0] : vector<32x256xf32> to vector<256xf32>
    %316 = vector.shape_cast %315 : vector<256xf32> to vector<1x256xf32>
    %317 = vector.extract_strided_slice %18 {offsets = [96, 0], sizes = [32, 256], strides = [1, 1]} : vector<256x256xf32> to vector<32x256xf32>
    %318 = arith.addf %295, %317 : vector<32x256xf32>
    %cst_92 = arith.constant 9.99999968E-21 : f32
    %319 = vector.broadcast %cst_92 : f32 to vector<32x256xf32>
    %320 = arith.maximumf %318, %319 : vector<32x256xf32>
    %321 = math.log %320 : vector<32x256xf32>
    %cst_93 = arith.constant dense<0.000000e+00> : vector<256xf32>
    %322 = vector.multi_reduction <add>, %321, %cst_93 [0] : vector<32x256xf32> to vector<256xf32>
    %323 = vector.shape_cast %322 : vector<256xf32> to vector<1x256xf32>
    %324 = vector.extract_strided_slice %18 {offsets = [128, 0], sizes = [32, 256], strides = [1, 1]} : vector<256x256xf32> to vector<32x256xf32>
    %325 = arith.addf %295, %324 : vector<32x256xf32>
    %cst_94 = arith.constant 9.99999968E-21 : f32
    %326 = vector.broadcast %cst_94 : f32 to vector<32x256xf32>
    %327 = arith.maximumf %325, %326 : vector<32x256xf32>
    %328 = math.log %327 : vector<32x256xf32>
    %cst_95 = arith.constant dense<0.000000e+00> : vector<256xf32>
    %329 = vector.multi_reduction <add>, %328, %cst_95 [0] : vector<32x256xf32> to vector<256xf32>
    %330 = vector.shape_cast %329 : vector<256xf32> to vector<1x256xf32>
    %331 = vector.extract_strided_slice %18 {offsets = [160, 0], sizes = [32, 256], strides = [1, 1]} : vector<256x256xf32> to vector<32x256xf32>
    %332 = arith.addf %295, %331 : vector<32x256xf32>
    %cst_96 = arith.constant 9.99999968E-21 : f32
    %333 = vector.broadcast %cst_96 : f32 to vector<32x256xf32>
    %334 = arith.maximumf %332, %333 : vector<32x256xf32>
    %335 = math.log %334 : vector<32x256xf32>
    %cst_97 = arith.constant dense<0.000000e+00> : vector<256xf32>
    %336 = vector.multi_reduction <add>, %335, %cst_97 [0] : vector<32x256xf32> to vector<256xf32>
    %337 = vector.shape_cast %336 : vector<256xf32> to vector<1x256xf32>
    %338 = vector.extract_strided_slice %18 {offsets = [192, 0], sizes = [32, 256], strides = [1, 1]} : vector<256x256xf32> to vector<32x256xf32>
    %339 = arith.addf %295, %338 : vector<32x256xf32>
    %cst_98 = arith.constant 9.99999968E-21 : f32
    %340 = vector.broadcast %cst_98 : f32 to vector<32x256xf32>
    %341 = arith.maximumf %339, %340 : vector<32x256xf32>
    %342 = math.log %341 : vector<32x256xf32>
    %cst_99 = arith.constant dense<0.000000e+00> : vector<256xf32>
    %343 = vector.multi_reduction <add>, %342, %cst_99 [0] : vector<32x256xf32> to vector<256xf32>
    %344 = vector.shape_cast %343 : vector<256xf32> to vector<1x256xf32>
    %345 = vector.extract_strided_slice %18 {offsets = [224, 0], sizes = [32, 256], strides = [1, 1]} : vector<256x256xf32> to vector<32x256xf32>
    %346 = arith.addf %295, %345 : vector<32x256xf32>
    %cst_100 = arith.constant 9.99999968E-21 : f32
    %347 = vector.broadcast %cst_100 : f32 to vector<32x256xf32>
    %348 = arith.maximumf %346, %347 : vector<32x256xf32>
    %349 = math.log %348 : vector<32x256xf32>
    %cst_101 = arith.constant dense<0.000000e+00> : vector<256xf32>
    %350 = vector.multi_reduction <add>, %349, %cst_101 [0] : vector<32x256xf32> to vector<256xf32>
    %351 = vector.shape_cast %350 : vector<256xf32> to vector<1x256xf32>
    %352 = tpu.concatenate %302, %309, %316, %323, %330, %337, %344, %351 in 0 : vector<1x256xf32>, vector<1x256xf32>, vector<1x256xf32>, vector<1x256xf32>, vector<1x256xf32>, vector<1x256xf32>, vector<1x256xf32>, vector<1x256xf32> -> vector<8x256xf32>
    %cst_102 = arith.constant dense<0xFF800000> : vector<256xf32>
    %353 = vector.multi_reduction <maximumf>, %352, %cst_102 [0] : vector<8x256xf32> to vector<256xf32>
    %354 = vector.shape_cast %353 : vector<256xf32> to vector<1x256xf32>
    %355 = vector.broadcast %354 : vector<1x256xf32> to vector<8x256xf32>
    %356 = arith.subf %352, %355 : vector<8x256xf32>
    %357 = math.exp %356 : vector<8x256xf32>
    %cst_103 = arith.constant dense<0.000000e+00> : vector<256xf32>
    %358 = vector.multi_reduction <add>, %357, %cst_103 [0] : vector<8x256xf32> to vector<256xf32>
    %359 = vector.shape_cast %358 : vector<256xf32> to vector<1x256xf32>
    %360 = math.log %359 : vector<1x256xf32>
    %361 = arith.addf %354, %360 : vector<1x256xf32>
    %cst_104 = arith.constant 2.07944155 : f32
    %362 = vector.broadcast %cst_104 : f32 to vector<1x256xf32>
    %363 = arith.subf %361, %362 : vector<1x256xf32>
    %364 = vector.extract_strided_slice %15 {offsets = [160, 0], sizes = [32, 256], strides = [1, 1]} : vector<256x256xf32> to vector<32x256xf32>
    %365 = vector.extract_strided_slice %18 {offsets = [0, 0], sizes = [32, 256], strides = [1, 1]} : vector<256x256xf32> to vector<32x256xf32>
    %366 = arith.addf %364, %365 : vector<32x256xf32>
    %cst_105 = arith.constant 9.99999968E-21 : f32
    %367 = vector.broadcast %cst_105 : f32 to vector<32x256xf32>
    %368 = arith.maximumf %366, %367 : vector<32x256xf32>
    %369 = math.log %368 : vector<32x256xf32>
    %cst_106 = arith.constant dense<0.000000e+00> : vector<256xf32>
    %370 = vector.multi_reduction <add>, %369, %cst_106 [0] : vector<32x256xf32> to vector<256xf32>
    %371 = vector.shape_cast %370 : vector<256xf32> to vector<1x256xf32>
    %372 = vector.extract_strided_slice %18 {offsets = [32, 0], sizes = [32, 256], strides = [1, 1]} : vector<256x256xf32> to vector<32x256xf32>
    %373 = arith.addf %364, %372 : vector<32x256xf32>
    %cst_107 = arith.constant 9.99999968E-21 : f32
    %374 = vector.broadcast %cst_107 : f32 to vector<32x256xf32>
    %375 = arith.maximumf %373, %374 : vector<32x256xf32>
    %376 = math.log %375 : vector<32x256xf32>
    %cst_108 = arith.constant dense<0.000000e+00> : vector<256xf32>
    %377 = vector.multi_reduction <add>, %376, %cst_108 [0] : vector<32x256xf32> to vector<256xf32>
    %378 = vector.shape_cast %377 : vector<256xf32> to vector<1x256xf32>
    %379 = vector.extract_strided_slice %18 {offsets = [64, 0], sizes = [32, 256], strides = [1, 1]} : vector<256x256xf32> to vector<32x256xf32>
    %380 = arith.addf %364, %379 : vector<32x256xf32>
    %cst_109 = arith.constant 9.99999968E-21 : f32
    %381 = vector.broadcast %cst_109 : f32 to vector<32x256xf32>
    %382 = arith.maximumf %380, %381 : vector<32x256xf32>
    %383 = math.log %382 : vector<32x256xf32>
    %cst_110 = arith.constant dense<0.000000e+00> : vector<256xf32>
    %384 = vector.multi_reduction <add>, %383, %cst_110 [0] : vector<32x256xf32> to vector<256xf32>
    %385 = vector.shape_cast %384 : vector<256xf32> to vector<1x256xf32>
    %386 = vector.extract_strided_slice %18 {offsets = [96, 0], sizes = [32, 256], strides = [1, 1]} : vector<256x256xf32> to vector<32x256xf32>
    %387 = arith.addf %364, %386 : vector<32x256xf32>
    %cst_111 = arith.constant 9.99999968E-21 : f32
    %388 = vector.broadcast %cst_111 : f32 to vector<32x256xf32>
    %389 = arith.maximumf %387, %388 : vector<32x256xf32>
    %390 = math.log %389 : vector<32x256xf32>
    %cst_112 = arith.constant dense<0.000000e+00> : vector<256xf32>
    %391 = vector.multi_reduction <add>, %390, %cst_112 [0] : vector<32x256xf32> to vector<256xf32>
    %392 = vector.shape_cast %391 : vector<256xf32> to vector<1x256xf32>
    %393 = vector.extract_strided_slice %18 {offsets = [128, 0], sizes = [32, 256], strides = [1, 1]} : vector<256x256xf32> to vector<32x256xf32>
    %394 = arith.addf %364, %393 : vector<32x256xf32>
    %cst_113 = arith.constant 9.99999968E-21 : f32
    %395 = vector.broadcast %cst_113 : f32 to vector<32x256xf32>
    %396 = arith.maximumf %394, %395 : vector<32x256xf32>
    %397 = math.log %396 : vector<32x256xf32>
    %cst_114 = arith.constant dense<0.000000e+00> : vector<256xf32>
    %398 = vector.multi_reduction <add>, %397, %cst_114 [0] : vector<32x256xf32> to vector<256xf32>
    %399 = vector.shape_cast %398 : vector<256xf32> to vector<1x256xf32>
    %400 = vector.extract_strided_slice %18 {offsets = [160, 0], sizes = [32, 256], strides = [1, 1]} : vector<256x256xf32> to vector<32x256xf32>
    %401 = arith.addf %364, %400 : vector<32x256xf32>
    %cst_115 = arith.constant 9.99999968E-21 : f32
    %402 = vector.broadcast %cst_115 : f32 to vector<32x256xf32>
    %403 = arith.maximumf %401, %402 : vector<32x256xf32>
    %404 = math.log %403 : vector<32x256xf32>
    %cst_116 = arith.constant dense<0.000000e+00> : vector<256xf32>
    %405 = vector.multi_reduction <add>, %404, %cst_116 [0] : vector<32x256xf32> to vector<256xf32>
    %406 = vector.shape_cast %405 : vector<256xf32> to vector<1x256xf32>
    %407 = vector.extract_strided_slice %18 {offsets = [192, 0], sizes = [32, 256], strides = [1, 1]} : vector<256x256xf32> to vector<32x256xf32>
    %408 = arith.addf %364, %407 : vector<32x256xf32>
    %cst_117 = arith.constant 9.99999968E-21 : f32
    %409 = vector.broadcast %cst_117 : f32 to vector<32x256xf32>
    %410 = arith.maximumf %408, %409 : vector<32x256xf32>
    %411 = math.log %410 : vector<32x256xf32>
    %cst_118 = arith.constant dense<0.000000e+00> : vector<256xf32>
    %412 = vector.multi_reduction <add>, %411, %cst_118 [0] : vector<32x256xf32> to vector<256xf32>
    %413 = vector.shape_cast %412 : vector<256xf32> to vector<1x256xf32>
    %414 = vector.extract_strided_slice %18 {offsets = [224, 0], sizes = [32, 256], strides = [1, 1]} : vector<256x256xf32> to vector<32x256xf32>
    %415 = arith.addf %364, %414 : vector<32x256xf32>
    %cst_119 = arith.constant 9.99999968E-21 : f32
    %416 = vector.broadcast %cst_119 : f32 to vector<32x256xf32>
    %417 = arith.maximumf %415, %416 : vector<32x256xf32>
    %418 = math.log %417 : vector<32x256xf32>
    %cst_120 = arith.constant dense<0.000000e+00> : vector<256xf32>
    %419 = vector.multi_reduction <add>, %418, %cst_120 [0] : vector<32x256xf32> to vector<256xf32>
    %420 = vector.shape_cast %419 : vector<256xf32> to vector<1x256xf32>
    %421 = tpu.concatenate %371, %378, %385, %392, %399, %406, %413, %420 in 0 : vector<1x256xf32>, vector<1x256xf32>, vector<1x256xf32>, vector<1x256xf32>, vector<1x256xf32>, vector<1x256xf32>, vector<1x256xf32>, vector<1x256xf32> -> vector<8x256xf32>
    %cst_121 = arith.constant dense<0xFF800000> : vector<256xf32>
    %422 = vector.multi_reduction <maximumf>, %421, %cst_121 [0] : vector<8x256xf32> to vector<256xf32>
    %423 = vector.shape_cast %422 : vector<256xf32> to vector<1x256xf32>
    %424 = vector.broadcast %423 : vector<1x256xf32> to vector<8x256xf32>
    %425 = arith.subf %421, %424 : vector<8x256xf32>
    %426 = math.exp %425 : vector<8x256xf32>
    %cst_122 = arith.constant dense<0.000000e+00> : vector<256xf32>
    %427 = vector.multi_reduction <add>, %426, %cst_122 [0] : vector<8x256xf32> to vector<256xf32>
    %428 = vector.shape_cast %427 : vector<256xf32> to vector<1x256xf32>
    %429 = math.log %428 : vector<1x256xf32>
    %430 = arith.addf %423, %429 : vector<1x256xf32>
    %cst_123 = arith.constant 2.07944155 : f32
    %431 = vector.broadcast %cst_123 : f32 to vector<1x256xf32>
    %432 = arith.subf %430, %431 : vector<1x256xf32>
    %433 = vector.extract_strided_slice %15 {offsets = [192, 0], sizes = [32, 256], strides = [1, 1]} : vector<256x256xf32> to vector<32x256xf32>
    %434 = vector.extract_strided_slice %18 {offsets = [0, 0], sizes = [32, 256], strides = [1, 1]} : vector<256x256xf32> to vector<32x256xf32>
    %435 = arith.addf %433, %434 : vector<32x256xf32>
    %cst_124 = arith.constant 9.99999968E-21 : f32
    %436 = vector.broadcast %cst_124 : f32 to vector<32x256xf32>
    %437 = arith.maximumf %435, %436 : vector<32x256xf32>
    %438 = math.log %437 : vector<32x256xf32>
    %cst_125 = arith.constant dense<0.000000e+00> : vector<256xf32>
    %439 = vector.multi_reduction <add>, %438, %cst_125 [0] : vector<32x256xf32> to vector<256xf32>
    %440 = vector.shape_cast %439 : vector<256xf32> to vector<1x256xf32>
    %441 = vector.extract_strided_slice %18 {offsets = [32, 0], sizes = [32, 256], strides = [1, 1]} : vector<256x256xf32> to vector<32x256xf32>
    %442 = arith.addf %433, %441 : vector<32x256xf32>
    %cst_126 = arith.constant 9.99999968E-21 : f32
    %443 = vector.broadcast %cst_126 : f32 to vector<32x256xf32>
    %444 = arith.maximumf %442, %443 : vector<32x256xf32>
    %445 = math.log %444 : vector<32x256xf32>
    %cst_127 = arith.constant dense<0.000000e+00> : vector<256xf32>
    %446 = vector.multi_reduction <add>, %445, %cst_127 [0] : vector<32x256xf32> to vector<256xf32>
    %447 = vector.shape_cast %446 : vector<256xf32> to vector<1x256xf32>
    %448 = vector.extract_strided_slice %18 {offsets = [64, 0], sizes = [32, 256], strides = [1, 1]} : vector<256x256xf32> to vector<32x256xf32>
    %449 = arith.addf %433, %448 : vector<32x256xf32>
    %cst_128 = arith.constant 9.99999968E-21 : f32
    %450 = vector.broadcast %cst_128 : f32 to vector<32x256xf32>
    %451 = arith.maximumf %449, %450 : vector<32x256xf32>
    %452 = math.log %451 : vector<32x256xf32>
    %cst_129 = arith.constant dense<0.000000e+00> : vector<256xf32>
    %453 = vector.multi_reduction <add>, %452, %cst_129 [0] : vector<32x256xf32> to vector<256xf32>
    %454 = vector.shape_cast %453 : vector<256xf32> to vector<1x256xf32>
    %455 = vector.extract_strided_slice %18 {offsets = [96, 0], sizes = [32, 256], strides = [1, 1]} : vector<256x256xf32> to vector<32x256xf32>
    %456 = arith.addf %433, %455 : vector<32x256xf32>
    %cst_130 = arith.constant 9.99999968E-21 : f32
    %457 = vector.broadcast %cst_130 : f32 to vector<32x256xf32>
    %458 = arith.maximumf %456, %457 : vector<32x256xf32>
    %459 = math.log %458 : vector<32x256xf32>
    %cst_131 = arith.constant dense<0.000000e+00> : vector<256xf32>
    %460 = vector.multi_reduction <add>, %459, %cst_131 [0] : vector<32x256xf32> to vector<256xf32>
    %461 = vector.shape_cast %460 : vector<256xf32> to vector<1x256xf32>
    %462 = vector.extract_strided_slice %18 {offsets = [128, 0], sizes = [32, 256], strides = [1, 1]} : vector<256x256xf32> to vector<32x256xf32>
    %463 = arith.addf %433, %462 : vector<32x256xf32>
    %cst_132 = arith.constant 9.99999968E-21 : f32
    %464 = vector.broadcast %cst_132 : f32 to vector<32x256xf32>
    %465 = arith.maximumf %463, %464 : vector<32x256xf32>
    %466 = math.log %465 : vector<32x256xf32>
    %cst_133 = arith.constant dense<0.000000e+00> : vector<256xf32>
    %467 = vector.multi_reduction <add>, %466, %cst_133 [0] : vector<32x256xf32> to vector<256xf32>
    %468 = vector.shape_cast %467 : vector<256xf32> to vector<1x256xf32>
    %469 = vector.extract_strided_slice %18 {offsets = [160, 0], sizes = [32, 256], strides = [1, 1]} : vector<256x256xf32> to vector<32x256xf32>
    %470 = arith.addf %433, %469 : vector<32x256xf32>
    %cst_134 = arith.constant 9.99999968E-21 : f32
    %471 = vector.broadcast %cst_134 : f32 to vector<32x256xf32>
    %472 = arith.maximumf %470, %471 : vector<32x256xf32>
    %473 = math.log %472 : vector<32x256xf32>
    %cst_135 = arith.constant dense<0.000000e+00> : vector<256xf32>
    %474 = vector.multi_reduction <add>, %473, %cst_135 [0] : vector<32x256xf32> to vector<256xf32>
    %475 = vector.shape_cast %474 : vector<256xf32> to vector<1x256xf32>
    %476 = vector.extract_strided_slice %18 {offsets = [192, 0], sizes = [32, 256], strides = [1, 1]} : vector<256x256xf32> to vector<32x256xf32>
    %477 = arith.addf %433, %476 : vector<32x256xf32>
    %cst_136 = arith.constant 9.99999968E-21 : f32
    %478 = vector.broadcast %cst_136 : f32 to vector<32x256xf32>
    %479 = arith.maximumf %477, %478 : vector<32x256xf32>
    %480 = math.log %479 : vector<32x256xf32>
    %cst_137 = arith.constant dense<0.000000e+00> : vector<256xf32>
    %481 = vector.multi_reduction <add>, %480, %cst_137 [0] : vector<32x256xf32> to vector<256xf32>
    %482 = vector.shape_cast %481 : vector<256xf32> to vector<1x256xf32>
    %483 = vector.extract_strided_slice %18 {offsets = [224, 0], sizes = [32, 256], strides = [1, 1]} : vector<256x256xf32> to vector<32x256xf32>
    %484 = arith.addf %433, %483 : vector<32x256xf32>
    %cst_138 = arith.constant 9.99999968E-21 : f32
    %485 = vector.broadcast %cst_138 : f32 to vector<32x256xf32>
    %486 = arith.maximumf %484, %485 : vector<32x256xf32>
    %487 = math.log %486 : vector<32x256xf32>
    %cst_139 = arith.constant dense<0.000000e+00> : vector<256xf32>
    %488 = vector.multi_reduction <add>, %487, %cst_139 [0] : vector<32x256xf32> to vector<256xf32>
    %489 = vector.shape_cast %488 : vector<256xf32> to vector<1x256xf32>
    %490 = tpu.concatenate %440, %447, %454, %461, %468, %475, %482, %489 in 0 : vector<1x256xf32>, vector<1x256xf32>, vector<1x256xf32>, vector<1x256xf32>, vector<1x256xf32>, vector<1x256xf32>, vector<1x256xf32>, vector<1x256xf32> -> vector<8x256xf32>
    %cst_140 = arith.constant dense<0xFF800000> : vector<256xf32>
    %491 = vector.multi_reduction <maximumf>, %490, %cst_140 [0] : vector<8x256xf32> to vector<256xf32>
    %492 = vector.shape_cast %491 : vector<256xf32> to vector<1x256xf32>
    %493 = vector.broadcast %492 : vector<1x256xf32> to vector<8x256xf32>
    %494 = arith.subf %490, %493 : vector<8x256xf32>
    %495 = math.exp %494 : vector<8x256xf32>
    %cst_141 = arith.constant dense<0.000000e+00> : vector<256xf32>
    %496 = vector.multi_reduction <add>, %495, %cst_141 [0] : vector<8x256xf32> to vector<256xf32>
    %497 = vector.shape_cast %496 : vector<256xf32> to vector<1x256xf32>
    %498 = math.log %497 : vector<1x256xf32>
    %499 = arith.addf %492, %498 : vector<1x256xf32>
    %cst_142 = arith.constant 2.07944155 : f32
    %500 = vector.broadcast %cst_142 : f32 to vector<1x256xf32>
    %501 = arith.subf %499, %500 : vector<1x256xf32>
    %502 = vector.extract_strided_slice %15 {offsets = [224, 0], sizes = [32, 256], strides = [1, 1]} : vector<256x256xf32> to vector<32x256xf32>
    %503 = vector.extract_strided_slice %18 {offsets = [0, 0], sizes = [32, 256], strides = [1, 1]} : vector<256x256xf32> to vector<32x256xf32>
    %504 = arith.addf %502, %503 : vector<32x256xf32>
    %cst_143 = arith.constant 9.99999968E-21 : f32
    %505 = vector.broadcast %cst_143 : f32 to vector<32x256xf32>
    %506 = arith.maximumf %504, %505 : vector<32x256xf32>
    %507 = math.log %506 : vector<32x256xf32>
    %cst_144 = arith.constant dense<0.000000e+00> : vector<256xf32>
    %508 = vector.multi_reduction <add>, %507, %cst_144 [0] : vector<32x256xf32> to vector<256xf32>
    %509 = vector.shape_cast %508 : vector<256xf32> to vector<1x256xf32>
    %510 = vector.extract_strided_slice %18 {offsets = [32, 0], sizes = [32, 256], strides = [1, 1]} : vector<256x256xf32> to vector<32x256xf32>
    %511 = arith.addf %502, %510 : vector<32x256xf32>
    %cst_145 = arith.constant 9.99999968E-21 : f32
    %512 = vector.broadcast %cst_145 : f32 to vector<32x256xf32>
    %513 = arith.maximumf %511, %512 : vector<32x256xf32>
    %514 = math.log %513 : vector<32x256xf32>
    %cst_146 = arith.constant dense<0.000000e+00> : vector<256xf32>
    %515 = vector.multi_reduction <add>, %514, %cst_146 [0] : vector<32x256xf32> to vector<256xf32>
    %516 = vector.shape_cast %515 : vector<256xf32> to vector<1x256xf32>
    %517 = vector.extract_strided_slice %18 {offsets = [64, 0], sizes = [32, 256], strides = [1, 1]} : vector<256x256xf32> to vector<32x256xf32>
    %518 = arith.addf %502, %517 : vector<32x256xf32>
    %cst_147 = arith.constant 9.99999968E-21 : f32
    %519 = vector.broadcast %cst_147 : f32 to vector<32x256xf32>
    %520 = arith.maximumf %518, %519 : vector<32x256xf32>
    %521 = math.log %520 : vector<32x256xf32>
    %cst_148 = arith.constant dense<0.000000e+00> : vector<256xf32>
    %522 = vector.multi_reduction <add>, %521, %cst_148 [0] : vector<32x256xf32> to vector<256xf32>
    %523 = vector.shape_cast %522 : vector<256xf32> to vector<1x256xf32>
    %524 = vector.extract_strided_slice %18 {offsets = [96, 0], sizes = [32, 256], strides = [1, 1]} : vector<256x256xf32> to vector<32x256xf32>
    %525 = arith.addf %502, %524 : vector<32x256xf32>
    %cst_149 = arith.constant 9.99999968E-21 : f32
    %526 = vector.broadcast %cst_149 : f32 to vector<32x256xf32>
    %527 = arith.maximumf %525, %526 : vector<32x256xf32>
    %528 = math.log %527 : vector<32x256xf32>
    %cst_150 = arith.constant dense<0.000000e+00> : vector<256xf32>
    %529 = vector.multi_reduction <add>, %528, %cst_150 [0] : vector<32x256xf32> to vector<256xf32>
    %530 = vector.shape_cast %529 : vector<256xf32> to vector<1x256xf32>
    %531 = vector.extract_strided_slice %18 {offsets = [128, 0], sizes = [32, 256], strides = [1, 1]} : vector<256x256xf32> to vector<32x256xf32>
    %532 = arith.addf %502, %531 : vector<32x256xf32>
    %cst_151 = arith.constant 9.99999968E-21 : f32
    %533 = vector.broadcast %cst_151 : f32 to vector<32x256xf32>
    %534 = arith.maximumf %532, %533 : vector<32x256xf32>
    %535 = math.log %534 : vector<32x256xf32>
    %cst_152 = arith.constant dense<0.000000e+00> : vector<256xf32>
    %536 = vector.multi_reduction <add>, %535, %cst_152 [0] : vector<32x256xf32> to vector<256xf32>
    %537 = vector.shape_cast %536 : vector<256xf32> to vector<1x256xf32>
    %538 = vector.extract_strided_slice %18 {offsets = [160, 0], sizes = [32, 256], strides = [1, 1]} : vector<256x256xf32> to vector<32x256xf32>
    %539 = arith.addf %502, %538 : vector<32x256xf32>
    %cst_153 = arith.constant 9.99999968E-21 : f32
    %540 = vector.broadcast %cst_153 : f32 to vector<32x256xf32>
    %541 = arith.maximumf %539, %540 : vector<32x256xf32>
    %542 = math.log %541 : vector<32x256xf32>
    %cst_154 = arith.constant dense<0.000000e+00> : vector<256xf32>
    %543 = vector.multi_reduction <add>, %542, %cst_154 [0] : vector<32x256xf32> to vector<256xf32>
    %544 = vector.shape_cast %543 : vector<256xf32> to vector<1x256xf32>
    %545 = vector.extract_strided_slice %18 {offsets = [192, 0], sizes = [32, 256], strides = [1, 1]} : vector<256x256xf32> to vector<32x256xf32>
    %546 = arith.addf %502, %545 : vector<32x256xf32>
    %cst_155 = arith.constant 9.99999968E-21 : f32
    %547 = vector.broadcast %cst_155 : f32 to vector<32x256xf32>
    %548 = arith.maximumf %546, %547 : vector<32x256xf32>
    %549 = math.log %548 : vector<32x256xf32>
    %cst_156 = arith.constant dense<0.000000e+00> : vector<256xf32>
    %550 = vector.multi_reduction <add>, %549, %cst_156 [0] : vector<32x256xf32> to vector<256xf32>
    %551 = vector.shape_cast %550 : vector<256xf32> to vector<1x256xf32>
    %552 = vector.extract_strided_slice %18 {offsets = [224, 0], sizes = [32, 256], strides = [1, 1]} : vector<256x256xf32> to vector<32x256xf32>
    %553 = arith.addf %502, %552 : vector<32x256xf32>
    %cst_157 = arith.constant 9.99999968E-21 : f32
    %554 = vector.broadcast %cst_157 : f32 to vector<32x256xf32>
    %555 = arith.maximumf %553, %554 : vector<32x256xf32>
    %556 = math.log %555 : vector<32x256xf32>
    %cst_158 = arith.constant dense<0.000000e+00> : vector<256xf32>
    %557 = vector.multi_reduction <add>, %556, %cst_158 [0] : vector<32x256xf32> to vector<256xf32>
    %558 = vector.shape_cast %557 : vector<256xf32> to vector<1x256xf32>
    %559 = tpu.concatenate %509, %516, %523, %530, %537, %544, %551, %558 in 0 : vector<1x256xf32>, vector<1x256xf32>, vector<1x256xf32>, vector<1x256xf32>, vector<1x256xf32>, vector<1x256xf32>, vector<1x256xf32>, vector<1x256xf32> -> vector<8x256xf32>
    %cst_159 = arith.constant dense<0xFF800000> : vector<256xf32>
    %560 = vector.multi_reduction <maximumf>, %559, %cst_159 [0] : vector<8x256xf32> to vector<256xf32>
    %561 = vector.shape_cast %560 : vector<256xf32> to vector<1x256xf32>
    %562 = vector.broadcast %561 : vector<1x256xf32> to vector<8x256xf32>
    %563 = arith.subf %559, %562 : vector<8x256xf32>
    %564 = math.exp %563 : vector<8x256xf32>
    %cst_160 = arith.constant dense<0.000000e+00> : vector<256xf32>
    %565 = vector.multi_reduction <add>, %564, %cst_160 [0] : vector<8x256xf32> to vector<256xf32>
    %566 = vector.shape_cast %565 : vector<256xf32> to vector<1x256xf32>
    %567 = math.log %566 : vector<1x256xf32>
    %568 = arith.addf %561, %567 : vector<1x256xf32>
    %cst_161 = arith.constant 2.07944155 : f32
    %569 = vector.broadcast %cst_161 : f32 to vector<1x256xf32>
    %570 = arith.subf %568, %569 : vector<1x256xf32>
    %571 = tpu.concatenate %87, %156, %225, %294, %363, %432, %501, %570 in 0 : vector<1x256xf32>, vector<1x256xf32>, vector<1x256xf32>, vector<1x256xf32>, vector<1x256xf32>, vector<1x256xf32>, vector<1x256xf32>, vector<1x256xf32> -> vector<8x256xf32>
    %c0_162 = arith.constant 0 : index
    %c0_163 = arith.constant 0 : index
    %572 = vector.load %arg7[%c0_162, %c0_163] : memref<8x256xf32, #tpu.memory_space<vmem>>, vector<8x256xf32>
    tpu.vector_store %arg7[%c0_162, %c0_163], %571 {strides = array<i32>} : memref<8x256xf32, #tpu.memory_space<vmem>>, vector<8x256xf32>,
    return
  }
  func.func @transform_0(%arg0: i32) -> (i32, i32) {
    %c0_i32 = arith.constant 0 : i32
    %c0_i32_0 = arith.constant 0 : i32
    return %c0_i32, %arg0 : i32, i32
  }
  func.func @transform_1(%arg0: i32) -> (i32, i32) {
    %c0_i32 = arith.constant 0 : i32
    %c0_i32_0 = arith.constant 0 : i32
    %c0_i32_1 = arith.constant 0 : i32
    return %c0_i32, %c0_i32_0 : i32, i32
  }
  func.func @transform_2(%arg0: i32) -> (i32, i32) {
    %c0_i32 = arith.constant 0 : i32
    %c0_i32_0 = arith.constant 0 : i32
    %c0_i32_1 = arith.constant 0 : i32
    return %c0_i32, %c0_i32_0 : i32, i32
  }
  func.func @transform_3(%arg0: i32) -> (i32, i32) {
    %c0_i32 = arith.constant 0 : i32
    %c0_i32_0 = arith.constant 0 : i32
    %c0_i32_1 = arith.constant 0 : i32
    return %c0_i32, %c0_i32_0 : i32, i32
  }
  func.func @transform_4(%arg0: i32) -> (i32, i32) {
    %c0_i32 = arith.constant 0 : i32
    %c0_i32_0 = arith.constant 0 : i32
    %c0_i32_1 = arith.constant 0 : i32
    return %c0_i32, %c0_i32_0 : i32, i32
  }
  func.func @transform_5(%arg0: i32) -> (i32, i32) {
    %c0_i32 = arith.constant 0 : i32
    %c0_i32_0 = arith.constant 0 : i32
    %c0_i32_1 = arith.constant 0 : i32
    return %c0_i32, %c0_i32_0 : i32, i32
  }
  func.func @transform_6(%arg0: i32) -> (i32, i32) {
    %c0_i32 = arith.constant 0 : i32
    %c0_i32_0 = arith.constant 0 : i32
    return %c0_i32, %arg0 : i32, i32
  }
}

</mosaic_0001>

<bundles_post_ra>
// kernel: tpu_custom_call.1
= control target key start
LH: loop header
LB: loop body
LE: loop exit
PB: predicated region body
PF: predicated region fallthrough
CT: control target
= control target key end

     0   :  { %11 = vsyncpa [#allocation4], 0  ;;  %s11940_s0 = inlined_call_operand.vmem [shape: f32[32,512], index: 0, kind: input, shape index: {}]   ;;  %s11941_s1 = inlined_call_operand.vmem [shape: f32[256,1], index: 1, kind: input, shape index: {}]   ;;  %s11942_s2 = inlined_call_operand.vmem [shape: f32[256,1], index: 2, kind: input, shape index: {}]   ;;  %s11943_s3 = inlined_call_operand.vmem [shape: f32[256,1], index: 3, kind: input, shape index: {}]   ;;  %s11944_s4 = inlined_call_operand.vmem [shape: f32[256,1], index: 4, kind: input, shape index: {}]   ;;  %s11945_s5 = inlined_call_operand.vmem [shape: f32[256,1], index: 5, kind: input, shape index: {}]   ;;  %s11946_s6 = inlined_call_operand.hbm [shape: f32[8,512], index: 6, kind: output, shape index: {}]  }
   0x1   :  { %13 = vsyncpa [#allocation4 + $0x1], 0  ;;  %s6874_s21 = smov 0   ;;  %s6876_s22 = smov 0  }
   0x2   :  { %s6878_s23 = smov 0   ;;  %s6880_s24 = smov 0  }
   0x3 LB: > { %s5484_s25 = sadd.s32 4294967295, %s6835_s24   ;;  %s5485_s26 = sadd.s32 4294967294, %s6835_s24   ;;  %s6835_s24 = sphi %s6880_s24, %s13609_s24   ;;  %s6831_s23 = sphi %s6878_s23, %s13608_s23   ;;  %s6827_s22 = sphi %s6876_s22, %s13607_s22   ;;  %s6823_s21 = sphi %s6874_s21, %s13606_s21  }
   0x4   : > { %s6897_s27 = sadd.s32 1, %s6835_s24   ;;  %s26_s28 = sadd.s32 1, %s6831_s23 }
   0x5   : > { %s23_s29 = ssub.s32 %s6835_s24, %s6897_s27  ;;  %p33_p0 = scmp.ne.s32.totalorder %s6831_s23, %s6827_s22 }
   0x6   : > { %p24_p1 = scmp.eq.s32.totalorder %s23_s29, 0  ;;  %p34_p2 = scmp.eq.s32.totalorder %s6835_s24, 0 }
   0x7   : > { %p168_p3 = scmp.eq.s32.totalorder %s5484_s25, 1  ;;  %p173_p4 = scmp.ne.s32.totalorder %s6827_s22, %s6823_s21 }
   0x8   : > { %s6910_s30 = scalar_select %p24_p1, %s6831_s23, %s26_s28  }
   0x9   : > { %p35_p5 = por %p34_p2, %p33_p0  ;;  %p6912_p6 = por %p168_p3, %p33_p0 }
   0xa   : > { %p174_p7 = scmp.eq.s32.totalorder %s5485_s26, 1  ;;  %p5487_p9 = scmp.ge.s32.totalorder %s6835_s24, 2 }
   0xc   : > { %p6916_p8 = por %p174_p7, %p173_p4  ;;  %205 = sbr.rel (%p5487_p9) target bundleno = 25 (0x19), region = 36 }
  0x11   : > { %208 = sbr.rel (!%p35_p5) target bundleno = 25 (0x19), region = 40  ;;  %s210_s9 = sand.u32 (%p35_p5), 1, %s6831_s23  }
  0x12   : > { %s5515_s10 = sshll.u32 (%p35_p5), %s6835_s24, 4  ;;  %s5488_s11 = sshll.u32 (%p35_p5), %s210_s9, 6 }
  0x13   : > { %s215_s14 = scalar_lea.vmem (%p35_p5), %s11940_s0, %s5515_s10  ;;  %s212_s15 = scalar_lea.vmem (%p35_p5), [#allocation2], %s5488_s11 }
  0x14   : > { %v228_v0 = vld [vmem:[%s215_s14] sm:$0xff] (%p35_p5)  ;;  %v230_v1 = vld [vmem:[%s215_s14 + $0x8] sm:$0xff] (%p35_p5) }
  0x15   : > { %v232_v2 = vld [vmem:[%s215_s14 + $0x20] sm:$0xff] (%p35_p5)  ;;  %229 = vst [vmem:[%s212_s15] sm:$0xff] (%p35_p5), %v228_v0  ;;  %231 = vst [vmem:[%s212_s15 + $0x8] sm:$0xff] (%p35_p5), %v230_v1  ;;  %v234_v3 = vld [vmem:[%s215_s14 + $0x28] sm:$0xff] (%p35_p5) }
  0x16   : > { %233 = vst [vmem:[%s212_s15 + $0x10] sm:$0xff] %v232_v2  ;;  %v236_v4 = vld [vmem:[%s215_s14 + $0x40] sm:$0xff]  ;;  %v238_v5 = vld [vmem:[%s215_s14 + $0x48] sm:$0xff]  ;;  %235 = vst [vmem:[%s212_s15 + $0x18] sm:$0xff] %v234_v3 }
  0x17   : > { %237 = vst [vmem:[%s212_s15 + $0x20] sm:$0xff] %v236_v4  ;;  %239 = vst [vmem:[%s212_s15 + $0x28] sm:$0xff] %v238_v5  ;;  %v240_v6 = vld [vmem:[%s215_s14 + $0x60] sm:$0xff]  ;;  %v242_v7 = vld [vmem:[%s215_s14 + $0x68] sm:$0xff] }
  0x18   : > { %241 = vst [vmem:[%s212_s15 + $0x30] sm:$0xff] %v240_v6  ;;  %243 = vst [vmem:[%s212_s15 + $0x38] sm:$0xff] %v242_v7 }
  0x19 PF: > { %p5491_p10 = scmp.ge.s32.totalorder %s6835_s24, 1  ;;  %p248_p11 = scmp.lt.s32.totalorder %s6835_s24, 3 }
  0x1b   : > { %p249_p12 = pnand %p5491_p10, %p248_p11 }
  0x1d   : > { %252 = sbr.rel (%p249_p12) target bundleno = 1395 (0x573), region = 63 }
  0x22   : > { %v296_v8 = vld [vmem:[%s11941_s1 + $0x10] sm:$0xff]  ;;  %v294_v9 = vld [vmem:[%s11941_s1] sm:$0xff]  ;;  %v6837_v10 = vmov 0   ;;  %v297_v11 = vld [vmem:[%s11941_s1 + $0x18] sm:$0xff]  ;;  %s7390_s10 = sand.u32 1, %s6827_s22   ;;  %vm2166_vm0 = vcmask 1040384  }
  0x23   : > { %5558 = vset.pattern.permute.xlu1 %v6837_v10  ;;  %5557 = vset.pattern.permute.xlu0 %v6837_v10  ;;  %v295_v12 = vld [vmem:[%s11941_s1 + $0x8] sm:$0xff]  ;;  %v298_v14 = vld [vmem:[%s11941_s1 + $0x20] sm:$0xff]  ;;  %v301_v15 = vld [vmem:[%s11941_s1 + $0x38] sm:$0xff]  ;;  %s5492_s13 = sshll.u32 %s7390_s10, 6  ;;  %vm2169_vm1 = vcmask 1041408   ;;  %vm2172_vm2 = vcmask 1042432  }
  0x24   : > { %338 = vperm.xlu1 %5558, %v296_v8   ;;  %328 = vperm.xlu0 %5557, %v294_v9   ;;  %v299_v13 = vld [vmem:[%s11941_s1 + $0x28] sm:$0xff]  ;;  %v300_v16 = vld [vmem:[%s11941_s1 + $0x30] sm:$0xff]  ;;  %v302_v18 = vld [vmem:[%s11941_s1 + $0x40] sm:$0xff]  ;;  %s257_s28 = scalar_lea.vmem [#allocation2], %s5492_s13  ;;  %vm2175_vm3 = vcmask 1043456   ;;  %vm2178_vm4 = vcmask 1044480  }
  0x25   : > { %v303_v17 = vld [vmem:[%s11941_s1 + $0x48] sm:$0xff]  ;;  %v305_v19 = vld [vmem:[%s11941_s1 + $0x58] sm:$0xff]  ;;  %v304_v20 = vld [vmem:[%s11941_s1 + $0x50] sm:$0xff]  ;;  %vm2181_vm5 = vcmask 1045504   ;;  %vm2184_vm6 = vcmask 1046528   ;;  %s5493_s15 = sshll.u32 %s7390_s10, 4 }
  0x26   : > { %v307_v21 = vld [vmem:[%s11941_s1 + $0x68] sm:$0xff]  ;;  %v306_v22 = vld [vmem:[%s11941_s1 + $0x60] sm:$0xff]  ;;  %v309_v23 = vld [vmem:[%s11941_s1 + $0x78] sm:$0xff]  ;;  %s5516_s16 = sshll.u32 %s5484_s25, 8  ;;  %s283_s17 = scalar_lea.vmem [#allocation3], %s5493_s15 }
  0x27   : > { %v308_v24 = vld [vmem:[%s11941_s1 + $0x70] sm:$0xff]  ;;  %v311_v25 = vld [vmem:[%s11941_s1 + $0x88] sm:$0xff]  ;;  %v310_v26 = vld [vmem:[%s11941_s1 + $0x80] sm:$0xff]  ;;  %s5420_s18 = sshll.u32 %s283_s17, 4  ;;  %s11896_s26 = scalar_lea.hbm %s11946_s6, %s5516_s16  ;;  %s11898_s18 = int_to_ptr.vmem [resolvable:$true] %s5420_s18 }
  0x28   : > { %343 = vperm.xlu1 %5558, %v297_v11   ;;  %333 = vperm.xlu0 %5557, %v295_v12   ;;  %v313_v27 = vld [vmem:[%s11941_s1 + $0x98] sm:$0xff]  ;;  %v312_v28 = vld [vmem:[%s11941_s1 + $0x90] sm:$0xff]  ;;  %v315_v29 = vld [vmem:[%s11941_s1 + $0xa8] sm:$0xff]  ;;  %s5406_s25 = scalar_lea.sflag [#allocation4], %s7390_s10  ;;  %s6838_s29 = smov [#allocation3]  }
  0x29   : > { %v314_v30 = vld [vmem:[%s11941_s1 + $0xa0] sm:$0xff]  ;;  %v317_v31 = vld [vmem:[%s11941_s1 + $0xb8] sm:$0xff]  ;;  %v316_v32 = vld [vmem:[%s11941_s1 + $0xb0] sm:$0xff]  ;;  %s6779_s9 = sshll.u32 %s6838_s29, 4  ;;  %s6780_s9 = int_to_ptr.vmem [resolvable:$false] %s6779_s9 }
  0x2a   : > { %v319_v33 = vld [vmem:[%s11941_s1 + $0xc8] sm:$0xff]  ;;  %v318_v34 = vld [vmem:[%s11941_s1 + $0xc0] sm:$0xff]  ;;  %v321_v35 = vld [vmem:[%s11941_s1 + $0xd8] sm:$0xff]  ;;  %s6781_s11 = scalar_lea.vmem %s6780_s9, 512  ;;  %p6782_p2 = scmp.lt.s32.totalorder %s11898_s18, %s6780_s9 }
  0x2b   : > { %v320_v36 = vld [vmem:[%s11941_s1 + $0xd0] sm:$0xff]  ;;  %v323_v37 = vld [vmem:[%s11941_s1 + $0xe8] sm:$0xff]  ;;  %v322_v38 = vld [vmem:[%s11941_s1 + $0xe0] sm:$0xff] }
  0x2c   : > { %353 = vperm.xlu1 %5558, %v299_v13   ;;  %348 = vperm.xlu0 %5557, %v298_v14   ;;  %v325_v39 = vld [vmem:[%s11941_s1 + $0xf8] sm:$0xff]  ;;  %v324_v40 = vld [vmem:[%s11941_s1 + $0xf0] sm:$0xff]  ;;  %v615_v41 = vld [vmem:[%s11942_s2 + $0x8] sm:$0xff] }
  0x2d   : > { %v614_v42 = vld [vmem:[%s11942_s2] sm:$0xff]  ;;  %v617_v43 = vld [vmem:[%s11942_s2 + $0x18] sm:$0xff]  ;;  %v616_v44 = vld [vmem:[%s11942_s2 + $0x10] sm:$0xff] }
  0x2e   : > { %v619_v45 = vld [vmem:[%s11942_s2 + $0x28] sm:$0xff]  ;;  %v618_v46 = vld [vmem:[%s11942_s2 + $0x20] sm:$0xff]  ;;  %v621_v47 = vld [vmem:[%s11942_s2 + $0x38] sm:$0xff] }
  0x2f   : > { %v620_v48 = vld [vmem:[%s11942_s2 + $0x30] sm:$0xff]  ;;  %v623_v49 = vld [vmem:[%s11942_s2 + $0x48] sm:$0xff]  ;;  %v622_v50 = vld [vmem:[%s11942_s2 + $0x40] sm:$0xff] }
  0x30   : > { %363 = vperm.xlu1 %5558, %v301_v15   ;;  %358 = vperm.xlu0 %5557, %v300_v16   ;;  %v625_v51 = vld [vmem:[%s11942_s2 + $0x58] sm:$0xff]  ;;  %v624_v52 = vld [vmem:[%s11942_s2 + $0x50] sm:$0xff]  ;;  %v627_v53 = vld [vmem:[%s11942_s2 + $0x68] sm:$0xff] }
  0x31   : > { %v626_v54 = vld [vmem:[%s11942_s2 + $0x60] sm:$0xff]  ;;  %v629_v55 = vld [vmem:[%s11942_s2 + $0x78] sm:$0xff]  ;;  %v628_v56 = vld [vmem:[%s11942_s2 + $0x70] sm:$0xff] }
  0x32   : > { %v631_v57 = vld [vmem:[%s11942_s2 + $0x88] sm:$0xff]  ;;  %v630_v58 = vld [vmem:[%s11942_s2 + $0x80] sm:$0xff]  ;;  %v633_v59 = vld [vmem:[%s11942_s2 + $0x98] sm:$0xff] }
  0x33   : > { %v632_v60 = vld [vmem:[%s11942_s2 + $0x90] sm:$0xff]  ;;  %v635_v61 = vld [vmem:[%s11942_s2 + $0xa8] sm:$0xff]  ;;  %v634_v62 = vld [vmem:[%s11942_s2 + $0xa0] sm:$0xff] }
  0x34   : > { %373 = vperm.xlu1 %5558, %v303_v17   ;;  %368 = vperm.xlu0 %5557, %v302_v18   ;;  %v637_v63 = vld [vmem:[%s11942_s2 + $0xb8] sm:$0xff]  ;;  %v636_v0 = vld [vmem:[%s11942_s2 + $0xb0] sm:$0xff]  ;;  %v639_v1 = vld [vmem:[%s11942_s2 + $0xc8] sm:$0xff] }
  0x35   : > { %v638_v2 = vld [vmem:[%s11942_s2 + $0xc0] sm:$0xff]  ;;  %v641_v3 = vld [vmem:[%s11942_s2 + $0xd8] sm:$0xff]  ;;  %v640_v4 = vld [vmem:[%s11942_s2 + $0xd0] sm:$0xff] }
  0x36   : > { %v643_v5 = vld [vmem:[%s11942_s2 + $0xe8] sm:$0xff]  ;;  %v642_v6 = vld [vmem:[%s11942_s2 + $0xe0] sm:$0xff]  ;;  %v645_v7 = vld [vmem:[%s11942_s2 + $0xf8] sm:$0xff] }
  0x37   : > { %v644_v8 = vld [vmem:[%s11942_s2 + $0xf0] sm:$0xff]  ;;  %v871_v11 = vld [vmem:[%s11943_s3 + $0x8] sm:$0xff]  ;;  %v870_v12 = vld [vmem:[%s11943_s3] sm:$0xff] }
  0x38   : > { %383 = vperm.xlu1 %5558, %v305_v19   ;;  %378 = vperm.xlu0 %5557, %v304_v20   ;;  %v873_v15 = vld [vmem:[%s11943_s3 + $0x18] sm:$0xff]  ;;  %v872_v16 = vld [vmem:[%s11943_s3 + $0x10] sm:$0xff]  ;;  %v875_v19 = vld [vmem:[%s11943_s3 + $0x28] sm:$0xff] }
  0x39   : > { %v874_v20 = vld [vmem:[%s11943_s3 + $0x20] sm:$0xff] }
  0x3c   : > { %393 = vperm.xlu1 %5558, %v307_v21   ;;  %388 = vperm.xlu0 %5557, %v306_v22  }
  0x40   : > { %403 = vperm.xlu1 %5558, %v309_v23   ;;  %398 = vperm.xlu0 %5557, %v308_v24   ;;  %v877_v23 = vld [vmem:[%s11943_s3 + $0x38] sm:$0xff]  ;;  %v876_v24 = vld [vmem:[%s11943_s3 + $0x30] sm:$0xff] }
  0x44   : > { %413 = vperm.xlu1 %5558, %v311_v25   ;;  %408 = vperm.xlu0 %5557, %v310_v26  }
  0x48   : > { %423 = vperm.xlu1 %5558, %v313_v27   ;;  %418 = vperm.xlu0 %5557, %v312_v28   ;;  %v879_v27 = vld [vmem:[%s11943_s3 + $0x48] sm:$0xff]  ;;  %v878_v28 = vld [vmem:[%s11943_s3 + $0x40] sm:$0xff] }
  0x4c   : > { %433 = vperm.xlu1 %5558, %v315_v29   ;;  %428 = vperm.xlu0 %5557, %v314_v30  }
  0x50   : > { %443 = vperm.xlu1 %5558, %v317_v31   ;;  %438 = vperm.xlu0 %5557, %v316_v32   ;;  %v881_v31 = vld [vmem:[%s11943_s3 + $0x58] sm:$0xff]  ;;  %v880_v32 = vld [vmem:[%s11943_s3 + $0x50] sm:$0xff] }
  0x54   : > { %453 = vperm.xlu1 %5558, %v319_v33   ;;  %448 = vperm.xlu0 %5557, %v318_v34  }
  0x58   : > { %463 = vperm.xlu1 %5558, %v321_v35   ;;  %458 = vperm.xlu0 %5557, %v320_v36   ;;  %v883_v35 = vld [vmem:[%s11943_s3 + $0x68] sm:$0xff]  ;;  %v882_v36 = vld [vmem:[%s11943_s3 + $0x60] sm:$0xff] }
  0x5c   : > { %473 = vperm.xlu1 %5558, %v323_v37   ;;  %468 = vperm.xlu0 %5557, %v322_v38  }
  0x60   : > { %483 = vperm.xlu1 %5558, %v325_v39   ;;  %478 = vperm.xlu0 %5557, %v324_v40   ;;  %v885_v39 = vld [vmem:[%s11943_s3 + $0x78] sm:$0xff]  ;;  %v884_v40 = vld [vmem:[%s11943_s3 + $0x70] sm:$0xff] }
  0x64   : > { %653 = vperm.xlu1 %5558, %v615_v41   ;;  %648 = vperm.xlu0 %5557, %v614_v42  }
  0x68   : > { %663 = vperm.xlu1 %5558, %v617_v43   ;;  %658 = vperm.xlu0 %5557, %v616_v44   ;;  %v887_v43 = vld [vmem:[%s11943_s3 + $0x88] sm:$0xff]  ;;  %v886_v44 = vld [vmem:[%s11943_s3 + $0x80] sm:$0xff] }
  0x6c   : > { %673 = vperm.xlu1 %5558, %v619_v45   ;;  %668 = vperm.xlu0 %5557, %v618_v46  }
  0x70   : > { %683 = vperm.xlu1 %5558, %v621_v47   ;;  %678 = vperm.xlu0 %5557, %v620_v48   ;;  %v889_v47 = vld [vmem:[%s11943_s3 + $0x98] sm:$0xff]  ;;  %v888_v48 = vld [vmem:[%s11943_s3 + $0x90] sm:$0xff] }
  0x74   : > { %693 = vperm.xlu1 %5558, %v623_v49   ;;  %688 = vperm.xlu0 %5557, %v622_v50  }
  0x78   : > { %703 = vperm.xlu1 %5558, %v625_v51   ;;  %698 = vperm.xlu0 %5557, %v624_v52   ;;  %v891_v51 = vld [vmem:[%s11943_s3 + $0xa8] sm:$0xff]  ;;  %v890_v52 = vld [vmem:[%s11943_s3 + $0xa0] sm:$0xff] }
  0x7c   : > { %713 = vperm.xlu1 %5558, %v627_v53   ;;  %708 = vperm.xlu0 %5557, %v626_v54  }
  0x80   : > { %723 = vperm.xlu1 %5558, %v629_v55   ;;  %718 = vperm.xlu0 %5557, %v628_v56   ;;  %v893_v55 = vld [vmem:[%s11943_s3 + $0xb8] sm:$0xff]  ;;  %v892_v56 = vld [vmem:[%s11943_s3 + $0xb0] sm:$0xff] }
  0x84   : > { %733 = vperm.xlu1 %5558, %v631_v57   ;;  %728 = vperm.xlu0 %5557, %v630_v58  }
  0x88   : > { %743 = vperm.xlu1 %5558, %v633_v59   ;;  %738 = vperm.xlu0 %5557, %v632_v60   ;;  %v895_v59 = vld [vmem:[%s11943_s3 + $0xc8] sm:$0xff]  ;;  %v894_v60 = vld [vmem:[%s11943_s3 + $0xc0] sm:$0xff] }
  0x8c   : > { %753 = vperm.xlu1 %5558, %v635_v61   ;;  %748 = vperm.xlu0 %5557, %v634_v62  }
  0x90   : > { %763 = vperm.xlu1 %5558, %v637_v63   ;;  %758 = vperm.xlu0 %5557, %v636_v0   ;;  %v897_v63 = vld [vmem:[%s11943_s3 + $0xd8] sm:$0xff]  ;;  %v896_v0 = vld [vmem:[%s11943_s3 + $0xd0] sm:$0xff] }
  0x94   : > { %773 = vperm.xlu1 %5558, %v639_v1   ;;  %768 = vperm.xlu0 %5557, %v638_v2  }
  0x98   : > { %783 = vperm.xlu1 %5558, %v641_v3   ;;  %778 = vperm.xlu0 %5557, %v640_v4   ;;  %v899_v3 = vld [vmem:[%s11943_s3 + $0xe8] sm:$0xff]  ;;  %v898_v4 = vld [vmem:[%s11943_s3 + $0xe0] sm:$0xff] }
  0x9c   : > { %793 = vperm.xlu1 %5558, %v643_v5   ;;  %788 = vperm.xlu0 %5557, %v642_v6  }
  0x9f   : > { %v7122_v9 = vpop.permute.xlu1 %338  ;;  %v7124_v10 = vpop.permute.xlu0 %328 }
  0xa0   : > { %803 = vperm.xlu1 %5558, %v645_v7   ;;  %798 = vperm.xlu0 %5557, %v644_v8   ;;  %v901_v7 = vld [vmem:[%s11943_s3 + $0xf8] sm:$0xff]  ;;  %v900_v8 = vld [vmem:[%s11943_s3 + $0xf0] sm:$0xff] }
  0xa3   : > { %v7132_v13 = vpop.permute.xlu1 %343  ;;  %v7134_v14 = vpop.permute.xlu0 %333 }
  0xa4   : > { %909 = vperm.xlu1 %5558, %v871_v11   ;;  %904 = vperm.xlu0 %5557, %v870_v12  }
  0xa7   : > { %v7142_v17 = vpop.permute.xlu1 %353  ;;  %v7144_v18 = vpop.permute.xlu0 %348 }
  0xa8   : > { %919 = vperm.xlu1 %5558, %v873_v15   ;;  %914 = vperm.xlu0 %5557, %v872_v16   ;;  %v1255_v15 = vld [vmem:[%s11944_s4 + $0x8] sm:$0xff]  ;;  %v1254_v16 = vld [vmem:[%s11944_s4] sm:$0xff] }
  0xab   : > { %v7152_v21 = vpop.permute.xlu1 %363  ;;  %v7154_v22 = vpop.permute.xlu0 %358 }
  0xac   : > { %929 = vperm.xlu1 %5558, %v875_v19   ;;  %924 = vperm.xlu0 %5557, %v874_v20  }
  0xaf   : > { %v7162_v25 = vpop.permute.xlu1 %373  ;;  %v7164_v26 = vpop.permute.xlu0 %368 }
  0xb0   : > { %939 = vperm.xlu1 %5558, %v877_v23   ;;  %934 = vperm.xlu0 %5557, %v876_v24   ;;  %v1257_v23 = vld [vmem:[%s11944_s4 + $0x18] sm:$0xff]  ;;  %v1256_v24 = vld [vmem:[%s11944_s4 + $0x10] sm:$0xff] }
  0xb3   : > { %v7172_v29 = vpop.permute.xlu1 %383  ;;  %v7174_v30 = vpop.permute.xlu0 %378 }
  0xb4   : > { %949 = vperm.xlu1 %5558, %v879_v27   ;;  %944 = vperm.xlu0 %5557, %v878_v28  }
  0xb7   : > { %v7182_v33 = vpop.permute.xlu1 %393  ;;  %v7184_v34 = vpop.permute.xlu0 %388 }
  0xb8   : > { %959 = vperm.xlu1 %5558, %v881_v31   ;;  %954 = vperm.xlu0 %5557, %v880_v32   ;;  %v1259_v31 = vld [vmem:[%s11944_s4 + $0x28] sm:$0xff]  ;;  %v1258_v32 = vld [vmem:[%s11944_s4 + $0x20] sm:$0xff] }
  0xbb   : > { %v7192_v37 = vpop.permute.xlu1 %403  ;;  %v7194_v38 = vpop.permute.xlu0 %398 }
  0xbc   : > { %969 = vperm.xlu1 %5558, %v883_v35   ;;  %964 = vperm.xlu0 %5557, %v882_v36  }
  0xbf   : > { %v7202_v41 = vpop.permute.xlu1 %413  ;;  %v7204_v42 = vpop.permute.xlu0 %408 }
  0xc0   : > { %979 = vperm.xlu1 %5558, %v885_v39   ;;  %974 = vperm.xlu0 %5557, %v884_v40   ;;  %v1261_v39 = vld [vmem:[%s11944_s4 + $0x38] sm:$0xff]  ;;  %v1260_v40 = vld [vmem:[%s11944_s4 + $0x30] sm:$0xff] }
  0xc3   : > { %v7212_v45 = vpop.permute.xlu1 %423  ;;  %v7214_v46 = vpop.permute.xlu0 %418 }
  0xc4   : > { %989 = vperm.xlu1 %5558, %v887_v43   ;;  %984 = vperm.xlu0 %5557, %v886_v44  }
  0xc7   : > { %v7222_v49 = vpop.permute.xlu1 %433  ;;  %v7224_v50 = vpop.permute.xlu0 %428 }
  0xc8   : > { %999 = vperm.xlu1 %5558, %v889_v47   ;;  %994 = vperm.xlu0 %5557, %v888_v48   ;;  %v1263_v47 = vld [vmem:[%s11944_s4 + $0x48] sm:$0xff]  ;;  %v1262_v48 = vld [vmem:[%s11944_s4 + $0x40] sm:$0xff] }
  0xcb   : > { %v7232_v53 = vpop.permute.xlu1 %443  ;;  %v7234_v54 = vpop.permute.xlu0 %438 }
  0xcc   : > { %1009 = vperm.xlu1 %5558, %v891_v51   ;;  %1004 = vperm.xlu0 %5557, %v890_v52  }
  0xcf   : > { %v7242_v57 = vpop.permute.xlu1 %453  ;;  %v7244_v58 = vpop.permute.xlu0 %448 }
  0xd0   : > { %1019 = vperm.xlu1 %5558, %v893_v55   ;;  %1014 = vperm.xlu0 %5557, %v892_v56   ;;  %v1265_v55 = vld [vmem:[%s11944_s4 + $0x58] sm:$0xff]  ;;  %v1264_v56 = vld [vmem:[%s11944_s4 + $0x50] sm:$0xff] }
  0xd3   : > { %v7252_v61 = vpop.permute.xlu1 %463  ;;  %v7254_v62 = vpop.permute.xlu0 %458 }
  0xd4   : > { %1029 = vperm.xlu1 %5558, %v895_v59   ;;  %1024 = vperm.xlu0 %5557, %v894_v60  }
  0xd7   : > { %v7262_v1 = vpop.permute.xlu1 %473  ;;  %v7264_v2 = vpop.permute.xlu0 %468 }
  0xd8   : > { %1039 = vperm.xlu1 %5558, %v897_v63   ;;  %1034 = vperm.xlu0 %5557, %v896_v0   ;;  %v1267_v63 = vld [vmem:[%s11944_s4 + $0x68] sm:$0xff]  ;;  %v1266_v0 = vld [vmem:[%s11944_s4 + $0x60] sm:$0xff] }
  0xdb   : > { %v7272_v5 = vpop.permute.xlu1 %483  ;;  %v7274_v6 = vpop.permute.xlu0 %478 }
  0xdc   : > { %1049 = vperm.xlu1 %5558, %v899_v3   ;;  %1044 = vperm.xlu0 %5557, %v898_v4  }
  0xdf   : > { %v7282_v11 = vpop.permute.xlu1 %653  ;;  %v7284_v12 = vpop.permute.xlu0 %648 }
  0xe0   : > { %1059 = vperm.xlu1 %5558, %v901_v7   ;;  %1054 = vperm.xlu0 %5557, %v900_v8   ;;  %v1269_v7 = vld [vmem:[%s11944_s4 + $0x78] sm:$0xff]  ;;  %v1268_v8 = vld [vmem:[%s11944_s4 + $0x70] sm:$0xff] }
  0xe3   : > { %v7292_v19 = vpop.permute.xlu1 %663  ;;  %v7294_v20 = vpop.permute.xlu0 %658 }
  0xe4   : > { %1293 = vperm.xlu1 %5558, %v1255_v15   ;;  %1288 = vperm.xlu0 %5557, %v1254_v16  }
  0xe7   : > { %v7302_v27 = vpop.permute.xlu1 %673  ;;  %v7304_v28 = vpop.permute.xlu0 %668 }
  0xe8   : > { %12325 = vst [vmem:[#allocation6_spill] sm:$0xff] %v7304_v28  ;;  %1303 = vperm.xlu1 %5558, %v1257_v23   ;;  %1298 = vperm.xlu0 %5557, %v1256_v24   ;;  %v1271_v23 = vld [vmem:[%s11944_s4 + $0x88] sm:$0xff]  ;;  %v1270_v24 = vld [vmem:[%s11944_s4 + $0x80] sm:$0xff] }
  0xeb   : > { %v7312_v35 = vpop.permute.xlu1 %683  ;;  %v7314_v36 = vpop.permute.xlu0 %678 }
  0xec   : > { %12326 = vst [vmem:[#allocation7_spill] sm:$0xff] %v7312_v35  ;;  %12327 = vst [vmem:[#allocation8_spill] sm:$0xff] %v7314_v36  ;;  %1313 = vperm.xlu1 %5558, %v1259_v31   ;;  %1308 = vperm.xlu0 %5557, %v1258_v32  }
  0xef   : > { %v7322_v43 = vpop.permute.xlu1 %693  ;;  %v7324_v44 = vpop.permute.xlu0 %688 }
  0xf0   : > { %12328 = vst [vmem:[#allocation9_spill] sm:$0xff] %v7322_v43  ;;  %12329 = vst [vmem:[#allocation10_spill] sm:$0xff] %v7324_v44  ;;  %1323 = vperm.xlu1 %5558, %v1261_v39   ;;  %1318 = vperm.xlu0 %5557, %v1260_v40   ;;  %v1510_v39 = vld [vmem:[%s11945_s5] sm:$0xff]  ;;  %v1272_v40 = vld [vmem:[%s11944_s4 + $0x90] sm:$0xff] }
  0xf3   : > { %v7332_v51 = vpop.permute.xlu1 %703  ;;  %v7334_v52 = vpop.permute.xlu0 %698 }
  0xf4   : > { %12330 = vst [vmem:[#allocation11_spill] sm:$0xff] %v7332_v51  ;;  %12331 = vst [vmem:[#allocation12_spill] sm:$0xff] %v7334_v52  ;;  %1333 = vperm.xlu1 %5558, %v1263_v47   ;;  %1328 = vperm.xlu0 %5557, %v1262_v48  }
  0xf7   : > { %v7342_v59 = vpop.permute.xlu1 %713  ;;  %v7344_v60 = vpop.permute.xlu0 %708 }
  0xf8   : > { %12332 = vst [vmem:[#allocation13_spill] sm:$0xff] %v7342_v59  ;;  %12333 = vst [vmem:[#allocation14_spill] sm:$0xff] %v7344_v60  ;;  %1343 = vperm.xlu1 %5558, %v1265_v55   ;;  %1338 = vperm.xlu0 %5557, %v1264_v56   ;;  %v1514_v55 = vld [vmem:[%s11945_s5 + $0x20] sm:$0xff]  ;;  %v1511_v56 = vld [vmem:[%s11945_s5 + $0x8] sm:$0xff] }
  0xfb   : > { %v7352_v3 = vpop.permute.xlu1 %723  ;;  %v7354_v4 = vpop.permute.xlu0 %718 }
  0xfc   : > { %12334 = vst [vmem:[#allocation15_spill] sm:$0xff] %v7352_v3  ;;  %12335 = vst [vmem:[#allocation16_spill] sm:$0xff] %v7354_v4  ;;  %1353 = vperm.xlu1 %5558, %v1267_v63   ;;  %1348 = vperm.xlu0 %5557, %v1266_v0  }
  0xff   : > { %v7362_v15 = vpop.permute.xlu1 %733  ;;  %v7364_v16 = vpop.permute.xlu0 %728 }
 0x100   : > { %12336 = vst [vmem:[#allocation17_spill] sm:$0xff] %v7362_v15  ;;  %12337 = vst [vmem:[#allocation18_spill] sm:$0xff] %v7364_v16  ;;  %1363 = vperm.xlu1 %5558, %v1269_v7   ;;  %1358 = vperm.xlu0 %5557, %v1268_v8   ;;  %v1518_v7 = vld [vmem:[%s11945_s5 + $0x40] sm:$0xff]  ;;  %v1515_v8 = vld [vmem:[%s11945_s5 + $0x28] sm:$0xff] }
 0x103   : > { %v7372_v31 = vpop.permute.xlu1 %743  ;;  %v7374_v32 = vpop.permute.xlu0 %738 }
 0x104   : > { %12338 = vst [vmem:[#allocation19_spill] sm:$0xff] %v7372_v31  ;;  %12339 = vst [vmem:[#allocation20_spill] sm:$0xff] %v7374_v32  ;;  %1373 = vperm.xlu1 %5558, %v1271_v23   ;;  %1368 = vperm.xlu0 %5557, %v1270_v24  }
 0x107   : > { %v7382_v47 = vpop.permute.xlu1 %753  ;;  %v7384_v48 = vpop.permute.xlu0 %748 }
 0x108   : > { %12340 = vst [vmem:[#allocation21_spill] sm:$0xff] %v7382_v47  ;;  %12341 = vst [vmem:[#allocation22_spill] sm:$0xff] %v7384_v48  ;;  %1544 = vperm.xlu1 %5558, %v1510_v39   ;;  %1378 = vperm.xlu0 %5557, %v1272_v40   ;;  %v1512_v39 = vld [vmem:[%s11945_s5 + $0x10] sm:$0xff]  ;;  %v1519_v40 = vld [vmem:[%s11945_s5 + $0x48] sm:$0xff] }
 0x109   : > { %v1522_v48 = vld [vmem:[%s11945_s5 + $0x60] sm:$0xff]  ;;  %v7439_v47 = vld [vmem:[%s257_s28 + $0x18] sm:$0xff] }
 0x10b   : > { %v7395_v63 = vpop.permute.xlu1 %763  ;;  %v7397_v0 = vpop.permute.xlu0 %758 }
 0x10c   : > { %12342 = vst [vmem:[#allocation23_spill] sm:$0xff] %v7395_v63  ;;  %12343 = vst [vmem:[#allocation24_spill] sm:$0xff] %v7397_v0  ;;  %1564 = vperm.xlu1 %5558, %v1514_v55   ;;  %1549 = vperm.xlu0 %5557, %v1511_v56   ;;  %v7416_v55 = vld [vmem:[%s257_s28 + $0x20] sm:$0xff]  ;;  %v7430_v63 = vld [vmem:[%s257_s28 + $0x38] sm:$0xff] }
 0x10d   : > { %v493_v3 = vsub.f32 %v7430_v63, %v7132_v13  ;;  %v501_v52 = vsub.f32 %v7430_v63, %v7152_v21  ;;  %v498_v43 = vsub.f32 %v7416_v55, %v7154_v22 }
 0x10f   : > { %v7406_v23 = vpop.permute.xlu1 %773  ;;  %v7408_v24 = vpop.permute.xlu0 %768  ;;  %v7498_v35 = vmul.f32 %v493_v3, %v493_v3  ;;  %v1526_v3 = vld [vmem:[%s11945_s5 + $0x80] sm:$0xff] }
 0x110   : > { %12344 = vst [vmem:[#allocation25_spill] sm:$0xff] %v7406_v23  ;;  %12345 = vst [vmem:[#allocation26_spill] sm:$0xff] %v7408_v24  ;;  %1584 = vperm.xlu1 %5558, %v1518_v7   ;;  %1569 = vperm.xlu0 %5557, %v1515_v8   ;;  %v7422_v23 = vld [vmem:[%s257_s28 + $0x28] sm:$0xff]  ;;  %v7424_v24 = vld [vmem:[%s257_s28] sm:$0xff] }
 0x111   : > { %v7426_v7 = vld [vmem:[%s257_s28 + $0x8] sm:$0xff]  ;;  %v7428_v8 = vld [vmem:[%s257_s28 + $0x30] sm:$0xff]  ;;  %v491_v32 = vsub.f32 %v7422_v23, %v7122_v9  ;;  %v486_v16 = vsub.f32 %v7424_v24, %v7124_v10 }
 0x112   : > { %v487_v15 = vsub.f32 %v7426_v7, %v7124_v10  ;;  %v492_v4 = vsub.f32 %v7428_v8, %v7132_v13  ;;  %v494_v13 = vsub.f32 %v7424_v24, %v7144_v18  ;;  %v495_v59 = vsub.f32 %v7426_v7, %v7144_v18 }
 0x113   : > { %v7418_v56 = vpop.permute.xlu1 %783  ;;  %v7420_v0 = vpop.permute.xlu0 %778 }
 0x114   : > { %12346 = vst [vmem:[#allocation27_spill] sm:$0xff] %v7418_v56  ;;  %12347 = vst [vmem:[#allocation28_spill] sm:$0xff] %v7420_v0  ;;  %1554 = vperm.xlu1 %5558, %v1512_v39   ;;  %1589 = vperm.xlu0 %5557, %v1519_v40   ;;  %v490_v56 = vsub.f32 %v7416_v55, %v7122_v9  ;;  %v7437_v0 = vld [vmem:[%s257_s28 + $0x10] sm:$0xff]  ;;  %v7488_v44 = vmul.f32 %v487_v15, %v487_v15  ;;  %v1527_v15 = vld [vmem:[%s11945_s5 + $0x88] sm:$0xff]  ;;  %s6775_s28 = scalar_lea.vmem %s11898_s18, 256 }
 0x115   : > { %v1516_v39 = vld [vmem:[%s11945_s5 + $0x30] sm:$0xff]  ;;  %v488_v9 = vsub.f32 %v7437_v0, %v7134_v14  ;;  %v496_v10 = vsub.f32 %v7437_v0, %v7142_v17  ;;  %v7496_v18 = vmul.f32 %v492_v4, %v492_v4  ;;  %v504_v4 = vsub.f32 %v7437_v0, %v7162_v25  ;;  %p6776_p13 = scmp.ne.s32.totalorder %s11898_s18, %s6775_s28  ;;  %p6783_p3 = scmp.lt.s32.totalorder %s6781_s11, %s6775_s28 }
 0x116   : > { %v7465_v60 = vmul.f32 %v490_v56, %v490_v56  ;;  %v500_v56 = vsub.f32 %v7428_v8, %v7152_v21 }
 0x117   : > { %v7446_v31 = vpop.permute.xlu1 %793  ;;  %v7448_v40 = vpop.permute.xlu0 %788  ;;  %v7500_v21 = vmul.f32 %v488_v9, %v488_v9  ;;  %v7522_v9 = vmul.f32 %v501_v52, %v501_v52  ;;  %v508_v52 = vsub.f32 %v7428_v8, %v7172_v29  ;;  %p6777_p0 = pnand %p6776_p13, %p6912_p6  ;;  %p6784_p4 = por %p6783_p3, %p6782_p2 }
 0x118   : > { %12348 = vst [vmem:[#allocation29_spill] sm:$0xff] %v7446_v31  ;;  %12349 = vst [vmem:[#allocation30_spill] sm:$0xff] %v7448_v40  ;;  %1604 = vperm.xlu1 %5558, %v1522_v48   ;;  %v489_v31 = vsub.f32 %v7439_v47, %v7134_v14  ;;  %1574 = vperm.xlu0 %5557, %v1516_v39   ;;  %v1520_v40 = vld [vmem:[%s11945_s5 + $0x50] sm:$0xff]  ;;  %v497_v48 = vsub.f32 %v7439_v47, %v7142_v17  ;;  %v1523_v14 = vld [vmem:[%s11945_s5 + $0x68] sm:$0xff] }
 0x119   : > { %v7476_v39 = vmul.f32 %v491_v32, %v491_v32  ;;  %v7486_v17 = vmul.f32 %v486_v16, %v486_v16  ;;  %v499_v32 = vsub.f32 %v7422_v23, %v7154_v22  ;;  %v7507_v16 = vmul.f32 %v496_v10, %v496_v10  ;;  %12356 = vst [vmem:[#allocation37_spill] sm:$0xff] %v7522_v9  ;;  %p6778_p1 = pneg %p6777_p0 }
 0x11a   : > { %v7509_v28 = vmul.f32 %v497_v48, %v497_v48  ;;  %v7511_v22 = vmul.f32 %v494_v13, %v494_v13  ;;  %v505_v10 = vsub.f32 %v7439_v47, %v7162_v25  ;;  %v7528_v13 = vmul.f32 %v498_v43, %v498_v43 }
 0x11b   : > { %v7484_v51 = vpop.permute.xlu1 %803  ;;  %v7494_v36 = vpop.permute.xlu0 %798  ;;  %v509_v25 = vsub.f32 %v7430_v63, %v7172_v29  ;;  %v506_v43 = vsub.f32 %v7416_v55, %v7174_v30  ;;  %v510_v29 = vsub.f32 %v7424_v24, %v7184_v34  ;;  %p6785_p5 = pnand %p6784_p4, %p6778_p1 }
 0x11c   : > { %12350 = vst [vmem:[#allocation31_spill] sm:$0xff] %v7484_v51  ;;  %12351 = vst [vmem:[#allocation32_spill] sm:$0xff] %v7494_v36  ;;  %1594 = vperm.xlu1 %5558, %v1520_v40   ;;  %v7502_v51 = vmul.f32 %v489_v31, %v489_v31  ;;  %1609 = vperm.xlu0 %5557, %v1523_v14   ;;  %v7518_v31 = vmul.f32 %v495_v59, %v495_v59 }
 0x11d   : > { %12352 = vst [vmem:[#allocation33_spill] sm:$0xff] %v7509_v28  ;;  %12353 = vst [vmem:[#allocation34_spill] sm:$0xff] %v7511_v22  ;;  %v7520_v40 = vmul.f32 %v500_v56, %v500_v56  ;;  %v7530_v14 = vmul.f32 %v499_v32, %v499_v32  ;;  %v502_v36 = vsub.f32 %v7424_v24, %v7164_v26 }
 0x11e   : > { %12354 = vst [vmem:[#allocation35_spill] sm:$0xff] %v7518_v31  ;;  %12357 = vst [vmem:[#allocation38_spill] sm:$0xff] %v7528_v13  ;;  %v503_v59 = vsub.f32 %v7426_v7, %v7164_v26  ;;  %v507_v56 = vsub.f32 %v7422_v23, %v7174_v30  ;;  %v1275_v26 = vld [vmem:[%s11944_s4 + $0xa8] sm:$0xff]  ;;  %v7549_v32 = vmul.f32 %v504_v4, %v504_v4  ;;  %v1274_v30 = vld [vmem:[%s11944_s4 + $0xa0] sm:$0xff] }
 0x11f   : > { %12355 = vst [vmem:[#allocation36_spill] sm:$0xff] %v7520_v40  ;;  %v7526_v48 = vpop.permute.xlu1 %909  ;;  %12358 = vst [vmem:[#allocation39_spill] sm:$0xff] %v7530_v14  ;;  %v7536_v31 = vpop.permute.xlu0 %904  ;;  %v513_v14 = vsub.f32 %v7439_v47, %v7182_v33  ;;  %v511_v13 = vsub.f32 %v7426_v7, %v7184_v34  ;;  %v516_v4 = vsub.f32 %v7428_v8, %v7192_v37 }
 0x120   : > { %1629 = vperm.xlu1 %5558, %v1527_v15   ;;  %1624 = vperm.xlu0 %5557, %v1526_v3   ;;  %12359 = vst [vmem:[#allocation40_spill] sm:$0xff] %v7549_v32  ;;  %v512_v15 = vsub.f32 %v7437_v0, %v7182_v33  ;;  %v7560_v3 = vmul.f32 %v505_v10, %v505_v10 }
 0x121   : > { %v517_v32 = vsub.f32 %v7430_v63, %v7192_v37  ;;  %v7570_v33 = vmul.f32 %v502_v36, %v502_v36  ;;  %v7572_v40 = vmul.f32 %v503_v59, %v503_v59  ;;  %v514_v22 = vsub.f32 %v7416_v55, %v7194_v38  ;;  %v1517_v36 = vld [vmem:[%s11945_s5 + $0x38] sm:$0xff] }
 0x122   : > { %12360 = vst [vmem:[#allocation41_spill] sm:$0xff] %v7560_v3  ;;  %v515_v10 = vsub.f32 %v7422_v23, %v7194_v38  ;;  %v7580_v34 = vmul.f32 %v508_v52, %v508_v52  ;;  %v7582_v28 = vmul.f32 %v509_v25, %v509_v25  ;;  %v7584_v37 = vmul.f32 %v506_v43, %v506_v43  ;;  %v1513_v25 = vld [vmem:[%s11945_s5 + $0x18] sm:$0xff] }
 0x123   : > { %v7568_v9 = vpop.permute.xlu1 %919  ;;  %12362 = vst [vmem:[#allocation43_spill] sm:$0xff] %v7572_v40  ;;  %v7578_v3 = vpop.permute.xlu0 %914  ;;  %v7591_v59 = vmul.f32 %v512_v15, %v512_v15  ;;  %v7593_v40 = vmul.f32 %v513_v14, %v513_v14  ;;  %v7595_v38 = vmul.f32 %v510_v29, %v510_v29  ;;  %v520_v52 = vsub.f32 %v7437_v0, %v7202_v41 }
 0x124   : > { %12361 = vst [vmem:[#allocation42_spill] sm:$0xff] %v7568_v9  ;;  %1393 = vperm.xlu1 %5558, %v1275_v26   ;;  %v7586_v9 = vmul.f32 %v507_v56, %v507_v56  ;;  %1388 = vperm.xlu0 %5557, %v1274_v30   ;;  %v7602_v43 = vmul.f32 %v511_v13, %v511_v13 }
 0x125   : > { %12363 = vst [vmem:[#allocation44_spill] sm:$0xff] %v7591_v59  ;;  %12364 = vst [vmem:[#allocation45_spill] sm:$0xff] %v7593_v40  ;;  %v7604_v56 = vmul.f32 %v516_v4, %v516_v4  ;;  %v7606_v26 = vmul.f32 %v517_v32, %v517_v32  ;;  %v521_v15 = vsub.f32 %v7439_v47, %v7202_v41 }
 0x126   : > { %12365 = vst [vmem:[#allocation46_spill] sm:$0xff] %v7595_v38  ;;  %12366 = vst [vmem:[#allocation47_spill] sm:$0xff] %v7602_v43  ;;  %v7612_v29 = vmul.f32 %v514_v22, %v514_v22  ;;  %v7614_v30 = vmul.f32 %v515_v10, %v515_v10  ;;  %v518_v38 = vsub.f32 %v7424_v24, %v7204_v42 }
 0x127   : > { %12367 = vst [vmem:[#allocation48_spill] sm:$0xff] %v7604_v56  ;;  %12368 = vst [vmem:[#allocation49_spill] sm:$0xff] %v7606_v26  ;;  %v7610_v14 = vpop.permute.xlu1 %929  ;;  %v519_v13 = vsub.f32 %v7426_v7, %v7204_v42  ;;  %v7620_v43 = vpop.permute.xlu0 %924  ;;  %v524_v32 = vsub.f32 %v7428_v8, %v7212_v45  ;;  %v525_v41 = vsub.f32 %v7430_v63, %v7212_v45  ;;  %v1530_v42 = vld [vmem:[%s11945_s5 + $0xa0] sm:$0xff] }
 0x128   : > { %12369 = vst [vmem:[#allocation50_spill] sm:$0xff] %v7612_v29  ;;  %12370 = vst [vmem:[#allocation51_spill] sm:$0xff] %v7614_v30  ;;  %1579 = vperm.xlu1 %5558, %v1517_v36   ;;  %v522_v22 = vsub.f32 %v7416_v55, %v7214_v46  ;;  %v523_v4 = vsub.f32 %v7422_v23, %v7214_v46  ;;  %1559 = vperm.xlu0 %5557, %v1513_v25   ;;  %v1524_v46 = vld [vmem:[%s11945_s5 + $0x70] sm:$0xff] }
 0x129   : > { %v7633_v10 = vmul.f32 %v520_v52, %v520_v52  ;;  %v528_v36 = vsub.f32 %v7437_v0, %v7222_v49  ;;  %v529_v30 = vsub.f32 %v7439_v47, %v7222_v49  ;;  %v526_v45 = vsub.f32 %v7424_v24, %v7224_v50 }
 0x12a   : > { %v7644_v25 = vmul.f32 %v521_v15, %v521_v15  ;;  %v527_v29 = vsub.f32 %v7426_v7, %v7224_v50  ;;  %v532_v52 = vsub.f32 %v7428_v8, %v7232_v53  ;;  %v7654_v49 = vmul.f32 %v518_v38, %v518_v38  ;;  %v1278_v38 = vld [vmem:[%s11944_s4 + $0xc0] sm:$0xff] }
 0x12b   : > { %12371 = vst [vmem:[#allocation52_spill] sm:$0xff] %v7633_v10  ;;  %v533_v10 = vsub.f32 %v7430_v63, %v7232_v53  ;;  %v7652_v26 = vpop.permute.xlu1 %939  ;;  %v7656_v56 = vmul.f32 %v519_v13, %v519_v13  ;;  %v530_v40 = vsub.f32 %v7416_v55, %v7234_v54  ;;  %v531_v15 = vsub.f32 %v7422_v23, %v7234_v54 }
 0x12c   : > { %12372 = vst [vmem:[#allocation53_spill] sm:$0xff] %v7644_v25  ;;  %12373 = vst [vmem:[#allocation54_spill] sm:$0xff] %v7652_v26  ;;  %v7662_v25 = vpop.permute.xlu0 %934  ;;  %1644 = vperm.xlu1 %5558, %v1530_v42   ;;  %v7664_v50 = vmul.f32 %v524_v32, %v524_v32  ;;  %v7666_v59 = vmul.f32 %v525_v41, %v525_v41  ;;  %v7668_v53 = vmul.f32 %v522_v22, %v522_v22  ;;  %v1531_v41 = vld [vmem:[%s11945_s5 + $0xa8] sm:$0xff] }
 0x12d   : > { %12374 = vst [vmem:[#allocation55_spill] sm:$0xff] %v7656_v56  ;;  %v7670_v26 = vmul.f32 %v523_v4, %v523_v4  ;;  %1614 = vperm.xlu0 %5557, %v1524_v46   ;;  %v7675_v13 = vmul.f32 %v528_v36, %v528_v36  ;;  %v7677_v56 = vmul.f32 %v529_v30, %v529_v30 }
 0x12e   : > { %v7679_v54 = vmul.f32 %v526_v45, %v526_v45  ;;  %v536_v32 = vsub.f32 %v7437_v0, %v7242_v57  ;;  %v7686_v22 = vmul.f32 %v527_v29, %v527_v29  ;;  %v7688_v4 = vmul.f32 %v532_v52, %v532_v52 }
 0x12f   : > { %v7690_v42 = vmul.f32 %v533_v10, %v533_v10  ;;  %v537_v36 = vsub.f32 %v7439_v47, %v7242_v57  ;;  %v7694_v30 = vpop.permute.xlu1 %949  ;;  %v7696_v45 = vmul.f32 %v530_v40, %v530_v40  ;;  %v7698_v46 = vmul.f32 %v531_v15, %v531_v15 }
 0x130   : > { %12375 = vst [vmem:[#allocation56_spill] sm:$0xff] %v7679_v54  ;;  %12376 = vst [vmem:[#allocation57_spill] sm:$0xff] %v7686_v22  ;;  %v534_v54 = vsub.f32 %v7424_v24, %v7244_v58  ;;  %v535_v29 = vsub.f32 %v7426_v7, %v7244_v58  ;;  %v7704_v22 = vpop.permute.xlu0 %944  ;;  %1408 = vperm.xlu1 %5558, %v1278_v38   ;;  %v540_v10 = vsub.f32 %v7428_v8, %v7252_v61  ;;  %v1521_v58 = vld [vmem:[%s11945_s5 + $0x58] sm:$0xff] }
 0x131   : > { %12377 = vst [vmem:[#allocation58_spill] sm:$0xff] %v7696_v45  ;;  %12378 = vst [vmem:[#allocation59_spill] sm:$0xff] %v7698_v46  ;;  %v541_v57 = vsub.f32 %v7430_v63, %v7252_v61  ;;  %v538_v40 = vsub.f32 %v7416_v55, %v7254_v62  ;;  %v539_v52 = vsub.f32 %v7422_v23, %v7254_v62  ;;  %1649 = vperm.xlu0 %5557, %v1531_v41   ;;  %v1279_v62 = vld [vmem:[%s11944_s4 + $0xc8] sm:$0xff] }
 0x132   : > { %v7717_v15 = vmul.f32 %v536_v32, %v536_v32  ;;  %v544_v38 = vsub.f32 %v7437_v0, %v7262_v1  ;;  %v545_v46 = vsub.f32 %v7439_v47, %v7262_v1  ;;  %v542_v61 = vsub.f32 %v7424_v24, %v7264_v2 }
 0x133   : > { %v7728_v41 = vmul.f32 %v537_v36, %v537_v36  ;;  %v543_v45 = vsub.f32 %v7426_v7, %v7264_v2  ;;  %v548_v32 = vsub.f32 %v7428_v8, %v7272_v5  ;;  %v549_v0 = vsub.f32 %v7430_v63, %v7272_v5  ;;  %v1534_v8 = vld [vmem:[%s11945_s5 + $0xc0] sm:$0xff] }
 0x134   : > { %12379 = vst [vmem:[#allocation60_spill] sm:$0xff] %v7717_v15  ;;  %v7736_v15 = vpop.permute.xlu1 %959  ;;  %v7738_v1 = vmul.f32 %v534_v54, %v534_v54  ;;  %v7740_v47 = vmul.f32 %v535_v29, %v535_v29  ;;  %v546_v24 = vsub.f32 %v7416_v55, %v7274_v6  ;;  %v547_v36 = vsub.f32 %v7422_v23, %v7274_v6  ;;  %v1528_v29 = vld [vmem:[%s11945_s5 + $0x90] sm:$0xff] }
 0x135   : > { %12380 = vst [vmem:[#allocation61_spill] sm:$0xff] %v7728_v41  ;;  %v7746_v41 = vpop.permute.xlu0 %954  ;;  %1599 = vperm.xlu1 %5558, %v1521_v58   ;;  %v7748_v2 = vmul.f32 %v540_v10, %v540_v10  ;;  %v7750_v7 = vmul.f32 %v541_v57, %v541_v57  ;;  %v7752_v5 = vmul.f32 %v538_v40, %v538_v40 }
 0x136   : > { %v7754_v63 = vmul.f32 %v539_v52, %v539_v52  ;;  %1413 = vperm.xlu0 %5557, %v1279_v62   ;;  %v7759_v55 = vmul.f32 %v544_v38, %v544_v38  ;;  %v7761_v54 = vmul.f32 %v545_v46, %v545_v46  ;;  %v7763_v6 = vmul.f32 %v542_v61, %v542_v61 }
 0x137   : > { %12381 = vst [vmem:[#allocation62_spill] sm:$0xff] %v7748_v2  ;;  %12382 = vst [vmem:[#allocation63_spill] sm:$0xff] %v7750_v7  ;;  %v808_v23 = vmul.f32 %v7282_v11, %v7500_v21  ;;  %v7770_v10 = vmul.f32 %v543_v45, %v543_v45  ;;  %v809_v57 = vmul.f32 %v7282_v11, %v7502_v51 }
 0x138   : > { %12383 = vst [vmem:[#allocation64_spill] sm:$0xff] %v7752_v5  ;;  %12384 = vst [vmem:[#allocation65_spill] sm:$0xff] %v7754_v63  ;;  %v7774_v40 = vmul.f32 %v548_v32, %v548_v32  ;;  %v7776_v52 = vmul.f32 %v549_v0, %v549_v0  ;;  %v7778_v46 = vpop.permute.xlu1 %969  ;;  %v806_v58 = vmul.f32 %v7284_v12, %v7486_v17  ;;  %v1276_v32 = vld [vmem:[%s11944_s4 + $0xb0] sm:$0xff] }
 0x139   : > { %12385 = vst [vmem:[#allocation66_spill] sm:$0xff] %v7759_v55  ;;  %12386 = vst [vmem:[#allocation67_spill] sm:$0xff] %v7761_v54  ;;  %v7782_v38 = vmul.f32 %v546_v24, %v546_v24  ;;  %v7784_v21 = vmul.f32 %v547_v36, %v547_v36  ;;  %v1064_v61 = vadd.f32 %v7526_v48, %v808_v23  ;;  %v7787_v45 = vpop.permute.xlu0 %964  ;;  %1664 = vperm.xlu1 %5558, %v1534_v8   ;;  %v12391_v36 = vld [vmem:[#allocation6_spill] sm:$0xff]  ;;  %v12392_v23 = vld [vmem:[#allocation35_spill] sm:$0xff] }
 0x13a   : > { %12387 = vst [vmem:[#allocation68_spill] sm:$0xff] %v7763_v6  ;;  %12388 = vst [vmem:[#allocation69_spill] sm:$0xff] %v7770_v10  ;;  %v807_v11 = vmul.f32 %v7284_v12, %v7488_v44  ;;  %v812_v51 = vmul.f32 %v7292_v19, %v7496_v18  ;;  %v813_v62 = vmul.f32 %v7292_v19, %v7498_v35  ;;  %1634 = vperm.xlu0 %5557, %v1528_v29   ;;  %v1535_v19 = vld [vmem:[%s11945_s5 + $0xc8] sm:$0xff]  ;;  %v12389_v35 = vld [vmem:[#allocation33_spill] sm:$0xff] }
 0x13b   : > { %v1065_v17 = vadd.f32 %v7526_v48, %v809_v57  ;;  %v810_v0 = vmul.f32 %v7294_v20, %v7465_v60  ;;  %v811_v24 = vmul.f32 %v7294_v20, %v7476_v39  ;;  %v816_v12 = vmul.f32 %v7302_v27, %v7507_v16  ;;  %v12390_v48 = vld [vmem:[#allocation34_spill] sm:$0xff]  ;;  %v12393_v16 = vld [vmem:[#allocation36_spill] sm:$0xff]  ;;  %v12394_v29 = vld [vmem:[#allocation7_spill] sm:$0xff] }
 0x13c   : > { %v1062_v44 = vadd.f32 %v7536_v31, %v806_v58  ;;  %v817_v18 = vmul.f32 %v7302_v27, %v12389_v35  ;;  %v814_v8 = vmul.f32 %v12391_v36, %v12390_v48  ;;  %v815_v60 = vmul.f32 %v12391_v36, %v12392_v23  ;;  %v7816_v39 = vpop.permute.xlu1 %979  ;;  %v12395_v58 = vld [vmem:[#allocation37_spill] sm:$0xff]  ;;  %v12396_v54 = vld [vmem:[#allocation42_spill] sm:$0xff]  ;;  %v12398_v48 = vld [vmem:[#allocation8_spill] sm:$0xff] }
 0x13d   : > { %v1063_v20 = vadd.f32 %v7536_v31, %v807_v11  ;;  %v820_v57 = vmul.f32 %v12394_v29, %v12393_v16  ;;  %v821_v10 = vmul.f32 %v12394_v29, %v12395_v58  ;;  %v1130_v6 = vmul.f32 1.442695, %v1064_v61  ;;  %v7823_v27 = vpop.permute.xlu0 %974  ;;  %1398 = vperm.xlu1 %5558, %v1276_v32   ;;  %v12397_v35 = vld [vmem:[#allocation38_spill] sm:$0xff]  ;;  %v12399_v36 = vld [vmem:[#allocation39_spill] sm:$0xff]  ;;  %v12400_v61 = vld [vmem:[#allocation40_spill] sm:$0xff] }
 0x13e   : > { %v1068_v55 = vadd.f32 %v12396_v54, %v812_v51  ;;  %v818_v63 = vmul.f32 %v12398_v48, %v12397_v35  ;;  %v819_v31 = vmul.f32 %v12398_v48, %v12399_v36  ;;  %v1132_v11 = vmul.f32 1.442695, %v1065_v17  ;;  %1669 = vperm.xlu0 %5557, %v1535_v19   ;;  %v1283_v16 = vld [vmem:[%s11944_s4 + $0xe8] sm:$0xff]  ;;  %v12401_v29 = vld [vmem:[#allocation9_spill] sm:$0xff]  ;;  %v1282_v17 = vld [vmem:[%s11944_s4 + $0xe0] sm:$0xff] }
 0x13f   : > { %v1069_v23 = vadd.f32 %v12396_v54, %v813_v62  ;;  %v824_v51 = vmul.f32 %v12401_v29, %v12400_v61  ;;  %v12402_v58 = vld [vmem:[#allocation41_spill] sm:$0xff]  ;;  %v1126_v5 = vmul.f32 1.442695, %v1062_v44  ;;  %v1066_v35 = vadd.f32 %v7578_v3, %v810_v0  ;;  %v12403_v54 = vld [vmem:[#allocation10_spill] sm:$0xff]  ;;  %v12404_v19 = vld [vmem:[#allocation43_spill] sm:$0xff] }
 0x140   : > { %v825_v32 = vmul.f32 %v12401_v29, %v12402_v58  ;;  %v7843_v62 = vmul.f32 %v12403_v54, %v7570_v33  ;;  %v7847_v48 = vmul.f32 %v12403_v54, %v12404_v19  ;;  %v1128_v36 = vmul.f32 1.442695, %v1063_v20  ;;  %v7850_v7 = vpop.permute.xlu1 %989  ;;  %v12405_v44 = vld [vmem:[#allocation11_spill] sm:$0xff]  ;;  %v12410_v19 = vld [vmem:[#allocation45_spill] sm:$0xff] }
 0x141   : > { %v1067_v61 = vadd.f32 %v7578_v3, %v811_v24  ;;  %v7854_v0 = vmul.f32 %v12405_v44, %v7580_v34  ;;  %5559 = vpow2.f32 %v1130_v6  ;;  %v1138_v29 = vmul.f32 1.442695, %v1068_v55  ;;  %v7857_v2 = vpop.permute.xlu0 %984  ;;  %1433 = vperm.xlu1 %5558, %v1283_v16   ;;  %v1532_v34 = vld [vmem:[%s11945_s5 + $0xb0] sm:$0xff]  ;;  %v12408_v16 = vld [vmem:[#allocation13_spill] sm:$0xff] }
 0x142   : > { %v1072_v58 = vadd.f32 %v7610_v14, %v816_v12  ;;  %v7861_v33 = vmul.f32 %v12405_v44, %v7582_v28  ;;  %5561 = vpow2.f32 %v1132_v11  ;;  %v1140_v20 = vmul.f32 1.442695, %v1069_v23  ;;  %1428 = vperm.xlu0 %5557, %v1282_v17   ;;  %v12406_v55 = vld [vmem:[#allocation12_spill] sm:$0xff]  ;;  %v1525_v28 = vld [vmem:[%s11945_s5 + $0x78] sm:$0xff]  ;;  %v12412_v44 = vld [vmem:[#allocation14_spill] sm:$0xff] }
 0x143   : > { %v1073_v3 = vadd.f32 %v7610_v14, %v817_v18  ;;  %v7869_v6 = vmul.f32 %v12406_v55, %v7584_v37  ;;  %5563 = vpow2.f32 %v1126_v5  ;;  %v1134_v24 = vmul.f32 1.442695, %v1066_v35  ;;  %v12407_v37 = vld [vmem:[#allocation44_spill] sm:$0xff]  ;;  %v12409_v35 = vld [vmem:[#allocation54_spill] sm:$0xff] }
 0x144   : > { %v1070_v12 = vadd.f32 %v7620_v43, %v814_v8  ;;  %v7877_v14 = vmul.f32 %v12406_v55, %v7586_v9  ;;  %5565 = vpow2.f32 %v1128_v36  ;;  %v1136_v18 = vmul.f32 1.442695, %v1067_v61  ;;  %v7880_v23 = vpop.permute.xlu1 %999  ;;  %v12411_v61 = vld [vmem:[#allocation46_spill] sm:$0xff] }
 0x145   : > { %v1071_v11 = vadd.f32 %v7620_v43, %v815_v60  ;;  %v7884_v5 = vmul.f32 %v12408_v16, %v12407_v37  ;;  %5567 = vpow2.f32 %v1138_v29  ;;  %v1146_v8 = vmul.f32 1.442695, %v1072_v58  ;;  %v7887_v54 = vpop.permute.xlu0 %994  ;;  %1654 = vperm.xlu1 %5558, %v1532_v34   ;;  %v1539_v60 = vld [vmem:[%s11945_s5 + $0xe8] sm:$0xff]  ;;  %v12414_v37 = vld [vmem:[#allocation48_spill] sm:$0xff] }
 0x146   : > { %v1076_v17 = vadd.f32 %v12409_v35, %v820_v57  ;;  %v7891_v9 = vmul.f32 %v12408_v16, %v12410_v19  ;;  %5569 = vpow2.f32 %v1140_v20  ;;  %v1148_v36 = vmul.f32 1.442695, %v1073_v3  ;;  %1619 = vperm.xlu0 %5557, %v1525_v28   ;;  %v1538_v20 = vld [vmem:[%s11945_s5 + $0xe0] sm:$0xff]  ;;  %v12413_v3 = vld [vmem:[#allocation47_spill] sm:$0xff]  ;;  %v12416_v19 = vld [vmem:[#allocation49_spill] sm:$0xff] }
 0x147   : > { %v1077_v43 = vadd.f32 %v12409_v35, %v821_v10  ;;  %v7899_v29 = vmul.f32 %v12412_v44, %v12411_v61  ;;  %5571 = vpow2.f32 %v1134_v24  ;;  %v1142_v57 = vmul.f32 1.442695, %v1070_v12  ;;  %v12415_v16 = vld [vmem:[#allocation15_spill] sm:$0xff] }
 0x148   : > { %v1074_v58 = vadd.f32 %v7662_v25, %v818_v63  ;;  %v7907_v10 = vmul.f32 %v12412_v44, %v12413_v3  ;;  %5573 = vpow2.f32 %v1136_v18  ;;  %v1144_v34 = vmul.f32 1.442695, %v1071_v11  ;;  %v7910_v28 = vpop.permute.xlu1 %1009  ;;  %v12417_v11 = vld [vmem:[#allocation50_spill] sm:$0xff] }
 0x149   : > { %v1075_v55 = vadd.f32 %v7662_v25, %v819_v31  ;;  %v7914_v24 = vmul.f32 %v12415_v16, %v12414_v37  ;;  %5575 = vpow2.f32 %v1146_v8  ;;  %v1154_v63 = vmul.f32 1.442695, %v1076_v17  ;;  %v7917_v35 = vpop.permute.xlu0 %1004  ;;  %1689 = vperm.xlu1 %5558, %v1539_v60   ;;  %v1280_v31 = vld [vmem:[%s11944_s4 + $0xd0] sm:$0xff] }
 0x14a   : > { %v1080_v12 = vadd.f32 %v7694_v30, %v824_v51  ;;  %v7921_v61 = vmul.f32 %v12415_v16, %v12416_v19  ;;  %5577 = vpow2.f32 %v1148_v36  ;;  %v1156_v18 = vmul.f32 1.442695, %v1077_v43  ;;  %1684 = vperm.xlu0 %5557, %v1538_v20   ;;  %v12418_v8 = vld [vmem:[#allocation16_spill] sm:$0xff]  ;;  %v1273_v36 = vld [vmem:[%s11944_s4 + $0x98] sm:$0xff]  ;;  %v12419_v43 = vld [vmem:[#allocation51_spill] sm:$0xff] }
 0x14b   : > { %v1081_v25 = vadd.f32 %v7694_v30, %v825_v32  ;;  %v7929_v17 = vmul.f32 %v12418_v8, %v12417_v11  ;;  %5579 = vpow2.f32 %v1142_v57  ;;  %v1150_v51 = vmul.f32 1.442695, %v1074_v58  ;;  %v12420_v57 = vld [vmem:[#allocation52_spill] sm:$0xff]  ;;  %v12421_v58 = vld [vmem:[#allocation17_spill] sm:$0xff] }
 0x14c   : > { %v1078_v60 = vadd.f32 %v7704_v22, %v7843_v62  ;;  %v7938_v30 = vmul.f32 %v12418_v8, %v12419_v43  ;;  %5581 = vpow2.f32 %v1144_v34  ;;  %v1152_v32 = vmul.f32 1.442695, %v1075_v55  ;;  %v7942_v20 = vpop.permute.xlu1 %1019  ;;  %v12423_v34 = vld [vmem:[#allocation53_spill] sm:$0xff] }
 0x14d   : > { %v1079_v44 = vadd.f32 %v7704_v22, %v7847_v48  ;;  %v7946_v3 = vmul.f32 %v12421_v58, %v12420_v57  ;;  %5583 = vpow2.f32 %v1154_v63  ;;  %v1162_v62 = vmul.f32 1.442695, %v1080_v12  ;;  %v7950_v16 = vpop.permute.xlu0 %1014  ;;  %1418 = vperm.xlu1 %5558, %v1280_v31   ;;  %v1536_v63 = vld [vmem:[%s11945_s5 + $0xd0] sm:$0xff]  ;;  %v12425_v12 = vld [vmem:[#allocation18_spill] sm:$0xff] }
 0x14e   : > { %v1084_v37 = vadd.f32 %v7736_v15, %v7854_v0  ;;  %v7952_v19 = vpop.eup %5559  ;;  %v7956_v55 = vmul.f32 %v12421_v58, %v12423_v34  ;;  %5585 = vpow2.f32 %v1156_v18  ;;  %v1164_v22 = vmul.f32 1.442695, %v1081_v25  ;;  %1383 = vperm.xlu0 %5557, %v1273_v36   ;;  %v12426_v25 = vld [vmem:[#allocation55_spill] sm:$0xff] }
 0x14f   : > { %12422 = vst [vmem:[#allocation33_spill] sm:$0xff] %v7952_v19  ;;  %v1085_v48 = vadd.f32 %v7736_v15, %v7861_v33  ;;  %v7963_v0 = vpop.eup %5561  ;;  %v7967_v31 = vmul.f32 %v12425_v12, %v7654_v49  ;;  %5587 = vpow2.f32 %v1150_v51  ;;  %v1158_v11 = vmul.f32 1.442695, %v1078_v60  ;;  %v1529_v15 = vld [vmem:[%s11945_s5 + $0x98] sm:$0xff] }
 0x150   : > { %12424 = vst [vmem:[#allocation34_spill] sm:$0xff] %v7963_v0  ;;  %v1082_v18 = vadd.f32 %v7746_v41, %v7869_v6  ;;  %v7974_v33 = vpop.eup %5563  ;;  %v7978_v8 = vmul.f32 %v12425_v12, %v12426_v25  ;;  %5589 = vpow2.f32 %v1152_v32  ;;  %v1160_v36 = vmul.f32 1.442695, %v1079_v44  ;;  %v7982_v51 = vpop.permute.xlu1 %1029  ;;  %v12427_v6 = vld [vmem:[#allocation19_spill] sm:$0xff]  ;;  %v1284_v44 = vld [vmem:[%s11944_s4 + $0xf0] sm:$0xff] }
 0x151   : > { %v1083_v49 = vadd.f32 %v7746_v41, %v7877_v14  ;;  %v7984_v60 = vpop.eup %5565  ;;  %v7988_v43 = vmul.f32 %v12427_v6, %v7664_v50  ;;  %5591 = vpow2.f32 %v1162_v62  ;;  %v1170_v57 = vmul.f32 1.442695, %v1084_v37  ;;  %v7992_v34 = vpop.permute.xlu0 %1024  ;;  %1674 = vperm.xlu1 %5558, %v1536_v63   ;;  %v12430_v62 = vld [vmem:[#allocation20_spill] sm:$0xff] }
 0x152   : > { %v1088_v58 = vadd.f32 %v7778_v46, %v7884_v5  ;;  %v7994_v32 = vpop.eup %5567  ;;  %v7998_v41 = vmul.f32 %v12427_v6, %v7666_v59  ;;  %5593 = vpow2.f32 %v1164_v22  ;;  %v1172_v14 = vmul.f32 1.442695, %v1085_v48  ;;  %1639 = vperm.xlu0 %5557, %v1529_v15   ;;  %v12435_v6 = vld [vmem:[#allocation56_spill] sm:$0xff] }
 0x153   : > { %12428 = vst [vmem:[#allocation6_spill] sm:$0xff] %v7994_v32  ;;  %v1089_v50 = vadd.f32 %v7778_v46, %v7891_v9  ;;  %v8005_v5 = vpop.eup %5569  ;;  %v8009_v37 = vmul.f32 %v12430_v62, %v7668_v53  ;;  %5595 = vpow2.f32 %v1158_v11  ;;  %v1166_v63 = vmul.f32 1.442695, %v1082_v18  ;;  %v1277_v46 = vld [vmem:[%s11944_s4 + $0xb8] sm:$0xff] }
 0x154   : > { %12429 = vst [vmem:[#allocation35_spill] sm:$0xff] %v8005_v5  ;;  %v1086_v59 = vadd.f32 %v7787_v45, %v7899_v29  ;;  %v8016_v9 = vpop.eup %5571  ;;  %v8020_v22 = vmul.f32 %v12430_v62, %v7670_v26  ;;  %5597 = vpow2.f32 %v1160_v36  ;;  %v1168_v48 = vmul.f32 1.442695, %v1083_v49  ;;  %v8024_v12 = vpop.permute.xlu1 %1039  ;;  %v12433_v29 = vld [vmem:[#allocation21_spill] sm:$0xff]  ;;  %v1540_v49 = vld [vmem:[%s11945_s5 + $0xf0] sm:$0xff] }
 0x155   : > { %12431 = vst [vmem:[#allocation36_spill] sm:$0xff] %v8016_v9  ;;  %v1087_v53 = vadd.f32 %v7787_v45, %v7907_v10  ;;  %v8026_v11 = vpop.eup %5573  ;;  %v8030_v18 = vmul.f32 %v12433_v29, %v7675_v13  ;;  %5599 = vpow2.f32 %v1170_v57  ;;  %v1178_v15 = vmul.f32 1.442695, %v1088_v58  ;;  %v8034_v26 = vpop.permute.xlu0 %1034  ;;  %1438 = vperm.xlu1 %5558, %v1284_v44   ;;  %v12436_v57 = vld [vmem:[#allocation22_spill] sm:$0xff] }
 0x156   : > { %12432 = vst [vmem:[#allocation7_spill] sm:$0xff] %v8026_v11  ;;  %v1092_v25 = vadd.f32 %v7816_v39, %v7914_v24  ;;  %12434 = vst [vmem:[#allocation37_spill] sm:$0xff] %v8034_v26  ;;  %v8036_v36 = vpop.eup %5575  ;;  %v8040_v45 = vmul.f32 %v12433_v29, %v7677_v56  ;;  %5601 = vpow2.f32 %v1172_v14  ;;  %v1180_v10 = vmul.f32 1.442695, %v1089_v50  ;;  %1403 = vperm.xlu0 %5557, %v1277_v46   ;;  %v12437_v14 = vld [vmem:[#allocation57_spill] sm:$0xff] }
 0x157   : > { %v1093_v13 = vadd.f32 %v7816_v39, %v7921_v61  ;;  %v8047_v24 = vpop.eup %5577  ;;  %v8051_v58 = vmul.f32 %v12436_v57, %v12435_v6  ;;  %5603 = vpow2.f32 %v1166_v63  ;;  %v1174_v44 = vmul.f32 1.442695, %v1086_v59  ;;  %v1533_v39 = vld [vmem:[%s11945_s5 + $0xb8] sm:$0xff] }
 0x158   : > { %v1090_v56 = vadd.f32 %v7823_v27, %v7929_v17  ;;  %v8058_v61 = vpop.eup %5579  ;;  %v8062_v50 = vmul.f32 %v12436_v57, %v12437_v14  ;;  %5605 = vpow2.f32 %v1168_v48  ;;  %v1176_v62 = vmul.f32 1.442695, %v1087_v53  ;;  %v8066_v63 = vpop.permute.xlu1 %1049  ;;  %v12439_v17 = vld [vmem:[#allocation23_spill] sm:$0xff] }
 0x159   : > { %v1091_v46 = vadd.f32 %v7823_v27, %v7938_v30  ;;  %12438 = vst [vmem:[#allocation42_spill] sm:$0xff] %v8066_v63  ;;  %v8068_v59 = vpop.eup %5581  ;;  %v8072_v29 = vmul.f32 %v12439_v17, %v7688_v4  ;;  %v8076_v6 = vmul.f32 %v12439_v17, %v7690_v42  ;;  %5607 = vpow2.f32 %v1178_v15  ;;  %v8078_v14 = vpop.permute.xlu0 %1044  ;;  %1694 = vperm.xlu1 %5558, %v1540_v49   ;;  %v12442_v27 = vld [vmem:[#allocation31_spill] sm:$0xff]  ;;  %v1537_v42 = vld [vmem:[%s11945_s5 + $0xd8] sm:$0xff] }
 0x15a   : > { %v1186_v57 = vmul.f32 1.442695, %v1092_v25  ;;  %12440 = vst [vmem:[#allocation38_spill] sm:$0xff] %v8078_v14  ;;  %v8080_v48 = vpop.eup %5583  ;;  %v868_v30 = vmul.f32 %v12442_v27, %v7774_v40  ;;  %v869_v53 = vmul.f32 %v12442_v27, %v7776_v52  ;;  %5609 = vpow2.f32 %v1180_v10  ;;  %1659 = vperm.xlu0 %5557, %v1533_v39   ;;  %v12444_v25 = vld [vmem:[#allocation32_spill] sm:$0xff]  ;;  %v1281_v52 = vld [vmem:[%s11944_s4 + $0xd8] sm:$0xff] }
 0x15b   : > { %12441 = vst [vmem:[#allocation8_spill] sm:$0xff] %v8080_v48  ;;  %v1188_v4 = vmul.f32 1.442695, %v1093_v13  ;;  %v8089_v15 = vpop.eup %5585  ;;  %v866_v49 = vmul.f32 %v12444_v25, %v7782_v38  ;;  %5611 = vpow2.f32 %v1174_v44  ;;  %v1182_v17 = vmul.f32 1.442695, %v1090_v56 }
 0x15c   : > { %12443 = vst [vmem:[#allocation39_spill] sm:$0xff] %v8089_v15  ;;  %v1096_v40 = vadd.f32 %v7850_v7, %v7946_v3  ;;  %v8098_v10 = vpop.eup %5587  ;;  %v867_v13 = vmul.f32 %v12444_v25, %v7784_v21  ;;  %5613 = vpow2.f32 %v1176_v62  ;;  %v1184_v39 = vmul.f32 1.442695, %v1091_v46  ;;  %v1060_v38 = vpop.permute.xlu1 %1059  ;;  %v12449_v46 = vld [vmem:[#allocation58_spill] sm:$0xff] }
 0x15d   : > { %12445 = vst [vmem:[#allocation40_spill] sm:$0xff] %v8098_v10  ;;  %v1097_v27 = vadd.f32 %v7850_v7, %v7956_v55  ;;  %v8104_v44 = vpop.eup %5589  ;;  %5615 = vpow2.f32 %v1186_v57  ;;  %v1094_v3 = vadd.f32 %v7857_v2, %v7967_v31  ;;  %v8108_v56 = vadd.f32 %v1060_v38, %v868_v30  ;;  %v1055_v63 = vpop.permute.xlu0 %1054  ;;  %1679 = vperm.xlu1 %5558, %v1537_v42   ;;  %v1541_v31 = vld [vmem:[%s11945_s5 + $0xf8] sm:$0xff]  ;;  %v12450_v57 = vld [vmem:[#allocation24_spill] sm:$0xff] }
 0x15e   : > { %12446 = vst [vmem:[#allocation9_spill] sm:$0xff] %v8104_v44  ;;  %v8110_v14 = vadd.f32 %v1060_v38, %v869_v53  ;;  %v8112_v26 = vpop.eup %5591  ;;  %5617 = vpow2.f32 %v1188_v4  ;;  %v1095_v21 = vadd.f32 %v7857_v2, %v7978_v8  ;;  %v8116_v7 = vadd.f32 %v1055_v63, %v866_v49  ;;  %1423 = vperm.xlu0 %5557, %v1281_v52   ;;  %v1285_v8 = vld [vmem:[%s11944_s4 + $0xf8] sm:$0xff]  ;;  %v12451_v4 = vld [vmem:[#allocation59_spill] sm:$0xff] }
 0x15f   : > { %12447 = vst [vmem:[#allocation41_spill] sm:$0xff] %v8112_v26  ;;  %v8118_v55 = vadd.f32 %v1055_v63, %v867_v13  ;;  %v8123_v62 = vpop.eup %5593  ;;  %v8127_v30 = vmul.f32 %v12450_v57, %v12449_v46  ;;  %5619 = vpow2.f32 %v1182_v17  ;;  %v1194_v53 = vmul.f32 1.442695, %v1096_v40 }
 0x160   : > { %12448 = vst [vmem:[#allocation10_spill] sm:$0xff] %v8123_v62  ;;  %v1100_v2 = vadd.f32 %v7880_v23, %v7988_v43  ;;  %v8134_v63 = vpop.eup %5595  ;;  %v8138_v42 = vmul.f32 %v12450_v57, %v12451_v4  ;;  %5621 = vpow2.f32 %v1184_v39  ;;  %v1196_v25 = vmul.f32 1.442695, %v1097_v27  ;;  %v1294_v17 = vpop.permute.xlu1 %1293  ;;  %v12458_v57 = vld [vmem:[#allocation60_spill] sm:$0xff]  ;;  %v12459_v4 = vld [vmem:[#allocation25_spill] sm:$0xff] }
 0x161   : > { %v1101_v49 = vadd.f32 %v7880_v23, %v7998_v41  ;;  %v8142_v40 = vpop.eup %5597  ;;  %v1190_v52 = vmul.f32 1.442695, %v1094_v3  ;;  %v1098_v43 = vadd.f32 %v7887_v54, %v8009_v37  ;;  %v8147_v13 = vmul.f32 %v7952_v19, %v1294_v17  ;;  %v1289_v46 = vpop.permute.xlu0 %1288  ;;  %1699 = vperm.xlu1 %5558, %v1541_v31  }
 0x162   : > { %v8150_v38 = vmul.f32 %v7963_v0, %v1294_v17  ;;  %v8152_v39 = vpop.eup %5599  ;;  %v1192_v27 = vmul.f32 1.442695, %v1095_v21  ;;  %v1099_v23 = vadd.f32 %v7887_v54, %v8020_v22  ;;  %v8157_v41 = vmul.f32 %v7974_v33, %v1289_v46  ;;  %1443 = vperm.xlu0 %5557, %v1285_v8   ;;  %v12461_v54 = vld [vmem:[#allocation61_spill] sm:$0xff] }
 0x163   : > { %12452 = vst [vmem:[#allocation43_spill] sm:$0xff] %v8147_v13  ;;  %12454 = vst [vmem:[#allocation12_spill] sm:$0xff] %v8152_v39  ;;  %v8160_v3 = vmul.f32 %v7984_v60, %v1289_v46  ;;  %v8162_v37 = vpop.eup %5601  ;;  %v856_v17 = vmul.f32 %v12459_v4, %v12458_v57  ;;  %5623 = vpow2.f32 %v1194_v53  ;;  %v1202_v31 = vmul.f32 1.442695, %v1100_v2 }
 0x164   : > { %12453 = vst [vmem:[#allocation11_spill] sm:$0xff] %v8150_v38  ;;  %12455 = vst [vmem:[#allocation44_spill] sm:$0xff] %v8157_v41  ;;  %v1104_v21 = vadd.f32 %v7910_v28, %v8030_v18  ;;  %v8168_v38 = vpop.eup %5603  ;;  %v857_v22 = vmul.f32 %v12459_v4, %v12461_v54  ;;  %5625 = vpow2.f32 %v1196_v25  ;;  %v1204_v13 = vmul.f32 1.442695, %v1101_v49  ;;  %v1304_v46 = vpop.permute.xlu1 %1303 }
 0x165   : > { %12456 = vst [vmem:[#allocation13_spill] sm:$0xff] %v8160_v3  ;;  %12457 = vst [vmem:[#allocation54_spill] sm:$0xff] %v8162_v37  ;;  %v1105_v8 = vadd.f32 %v7910_v28, %v8040_v45  ;;  %v8174_v0 = vpop.eup %5605  ;;  %5627 = vpow2.f32 %v1190_v52  ;;  %v1198_v57 = vmul.f32 1.442695, %v1098_v43  ;;  %v8177_v53 = vmul.f32 %v7994_v32, %v1304_v46  ;;  %v1299_v2 = vpop.permute.xlu0 %1298  ;;  %v12469_v52 = vld [vmem:[#allocation26_spill] sm:$0xff] }
 0x166   : > { %12460 = vst [vmem:[#allocation45_spill] sm:$0xff] %v8168_v38  ;;  %12462 = vst [vmem:[#allocation46_spill] sm:$0xff] %v8174_v0  ;;  %v8180_v18 = vmul.f32 %v8005_v5, %v1304_v46  ;;  %v8182_v19 = vpop.eup %5607  ;;  %5629 = vpow2.f32 %v1192_v27  ;;  %v1200_v25 = vmul.f32 1.442695, %v1099_v23  ;;  %v8185_v49 = vmul.f32 %v8016_v9, %v1299_v2 }
 0x167   : > { %12463 = vst [vmem:[#allocation14_spill] sm:$0xff] %v8177_v53  ;;  %12465 = vst [vmem:[#allocation48_spill] sm:$0xff] %v8182_v19  ;;  %v8188_v28 = vmul.f32 %v8026_v11, %v1299_v2  ;;  %v8190_v45 = vpop.eup %5609  ;;  %v854_v43 = vmul.f32 %v12469_v52, %v7738_v1  ;;  %5631 = vpow2.f32 %v1202_v31  ;;  %v1210_v4 = vmul.f32 1.442695, %v1104_v21  ;;  %v12481_v53 = vld [vmem:[#allocation63_spill] sm:$0xff] }
 0x168   : > { %12464 = vst [vmem:[#allocation47_spill] sm:$0xff] %v8180_v18  ;;  %12466 = vst [vmem:[#allocation15_spill] sm:$0xff] %v8185_v49  ;;  %v1102_v54 = vadd.f32 %v7917_v35, %v8051_v58  ;;  %v8196_v46 = vpop.eup %5611  ;;  %v855_v27 = vmul.f32 %v12469_v52, %v7740_v47  ;;  %5633 = vpow2.f32 %v1204_v13  ;;  %v1212_v23 = vmul.f32 1.442695, %v1105_v8  ;;  %v1314_v5 = vpop.permute.xlu1 %1313  ;;  %v12478_v8 = vld [vmem:[#allocation62_spill] sm:$0xff] }
 0x169   : > { %12467 = vst [vmem:[#allocation49_spill] sm:$0xff] %v8188_v28  ;;  %12468 = vst [vmem:[#allocation50_spill] sm:$0xff] %v8190_v45  ;;  %v1103_v2 = vadd.f32 %v7917_v35, %v8062_v50  ;;  %v8202_v32 = vpop.eup %5613  ;;  %5635 = vpow2.f32 %v1198_v57  ;;  %v1108_v1 = vadd.f32 %v7942_v20, %v8072_v29  ;;  %v8207_v31 = vmul.f32 %v8036_v36, %v1314_v5  ;;  %v1309_v21 = vpop.permute.xlu0 %1308  ;;  %v12479_v57 = vld [vmem:[#allocation27_spill] sm:$0xff] }
 0x16a   : > { %12470 = vst [vmem:[#allocation16_spill] sm:$0xff] %v8196_v46  ;;  %12471 = vst [vmem:[#allocation51_spill] sm:$0xff] %v8202_v32  ;;  %v8210_v58 = vmul.f32 %v8047_v24, %v1314_v5  ;;  %v8212_v47 = vpop.eup %5615  ;;  %5637 = vpow2.f32 %v1200_v25  ;;  %v1109_v35 = vadd.f32 %v7942_v20, %v8076_v6  ;;  %v8217_v50 = vmul.f32 %v8058_v61, %v1309_v21 }
 0x16b   : > { %12472 = vst [vmem:[#allocation52_spill] sm:$0xff] %v8207_v31  ;;  %12474 = vst [vmem:[#allocation53_spill] sm:$0xff] %v8212_v47  ;;  %v8220_v13 = vmul.f32 %v8068_v59, %v1309_v21  ;;  %v8222_v29 = vpop.eup %5617  ;;  %v860_v52 = vmul.f32 %v12479_v57, %v12478_v8  ;;  %5639 = vpow2.f32 %v1210_v4  ;;  %v1206_v5 = vmul.f32 1.442695, %v1102_v54 }
 0x16c   : > { %12473 = vst [vmem:[#allocation17_spill] sm:$0xff] %v8210_v58  ;;  %12475 = vst [vmem:[#allocation18_spill] sm:$0xff] %v8217_v50  ;;  %v1106_v18 = vadd.f32 %v7950_v16, %v8127_v30  ;;  %v8228_v25 = vpop.eup %5619  ;;  %v861_v20 = vmul.f32 %v12479_v57, %v12481_v53  ;;  %5641 = vpow2.f32 %v1212_v23  ;;  %v1208_v6 = vmul.f32 1.442695, %v1103_v2  ;;  %v1324_v28 = vpop.permute.xlu1 %1323  ;;  %v12488_v2 = vld [vmem:[#allocation28_spill] sm:$0xff] }
 0x16d   : > { %12476 = vst [vmem:[#allocation55_spill] sm:$0xff] %v8220_v13  ;;  %12477 = vst [vmem:[#allocation19_spill] sm:$0xff] %v8222_v29  ;;  %v1107_v21 = vadd.f32 %v7950_v16, %v8138_v42  ;;  %v8234_v49 = vpop.eup %5621  ;;  %v1218_v11 = vmul.f32 1.442695, %v1108_v1  ;;  %v1112_v4 = vadd.f32 %v7982_v51, %v856_v17  ;;  %v8238_v54 = vmul.f32 %v8080_v48, %v1324_v28  ;;  %v1319_v8 = vpop.permute.xlu0 %1318  ;;  %v12487_v42 = vld [vmem:[#allocation64_spill] sm:$0xff] }
 0x16e   : > { %12480 = vst [vmem:[#allocation20_spill] sm:$0xff] %v8228_v25  ;;  %12482 = vst [vmem:[#allocation21_spill] sm:$0xff] %v8234_v49  ;;  %v8241_v30 = vmul.f32 %v8089_v15, %v1324_v28  ;;  %v1220_v9 = vmul.f32 1.442695, %v1109_v35  ;;  %v1113_v53 = vadd.f32 %v7982_v51, %v857_v22  ;;  %v8245_v23 = vmul.f32 %v8098_v10, %v1319_v8  ;;  %v12490_v28 = vld [vmem:[#allocation65_spill] sm:$0xff] }
 0x16f   : > { %12483 = vst [vmem:[#allocation56_spill] sm:$0xff] %v8238_v54  ;;  %v8248_v16 = vmul.f32 %v8104_v44, %v1319_v8  ;;  %v858_v1 = vmul.f32 %v12488_v2, %v12487_v42  ;;  %5643 = vpow2.f32 %v1206_v5  ;;  %v1214_v17 = vmul.f32 1.442695, %v1106_v18  ;;  %v12501_v44 = vld [vmem:[#allocation67_spill] sm:$0xff] }
 0x170   : > { %12484 = vst [vmem:[#allocation22_spill] sm:$0xff] %v8241_v30  ;;  %12485 = vst [vmem:[#allocation57_spill] sm:$0xff] %v8245_v23  ;;  %v1110_v57 = vadd.f32 %v7992_v34, %v854_v43  ;;  %v8253_v54 = vpop.eup %5623  ;;  %v859_v35 = vmul.f32 %v12488_v2, %v12490_v28  ;;  %5645 = vpow2.f32 %v1208_v6  ;;  %v1216_v51 = vmul.f32 1.442695, %v1107_v21  ;;  %v1334_v30 = vpop.permute.xlu1 %1333  ;;  %v12499_v21 = vld [vmem:[#allocation29_spill] sm:$0xff] }
 0x171   : > { %12486 = vst [vmem:[#allocation23_spill] sm:$0xff] %v8248_v16  ;;  %12489 = vst [vmem:[#allocation31_spill] sm:$0xff] %v8253_v54  ;;  %v1111_v22 = vadd.f32 %v7992_v34, %v855_v27  ;;  %v8258_v15 = vpop.eup %5625  ;;  %5647 = vpow2.f32 %v1218_v11  ;;  %v1226_v8 = vmul.f32 1.442695, %v1112_v4  ;;  %v8261_v42 = vmul.f32 %v8112_v26, %v1334_v30  ;;  %v1329_v43 = vpop.permute.xlu0 %1328  ;;  %v12498_v11 = vld [vmem:[#allocation66_spill] sm:$0xff]  ;;  %v12503_v26 = vld [vmem:[#allocation37_spill] sm:$0xff] }
 0x172   : > { %12491 = vst [vmem:[#allocation32_spill] sm:$0xff] %v8258_v15  ;;  %v8264_v18 = vmul.f32 %v8123_v62, %v1334_v30  ;;  %v8266_v5 = vpop.eup %5627  ;;  %5649 = vpow2.f32 %v1220_v9  ;;  %v1228_v2 = vmul.f32 1.442695, %v1113_v53  ;;  %v8269_v6 = vmul.f32 %v8134_v63, %v1329_v43 }
 0x173   : > { %12492 = vst [vmem:[#allocation58_spill] sm:$0xff] %v8261_v42  ;;  %12494 = vst [vmem:[#allocation59_spill] sm:$0xff] %v8266_v5  ;;  %v8272_v34 = vmul.f32 %v8142_v40, %v1329_v43  ;;  %v8274_v27 = vpop.eup %5629  ;;  %v864_v4 = vmul.f32 %v12499_v21, %v12498_v11  ;;  %5651 = vpow2.f32 %v1214_v17  ;;  %v1222_v28 = vmul.f32 1.442695, %v1110_v57 }
 0x174   : > { %12493 = vst [vmem:[#allocation24_spill] sm:$0xff] %v8264_v18  ;;  %12495 = vst [vmem:[#allocation60_spill] sm:$0xff] %v8269_v6  ;;  %v1116_v30 = vadd.f32 %v8024_v12, %v860_v52  ;;  %v8279_v48 = vpop.eup %5631  ;;  %v865_v9 = vmul.f32 %v12499_v21, %v12501_v44  ;;  %5653 = vpow2.f32 %v1216_v51  ;;  %v1224_v53 = vmul.f32 1.442695, %v1111_v22  ;;  %v1344_v43 = vpop.permute.xlu1 %1343  ;;  %v12511_v22 = vld [vmem:[#allocation30_spill] sm:$0xff] }
 0x175   : > { %12496 = vst [vmem:[#allocation25_spill] sm:$0xff] %v8272_v34  ;;  %12497 = vst [vmem:[#allocation61_spill] sm:$0xff] %v8274_v27  ;;  %v1117_v10 = vadd.f32 %v8024_v12, %v861_v20  ;;  %v8284_v62 = vpop.eup %5633  ;;  %5655 = vpow2.f32 %v1226_v8  ;;  %v1114_v16 = vadd.f32 %v12503_v26, %v858_v1  ;;  %v8288_v17 = vmul.f32 %v8152_v39, %v1344_v43  ;;  %v1339_v57 = vpop.permute.xlu0 %1338  ;;  %v12510_v1 = vld [vmem:[#allocation68_spill] sm:$0xff] }
 0x176   : > { %12500 = vst [vmem:[#allocation26_spill] sm:$0xff] %v8279_v48  ;;  %12502 = vst [vmem:[#allocation62_spill] sm:$0xff] %v8284_v62  ;;  %v8291_v52 = vmul.f32 %v8162_v37, %v1344_v43  ;;  %v8293_v11 = vpop.eup %5635  ;;  %5657 = vpow2.f32 %v1228_v2  ;;  %v1115_v44 = vadd.f32 %v12503_v26, %v859_v35  ;;  %v8297_v12 = vmul.f32 %v8168_v38, %v1339_v57  ;;  %v12512_v43 = vld [vmem:[#allocation42_spill] sm:$0xff]  ;;  %v12514_v2 = vld [vmem:[#allocation69_spill] sm:$0xff] }
 0x177   : > { %12504 = vst [vmem:[#allocation27_spill] sm:$0xff] %v8288_v17  ;;  %12506 = vst [vmem:[#allocation64_spill] sm:$0xff] %v8293_v11  ;;  %v8300_v20 = vmul.f32 %v8174_v0, %v1339_v57  ;;  %v8302_v51 = vpop.eup %5637  ;;  %v862_v8 = vmul.f32 %v12511_v22, %v12510_v1  ;;  %5659 = vpow2.f32 %v1222_v28  ;;  %v1234_v21 = vmul.f32 1.442695, %v1116_v30  ;;  %v12516_v17 = vld [vmem:[#allocation38_spill] sm:$0xff] }
 0x178   : > { %12505 = vst [vmem:[#allocation63_spill] sm:$0xff] %v8291_v52  ;;  %12507 = vst [vmem:[#allocation28_spill] sm:$0xff] %v8297_v12  ;;  %v1120_v62 = vadd.f32 %v12512_v43, %v864_v4  ;;  %v8307_v48 = vpop.eup %5639  ;;  %v863_v26 = vmul.f32 %v12511_v22, %v12514_v2  ;;  %5661 = vpow2.f32 %v1224_v53  ;;  %v1236_v35 = vmul.f32 1.442695, %v1117_v10  ;;  %v1354_v57 = vpop.permute.xlu1 %1353 }
 0x179   : > { %12508 = vst [vmem:[#allocation65_spill] sm:$0xff] %v8300_v20  ;;  %12509 = vst [vmem:[#allocation66_spill] sm:$0xff] %v8302_v51  ;;  %v1121_v37 = vadd.f32 %v12512_v43, %v865_v9  ;;  %v8312_v39 = vpop.eup %5641  ;;  %v1230_v52 = vmul.f32 1.442695, %v1114_v16  ;;  %v1118_v0 = vadd.f32 %v12516_v17, %v862_v8  ;;  %v8316_v28 = vmul.f32 %v8182_v19, %v1354_v57  ;;  %v1349_v30 = vpop.permute.xlu0 %1348 }
 0x17a   : > { %12513 = vst [vmem:[#allocation29_spill] sm:$0xff] %v8307_v48  ;;  %12515 = vst [vmem:[#allocation67_spill] sm:$0xff] %v8312_v39  ;;  %v8319_v4 = vmul.f32 %v8190_v45, %v1354_v57  ;;  %v1232_v1 = vmul.f32 1.442695, %v1115_v44  ;;  %v1119_v22 = vadd.f32 %v12516_v17, %v863_v26  ;;  %v8323_v10 = vmul.f32 %v8196_v46, %v1349_v30 }
 0x17b   : > { %12517 = vst [vmem:[#allocation37_spill] sm:$0xff] %v8316_v28  ;;  %v8326_v9 = vmul.f32 %v8202_v32, %v1349_v30  ;;  %5663 = vpow2.f32 %v1234_v21  ;;  %v1242_v16 = vmul.f32 1.442695, %v1120_v62  ;;  %v1244_v8 = vmul.f32 1.442695, %v1121_v37 }
 0x17c   : > { %12518 = vst [vmem:[#allocation68_spill] sm:$0xff] %v8319_v4  ;;  %12519 = vst [vmem:[#allocation30_spill] sm:$0xff] %v8323_v10  ;;  %v8328_v53 = vpop.eup %5643  ;;  %5665 = vpow2.f32 %v1236_v35  ;;  %v1364_v43 = vpop.permute.xlu1 %1363  ;;  %v1238_v57 = vmul.f32 1.442695, %v1118_v0  ;;  %v1240_v62 = vmul.f32 1.442695, %v1119_v22 }
 0x17d   : > { %12520 = vst [vmem:[#allocation42_spill] sm:$0xff] %v8326_v9  ;;  %12521 = vst [vmem:[#allocation69_spill] sm:$0xff] %v8328_v53  ;;  %v8330_v2 = vpop.eup %5645  ;;  %5667 = vpow2.f32 %v1230_v52  ;;  %v8333_v44 = vmul.f32 %v8212_v47, %v1364_v43  ;;  %v8336_v17 = vmul.f32 %v8222_v29, %v1364_v43  ;;  %v1359_v26 = vpop.permute.xlu0 %1358  ;;  %v1250_v0 = vmul.f32 1.442695, %v8108_v56 }
 0x17e   : > { %12522 = vst [vmem:[#allocation38_spill] sm:$0xff] %v8330_v2  ;;  %v8338_v30 = vpop.eup %5647  ;;  %5669 = vpow2.f32 %v1232_v1  ;;  %v8341_v21 = vmul.f32 %v8228_v25, %v1359_v26  ;;  %v8344_v37 = vmul.f32 %v8234_v49, %v1359_v26  ;;  %v1252_v43 = vmul.f32 1.442695, %v8110_v14 }
 0x17f   : > { %12523 = vst [vmem:[#allocation70_spill] sm:$0xff] %v8333_v44  ;;  %12524 = vst [vmem:[#allocation71_spill] sm:$0xff] %v8336_v17  ;;  %v8346_v35 = vpop.eup %5649  ;;  %5671 = vpow2.f32 %v1242_v16  ;;  %v1246_v1 = vmul.f32 1.442695, %v8116_v7  ;;  %v1248_v56 = vmul.f32 1.442695, %v8118_v55 }
 0x180   : > { %12525 = vst [vmem:[#allocation72_spill] sm:$0xff] %v8338_v30  ;;  %12526 = vst [vmem:[#allocation73_spill] sm:$0xff] %v8341_v21  ;;  %v8349_v52 = vpop.eup %5651  ;;  %5673 = vpow2.f32 %v1244_v8  ;;  %v1374_v29 = vpop.permute.xlu1 %1373 }
 0x181   : > { %12527 = vst [vmem:[#allocation74_spill] sm:$0xff] %v8344_v37  ;;  %12528 = vst [vmem:[#allocation75_spill] sm:$0xff] %v8346_v35  ;;  %v8352_v30 = vpop.eup %5653  ;;  %5675 = vpow2.f32 %v1238_v57  ;;  %v8356_v22 = vmul.f32 %v8253_v54, %v1374_v29  ;;  %v8359_v26 = vmul.f32 %v8258_v15, %v1374_v29  ;;  %v1369_v16 = vpop.permute.xlu0 %1368 }
 0x182   : > { %12529 = vst [vmem:[#allocation76_spill] sm:$0xff] %v8349_v52  ;;  %12530 = vst [vmem:[#allocation77_spill] sm:$0xff] %v8352_v30  ;;  %v8361_v35 = vpop.eup %5655  ;;  %5677 = vpow2.f32 %v1240_v62  ;;  %v8365_v14 = vmul.f32 %v8266_v5, %v1369_v16  ;;  %v8368_v8 = vmul.f32 %v8274_v27, %v1369_v16 }
 0x183   : > { %12531 = vst [vmem:[#allocation78_spill] sm:$0xff] %v8356_v22  ;;  %12532 = vst [vmem:[#allocation79_spill] sm:$0xff] %v8359_v26  ;;  %v8370_v57 = vpop.eup %5657  ;;  %5679 = vpow2.f32 %v1250_v0 }
 0x184   : > { %12533 = vst [vmem:[#allocation80_spill] sm:$0xff] %v8361_v35  ;;  %12534 = vst [vmem:[#allocation81_spill] sm:$0xff] %v8365_v14  ;;  %v8372_v7 = vpop.eup %5659  ;;  %5681 = vpow2.f32 %v1252_v43  ;;  %v1545_v29 = vpop.permute.xlu1 %1544 }
 0x185   : > { %12535 = vst [vmem:[#allocation82_spill] sm:$0xff] %v8368_v8  ;;  %12536 = vst [vmem:[#allocation83_spill] sm:$0xff] %v8370_v57  ;;  %v8374_v47 = vpop.eup %5661  ;;  %5683 = vpow2.f32 %v1246_v1  ;;  %v8377_v62 = vmul.f32 %v7974_v33, %v1545_v29  ;;  %v8380_v55 = vmul.f32 %v7984_v60, %v1545_v29  ;;  %v1379_v30 = vpop.permute.xlu0 %1378 }
 0x186   : > { %12537 = vst [vmem:[#allocation84_spill] sm:$0xff] %v8372_v7  ;;  %12538 = vst [vmem:[#allocation85_spill] sm:$0xff] %v8374_v47  ;;  %5685 = vpow2.f32 %v1248_v56  ;;  %v8383_v16 = vmul.f32 %v8293_v11, %v1379_v30  ;;  %v8386_v0 = vmul.f32 %v8302_v51, %v1379_v30 }
 0x187   : > { %12539 = vst [vmem:[#allocation86_spill] sm:$0xff] %v8377_v62  ;;  %12540 = vst [vmem:[#allocation87_spill] sm:$0xff] %v8380_v55  ;;  %v1766_v43 = vadd.f32 %v8377_v62, %v8157_v41  ;;  %v1767_v1 = vadd.f32 %v8380_v55, %v8160_v3  ;;  %v2225_v33 = vadd.f32 %v8377_v62, %v8217_v50 }
 0x188   : > { %12541 = vst [vmem:[#allocation88_spill] sm:$0xff] %v8383_v16  ;;  %12542 = vst [vmem:[#allocation89_spill] sm:$0xff] %v8386_v0  ;;  %v2226_v60 = vadd.f32 %v8380_v55, %v8220_v13  ;;  %v8396_v29 = vpop.eup %5663  ;;  %v2677_v56 = vadd.f32 %v8377_v62, %v8269_v6  ;;  %v2678_v30 = vadd.f32 %v8380_v55, %v8272_v34  ;;  %v1565_v11 = vpop.permute.xlu1 %1564 }
 0x189   : > { %12543 = vst [vmem:[#allocation90_spill] sm:$0xff] %v8396_v29  ;;  %v3129_v52 = vadd.f32 %v8377_v62, %v8323_v10  ;;  %v3130_v51 = vadd.f32 %v8380_v55, %v8326_v9  ;;  %v8406_v57 = vpop.eup %5665  ;;  %v1774_v35 = vmax.f32 %v1766_v43, 1e-20  ;;  %v1775_v47 = vmax.f32 %v1767_v1, 1e-20  ;;  %v1550_v53 = vpop.permute.xlu0 %1549 }
 0x18a   : > { %12544 = vst [vmem:[#allocation91_spill] sm:$0xff] %v8406_v57  ;;  %v2233_v7 = vmax.f32 %v2225_v33, 1e-20  ;;  %v3581_v29 = vadd.f32 %v8377_v62, %v8365_v14  ;;  %v8410_v49 = vpop.eup %5667  ;;  %v2234_v25 = vmax.f32 %v2226_v60, 1e-20  ;;  %v3582_v2 = vadd.f32 %v8380_v55, %v8368_v8 }
 0x18b   : > { %12545 = vst [vmem:[#allocation92_spill] sm:$0xff] %v8410_v49  ;;  %v2685_v17 = vmax.f32 %v2677_v56, 1e-20  ;;  %v2686_v44 = vmax.f32 %v2678_v30, 1e-20  ;;  %v8414_v39 = vpop.eup %5669  ;;  %5687 = vlog2.f32 %v1774_v35  ;;  %v8419_v62 = vmul.f32 %v8058_v61, %v1565_v11 }
 0x18c   : > { %12546 = vst [vmem:[#allocation93_spill] sm:$0xff] %v8414_v39  ;;  %v3137_v48 = vmax.f32 %v3129_v52, 1e-20  ;;  %v3138_v57 = vmax.f32 %v3130_v51, 1e-20  ;;  %v8416_v1 = vpop.eup %5671  ;;  %5689 = vlog2.f32 %v1775_v47  ;;  %v8422_v60 = vmul.f32 %v8068_v59, %v1565_v11  ;;  %v8424_v56 = vpop.permute.xlu1 %1584  ;;  %v12551_v39 = vld [vmem:[#allocation33_spill] sm:$0xff] }
 0x18d   : > { %v3589_v43 = vmax.f32 %v3581_v29, 1e-20  ;;  %12547 = vst [vmem:[#allocation94_spill] sm:$0xff] %v8416_v1  ;;  %v3590_v33 = vmax.f32 %v3582_v2, 1e-20  ;;  %12548 = vst [vmem:[#allocation95_spill] sm:$0xff] %v8419_v62  ;;  %v8426_v30 = vpop.eup %5673  ;;  %5691 = vlog2.f32 %v2233_v7  ;;  %v8429_v35 = vmul.f32 %v12551_v39, %v1550_v53 }
 0x18e   : > { %12549 = vst [vmem:[#allocation96_spill] sm:$0xff] %v8422_v60  ;;  %12550 = vst [vmem:[#allocation97_spill] sm:$0xff] %v8426_v30  ;;  %v12553_v51 = vld [vmem:[#allocation34_spill] sm:$0xff]  ;;  %v8436_v47 = vmul.f32 %v8134_v63, %v8424_v56  ;;  %v8438_v61 = vpop.eup %5675  ;;  %5693 = vlog2.f32 %v2234_v25  ;;  %v1816_v59 = vadd.f32 %v8419_v62, %v8157_v41  ;;  %v1817_v11 = vadd.f32 %v8422_v60, %v8160_v3 }
 0x18f   : > { %12552 = vst [vmem:[#allocation33_spill] sm:$0xff] %v8429_v35  ;;  %v8432_v52 = vmul.f32 %v12553_v51, %v1550_v53  ;;  %12556 = vst [vmem:[#allocation99_spill] sm:$0xff] %v8438_v61  ;;  %v2275_v39 = vadd.f32 %v8419_v62, %v8217_v50  ;;  %v8446_v2 = vpop.eup %5677  ;;  %5695 = vlog2.f32 %v2685_v17  ;;  %v2276_v53 = vadd.f32 %v8422_v60, %v8220_v13 }
 0x190   : > { %12555 = vst [vmem:[#allocation98_spill] sm:$0xff] %v8436_v47  ;;  %12557 = vst [vmem:[#allocation100_spill] sm:$0xff] %v8446_v2  ;;  %v2727_v63 = vadd.f32 %v8419_v62, %v8269_v6  ;;  %v2728_v25 = vadd.f32 %v8422_v60, %v8272_v34  ;;  %v8454_v7 = vpop.eup %5679  ;;  %5697 = vlog2.f32 %v2686_v44  ;;  %v1824_v29 = vmax.f32 %v1816_v59, 1e-20 }
 0x191   : > { %12554 = vst [vmem:[#allocation34_spill] sm:$0xff] %v8432_v52  ;;  %12558 = vst [vmem:[#allocation101_spill] sm:$0xff] %v8454_v7  ;;  %v1825_v51 = vmax.f32 %v1817_v11, 1e-20  ;;  %v2283_v49 = vmax.f32 %v2275_v39, 1e-20  ;;  %v8456_v61 = vpop.eup %5681  ;;  %5699 = vlog2.f32 %v3137_v48  ;;  %v3179_v55 = vadd.f32 %v8419_v62, %v8323_v10 }
 0x192   : > { %12559 = vst [vmem:[#allocation102_spill] sm:$0xff] %v8456_v61  ;;  %v2284_v2 = vmax.f32 %v2276_v53, 1e-20  ;;  %v2735_v17 = vmax.f32 %v2727_v63, 1e-20  ;;  %v8458_v1 = vpop.eup %5683  ;;  %5701 = vlog2.f32 %v3138_v57  ;;  %v3180_v27 = vadd.f32 %v8422_v60, %v8326_v9  ;;  %v12562_v11 = vld [vmem:[#allocation43_spill] sm:$0xff] }
 0x193   : > { %v2736_v30 = vmax.f32 %v2728_v25, 1e-20  ;;  %12560 = vst [vmem:[#allocation103_spill] sm:$0xff] %v8458_v1  ;;  %v3631_v44 = vadd.f32 %v8419_v62, %v8365_v14  ;;  %v8466_v59 = vpop.eup %5685  ;;  %5703 = vlog2.f32 %v3589_v43  ;;  %v3632_v48 = vadd.f32 %v8422_v60, %v8368_v8  ;;  %v12563_v53 = vld [vmem:[#allocation11_spill] sm:$0xff] }
 0x194   : > { %12561 = vst [vmem:[#allocation104_spill] sm:$0xff] %v8466_v59  ;;  %v1768_v39 = vadd.f32 %v8429_v35, %v12562_v11  ;;  %v1769_v57 = vadd.f32 %v8432_v52, %v12563_v53  ;;  %5705 = vlog2.f32 %v3590_v33  ;;  %v3187_v63 = vmax.f32 %v3179_v55, 1e-20 }
 0x195   : > { %v3188_v25 = vmax.f32 %v3180_v27, 1e-20  ;;  %v3639_v61 = vmax.f32 %v3631_v44, 1e-20  ;;  %5707 = vlog2.f32 %v1824_v29  ;;  %v3640_v7 = vmax.f32 %v3632_v48, 1e-20 }
 0x196   : > { %v1776_v1 = vmax.f32 %v1768_v39, 1e-20  ;;  %v1777_v62 = vmax.f32 %v1769_v57, 1e-20  ;;  %5709 = vlog2.f32 %v1825_v51  ;;  %v2227_v43 = vadd.f32 %v8429_v35, %v8207_v31 }
 0x197   : > { %v2228_v59 = vadd.f32 %v8432_v52, %v8210_v58  ;;  %v2679_v60 = vadd.f32 %v8429_v35, %v8261_v42  ;;  %5711 = vlog2.f32 %v2283_v49  ;;  %v8482_v55 = vadd.f32 %v8432_v52, %v8264_v18 }
 0x198   : > { %v8486_v27 = vadd.f32 %v8429_v35, %v8316_v28  ;;  %v8490_v33 = vadd.f32 %v8432_v52, %v8319_v4  ;;  %v5688_v29 = vpop.eup %5687  ;;  %5713 = vlog2.f32 %v2284_v2  ;;  %v2235_v51 = vmax.f32 %v2227_v43, 1e-20 }
 0x199   : > { %v2236_v44 = vmax.f32 %v2228_v59, 1e-20  ;;  %v2687_v48 = vmax.f32 %v2679_v60, 1e-20  ;;  %v5690_v39 = vpop.eup %5689  ;;  %v8492_v57 = vmul.f32 0.6931472, %v5688_v29  ;;  %5715 = vlog2.f32 %v2735_v17 }
 0x19a   : > { %v2688_v49 = vmax.f32 %v8482_v55, 1e-20  ;;  %v3139_v5 = vmax.f32 %v8486_v27, 1e-20  ;;  %v5692_v15 = vpop.eup %5691  ;;  %v8496_v54 = vmul.f32 0.6931472, %v5690_v39  ;;  %5717 = vlog2.f32 %v2736_v30 }
 0x19b   : > { %v3140_v45 = vmax.f32 %v8490_v33, 1e-20  ;;  %v8501_v2 = vadd.f32 %v8429_v35, %v8356_v22  ;;  %v5694_v59 = vpop.eup %5693  ;;  %v8503_v60 = vmul.f32 0.6931472, %v5692_v15  ;;  %5719 = vlog2.f32 %v3187_v63 }
 0x19c   : > { %v8507_v17 = vadd.f32 %v8432_v52, %v8359_v26  ;;  %v8511_v43 = vmul.f32 %v8142_v40, %v8424_v56  ;;  %v5696_v55 = vpop.eup %5695  ;;  %v8513_v30 = vmul.f32 0.6931472, %v5694_v59  ;;  %5721 = vlog2.f32 %v3188_v25 }
 0x19d   : > { %v3591_v27 = vmax.f32 %v8501_v2, 1e-20  ;;  %v8518_v33 = vadd.f32 %v8436_v47, %v8157_v41  ;;  %v5698_v15 = vpop.eup %5697  ;;  %v8520_v63 = vmul.f32 0.6931472, %v5696_v55  ;;  %5723 = vlog2.f32 %v3639_v61 }
 0x19e   : > { %12564 = vst [vmem:[#allocation105_spill] sm:$0xff] %v8511_v43  ;;  %v3592_v29 = vmax.f32 %v8507_v17, 1e-20  ;;  %v8525_v40 = vadd.f32 %v8511_v43, %v8160_v3  ;;  %v5700_v56 = vpop.eup %5699  ;;  %v8527_v39 = vmul.f32 0.6931472, %v5698_v15  ;;  %5725 = vlog2.f32 %v3640_v7 }
 0x19f   : > { %v1874_v25 = vmax.f32 %v8518_v33, 1e-20  ;;  %v8532_v2 = vadd.f32 %v8436_v47, %v8217_v50  ;;  %v5702_v59 = vpop.eup %5701  ;;  %v8534_v55 = vmul.f32 0.6931472, %v5700_v56  ;;  %5727 = vlog2.f32 %v1776_v1 }
 0x1a0   : > { %v1875_v61 = vmax.f32 %v8525_v40, 1e-20  ;;  %v8539_v17 = vadd.f32 %v8511_v43, %v8220_v13  ;;  %v5704_v52 = vpop.eup %5703  ;;  %v8541_v15 = vmul.f32 0.6931472, %v5702_v59  ;;  %5729 = vlog2.f32 %v1777_v62 }
 0x1a1   : > { %v2333_v7 = vmax.f32 %v8532_v2, 1e-20  ;;  %v8546_v33 = vadd.f32 %v8436_v47, %v8269_v6  ;;  %v5706_v35 = vpop.eup %5705  ;;  %v8548_v56 = vmul.f32 0.6931472, %v5704_v52  ;;  %5731 = vlog2.f32 %v2235_v51 }
 0x1a2   : > { %v2334_v1 = vmax.f32 %v8539_v17, 1e-20  ;;  %v8553_v40 = vadd.f32 %v8511_v43, %v8272_v34  ;;  %v5708_v19 = vpop.eup %5707  ;;  %v8555_v59 = vmul.f32 0.6931472, %v5706_v35  ;;  %5733 = vlog2.f32 %v2236_v44  ;;  %v1570_v34 = vpop.permute.xlu0 %1569 }
 0x1a3   : > { %v2785_v62 = vmax.f32 %v8546_v33, 1e-20  ;;  %v8560_v2 = vadd.f32 %v8436_v47, %v8323_v10  ;;  %v5710_v38 = vpop.eup %5709  ;;  %v8562_v52 = vmul.f32 0.6931472, %v5708_v19  ;;  %5735 = vlog2.f32 %v2687_v48 }
 0x1a4   : > { %v2786_v51 = vmax.f32 %v8553_v40, 1e-20  ;;  %v8567_v17 = vadd.f32 %v8511_v43, %v8326_v9  ;;  %v5712_v35 = vpop.eup %5711  ;;  %v8569_v6 = vmul.f32 0.6931472, %v5710_v38  ;;  %5737 = vlog2.f32 %v2688_v49 }
 0x1a5   : > { %v3237_v44 = vmax.f32 %v8560_v2, 1e-20  ;;  %v8574_v33 = vadd.f32 %v8436_v47, %v8365_v14  ;;  %v5714_v19 = vpop.eup %5713  ;;  %v8576_v10 = vmul.f32 0.6931472, %v5712_v35  ;;  %5739 = vlog2.f32 %v3139_v5 }
 0x1a6   : > { %v3238_v48 = vmax.f32 %v8567_v17, 1e-20  ;;  %v8581_v40 = vadd.f32 %v8511_v43, %v8368_v8  ;;  %v5716_v9 = vpop.eup %5715  ;;  %v8583_v38 = vmul.f32 0.6931472, %v5714_v19  ;;  %5741 = vlog2.f32 %v3140_v45 }
 0x1a7   : > { %v3689_v49 = vmax.f32 %v8574_v33, 1e-20  ;;  %v8587_v2 = vmul.f32 %v8036_v36, %v1570_v34  ;;  %v5718_v47 = vpop.eup %5717  ;;  %v8589_v14 = vmul.f32 0.6931472, %v5716_v9  ;;  %5743 = vlog2.f32 %v3591_v27 }
 0x1a8   : > { %v3690_v5 = vmax.f32 %v8581_v40, 1e-20  ;;  %v8593_v17 = vmul.f32 %v8047_v24, %v1570_v34  ;;  %v5720_v35 = vpop.eup %5719  ;;  %v8595_v43 = vmul.f32 0.6931472, %v5718_v47  ;;  %5745 = vlog2.f32 %v3592_v29 }
 0x1a9   : > { %12565 = vst [vmem:[#allocation106_spill] sm:$0xff] %v8587_v2  ;;  %v1818_v45 = vadd.f32 %v8587_v2, %v12562_v11  ;;  %v8601_v36 = vadd.f32 %v8587_v2, %v8207_v31  ;;  %v5722_v33 = vpop.eup %5721  ;;  %v8603_v9 = vmul.f32 0.6931472, %v5720_v35  ;;  %5747 = vlog2.f32 %v1874_v25 }
 0x1aa   : > { %12566 = vst [vmem:[#allocation107_spill] sm:$0xff] %v8593_v17  ;;  %v1819_v27 = vadd.f32 %v8593_v17, %v12563_v53  ;;  %v8609_v24 = vadd.f32 %v8593_v17, %v8210_v58  ;;  %v5724_v34 = vpop.eup %5723  ;;  %v8611_v47 = vmul.f32 0.6931472, %v5722_v33  ;;  %5749 = vlog2.f32 %v1875_v61 }
 0x1ab   : > { %v1826_v29 = vmax.f32 %v1818_v45, 1e-20  ;;  %v2285_v19 = vmax.f32 %v8601_v36, 1e-20  ;;  %v5726_v40 = vpop.eup %5725  ;;  %v8614_v8 = vmul.f32 0.6931472, %v5724_v34  ;;  %5751 = vlog2.f32 %v2333_v7 }
 0x1ac   : > { %v1827_v35 = vmax.f32 %v1819_v27, 1e-20  ;;  %v2286_v25 = vmax.f32 %v8609_v24, 1e-20  ;;  %v5728_v13 = vpop.eup %5727  ;;  %v8617_v3 = vmul.f32 0.6931472, %v5726_v40  ;;  %5753 = vlog2.f32 %v2334_v1 }
 0x1ad   : > { %v2729_v50 = vadd.f32 %v8587_v2, %v8261_v42  ;;  %v2730_v61 = vadd.f32 %v8593_v17, %v8264_v18  ;;  %v5730_v45 = vpop.eup %5729  ;;  %v1787_v33 = vmul.f32 0.6931472, %v5728_v13  ;;  %5755 = vlog2.f32 %v2785_v62 }
 0x1ae   : > { %12567 = vst [vmem:[#allocation108_spill] sm:$0xff] %v8617_v3  ;;  %v3181_v36 = vadd.f32 %v8587_v2, %v8316_v28  ;;  %v8627_v7 = vadd.f32 %v8593_v17, %v8319_v4  ;;  %v5732_v27 = vpop.eup %5731  ;;  %v1789_v24 = vmul.f32 0.6931472, %v5730_v45  ;;  %5757 = vlog2.f32 %v2786_v51 }
 0x1af   : > { %v2737_v1 = vmax.f32 %v2729_v50, 1e-20  ;;  %v2738_v34 = vmax.f32 %v2730_v61, 1e-20  ;;  %v5734_v40 = vpop.eup %5733  ;;  %v8630_v41 = vadd.f32 %v1787_v33, %v8492_v57  ;;  %v2246_v32 = vmul.f32 0.6931472, %v5732_v27 }
 0x1b0   : > { %5759 = vlog2.f32 %v3237_v44  ;;  %v3189_v13 = vmax.f32 %v3181_v36, 1e-20  ;;  %v5736_v62 = vpop.eup %5735  ;;  %v8633_v46 = vadd.f32 %v1789_v24, %v8496_v54  ;;  %v2248_v28 = vmul.f32 0.6931472, %v5734_v40  ;;  %v12568_v24 = vld [vmem:[#allocation36_spill] sm:$0xff] }
 0x1b1   : > { %5761 = vlog2.f32 %v3238_v48  ;;  %v3190_v4 = vmax.f32 %v8627_v7, 1e-20  ;;  %v5738_v3 = vpop.eup %5737  ;;  %v8637_v51 = vadd.f32 %v2246_v32, %v8503_v60  ;;  %v2698_v50 = vmul.f32 0.6931472, %v5736_v62  ;;  %v1555_v48 = vpop.permute.xlu1 %1554 }
 0x1b2   : > { %5763 = vlog2.f32 %v3689_v49  ;;  %v3633_v57 = vadd.f32 %v8587_v2, %v8356_v22  ;;  %v5740_v61 = vpop.eup %5739  ;;  %v8642_v44 = vadd.f32 %v2248_v28, %v8513_v30  ;;  %v2700_v45 = vmul.f32 0.6931472, %v5738_v3 }
 0x1b3   : > { %5765 = vlog2.f32 %v3690_v5  ;;  %v3634_v54 = vadd.f32 %v8593_v17, %v8359_v26  ;;  %v5742_v33 = vpop.eup %5741  ;;  %v8647_v36 = vadd.f32 %v2698_v50, %v8520_v63  ;;  %v3150_v32 = vmul.f32 0.6931472, %v5740_v61 }
 0x1b4   : > { %5767 = vlog2.f32 %v1826_v29  ;;  %v3641_v60 = vmax.f32 %v3633_v57, 1e-20  ;;  %v5744_v49 = vpop.eup %5743  ;;  %v8650_v7 = vadd.f32 %v2700_v45, %v8527_v39  ;;  %v3152_v27 = vmul.f32 0.6931472, %v5742_v33  ;;  %v12570_v39 = vld [vmem:[#allocation7_spill] sm:$0xff] }
 0x1b5   : > { %5769 = vlog2.f32 %v1827_v35  ;;  %v3642_v28 = vmax.f32 %v3634_v54, 1e-20  ;;  %v5746_v3 = vpop.eup %5745  ;;  %v8653_v30 = vadd.f32 %v3150_v32, %v8534_v55  ;;  %v3602_v5 = vmul.f32 0.6931472, %v5744_v49 }
 0x1b6   : > { %5771 = vlog2.f32 %v2285_v19  ;;  %v8656_v40 = vmul.f32 %v12568_v24, %v1555_v48  ;;  %v5748_v63 = vpop.eup %5747  ;;  %v8659_v29 = vadd.f32 %v3152_v27, %v8541_v15  ;;  %v3604_v62 = vmul.f32 0.6931472, %v5746_v3  ;;  %v12572_v19 = vld [vmem:[#allocation15_spill] sm:$0xff] }
 0x1b7   : > { %5773 = vlog2.f32 %v2286_v25  ;;  %v8662_v50 = vmul.f32 %v12570_v39, %v1555_v48  ;;  %v5750_v35 = vpop.eup %5749  ;;  %v8665_v57 = vadd.f32 %v3602_v5, %v8548_v56  ;;  %v8667_v55 = vmul.f32 0.6931472, %v5748_v63  ;;  %v12573_v25 = vld [vmem:[#allocation49_spill] sm:$0xff]  ;;  %v12574_v3 = vld [vmem:[#allocation23_spill] sm:$0xff] }
 0x1b8   : > { %12569 = vst [vmem:[#allocation36_spill] sm:$0xff] %v8656_v40  ;;  %5775 = vlog2.f32 %v2737_v1  ;;  %v1770_v61 = vadd.f32 %v8656_v40, %v12572_v19  ;;  %v5752_v45 = vpop.eup %5751  ;;  %v8672_v54 = vadd.f32 %v3604_v62, %v8555_v59  ;;  %v8674_v15 = vmul.f32 0.6931472, %v5750_v35 }
 0x1b9   : > { %12571 = vst [vmem:[#allocation7_spill] sm:$0xff] %v8662_v50  ;;  %5777 = vlog2.f32 %v2738_v34  ;;  %v1771_v48 = vadd.f32 %v8662_v50, %v12573_v25  ;;  %v5754_v33 = vpop.eup %5753  ;;  %v8678_v32 = vmul.f32 0.6931472, %v5752_v45  ;;  %v2229_v1 = vadd.f32 %v8656_v40, %v8245_v23 }
 0x1ba   : > { %5779 = vlog2.f32 %v3189_v13  ;;  %v1778_v56 = vmax.f32 %v1770_v61, 1e-20  ;;  %v5756_v49 = vpop.eup %5755  ;;  %v8682_v27 = vmul.f32 0.6931472, %v5754_v33  ;;  %v2230_v5 = vadd.f32 %v8662_v50, %v12574_v3 }
 0x1bb   : > { %5781 = vlog2.f32 %v3190_v4  ;;  %v1779_v59 = vmax.f32 %v1771_v48, 1e-20  ;;  %v5758_v34 = vpop.eup %5757  ;;  %v8686_v24 = vmul.f32 0.6931472, %v5756_v49  ;;  %v2237_v63 = vmax.f32 %v2229_v1, 1e-20 }
 0x1bc   : > { %5783 = vlog2.f32 %v3641_v60  ;;  %v2681_v13 = vadd.f32 %v8656_v40, %v8297_v12  ;;  %v8690_v39 = vmul.f32 0.6931472, %v5758_v34  ;;  %v2238_v35 = vmax.f32 %v2230_v5, 1e-20  ;;  %v1590_v5 = vpop.permute.xlu0 %1589 }
 0x1bd   : > { %v5760_v62 = vpop.eup %5759  ;;  %5785 = vlog2.f32 %v3642_v28  ;;  %v2682_v4 = vadd.f32 %v8662_v50, %v8300_v20  ;;  %v3133_v60 = vadd.f32 %v8656_v40, %v8341_v21  ;;  %v3134_v28 = vadd.f32 %v8662_v50, %v8344_v37  ;;  %v12575_v20 = vld [vmem:[#allocation41_spill] sm:$0xff] }
 0x1be   : > { %v5762_v61 = vpop.eup %5761  ;;  %v8694_v45 = vmul.f32 0.6931472, %v5760_v62  ;;  %5787 = vlog2.f32 %v1778_v56  ;;  %v2689_v48 = vmax.f32 %v2681_v13, 1e-20  ;;  %v3585_v56 = vadd.f32 %v8656_v40, %v8383_v16  ;;  %v12577_v40 = vld [vmem:[#allocation10_spill] sm:$0xff] }
 0x1bf   : > { %v5764_v33 = vpop.eup %5763  ;;  %v8698_v1 = vmul.f32 0.6931472, %v5762_v61  ;;  %5789 = vlog2.f32 %v1779_v59  ;;  %v2690_v49 = vmax.f32 %v2682_v4, 1e-20  ;;  %v3141_v62 = vmax.f32 %v3133_v60, 1e-20 }
 0x1c0   : > { %v5766_v34 = vpop.eup %5765  ;;  %v8702_v17 = vmul.f32 0.6931472, %v5764_v33  ;;  %5791 = vlog2.f32 %v2237_v63  ;;  %v3142_v61 = vmax.f32 %v3134_v28, 1e-20  ;;  %v3586_v59 = vadd.f32 %v8662_v50, %v8386_v0  ;;  %v12581_v50 = vld [vmem:[#allocation37_spill] sm:$0xff] }
 0x1c1   : > { %v5768_v13 = vpop.eup %5767  ;;  %v8706_v2 = vmul.f32 0.6931472, %v5766_v34  ;;  %5793 = vlog2.f32 %v2238_v35  ;;  %v3593_v37 = vmax.f32 %v3585_v56, 1e-20  ;;  %v8711_v33 = vmul.f32 %v12575_v20, %v1590_v5 }
 0x1c2   : > { %v5770_v4 = vpop.eup %5769  ;;  %v1837_v21 = vmul.f32 0.6931472, %v5768_v13  ;;  %5795 = vlog2.f32 %v2689_v48  ;;  %v3594_v12 = vmax.f32 %v3586_v59, 1e-20  ;;  %v8714_v16 = vmul.f32 %v12577_v40, %v1590_v5 }
 0x1c3   : > { %12576 = vst [vmem:[#allocation41_spill] sm:$0xff] %v8711_v33  ;;  %v5772_v63 = vpop.eup %5771  ;;  %v1839_v60 = vmul.f32 0.6931472, %v5770_v4  ;;  %5797 = vlog2.f32 %v2690_v49  ;;  %v1868_v48 = vadd.f32 %v8711_v33, %v12562_v11 }
 0x1c4   : > { %12578 = vst [vmem:[#allocation10_spill] sm:$0xff] %v8714_v16  ;;  %v5774_v34 = vpop.eup %5773  ;;  %v8717_v35 = vadd.f32 %v1837_v21, %v8562_v52  ;;  %v2296_v28 = vmul.f32 0.6931472, %v5772_v63  ;;  %5799 = vlog2.f32 %v3141_v62  ;;  %v1869_v49 = vadd.f32 %v8714_v16, %v12563_v53 }
 0x1c5   : > { %v5776_v56 = vpop.eup %5775  ;;  %v8722_v20 = vadd.f32 %v1839_v60, %v8569_v6  ;;  %v2298_v13 = vmul.f32 0.6931472, %v5774_v34  ;;  %5801 = vlog2.f32 %v3142_v61  ;;  %v1876_v52 = vmax.f32 %v1868_v48, 1e-20 }
 0x1c6   : > { %v5778_v40 = vpop.eup %5777  ;;  %v8727_v5 = vadd.f32 %v2296_v28, %v8576_v10  ;;  %v2748_v21 = vmul.f32 0.6931472, %v5776_v56  ;;  %5803 = vlog2.f32 %v3593_v37  ;;  %v1877_v6 = vmax.f32 %v1869_v49, 1e-20 }
 0x1c7   : > { %v5780_v62 = vpop.eup %5779  ;;  %v8730_v59 = vadd.f32 %v2298_v13, %v8583_v38  ;;  %v2750_v4 = vmul.f32 0.6931472, %v5778_v40  ;;  %5805 = vlog2.f32 %v3594_v12  ;;  %v2327_v10 = vadd.f32 %v8711_v33, %v8207_v31 }
 0x1c8   : > { %v5782_v63 = vpop.eup %5781  ;;  %v8733_v61 = vadd.f32 %v2748_v21, %v8589_v14  ;;  %v3200_v60 = vmul.f32 0.6931472, %v5780_v62  ;;  %5807 = vlog2.f32 %v1876_v52  ;;  %v2328_v38 = vadd.f32 %v8714_v16, %v8210_v58 }
 0x1c9   : > { %v5784_v34 = vpop.eup %5783  ;;  %v8738_v37 = vadd.f32 %v2750_v4, %v8595_v43  ;;  %v3202_v28 = vmul.f32 0.6931472, %v5782_v63  ;;  %5809 = vlog2.f32 %v1877_v6  ;;  %v2335_v56 = vmax.f32 %v2327_v10, 1e-20 }
 0x1ca   : > { %v5786_v12 = vpop.eup %5785  ;;  %v8743_v48 = vadd.f32 %v3200_v60, %v8603_v9  ;;  %v3652_v14 = vmul.f32 0.6931472, %v5784_v34  ;;  %v2779_v13 = vadd.f32 %v8711_v33, %v8261_v42  ;;  %v2336_v21 = vmax.f32 %v2328_v38, 1e-20  ;;  %v12579_v60 = vld [vmem:[#allocation108_spill] sm:$0xff] }
 0x1cb   : > { %v5788_v49 = vpop.eup %5787  ;;  %v8748_v40 = vadd.f32 %v3202_v28, %v8611_v47  ;;  %v3654_v43 = vmul.f32 0.6931472, %v5786_v12  ;;  %v2780_v52 = vadd.f32 %v8714_v16, %v8264_v18  ;;  %5811 = vlog2.f32 %v2335_v56 }
 0x1cc   : > { %v5790_v62 = vpop.eup %5789  ;;  %v8753_v4 = vadd.f32 %v3652_v14, %v8614_v8  ;;  %v1791_v9 = vmul.f32 0.6931472, %v5788_v49  ;;  %v2787_v6 = vmax.f32 %v2779_v13, 1e-20  ;;  %5813 = vlog2.f32 %v2336_v21  ;;  %v12583_v49 = vld [vmem:[#allocation68_spill] sm:$0xff] }
 0x1cd   : > { %v5792_v63 = vpop.eup %5791  ;;  %v8756_v10 = vadd.f32 %v3654_v43, %v12579_v60  ;;  %v1793_v34 = vmul.f32 0.6931472, %v5790_v62  ;;  %v2788_v47 = vmax.f32 %v2780_v52, 1e-20  ;;  %v3231_v8 = vadd.f32 %v8711_v33, %v12581_v50 }
 0x1ce   : > { %v5794_v28 = vpop.eup %5793  ;;  %v8759_v38 = vadd.f32 %v8630_v41, %v1791_v9  ;;  %v2250_v12 = vmul.f32 0.6931472, %v5792_v63  ;;  %5815 = vlog2.f32 %v2787_v6  ;;  %v3232_v43 = vadd.f32 %v8714_v16, %v12583_v49 }
 0x1cf   : > { %v5796_v14 = vpop.eup %5795  ;;  %v8764_v56 = vadd.f32 %v8633_v46, %v1793_v34  ;;  %v2252_v13 = vmul.f32 0.6931472, %v5794_v28  ;;  %5817 = vlog2.f32 %v2788_v47  ;;  %v3239_v62 = vmax.f32 %v3231_v8, 1e-20  ;;  %v1605_v47 = vpop.permute.xlu1 %1604 }
 0x1d0   : > { %12580 = vst [vmem:[#allocation108_spill] sm:$0xff] %v8759_v38  ;;  %v5798_v21 = vpop.eup %5797  ;;  %v8769_v52 = vadd.f32 %v8637_v51, %v2250_v12  ;;  %v2702_v41 = vmul.f32 0.6931472, %v5796_v14  ;;  %v3683_v9 = vadd.f32 %v8711_v33, %v8356_v22  ;;  %v3240_v60 = vmax.f32 %v3232_v43, 1e-20 }
 0x1d1   : > { %12582 = vst [vmem:[#allocation109_spill] sm:$0xff] %v8764_v56  ;;  %v5800_v6 = vpop.eup %5799  ;;  %v8774_v63 = vadd.f32 %v8642_v44, %v2252_v13  ;;  %v2704_v46 = vmul.f32 0.6931472, %v5798_v21  ;;  %v3684_v34 = vadd.f32 %v8714_v16, %v8359_v26  ;;  %5819 = vlog2.f32 %v3239_v62  ;;  %v12603_v16 = vld [vmem:[#allocation42_spill] sm:$0xff] }
 0x1d2   : > { %12584 = vst [vmem:[#allocation110_spill] sm:$0xff] %v8769_v52  ;;  %v5802_v28 = vpop.eup %5801  ;;  %v8779_v56 = vadd.f32 %v8647_v36, %v2702_v41  ;;  %v3154_v51 = vmul.f32 0.6931472, %v5800_v6  ;;  %v3691_v12 = vmax.f32 %v3683_v9, 1e-20  ;;  %5821 = vlog2.f32 %v3240_v60  ;;  %v12595_v60 = vld [vmem:[#allocation44_spill] sm:$0xff] }
 0x1d3   : > { %12585 = vst [vmem:[#allocation111_spill] sm:$0xff] %v8774_v63  ;;  %v5804_v8 = vpop.eup %5803  ;;  %v8782_v14 = vadd.f32 %v8650_v7, %v2704_v46  ;;  %v3156_v52 = vmul.f32 0.6931472, %v5802_v28  ;;  %v3692_v44 = vmax.f32 %v3684_v34, 1e-20  ;;  %v12589_v63 = vld [vmem:[#allocation16_spill] sm:$0xff] }
 0x1d4   : > { %12586 = vst [vmem:[#allocation112_spill] sm:$0xff] %v8779_v56  ;;  %v5806_v13 = vpop.eup %5805  ;;  %v8785_v43 = vadd.f32 %v8653_v30, %v3154_v51  ;;  %v3606_v21 = vmul.f32 0.6931472, %v5804_v8  ;;  %5823 = vlog2.f32 %v3691_v12  ;;  %v8788_v38 = vmul.f32 %v12589_v63, %v1605_v47  ;;  %v12592_v7 = vld [vmem:[#allocation51_spill] sm:$0xff]  ;;  %v12596_v28 = vld [vmem:[#allocation18_spill] sm:$0xff] }
 0x1d5   : > { %12587 = vst [vmem:[#allocation113_spill] sm:$0xff] %v8782_v14  ;;  %v5808_v36 = vpop.eup %5807  ;;  %v8791_v41 = vadd.f32 %v8659_v29, %v3156_v52  ;;  %v3608_v62 = vmul.f32 0.6931472, %v5806_v13  ;;  %5825 = vlog2.f32 %v3692_v44  ;;  %v8794_v9 = vmul.f32 %v12592_v7, %v1605_v47  ;;  %v12598_v52 = vld [vmem:[#allocation13_spill] sm:$0xff]  ;;  %v12599_v47 = vld [vmem:[#allocation55_spill] sm:$0xff] }
 0x1d6   : > { %12588 = vst [vmem:[#allocation114_spill] sm:$0xff] %v8785_v43  ;;  %12590 = vst [vmem:[#allocation16_spill] sm:$0xff] %v8788_v38  ;;  %v5810_v6 = vpop.eup %5809  ;;  %v8797_v46 = vadd.f32 %v8665_v57, %v3606_v21  ;;  %v1887_v30 = vmul.f32 0.6931472, %v5808_v36  ;;  %v1916_v34 = vadd.f32 %v8788_v38, %v12595_v60  ;;  %v2375_v63 = vadd.f32 %v8788_v38, %v12596_v28  ;;  %v12600_v21 = vld [vmem:[#allocation60_spill] sm:$0xff] }
 0x1d7   : > { %12591 = vst [vmem:[#allocation115_spill] sm:$0xff] %v8791_v41  ;;  %12593 = vst [vmem:[#allocation51_spill] sm:$0xff] %v8794_v9  ;;  %v8804_v51 = vadd.f32 %v8672_v54, %v3608_v62  ;;  %v1889_v29 = vmul.f32 0.6931472, %v5810_v6  ;;  %v1917_v12 = vadd.f32 %v8794_v9, %v12598_v52  ;;  %v2376_v8 = vadd.f32 %v8794_v9, %v12599_v47  ;;  %v12601_v6 = vld [vmem:[#allocation25_spill] sm:$0xff] }
 0x1d8   : > { %12594 = vst [vmem:[#allocation116_spill] sm:$0xff] %v8797_v46  ;;  %v8811_v57 = vadd.f32 %v1887_v30, %v8667_v55  ;;  %v1924_v44 = vmax.f32 %v1916_v34, 1e-20  ;;  %v2383_v13 = vmax.f32 %v2375_v63, 1e-20  ;;  %v2827_v36 = vadd.f32 %v8788_v38, %v12600_v21  ;;  %v5812_v7 = vpop.eup %5811  ;;  %v12602_v55 = vld [vmem:[#allocation30_spill] sm:$0xff] }
 0x1d9   : > { %12597 = vst [vmem:[#allocation117_spill] sm:$0xff] %v8804_v51  ;;  %v8816_v46 = vadd.f32 %v1889_v29, %v8674_v15  ;;  %v1925_v54 = vmax.f32 %v1917_v12, 1e-20  ;;  %v2384_v62 = vmax.f32 %v2376_v8, 1e-20  ;;  %v2828_v51 = vadd.f32 %v8794_v9, %v12601_v6  ;;  %v5814_v41 = vpop.eup %5813 }
 0x1da   : > { %v2346_v43 = vmul.f32 0.6931472, %v5812_v7  ;;  %5827 = vlog2.f32 %v1924_v44  ;;  %v2835_v14 = vmax.f32 %v2827_v36, 1e-20  ;;  %v3279_v30 = vadd.f32 %v8788_v38, %v12602_v55  ;;  %v1575_v7 = vpop.permute.xlu0 %1574 }
 0x1db   : > { %v5816_v34 = vpop.eup %5815  ;;  %v2348_v63 = vmul.f32 0.6931472, %v5814_v41  ;;  %5829 = vlog2.f32 %v1925_v54  ;;  %v2836_v56 = vmax.f32 %v2828_v51, 1e-20  ;;  %v3280_v15 = vadd.f32 %v8794_v9, %v12603_v16  ;;  %v12604_v51 = vld [vmem:[#allocation81_spill] sm:$0xff]  ;;  %v12605_v16 = vld [vmem:[#allocation82_spill] sm:$0xff] }
 0x1dc   : > { %v5818_v29 = vpop.eup %5817  ;;  %v8825_v12 = vadd.f32 %v2346_v43, %v8678_v32  ;;  %v2798_v8 = vmul.f32 0.6931472, %v5816_v34  ;;  %5831 = vlog2.f32 %v2383_v13  ;;  %v3287_v33 = vmax.f32 %v3279_v30, 1e-20 }
 0x1dd   : > { %v8828_v44 = vadd.f32 %v2348_v63, %v8682_v27  ;;  %v2800_v36 = vmul.f32 0.6931472, %v5818_v29  ;;  %5833 = vlog2.f32 %v2384_v62  ;;  %v3288_v55 = vmax.f32 %v3280_v15, 1e-20  ;;  %v12606_v27 = vld [vmem:[#allocation40_spill] sm:$0xff]  ;;  %v12608_v62 = vld [vmem:[#allocation9_spill] sm:$0xff] }
 0x1de   : > { %v8831_v41 = vadd.f32 %v2798_v8, %v8686_v24  ;;  %5835 = vlog2.f32 %v2835_v14  ;;  %v3731_v54 = vadd.f32 %v8788_v38, %v12604_v51  ;;  %v3732_v32 = vadd.f32 %v8794_v9, %v12605_v16  ;;  %v5820_v43 = vpop.eup %5819  ;;  %v1610_v28 = vpop.permute.xlu0 %1609 }
 0x1df   : > { %v8838_v13 = vadd.f32 %v2800_v36, %v8690_v39  ;;  %5837 = vlog2.f32 %v2836_v56  ;;  %v8841_v30 = vmul.f32 %v12606_v27, %v1575_v7  ;;  %v8844_v34 = vmul.f32 %v12608_v62, %v1575_v7  ;;  %v5822_v24 = vpop.eup %5821 }
 0x1e0   : > { %v3250_v63 = vmul.f32 0.6931472, %v5820_v43  ;;  %5839 = vlog2.f32 %v3287_v33  ;;  %v3739_v14 = vmax.f32 %v3731_v54, 1e-20  ;;  %v3740_v15 = vmax.f32 %v3732_v32, 1e-20 }
 0x1e1   : > { %12607 = vst [vmem:[#allocation40_spill] sm:$0xff] %v8841_v30  ;;  %12609 = vst [vmem:[#allocation9_spill] sm:$0xff] %v8844_v34  ;;  %v5824_v29 = vpop.eup %5823  ;;  %v3252_v8 = vmul.f32 0.6931472, %v5822_v24  ;;  %5841 = vlog2.f32 %v3288_v55  ;;  %v1820_v9 = vadd.f32 %v8841_v30, %v12572_v19  ;;  %v1821_v39 = vadd.f32 %v8844_v34, %v12573_v25 }
 0x1e2   : > { %v5826_v56 = vpop.eup %5825  ;;  %v8851_v36 = vadd.f32 %v3250_v63, %v8694_v45  ;;  %v3702_v7 = vmul.f32 0.6931472, %v5824_v29  ;;  %5843 = vlog2.f32 %v3739_v14  ;;  %v2279_v33 = vadd.f32 %v8841_v30, %v8245_v23  ;;  %v12610_v63 = vld [vmem:[#allocation28_spill] sm:$0xff] }
 0x1e3   : > { %v8856_v54 = vadd.f32 %v3252_v8, %v8698_v1  ;;  %v3704_v32 = vmul.f32 0.6931472, %v5826_v56  ;;  %5845 = vlog2.f32 %v3740_v15  ;;  %v1828_v55 = vmax.f32 %v1820_v9, 1e-20  ;;  %v12611_v1 = vld [vmem:[#allocation65_spill] sm:$0xff]  ;;  %v12613_v8 = vld [vmem:[#allocation74_spill] sm:$0xff] }
 0x1e4   : > { %v8859_v43 = vadd.f32 %v3702_v7, %v8702_v17  ;;  %v1829_v27 = vmax.f32 %v1821_v39, 1e-20  ;;  %v2280_v62 = vadd.f32 %v8844_v34, %v12574_v3  ;;  %v2287_v45 = vmax.f32 %v2279_v33, 1e-20  ;;  %v12612_v15 = vld [vmem:[#allocation73_spill] sm:$0xff]  ;;  %v12614_v33 = vld [vmem:[#allocation88_spill] sm:$0xff] }
 0x1e5   : > { %v8864_v24 = vadd.f32 %v3704_v32, %v8706_v2  ;;  %5847 = vlog2.f32 %v1828_v55  ;;  %v2731_v14 = vadd.f32 %v8841_v30, %v12610_v63  ;;  %v2732_v29 = vadd.f32 %v8844_v34, %v12611_v1  ;;  %v1595_v55 = vpop.permute.xlu1 %1594 }
 0x1e6   : > { %5849 = vlog2.f32 %v1829_v27  ;;  %v2288_v9 = vmax.f32 %v2280_v62, 1e-20  ;;  %v3183_v17 = vadd.f32 %v8841_v30, %v12612_v15  ;;  %v3184_v39 = vadd.f32 %v8844_v34, %v12613_v8 }
 0x1e7   : > { %v5828_v56 = vpop.eup %5827  ;;  %5851 = vlog2.f32 %v2287_v45  ;;  %v2739_v7 = vmax.f32 %v2731_v14, 1e-20  ;;  %v2740_v2 = vmax.f32 %v2732_v29, 1e-20  ;;  %v3635_v32 = vadd.f32 %v8841_v30, %v12614_v33  ;;  %v12615_v45 = vld [vmem:[#allocation45_spill] sm:$0xff]  ;;  %v12617_v29 = vld [vmem:[#allocation46_spill] sm:$0xff] }
 0x1e8   : > { %v5830_v38 = vpop.eup %5829  ;;  %5853 = vlog2.f32 %v2288_v9  ;;  %v3191_v16 = vmax.f32 %v3183_v17, 1e-20  ;;  %v3192_v51 = vmax.f32 %v3184_v39, 1e-20  ;;  %v3636_v62 = vadd.f32 %v8844_v34, %v8386_v0 }
 0x1e9   : > { %v5832_v27 = vpop.eup %5831  ;;  %5855 = vlog2.f32 %v2739_v7  ;;  %v3643_v6 = vmax.f32 %v3635_v32, 1e-20  ;;  %v8878_v47 = vmul.f32 0.6931472, %v5828_v56  ;;  %v8881_v14 = vmul.f32 %v12615_v45, %v1595_v55 }
 0x1ea   : > { %v5834_v21 = vpop.eup %5833  ;;  %5857 = vlog2.f32 %v2740_v2  ;;  %v8884_v30 = vmul.f32 %v12617_v29, %v1595_v55  ;;  %v8886_v17 = vmul.f32 0.6931472, %v5830_v38  ;;  %v8888_v39 = vmul.f32 0.6931472, %v5832_v27 }
 0x1eb   : > { %12616 = vst [vmem:[#allocation45_spill] sm:$0xff] %v8881_v14  ;;  %v5836_v9 = vpop.eup %5835  ;;  %5859 = vlog2.f32 %v3191_v16  ;;  %v3644_v7 = vmax.f32 %v3636_v62, 1e-20  ;;  %v8890_v32 = vmul.f32 0.6931472, %v5834_v21  ;;  %v1870_v56 = vadd.f32 %v8881_v14, %v12572_v19  ;;  %v12619_v16 = vld [vmem:[#allocation48_spill] sm:$0xff] }
 0x1ec   : > { %12618 = vst [vmem:[#allocation46_spill] sm:$0xff] %v8884_v30  ;;  %v5838_v34 = vpop.eup %5837  ;;  %5861 = vlog2.f32 %v3192_v51  ;;  %v1871_v2 = vadd.f32 %v8884_v30, %v12573_v25  ;;  %v2329_v38 = vadd.f32 %v8881_v14, %v8245_v23  ;;  %v2330_v27 = vadd.f32 %v8884_v30, %v12574_v3 }
 0x1ed   : > { %v5840_v55 = vpop.eup %5839  ;;  %5863 = vlog2.f32 %v3643_v6  ;;  %v8901_v62 = vmul.f32 %v12619_v16, %v1610_v28  ;;  %v8903_v45 = vmul.f32 0.6931472, %v5836_v9  ;;  %v1878_v51 = vmax.f32 %v1870_v56, 1e-20 }
 0x1ee   : > { %v5842_v21 = vpop.eup %5841  ;;  %5865 = vlog2.f32 %v3644_v7  ;;  %v1879_v29 = vmax.f32 %v1871_v2, 1e-20  ;;  %v8907_v25 = vmul.f32 0.6931472, %v5838_v34  ;;  %v2337_v6 = vmax.f32 %v2329_v38, 1e-20 }
 0x1ef   : > { %12620 = vst [vmem:[#allocation48_spill] sm:$0xff] %v8901_v62  ;;  %v8905_v19 = vpop.eup %5843  ;;  %v2338_v52 = vmax.f32 %v2330_v27, 1e-20  ;;  %v2781_v23 = vadd.f32 %v8881_v14, %v12610_v63  ;;  %v8913_v3 = vmul.f32 0.6931472, %v5840_v55  ;;  %5867 = vlog2.f32 %v1878_v51 }
 0x1f0   : > { %v8911_v60 = vpop.eup %5845  ;;  %v2782_v9 = vadd.f32 %v8884_v30, %v12611_v1  ;;  %v3233_v7 = vadd.f32 %v8881_v14, %v12612_v15  ;;  %v8919_v56 = vmul.f32 0.6931472, %v5842_v21  ;;  %5869 = vlog2.f32 %v1879_v29 }
 0x1f1   : > { %v2789_v34 = vmax.f32 %v2781_v23, 1e-20  ;;  %v3234_v2 = vadd.f32 %v8884_v30, %v12613_v8  ;;  %5871 = vlog2.f32 %v2337_v6  ;;  %v3685_v55 = vadd.f32 %v8881_v14, %v12614_v33 }
 0x1f2   : > { %12621 = vst [vmem:[#allocation118_spill] sm:$0xff] %v8919_v56  ;;  %v5848_v38 = vpop.eup %5847  ;;  %v2790_v27 = vmax.f32 %v2782_v9, 1e-20  ;;  %v3241_v16 = vmax.f32 %v3233_v7, 1e-20  ;;  %5873 = vlog2.f32 %v2338_v52  ;;  %v3686_v21 = vadd.f32 %v8884_v30, %v8386_v0  ;;  %v12622_v56 = vld [vmem:[#allocation50_spill] sm:$0xff] }
 0x1f3   : > { %v5850_v51 = vpop.eup %5849  ;;  %v1841_v63 = vmul.f32 0.6931472, %v5848_v38  ;;  %v3242_v1 = vmax.f32 %v3234_v2, 1e-20  ;;  %5875 = vlog2.f32 %v2789_v34  ;;  %v3693_v23 = vmax.f32 %v3685_v55, 1e-20 }
 0x1f4   : > { %v5852_v15 = vpop.eup %5851  ;;  %v1843_v29 = vmul.f32 0.6931472, %v5850_v51  ;;  %v8928_v8 = vmul.f32 %v12622_v56, %v1610_v28  ;;  %5877 = vlog2.f32 %v2790_v27  ;;  %v3694_v14 = vmax.f32 %v3686_v21, 1e-20 }
 0x1f5   : > { %v5854_v6 = vpop.eup %5853  ;;  %v8931_v9 = vadd.f32 %v8717_v35, %v1841_v63  ;;  %v2300_v7 = vmul.f32 0.6931472, %v5852_v15  ;;  %5879 = vlog2.f32 %v3241_v16  ;;  %v1918_v34 = vadd.f32 %v8901_v62, %v12562_v11 }
 0x1f6   : > { %12623 = vst [vmem:[#allocation50_spill] sm:$0xff] %v8928_v8  ;;  %v5856_v38 = vpop.eup %5855  ;;  %v8934_v52 = vadd.f32 %v8722_v20, %v1843_v29  ;;  %v2302_v2 = vmul.f32 0.6931472, %v5854_v6  ;;  %5881 = vlog2.f32 %v3242_v1  ;;  %v1919_v35 = vadd.f32 %v8928_v8, %v12563_v53 }
 0x1f7   : > { %v5858_v55 = vpop.eup %5857  ;;  %v8939_v28 = vadd.f32 %v8727_v5, %v2300_v7  ;;  %v2752_v56 = vmul.f32 0.6931472, %v5856_v38  ;;  %5883 = vlog2.f32 %v3693_v23  ;;  %v1926_v27 = vmax.f32 %v1918_v34, 1e-20 }
 0x1f8   : > { %v5860_v63 = vpop.eup %5859  ;;  %v8944_v15 = vadd.f32 %v8730_v59, %v2302_v2  ;;  %v2754_v20 = vmul.f32 0.6931472, %v5858_v55  ;;  %5885 = vlog2.f32 %v3694_v14  ;;  %v1927_v5 = vmax.f32 %v1919_v35, 1e-20 }
 0x1f9   : > { %v5862_v16 = vpop.eup %5861  ;;  %v8947_v51 = vadd.f32 %v8733_v61, %v2752_v56  ;;  %v3204_v21 = vmul.f32 0.6931472, %v5860_v63  ;;  %5887 = vlog2.f32 %v1926_v27  ;;  %v2377_v59 = vadd.f32 %v8901_v62, %v8207_v31 }
 0x1fa   : > { %v5864_v29 = vpop.eup %5863  ;;  %v8950_v1 = vadd.f32 %v8738_v37, %v2754_v20  ;;  %v3206_v6 = vmul.f32 0.6931472, %v5862_v16  ;;  %5889 = vlog2.f32 %v1927_v5  ;;  %v2378_v61 = vadd.f32 %v8928_v8, %v8210_v58 }
 0x1fb   : > { %v5866_v7 = vpop.eup %5865  ;;  %v8955_v23 = vadd.f32 %v8743_v48, %v3204_v21  ;;  %v3656_v38 = vmul.f32 0.6931472, %v5864_v29  ;;  %v2385_v37 = vmax.f32 %v2377_v59, 1e-20  ;;  %v2829_v34 = vadd.f32 %v8901_v62, %v8261_v42 }
 0x1fc   : > { %v8960_v14 = vadd.f32 %v8748_v40, %v3206_v6  ;;  %v3658_v2 = vmul.f32 0.6931472, %v5866_v7  ;;  %v5868_v55 = vpop.eup %5867  ;;  %v2386_v35 = vmax.f32 %v2378_v61, 1e-20  ;;  %v2830_v48 = vadd.f32 %v8928_v8, %v8264_v18 }
 0x1fd   : > { %v8965_v56 = vadd.f32 %v8753_v4, %v3656_v38  ;;  %v3281_v63 = vadd.f32 %v8901_v62, %v12581_v50  ;;  %v5870_v20 = vpop.eup %5869  ;;  %v1891_v27 = vmul.f32 0.6931472, %v5868_v55  ;;  %5891 = vlog2.f32 %v2385_v37 }
 0x1fe   : > { %v8972_v40 = vadd.f32 %v8756_v10, %v3658_v2  ;;  %v2837_v16 = vmax.f32 %v2829_v34, 1e-20  ;;  %v5872_v21 = vpop.eup %5871  ;;  %v1893_v5 = vmul.f32 0.6931472, %v5870_v20  ;;  %5893 = vlog2.f32 %v2386_v35  ;;  %v1630_v34 = vpop.permute.xlu1 %1629 }
 0x1ff   : > { %12624 = vst [vmem:[#allocation119_spill] sm:$0xff] %v8965_v56  ;;  %v2838_v29 = vmax.f32 %v2830_v48, 1e-20  ;;  %v3282_v4 = vadd.f32 %v8928_v8, %v12583_v49  ;;  %v5874_v6 = vpop.eup %5873  ;;  %v8977_v59 = vadd.f32 %v8811_v57, %v1891_v27  ;;  %v2350_v7 = vmul.f32 0.6931472, %v5872_v21 }
 0x200   : > { %12625 = vst [vmem:[#allocation120_spill] sm:$0xff] %v8972_v40  ;;  %5895 = vlog2.f32 %v2837_v16  ;;  %v3289_v38 = vmax.f32 %v3281_v63, 1e-20  ;;  %v5876_v61 = vpop.eup %5875  ;;  %v8980_v10 = vadd.f32 %v8816_v46, %v1893_v5  ;;  %v2352_v2 = vmul.f32 0.6931472, %v5874_v6 }
 0x201   : > { %12626 = vst [vmem:[#allocation121_spill] sm:$0xff] %v8977_v59  ;;  %5897 = vlog2.f32 %v2838_v29  ;;  %v3290_v37 = vmax.f32 %v3282_v4, 1e-20  ;;  %v5878_v55 = vpop.eup %5877  ;;  %v8983_v35 = vadd.f32 %v8825_v12, %v2350_v7  ;;  %v2802_v48 = vmul.f32 0.6931472, %v5876_v61  ;;  %v12631_v29 = vld [vmem:[#allocation31_spill] sm:$0xff] }
 0x202   : > { %12627 = vst [vmem:[#allocation122_spill] sm:$0xff] %v8980_v10  ;;  %5899 = vlog2.f32 %v3289_v38  ;;  %v3733_v57 = vadd.f32 %v8901_v62, %v8356_v22  ;;  %v5880_v20 = vpop.eup %5879  ;;  %v8988_v63 = vadd.f32 %v8828_v44, %v2352_v2  ;;  %v2804_v27 = vmul.f32 0.6931472, %v5878_v55  ;;  %v12634_v61 = vld [vmem:[#allocation32_spill] sm:$0xff]  ;;  %v12664_v10 = vld [vmem:[#allocation42_spill] sm:$0xff] }
 0x203   : > { %12628 = vst [vmem:[#allocation123_spill] sm:$0xff] %v8983_v35  ;;  %5901 = vlog2.f32 %v3290_v37  ;;  %v3734_v46 = vadd.f32 %v8928_v8, %v8359_v26  ;;  %v5882_v16 = vpop.eup %5881  ;;  %v8993_v21 = vadd.f32 %v8831_v41, %v2802_v48  ;;  %v3254_v12 = vmul.f32 0.6931472, %v5880_v20 }
 0x204   : > { %12629 = vst [vmem:[#allocation124_spill] sm:$0xff] %v8988_v63  ;;  %v3741_v5 = vmax.f32 %v3733_v57, 1e-20  ;;  %v8996_v4 = vmul.f32 %v12631_v29, %v1630_v34  ;;  %v5884_v6 = vpop.eup %5883  ;;  %v8999_v7 = vadd.f32 %v8838_v13, %v2804_v27  ;;  %v3256_v44 = vmul.f32 0.6931472, %v5882_v16  ;;  %v12661_v63 = vld [vmem:[#allocation30_spill] sm:$0xff] }
 0x205   : > { %12630 = vst [vmem:[#allocation125_spill] sm:$0xff] %v8993_v21  ;;  %v3742_v38 = vmax.f32 %v3734_v46, 1e-20  ;;  %v9002_v2 = vmul.f32 %v12634_v61, %v1630_v34  ;;  %v5886_v37 = vpop.eup %5885  ;;  %v9005_v55 = vadd.f32 %v8851_v36, %v3254_v12  ;;  %v3706_v41 = vmul.f32 0.6931472, %v5884_v6 }
 0x206   : > { %12632 = vst [vmem:[#allocation31_spill] sm:$0xff] %v8996_v4  ;;  %12633 = vst [vmem:[#allocation126_spill] sm:$0xff] %v8999_v7  ;;  %5903 = vlog2.f32 %v3741_v5  ;;  %v1968_v48 = vadd.f32 %v8996_v4, %v12562_v11  ;;  %v5888_v57 = vpop.eup %5887  ;;  %v9010_v20 = vadd.f32 %v8856_v54, %v3256_v44  ;;  %v3708_v13 = vmul.f32 0.6931472, %v5886_v37 }
 0x207   : > { %12635 = vst [vmem:[#allocation32_spill] sm:$0xff] %v9002_v2  ;;  %12636 = vst [vmem:[#allocation127_spill] sm:$0xff] %v9005_v55  ;;  %5905 = vlog2.f32 %v3742_v38  ;;  %v1969_v27 = vadd.f32 %v9002_v2, %v12563_v53  ;;  %v5890_v34 = vpop.eup %5889  ;;  %v9015_v46 = vadd.f32 %v8859_v43, %v3706_v41  ;;  %v1937_v36 = vmul.f32 0.6931472, %v5888_v57  ;;  %v12704_v53 = vld [vmem:[#allocation22_spill] sm:$0xff] }
 0x208   : > { %12637 = vst [vmem:[#allocation128_spill] sm:$0xff] %v9010_v20  ;;  %v1976_v16 = vmax.f32 %v1968_v48, 1e-20  ;;  %v2427_v12 = vadd.f32 %v8996_v4, %v8207_v31  ;;  %v9020_v5 = vadd.f32 %v8864_v24, %v3708_v13  ;;  %v1939_v29 = vmul.f32 0.6931472, %v5890_v34 }
 0x209   : > { %12638 = vst [vmem:[#allocation129_spill] sm:$0xff] %v9015_v46  ;;  %v1977_v54 = vmax.f32 %v1969_v27, 1e-20  ;;  %v2428_v6 = vadd.f32 %v9002_v2, %v8210_v58  ;;  %v9025_v44 = vadd.f32 %v1937_v36, %v8878_v47  ;;  %v2879_v43 = vadd.f32 %v8996_v4, %v8261_v42  ;;  %v12656_v46 = vld [vmem:[#allocation55_spill] sm:$0xff] }
 0x20a   : > { %12639 = vst [vmem:[#allocation130_spill] sm:$0xff] %v9020_v5  ;;  %5907 = vlog2.f32 %v1976_v16  ;;  %v2435_v38 = vmax.f32 %v2427_v12, 1e-20  ;;  %v5892_v61 = vpop.eup %5891  ;;  %v9030_v37 = vadd.f32 %v1939_v29, %v8886_v17  ;;  %v2880_v41 = vadd.f32 %v9002_v2, %v8264_v18 }
 0x20b   : > { %12640 = vst [vmem:[#allocation131_spill] sm:$0xff] %v9025_v44  ;;  %5909 = vlog2.f32 %v1977_v54  ;;  %v2436_v24 = vmax.f32 %v2428_v6, 1e-20  ;;  %v5894_v48 = vpop.eup %5893  ;;  %v2396_v57 = vmul.f32 0.6931472, %v5892_v61  ;;  %v3331_v47 = vadd.f32 %v8996_v4, %v12581_v50 }
 0x20c   : > { %12641 = vst [vmem:[#allocation132_spill] sm:$0xff] %v9030_v37  ;;  %5911 = vlog2.f32 %v2435_v38  ;;  %v2887_v13 = vmax.f32 %v2879_v43, 1e-20  ;;  %v2398_v34 = vmul.f32 0.6931472, %v5894_v48  ;;  %v3332_v17 = vadd.f32 %v9002_v2, %v12583_v49  ;;  %v1625_v48 = vpop.permute.xlu0 %1624 }
 0x20d   : > { %v5896_v27 = vpop.eup %5895  ;;  %5913 = vlog2.f32 %v2436_v24  ;;  %v2888_v36 = vmax.f32 %v2880_v41, 1e-20  ;;  %v9039_v12 = vadd.f32 %v2396_v57, %v8888_v39  ;;  %v3339_v54 = vmax.f32 %v3331_v47, 1e-20 }
 0x20e   : > { %v5898_v16 = vpop.eup %5897  ;;  %v2848_v29 = vmul.f32 0.6931472, %v5896_v27  ;;  %5915 = vlog2.f32 %v2887_v13  ;;  %v9042_v38 = vadd.f32 %v2398_v34, %v8890_v32  ;;  %v3340_v61 = vmax.f32 %v3332_v17, 1e-20  ;;  %v12647_v34 = vld [vmem:[#allocation59_spill] sm:$0xff] }
 0x20f   : > { %12642 = vst [vmem:[#allocation133_spill] sm:$0xff] %v9039_v12  ;;  %v5900_v6 = vpop.eup %5899  ;;  %v2850_v43 = vmul.f32 0.6931472, %v5898_v16  ;;  %5917 = vlog2.f32 %v2888_v36  ;;  %v3783_v39 = vadd.f32 %v8996_v4, %v8356_v22  ;;  %v3784_v32 = vadd.f32 %v9002_v2, %v8359_v26  ;;  %v12649_v36 = vld [vmem:[#allocation61_spill] sm:$0xff] }
 0x210   : > { %12643 = vst [vmem:[#allocation134_spill] sm:$0xff] %v9042_v38  ;;  %v5902_v24 = vpop.eup %5901  ;;  %v9045_v41 = vadd.f32 %v2848_v29, %v8903_v45  ;;  %v3300_v5 = vmul.f32 0.6931472, %v5900_v6  ;;  %5919 = vlog2.f32 %v3339_v54  ;;  %v9058_v45 = vmul.f32 %v12647_v34, %v1625_v48  ;;  %v12651_v54 = vld [vmem:[#allocation118_spill] sm:$0xff] }
 0x211   : > { %v9050_v57 = vadd.f32 %v2850_v43, %v8907_v25  ;;  %v3302_v13 = vmul.f32 0.6931472, %v5902_v24  ;;  %5921 = vlog2.f32 %v3340_v61  ;;  %v3791_v27 = vmax.f32 %v3783_v39, 1e-20  ;;  %v12654_v39 = vld [vmem:[#allocation13_spill] sm:$0xff] }
 0x212   : > { %12644 = vst [vmem:[#allocation135_spill] sm:$0xff] %v9045_v41  ;;  %v9055_v47 = vadd.f32 %v3300_v5, %v8913_v3  ;;  %12648 = vst [vmem:[#allocation59_spill] sm:$0xff] %v9058_v45  ;;  %v9061_v17 = vmul.f32 %v12649_v36, %v1625_v48  ;;  %v3748_v29 = vmul.f32 0.6931472, %v8905_v19  ;;  %v3750_v25 = vmul.f32 0.6931472, %v8911_v60 }
 0x213   : > { %12645 = vst [vmem:[#allocation136_spill] sm:$0xff] %v9050_v57  ;;  %v5904_v16 = vpop.eup %5903  ;;  %v9066_v6 = vadd.f32 %v3302_v13, %v12651_v54  ;;  %v3792_v43 = vmax.f32 %v3784_v32, 1e-20  ;;  %5923 = vlog2.f32 %v3791_v27  ;;  %v12653_v3 = vld [vmem:[#allocation44_spill] sm:$0xff]  ;;  %v12655_v36 = vld [vmem:[#allocation18_spill] sm:$0xff]  ;;  %v1394_v13 = vpop.permute.xlu1 %1393 }
 0x214   : > { %12646 = vst [vmem:[#allocation137_spill] sm:$0xff] %v9055_v47  ;;  %12650 = vst [vmem:[#allocation61_spill] sm:$0xff] %v9061_v17  ;;  %v5906_v61 = vpop.eup %5905  ;;  %v3752_v24 = vmul.f32 0.6931472, %v5904_v16  ;;  %v1966_v5 = vadd.f32 %v9058_v45, %v12653_v3  ;;  %v1967_v34 = vadd.f32 %v9061_v17, %v12654_v39  ;;  %v2425_v19 = vadd.f32 %v9058_v45, %v12655_v36  ;;  %v12658_v27 = vld [vmem:[#allocation60_spill] sm:$0xff] }
 0x215   : > { %12652 = vst [vmem:[#allocation118_spill] sm:$0xff] %v9066_v6  ;;  %v3754_v48 = vmul.f32 0.6931472, %v5906_v61  ;;  %5925 = vlog2.f32 %v3792_v43  ;;  %v2426_v60 = vadd.f32 %v9061_v17, %v12656_v46  ;;  %v2877_v40 = vadd.f32 %v9058_v45, %v12658_v27  ;;  %v12660_v43 = vld [vmem:[#allocation25_spill] sm:$0xff] }
 0x216   : > { %v9076_v54 = vadd.f32 %v3752_v24, %v3748_v29  ;;  %v1974_v32 = vmax.f32 %v1966_v5, 1e-20  ;;  %v1975_v16 = vmax.f32 %v1967_v34, 1e-20  ;;  %v2433_v20 = vmax.f32 %v2425_v19, 1e-20 }
 0x217   : > { %v5908_v56 = vpop.eup %5907  ;;  %v9080_v30 = vadd.f32 %v3754_v48, %v3750_v25  ;;  %v2434_v61 = vmax.f32 %v2426_v60, 1e-20  ;;  %v2878_v55 = vadd.f32 %v9061_v17, %v12660_v43  ;;  %v2885_v21 = vmax.f32 %v2877_v40, 1e-20  ;;  %v12662_v24 = vld [vmem:[#allocation29_spill] sm:$0xff]  ;;  %v12665_v48 = vld [vmem:[#allocation67_spill] sm:$0xff] }
 0x218   : > { %12657 = vst [vmem:[#allocation138_spill] sm:$0xff] %v9076_v54  ;;  %v5910_v7 = vpop.eup %5909  ;;  %5927 = vlog2.f32 %v1974_v32  ;;  %v3329_v29 = vadd.f32 %v9058_v45, %v12661_v63  ;;  %v9087_v5 = vmul.f32 %v12662_v24, %v1394_v13  ;;  %v3330_v25 = vadd.f32 %v9061_v17, %v12664_v10  ;;  %v12667_v32 = vld [vmem:[#allocation81_spill] sm:$0xff] }
 0x219   : > { %12659 = vst [vmem:[#allocation139_spill] sm:$0xff] %v9080_v30  ;;  %v5912_v34 = vpop.eup %5911  ;;  %5929 = vlog2.f32 %v1975_v16  ;;  %v2886_v35 = vmax.f32 %v2878_v55, 1e-20  ;;  %v9092_v19 = vmul.f32 %v12665_v48, %v1394_v13  ;;  %v9094_v59 = vmul.f32 0.6931472, %v5908_v56  ;;  %v12668_v55 = vld [vmem:[#allocation82_spill] sm:$0xff] }
 0x21a   : > { %12663 = vst [vmem:[#allocation140_spill] sm:$0xff] %v9087_v5  ;;  %v5914_v60 = vpop.eup %5913  ;;  %5931 = vlog2.f32 %v2433_v20  ;;  %v3337_v40 = vmax.f32 %v3329_v29, 1e-20  ;;  %v3781_v26 = vadd.f32 %v9058_v45, %v12667_v32  ;;  %v9098_v49 = vmul.f32 0.6931472, %v5910_v7  ;;  %v12669_v56 = vld [vmem:[#allocation33_spill] sm:$0xff] }
 0x21b   : > { %12666 = vst [vmem:[#allocation141_spill] sm:$0xff] %v9092_v19  ;;  %v5916_v22 = vpop.eup %5915  ;;  %5933 = vlog2.f32 %v2434_v61  ;;  %v3338_v16 = vmax.f32 %v3330_v25, 1e-20  ;;  %v3782_v50 = vadd.f32 %v9061_v17, %v12668_v55  ;;  %v9102_v54 = vmul.f32 0.6931472, %v5912_v34  ;;  %v12670_v7 = vld [vmem:[#allocation34_spill] sm:$0xff] }
 0x21c   : > { %v5918_v30 = vpop.eup %5917  ;;  %5935 = vlog2.f32 %v2885_v21  ;;  %v3789_v13 = vmax.f32 %v3781_v26, 1e-20  ;;  %v4035_v20 = vadd.f32 %v12669_v56, %v9087_v5  ;;  %v9106_v18 = vmul.f32 0.6931472, %v5914_v60  ;;  %v12671_v34 = vld [vmem:[#allocation106_spill] sm:$0xff]  ;;  %v12672_v60 = vld [vmem:[#allocation107_spill] sm:$0xff] }
 0x21d   : > { %v5920_v29 = vpop.eup %5919  ;;  %5937 = vlog2.f32 %v2886_v35  ;;  %v3790_v6 = vmax.f32 %v3782_v50, 1e-20  ;;  %v4036_v61 = vadd.f32 %v12670_v7, %v9092_v19  ;;  %v9110_v42 = vmul.f32 0.6931472, %v5916_v22  ;;  %v12673_v35 = vld [vmem:[#allocation41_spill] sm:$0xff]  ;;  %v12674_v22 = vld [vmem:[#allocation10_spill] sm:$0xff] }
 0x21e   : > { %v5922_v25 = vpop.eup %5921  ;;  %5939 = vlog2.f32 %v3337_v40  ;;  %v4043_v47 = vmax.f32 %v4035_v20, 1e-20  ;;  %v4085_v21 = vadd.f32 %v12671_v34, %v9087_v5  ;;  %v9114_v26 = vmul.f32 0.6931472, %v5918_v30  ;;  %v12705_v48 = vld [vmem:[#allocation27_spill] sm:$0xff] }
 0x21f   : > { %5941 = vlog2.f32 %v3338_v16  ;;  %v4044_v56 = vmax.f32 %v4036_v61, 1e-20  ;;  %v4086_v57 = vadd.f32 %v12672_v60, %v9092_v19  ;;  %v4135_v7 = vadd.f32 %v12673_v35, %v9087_v5  ;;  %v1389_v61 = vpop.permute.xlu0 %1388 }
 0x220   : > { %5943 = vlog2.f32 %v3789_v13  ;;  %v4093_v50 = vmax.f32 %v4085_v21, 1e-20  ;;  %v4136_v41 = vadd.f32 %v12674_v22, %v9092_v19  ;;  %v5924_v40 = vpop.eup %5923  ;;  %v4185_v30 = vadd.f32 %v8901_v62, %v9087_v5 }
 0x221   : > { %5945 = vlog2.f32 %v3790_v6  ;;  %v4094_v20 = vmax.f32 %v4086_v57, 1e-20  ;;  %v4186_v16 = vadd.f32 %v8928_v8, %v9092_v19  ;;  %v3350_v60 = vmul.f32 0.6931472, %v5920_v29  ;;  %v12675_v8 = vld [vmem:[#allocation69_spill] sm:$0xff] }
 0x222   : > { %v5926_v34 = vpop.eup %5925  ;;  %v9126_v13 = vmul.f32 0.6931472, %v5922_v25  ;;  %5947 = vlog2.f32 %v4043_v47  ;;  %v4143_v21 = vmax.f32 %v4135_v7, 1e-20  ;;  %v9128_v35 = vmul.f32 0.6931472, %v5924_v40 }
 0x223   : > { %5949 = vlog2.f32 %v4044_v56  ;;  %v4144_v22 = vmax.f32 %v4136_v41, 1e-20  ;;  %v4193_v58 = vmax.f32 %v4185_v30, 1e-20  ;;  %v4235_v57 = vadd.f32 %v8996_v4, %v9087_v5  ;;  %v12677_v7 = vld [vmem:[#allocation38_spill] sm:$0xff]  ;;  %v12680_v5 = vld [vmem:[#allocation87_spill] sm:$0xff] }
 0x224   : > { %5951 = vlog2.f32 %v4093_v50  ;;  %v4236_v6 = vadd.f32 %v9002_v2, %v9092_v19  ;;  %v9135_v62 = vmul.f32 %v12675_v8, %v1389_v61  ;;  %v3804_v25 = vmul.f32 0.6931472, %v5926_v34  ;;  %v12679_v2 = vld [vmem:[#allocation86_spill] sm:$0xff] }
 0x225   : > { %v5928_v29 = vpop.eup %5927  ;;  %5953 = vlog2.f32 %v4094_v20  ;;  %v4194_v47 = vmax.f32 %v4186_v16, 1e-20  ;;  %v9138_v40 = vmul.f32 %v12677_v7, %v1389_v61  ;;  %v4243_v50 = vmax.f32 %v4235_v57, 1e-20  ;;  %v12682_v61 = vld [vmem:[#allocation95_spill] sm:$0xff] }
 0x226   : > { %12676 = vst [vmem:[#allocation69_spill] sm:$0xff] %v9135_v62  ;;  %v5930_v56 = vpop.eup %5929  ;;  %v1983_v41 = vmul.f32 0.6931472, %v5928_v29  ;;  %5955 = vlog2.f32 %v4143_v21  ;;  %v4244_v30 = vmax.f32 %v4236_v6, 1e-20  ;;  %v4033_v19 = vadd.f32 %v12679_v2, %v9135_v62 }
 0x227   : > { %12678 = vst [vmem:[#allocation38_spill] sm:$0xff] %v9138_v40  ;;  %v5932_v38 = vpop.eup %5931  ;;  %v1985_v4 = vmul.f32 0.6931472, %v5930_v56  ;;  %5957 = vlog2.f32 %v4144_v22  ;;  %v4034_v12 = vadd.f32 %v12680_v5, %v9138_v40  ;;  %v4083_v21 = vadd.f32 %v12682_v61, %v9135_v62 }
 0x228   : > { %v5934_v34 = vpop.eup %5933  ;;  %v9145_v20 = vadd.f32 %v9094_v59, %v1983_v41  ;;  %v2442_v16 = vmul.f32 0.6931472, %v5932_v38  ;;  %5959 = vlog2.f32 %v4193_v58  ;;  %v4041_v29 = vmax.f32 %v4033_v19, 1e-20 }
 0x229   : > { %v5936_v57 = vpop.eup %5935  ;;  %v9150_v6 = vadd.f32 %v9098_v49, %v1985_v4  ;;  %v2444_v22 = vmul.f32 0.6931472, %v5934_v34  ;;  %5961 = vlog2.f32 %v4194_v47  ;;  %v4042_v59 = vmax.f32 %v4034_v12, 1e-20 }
 0x22a   : > { %12681 = vst [vmem:[#allocation142_spill] sm:$0xff] %v9145_v20  ;;  %v5938_v56 = vpop.eup %5937  ;;  %v9153_v37 = vadd.f32 %v9102_v54, %v2442_v16  ;;  %v2894_v31 = vmul.f32 0.6931472, %v5936_v57  ;;  %5963 = vlog2.f32 %v4243_v50  ;;  %v12686_v20 = vld [vmem:[#allocation96_spill] sm:$0xff]  ;;  %v4091_v54 = vmax.f32 %v4083_v21, 1e-20  ;;  %v1580_v16 = vpop.permute.xlu1 %1579 }
 0x22b   : > { %12683 = vst [vmem:[#allocation143_spill] sm:$0xff] %v9150_v6  ;;  %v5940_v41 = vpop.eup %5939  ;;  %v9156_v58 = vadd.f32 %v9106_v18, %v2444_v22  ;;  %v2896_v38 = vmul.f32 0.6931472, %v5938_v56  ;;  %5965 = vlog2.f32 %v4244_v30  ;;  %v4084_v49 = vadd.f32 %v12686_v20, %v9138_v40  ;;  %v12690_v56 = vld [vmem:[#allocation98_spill] sm:$0xff]  ;;  %v12703_v6 = vld [vmem:[#allocation56_spill] sm:$0xff] }
 0x22c   : > { %12684 = vst [vmem:[#allocation144_spill] sm:$0xff] %v9153_v37  ;;  %v5942_v4 = vpop.eup %5941  ;;  %v9161_v47 = vadd.f32 %v9110_v42, %v2894_v31  ;;  %v3346_v19 = vmul.f32 0.6931472, %v5940_v41  ;;  %5967 = vlog2.f32 %v4041_v29  ;;  %v4133_v31 = vadd.f32 %v12690_v56, %v9135_v62 }
 0x22d   : > { %12685 = vst [vmem:[#allocation145_spill] sm:$0xff] %v9156_v58  ;;  %v5944_v34 = vpop.eup %5943  ;;  %v9164_v50 = vadd.f32 %v9114_v26, %v2896_v38  ;;  %v3348_v12 = vmul.f32 0.6931472, %v5942_v4  ;;  %5969 = vlog2.f32 %v4042_v59  ;;  %v4092_v18 = vmax.f32 %v4084_v49, 1e-20  ;;  %v12692_v26 = vld [vmem:[#allocation105_spill] sm:$0xff] }
 0x22e   : > { %12687 = vst [vmem:[#allocation146_spill] sm:$0xff] %v9161_v47  ;;  %v5946_v57 = vpop.eup %5945  ;;  %v9166_v30 = vadd.f32 %v3350_v60, %v3346_v19  ;;  %v3798_v22 = vmul.f32 0.6931472, %v5944_v34  ;;  %5971 = vlog2.f32 %v4091_v54  ;;  %v4134_v41 = vadd.f32 %v12692_v26, %v9138_v40  ;;  %v12694_v49 = vld [vmem:[#allocation16_spill] sm:$0xff]  ;;  %v12702_v58 = vld [vmem:[#allocation47_spill] sm:$0xff] }
 0x22f   : > { %12688 = vst [vmem:[#allocation147_spill] sm:$0xff] %v9164_v50  ;;  %v5948_v42 = vpop.eup %5947  ;;  %v9171_v29 = vadd.f32 %v9126_v13, %v3348_v12  ;;  %v3800_v21 = vmul.f32 0.6931472, %v5946_v57  ;;  %5973 = vlog2.f32 %v4092_v18  ;;  %v4141_v60 = vmax.f32 %v4133_v31, 1e-20  ;;  %v12695_v19 = vld [vmem:[#allocation8_spill] sm:$0xff] }
 0x230   : > { %12689 = vst [vmem:[#allocation148_spill] sm:$0xff] %v9166_v30  ;;  %v5950_v59 = vpop.eup %5949  ;;  %v9176_v38 = vadd.f32 %v9128_v35, %v3798_v22  ;;  %v4183_v4 = vadd.f32 %v12694_v49, %v9135_v62  ;;  %v9181_v54 = vmul.f32 %v12695_v19, %v1580_v16  ;;  %v4142_v13 = vmax.f32 %v4134_v41, 1e-20  ;;  %v12698_v12 = vld [vmem:[#allocation51_spill] sm:$0xff] }
 0x231   : > { %12691 = vst [vmem:[#allocation149_spill] sm:$0xff] %v9171_v29  ;;  %v5952_v34 = vpop.eup %5951  ;;  %v9183_v30 = vadd.f32 %v3804_v25, %v3800_v21  ;;  %v4184_v18 = vadd.f32 %v12698_v12, %v9138_v40  ;;  %v12699_v57 = vld [vmem:[#allocation39_spill] sm:$0xff]  ;;  %v4054_v35 = vmul.f32 0.6931472, %v5948_v42  ;;  %5975 = vlog2.f32 %v4141_v60  ;;  %v12707_v12 = vld [vmem:[#allocation70_spill] sm:$0xff] }
 0x232   : > { %12693 = vst [vmem:[#allocation150_spill] sm:$0xff] %v9176_v38  ;;  %12696 = vst [vmem:[#allocation8_spill] sm:$0xff] %v9181_v54  ;;  %v9188_v29 = vmul.f32 %v12699_v57, %v1580_v16  ;;  %v5954_v50 = vpop.eup %5953  ;;  %v4191_v22 = vmax.f32 %v4183_v4, 1e-20  ;;  %v4233_v31 = vadd.f32 %v9058_v45, %v9135_v62  ;;  %v4056_v19 = vmul.f32 0.6931472, %v5950_v59 }
 0x233   : > { %12697 = vst [vmem:[#allocation151_spill] sm:$0xff] %v9183_v30  ;;  %v5956_v38 = vpop.eup %5955  ;;  %5977 = vlog2.f32 %v4142_v13  ;;  %v4192_v47 = vmax.f32 %v4184_v18, 1e-20  ;;  %v4234_v25 = vadd.f32 %v9061_v17, %v9138_v40  ;;  %v4104_v41 = vmul.f32 0.6931472, %v5952_v34  ;;  %v12701_v16 = vld [vmem:[#allocation14_spill] sm:$0xff] }
 0x234   : > { %12700 = vst [vmem:[#allocation39_spill] sm:$0xff] %v9188_v29  ;;  %v5958_v21 = vpop.eup %5957  ;;  %5979 = vlog2.f32 %v4191_v22  ;;  %v4241_v30 = vmax.f32 %v4233_v31, 1e-20  ;;  %v1822_v57 = vadd.f32 %v9181_v54, %v12701_v16  ;;  %v4106_v60 = vmul.f32 0.6931472, %v5954_v50  ;;  %v12706_v17 = vld [vmem:[#allocation63_spill] sm:$0xff] }
 0x235   : > { %v5960_v42 = vpop.eup %5959  ;;  %5981 = vlog2.f32 %v4192_v47  ;;  %v4242_v4 = vmax.f32 %v4234_v25, 1e-20  ;;  %v1823_v37 = vadd.f32 %v9188_v29, %v12702_v58  ;;  %v4154_v13 = vmul.f32 0.6931472, %v5956_v38  ;;  %v12708_v26 = vld [vmem:[#allocation71_spill] sm:$0xff] }
 0x236   : > { %v5962_v59 = vpop.eup %5961  ;;  %5983 = vlog2.f32 %v4241_v30  ;;  %v1830_v18 = vmax.f32 %v1822_v57, 1e-20  ;;  %v2281_v44 = vadd.f32 %v9181_v54, %v12703_v6  ;;  %v4156_v22 = vmul.f32 0.6931472, %v5958_v21 }
 0x237   : > { %v5964_v34 = vpop.eup %5963  ;;  %5985 = vlog2.f32 %v4242_v4  ;;  %v1831_v31 = vmax.f32 %v1823_v37, 1e-20  ;;  %v2282_v11 = vadd.f32 %v9188_v29, %v12704_v53  ;;  %v4204_v47 = vmul.f32 0.6931472, %v5960_v42 }
 0x238   : > { %v5966_v50 = vpop.eup %5965  ;;  %5987 = vlog2.f32 %v1830_v18  ;;  %v2289_v25 = vmax.f32 %v2281_v44, 1e-20  ;;  %v2733_v24 = vadd.f32 %v9181_v54, %v12705_v48  ;;  %v4206_v30 = vmul.f32 0.6931472, %v5962_v59  ;;  %v1560_v59 = vpop.permute.xlu0 %1559 }
 0x239   : > { %v5968_v38 = vpop.eup %5967  ;;  %5989 = vlog2.f32 %v1831_v31  ;;  %v2290_v57 = vmax.f32 %v2282_v11, 1e-20  ;;  %v2734_v45 = vadd.f32 %v9188_v29, %v12706_v17  ;;  %v3185_v49 = vadd.f32 %v9181_v54, %v12707_v12 }
 0x23a   : > { %v5970_v21 = vpop.eup %5969  ;;  %v4050_v4 = vmul.f32 0.6931472, %v5968_v38  ;;  %5991 = vlog2.f32 %v2289_v25  ;;  %v2741_v37 = vmax.f32 %v2733_v24, 1e-20  ;;  %v3186_v56 = vadd.f32 %v9188_v29, %v12708_v26 }
 0x23b   : > { %v5972_v42 = vpop.eup %5971  ;;  %v4052_v18 = vmul.f32 0.6931472, %v5970_v21  ;;  %5993 = vlog2.f32 %v2290_v57  ;;  %v2742_v44 = vmax.f32 %v2734_v45, 1e-20  ;;  %v3193_v61 = vmax.f32 %v3185_v49, 1e-20 }
 0x23c   : > { %v5974_v31 = vpop.eup %5973  ;;  %v9210_v11 = vadd.f32 %v4054_v35, %v4050_v4  ;;  %v4100_v20 = vmul.f32 0.6931472, %v5972_v42  ;;  %5995 = vlog2.f32 %v2741_v37  ;;  %v3194_v25 = vmax.f32 %v3186_v56, 1e-20  ;;  %v12712_v57 = vld [vmem:[#allocation6_spill] sm:$0xff]  ;;  %v12714_v21 = vld [vmem:[#allocation35_spill] sm:$0xff] }
 0x23d   : > { %v9212_v38 = vadd.f32 %v4056_v19, %v4052_v18  ;;  %v4102_v24 = vmul.f32 0.6931472, %v5974_v31  ;;  %5997 = vlog2.f32 %v2742_v44  ;;  %v9217_v45 = vmul.f32 %v12712_v57, %v1560_v59 }
 0x23e   : > { %12709 = vst [vmem:[#allocation152_spill] sm:$0xff] %v9210_v11  ;;  %v9214_v54 = vadd.f32 %v4104_v41, %v4100_v20  ;;  %5999 = vlog2.f32 %v3193_v61  ;;  %v9220_v29 = vmul.f32 %v12714_v21, %v1560_v59  ;;  %v5976_v5 = vpop.eup %5975  ;;  %v4254_v35 = vmul.f32 0.6931472, %v5964_v34 }
 0x23f   : > { %12710 = vst [vmem:[#allocation153_spill] sm:$0xff] %v9212_v38  ;;  %12713 = vst [vmem:[#allocation6_spill] sm:$0xff] %v9217_v45  ;;  %v4256_v4 = vmul.f32 0.6931472, %v5966_v50  ;;  %v9222_v42 = vadd.f32 %v4106_v60, %v4102_v24  ;;  %6001 = vlog2.f32 %v3194_v25  ;;  %v4150_v19 = vmul.f32 0.6931472, %v5976_v5 }
 0x240   : > { %12711 = vst [vmem:[#allocation154_spill] sm:$0xff] %v9214_v54  ;;  %12715 = vst [vmem:[#allocation35_spill] sm:$0xff] %v9220_v29  ;;  %v5978_v49 = vpop.eup %5977  ;;  %v1772_v56 = vadd.f32 %v9217_v45, %v12701_v16  ;;  %v1773_v20 = vadd.f32 %v9220_v29, %v12702_v58  ;;  %v2231_v61 = vadd.f32 %v9217_v45, %v12703_v6 }
 0x241   : > { %12716 = vst [vmem:[#allocation155_spill] sm:$0xff] %v9222_v42  ;;  %v5980_v41 = vpop.eup %5979  ;;  %v4152_v37 = vmul.f32 0.6931472, %v5978_v49  ;;  %v2232_v34 = vadd.f32 %v9220_v29, %v12704_v53  ;;  %v2683_v60 = vadd.f32 %v9217_v45, %v12705_v48  ;;  %v2684_v5 = vadd.f32 %v9220_v29, %v12706_v17 }
 0x242   : > { %v5982_v50 = vpop.eup %5981  ;;  %v9236_v18 = vadd.f32 %v4154_v13, %v4150_v19  ;;  %v4200_v44 = vmul.f32 0.6931472, %v5980_v41  ;;  %v1780_v59 = vmax.f32 %v1772_v56, 1e-20  ;;  %v1781_v31 = vmax.f32 %v1773_v20, 1e-20 }
 0x243   : > { %v5984_v24 = vpop.eup %5983  ;;  %v9238_v25 = vadd.f32 %v4156_v22, %v4152_v37  ;;  %v4202_v57 = vmul.f32 0.6931472, %v5982_v50  ;;  %v2239_v21 = vmax.f32 %v2231_v61, 1e-20  ;;  %v2240_v49 = vmax.f32 %v2232_v34, 1e-20 }
 0x244   : > { %12717 = vst [vmem:[#allocation156_spill] sm:$0xff] %v9236_v18  ;;  %v5986_v42 = vpop.eup %5985  ;;  %v9240_v54 = vadd.f32 %v4204_v47, %v4200_v44  ;;  %v4250_v38 = vmul.f32 0.6931472, %v5984_v24  ;;  %6003 = vlog2.f32 %v1780_v59  ;;  %v2691_v11 = vmax.f32 %v2683_v60, 1e-20 }
 0x245   : > { %12718 = vst [vmem:[#allocation157_spill] sm:$0xff] %v9238_v25  ;;  %v5988_v48 = vpop.eup %5987  ;;  %v9242_v17 = vadd.f32 %v4206_v30, %v4202_v57  ;;  %v4252_v13 = vmul.f32 0.6931472, %v5986_v42  ;;  %6005 = vlog2.f32 %v1781_v31  ;;  %v2692_v19 = vmax.f32 %v2684_v5, 1e-20 }
 0x246   : > { %12719 = vst [vmem:[#allocation158_spill] sm:$0xff] %v9240_v54  ;;  %v5990_v56 = vpop.eup %5989  ;;  %v9244_v20 = vadd.f32 %v4254_v35, %v4250_v38  ;;  %v1845_v22 = vmul.f32 0.6931472, %v5988_v48  ;;  %6007 = vlog2.f32 %v2239_v21  ;;  %v3135_v61 = vadd.f32 %v9217_v45, %v12707_v12 }
 0x247   : > { %12720 = vst [vmem:[#allocation159_spill] sm:$0xff] %v9242_v17  ;;  %v5992_v41 = vpop.eup %5991  ;;  %v9248_v47 = vadd.f32 %v4256_v4, %v4252_v13  ;;  %v1847_v37 = vmul.f32 0.6931472, %v5990_v56  ;;  %6009 = vlog2.f32 %v2240_v49  ;;  %v3136_v30 = vadd.f32 %v9220_v29, %v12708_v26 }
 0x248   : > { %12721 = vst [vmem:[#allocation160_spill] sm:$0xff] %v9244_v20  ;;  %v5994_v34 = vpop.eup %5993  ;;  %v1850_v42 = vadd.f32 %v8931_v9, %v1845_v22  ;;  %v2304_v60 = vmul.f32 0.6931472, %v5992_v41  ;;  %6011 = vlog2.f32 %v2691_v11  ;;  %v3143_v38 = vmax.f32 %v3135_v61, 1e-20 }
 0x249   : > { %12722 = vst [vmem:[#allocation161_spill] sm:$0xff] %v9248_v47  ;;  %v5996_v35 = vpop.eup %5995  ;;  %v1859_v48 = vadd.f32 %v8934_v52, %v1847_v37  ;;  %v2306_v5 = vmul.f32 0.6931472, %v5994_v34  ;;  %6013 = vlog2.f32 %v2692_v19  ;;  %v3144_v50 = vmax.f32 %v3136_v30, 1e-20 }
 0x24a   : > { %v5998_v44 = vpop.eup %5997  ;;  %v1851_v4 = vrot.slane %v1850_v42, 4  ;;  %v2309_v59 = vadd.f32 %v8939_v28, %v2304_v60  ;;  %v2756_v31 = vmul.f32 0.6931472, %v5996_v35  ;;  %6015 = vlog2.f32 %v3143_v38 }
 0x24b   : > { %v6000_v24 = vpop.eup %5999  ;;  %v1860_v57 = vrot.slane %v1859_v48, 4  ;;  %v2318_v21 = vadd.f32 %v8944_v15, %v2306_v5  ;;  %v2758_v9 = vmul.f32 0.6931472, %v5998_v44  ;;  %6017 = vlog2.f32 %v3144_v50 }
 0x24c   : > { %v6002_v11 = vpop.eup %6001  ;;  %v1852_v49 = vadd.f32 %v1851_v4, %v1850_v42  ;;  %v2310_v13 = vrot.slane %v2309_v59, 4  ;;  %v2761_v52 = vadd.f32 %v8947_v51, %v2756_v31  ;;  %v3208_v56 = vmul.f32 0.6931472, %v6000_v24  ;;  %v1645_v24 = vpop.permute.xlu1 %1644 }
 0x24d   : > { %v1861_v19 = vadd.f32 %v1860_v57, %v1859_v48  ;;  %v2319_v22 = vrot.slane %v2318_v21, 4  ;;  %v2770_v61 = vadd.f32 %v8950_v1, %v2758_v9  ;;  %v3210_v41 = vmul.f32 0.6931472, %v6002_v11 }
 0x24e   : > { %v1853_v28 = vrot.slane %v1852_v49, 2  ;;  %v2311_v37 = vadd.f32 %v2310_v13, %v2309_v59  ;;  %v2762_v30 = vrot.slane %v2761_v52, 4  ;;  %v3213_v34 = vadd.f32 %v8955_v23, %v3208_v56 }
 0x24f   : > { %v1862_v60 = vrot.slane %v1861_v19, 2  ;;  %v2320_v15 = vadd.f32 %v2319_v22, %v2318_v21  ;;  %v2771_v38 = vrot.slane %v2770_v61, 4  ;;  %v3222_v35 = vadd.f32 %v8960_v14, %v3210_v41 }
 0x250   : > { %v1854_v42 = vadd.f32 %v1853_v28, %v1852_v49  ;;  %v2312_v5 = vrot.slane %v2311_v37, 2  ;;  %v2763_v50 = vadd.f32 %v2762_v30, %v2761_v52  ;;  %v3214_v51 = vrot.slane %v3213_v34, 4 }
 0x251   : > { %v6004_v44 = vpop.eup %6003  ;;  %v1863_v48 = vadd.f32 %v1862_v60, %v1861_v19  ;;  %v2321_v4 = vrot.slane %v2320_v15, 2  ;;  %v2772_v31 = vadd.f32 %v2771_v38, %v2770_v61  ;;  %v3223_v1 = vrot.slane %v3222_v35, 4 }
 0x252   : > { %v6006_v57 = vpop.eup %6005  ;;  %v1855_v59 = vrot.slane %v1854_v42, 1  ;;  %v2313_v9 = vadd.f32 %v2312_v5, %v2311_v37  ;;  %v2764_v11 = vrot.slane %v2763_v50, 2  ;;  %v3215_v23 = vadd.f32 %v3214_v51, %v3213_v34 }
 0x253   : > { %v6008_v13 = vpop.eup %6007  ;;  %v1864_v21 = vrot.slane %v1863_v48, 1  ;;  %v2322_v56 = vadd.f32 %v2321_v4, %v2320_v15  ;;  %v2773_v22 = vrot.slane %v2772_v31, 2  ;;  %v3224_v14 = vadd.f32 %v3223_v1, %v3222_v35 }
 0x254   : > { %v6010_v49 = vpop.eup %6009  ;;  %v2314_v41 = vrot.slane %v2313_v9, 1  ;;  %v2765_v52 = vadd.f32 %v2764_v11, %v2763_v50  ;;  %v3216_v28 = vrot.slane %v3215_v23, 2  ;;  %v9261_v19 = vmul.f32 %v12675_v8, %v1645_v24 }
 0x255   : > { %v6012_v61 = vpop.eup %6011  ;;  %v2323_v30 = vrot.slane %v2322_v56, 1  ;;  %v2774_v60 = vadd.f32 %v2773_v22, %v2772_v31  ;;  %v3225_v38 = vrot.slane %v3224_v14, 2  ;;  %v9264_v37 = vmul.f32 %v12677_v7, %v1645_v24  ;;  %v12731_v7 = vld [vmem:[#allocation108_spill] sm:$0xff] }
 0x256   : > { %12723 = vst [vmem:[#allocation162_spill] sm:$0xff] %v9261_v19  ;;  %v6014_v34 = vpop.eup %6013  ;;  %v9266_v5 = vadd.f32 %v1855_v59, %v1854_v42  ;;  %v2766_v15 = vrot.slane %v2765_v52, 1  ;;  %v9268_v51 = vadd.f32 %v3216_v28, %v3215_v23  ;;  %v1795_v35 = vmul.f32 0.6931472, %v6004_v44  ;;  %v12733_v44 = vld [vmem:[#allocation109_spill] sm:$0xff] }
 0x257   : > { %12724 = vst [vmem:[#allocation163_spill] sm:$0xff] %v9264_v37  ;;  %v6016_v4 = vpop.eup %6015  ;;  %v9270_v50 = vadd.f32 %v1864_v21, %v1863_v48  ;;  %v9272_v1 = vadd.f32 %v2314_v41, %v2313_v9  ;;  %v9274_v8 = vadd.f32 %v2323_v30, %v2322_v56  ;;  %v1797_v11 = vmul.f32 0.6931472, %v6006_v57  ;;  %v12734_v9 = vld [vmem:[#allocation110_spill] sm:$0xff] }
 0x258   : > { %12725 = vst [vmem:[#allocation164_spill] sm:$0xff] %v9266_v5  ;;  %12726 = vst [vmem:[#allocation165_spill] sm:$0xff] %v9268_v51  ;;  %v6018_v31 = vpop.eup %6017  ;;  %v2775_v22 = vrot.slane %v2774_v60, 1  ;;  %v9276_v29 = vadd.f32 %v3225_v38, %v3224_v14  ;;  %v1800_v24 = vadd.f32 %v12731_v7, %v1795_v35  ;;  %v2254_v42 = vmul.f32 0.6931472, %v6008_v13  ;;  %v12736_v13 = vld [vmem:[#allocation112_spill] sm:$0xff] }
 0x259   : > { %12727 = vst [vmem:[#allocation166_spill] sm:$0xff] %v9270_v50  ;;  %12728 = vst [vmem:[#allocation167_spill] sm:$0xff] %v9272_v1  ;;  %v9279_v59 = vadd.f32 %v2766_v15, %v2765_v52  ;;  %v1809_v28 = vadd.f32 %v12733_v44, %v1797_v11  ;;  %v2256_v48 = vmul.f32 0.6931472, %v6010_v49  ;;  %v2706_v56 = vmul.f32 0.6931472, %v6012_v61 }
 0x25a   : > { %12729 = vst [vmem:[#allocation168_spill] sm:$0xff] %v9274_v8  ;;  %12730 = vst [vmem:[#allocation169_spill] sm:$0xff] %v9276_v29  ;;  %v1801_v21 = vrot.slane %v1800_v24, 4  ;;  %v2259_v41 = vadd.f32 %v12734_v9, %v2254_v42  ;;  %v2708_v30 = vmul.f32 0.6931472, %v6014_v34  ;;  %v12735_v8 = vld [vmem:[#allocation111_spill] sm:$0xff]  ;;  %v9289_v47 = vadd.f32 %v2775_v22, %v2774_v60 }
 0x25b   : > { %12732 = vst [vmem:[#allocation108_spill] sm:$0xff] %v9279_v59  ;;  %v1810_v57 = vrot.slane %v1809_v28, 4  ;;  %v2268_v1 = vadd.f32 %v12735_v8, %v2256_v48  ;;  %v3158_v14 = vmul.f32 0.6931472, %v6016_v4  ;;  %v3160_v38 = vmul.f32 0.6931472, %v6018_v31 }
 0x25c   : > { %v1802_v50 = vadd.f32 %v1801_v21, %v1800_v24  ;;  %v2260_v35 = vrot.slane %v2259_v41, 4  ;;  %v2711_v52 = vadd.f32 %v12736_v13, %v2706_v56  ;;  %v12737_v15 = vld [vmem:[#allocation113_spill] sm:$0xff]  ;;  %v12738_v11 = vld [vmem:[#allocation114_spill] sm:$0xff]  ;;  %v12739_v44 = vld [vmem:[#allocation115_spill] sm:$0xff]  ;;  %12740 = vst [vmem:[#allocation109_spill] sm:$0xff] %v9289_v47  ;;  %v2016_v60 = vadd.f32 %v9261_v19, %v12653_v3 }
 0x25d   : > { %v2720_v7 = vadd.f32 %v12737_v15, %v2708_v30  ;;  %v1811_v23 = vadd.f32 %v1810_v57, %v1809_v28  ;;  %v2269_v51 = vrot.slane %v2268_v1, 4  ;;  %v3163_v49 = vadd.f32 %v12738_v11, %v3158_v14  ;;  %v12760_v47 = vld [vmem:[#allocation74_spill] sm:$0xff] }
 0x25e   : > { %v3172_v59 = vadd.f32 %v12739_v44, %v3160_v38  ;;  %v1803_v42 = vrot.slane %v1802_v50, 2  ;;  %v2261_v61 = vadd.f32 %v2260_v35, %v2259_v41  ;;  %v2712_v34 = vrot.slane %v2711_v52, 4 }
 0x25f   : > { %v2721_v9 = vrot.slane %v2720_v7, 4  ;;  %v1812_v5 = vrot.slane %v1811_v23, 2  ;;  %v2270_v8 = vadd.f32 %v2269_v51, %v2268_v1  ;;  %v3164_v4 = vrot.slane %v3163_v49, 4 }
 0x260   : > { %v3173_v31 = vrot.slane %v3172_v59, 4  ;;  %v1804_v24 = vadd.f32 %v1803_v42, %v1802_v50  ;;  %v2262_v48 = vrot.slane %v2261_v61, 2  ;;  %v2713_v21 = vadd.f32 %v2712_v34, %v2711_v52  ;;  %v12753_v52 = vld [vmem:[#allocation57_spill] sm:$0xff] }
 0x261   : > { %v2722_v56 = vadd.f32 %v2721_v9, %v2720_v7  ;;  %v1813_v13 = vadd.f32 %v1812_v5, %v1811_v23  ;;  %v2271_v30 = vrot.slane %v2270_v8, 2  ;;  %v3165_v28 = vadd.f32 %v3164_v4, %v3163_v49 }
 0x262   : > { %v3174_v57 = vadd.f32 %v3173_v31, %v3172_v59  ;;  %v1805_v15 = vrot.slane %v1804_v24, 1  ;;  %v2263_v14 = vadd.f32 %v2262_v48, %v2261_v61  ;;  %v2714_v11 = vrot.slane %v2713_v21, 2 }
 0x263   : > { %v2723_v38 = vrot.slane %v2722_v56, 2  ;;  %v1814_v44 = vrot.slane %v1813_v13, 1  ;;  %v2272_v41 = vadd.f32 %v2271_v30, %v2270_v8  ;;  %v3166_v35 = vrot.slane %v3165_v28, 2 }
 0x264   : > { %v3175_v45 = vrot.slane %v3174_v57, 2  ;;  %v2264_v51 = vrot.slane %v2263_v14, 1  ;;  %v2715_v1 = vadd.f32 %v2714_v11, %v2713_v21  ;;  %v9296_v59 = vadd.f32 %v1805_v15, %v1804_v24  ;;  %v1615_v11 = vpop.permute.xlu0 %1614 }
 0x265   : > { %v2724_v50 = vadd.f32 %v2723_v38, %v2722_v56  ;;  %v2273_v7 = vrot.slane %v2272_v41, 1  ;;  %v9292_v5 = vadd.f32 %v3166_v35, %v3165_v28  ;;  %v9298_v49 = vadd.f32 %v1814_v44, %v1813_v13 }
 0x266   : > { %v9294_v23 = vadd.f32 %v3175_v45, %v3174_v57  ;;  %12743 = vst [vmem:[#allocation112_spill] sm:$0xff] %v9296_v59  ;;  %v9300_v42 = vadd.f32 %v2264_v51, %v2263_v14  ;;  %v2716_v61 = vrot.slane %v2715_v1, 1  ;;  %v2017_v9 = vadd.f32 %v9264_v37, %v12654_v39  ;;  %v1409_v45 = vpop.permute.xlu1 %1408  ;;  %v12766_v59 = vld [vmem:[#allocation95_spill] sm:$0xff] }
 0x267   : > { %12741 = vst [vmem:[#allocation110_spill] sm:$0xff] %v9292_v5  ;;  %12744 = vst [vmem:[#allocation113_spill] sm:$0xff] %v9298_v49  ;;  %v9304_v22 = vadd.f32 %v2273_v7, %v2272_v41  ;;  %v2725_v34 = vrot.slane %v2724_v50, 1  ;;  %v2024_v4 = vmax.f32 %v2016_v60, 1e-20  ;;  %v2475_v31 = vadd.f32 %v9261_v19, %v12655_v36 }
 0x268   : > { %12742 = vst [vmem:[#allocation111_spill] sm:$0xff] %v9294_v23  ;;  %12745 = vst [vmem:[#allocation114_spill] sm:$0xff] %v9300_v42  ;;  %v2025_v24 = vmax.f32 %v2017_v9, 1e-20  ;;  %v2476_v48 = vadd.f32 %v9264_v37, %v12656_v46  ;;  %v2927_v21 = vadd.f32 %v9261_v19, %v12658_v27  ;;  %v2928_v56 = vadd.f32 %v9264_v37, %v12660_v43  ;;  %v12747_v9 = vld [vmem:[#allocation20_spill] sm:$0xff]  ;;  %v12759_v23 = vld [vmem:[#allocation73_spill] sm:$0xff] }
 0x269   : > { %12746 = vst [vmem:[#allocation115_spill] sm:$0xff] %v9304_v22  ;;  %6019 = vlog2.f32 %v2024_v4  ;;  %v2483_v13 = vmax.f32 %v2475_v31, 1e-20  ;;  %v3379_v30 = vadd.f32 %v9261_v19, %v12661_v63  ;;  %v3380_v28 = vadd.f32 %v9264_v37, %v12664_v10  ;;  %v12749_v31 = vld [vmem:[#allocation21_spill] sm:$0xff] }
 0x26a   : > { %6021 = vlog2.f32 %v2025_v24  ;;  %v2484_v57 = vmax.f32 %v2476_v48, 1e-20  ;;  %v2935_v15 = vmax.f32 %v2927_v21, 1e-20  ;;  %v2936_v14 = vmax.f32 %v2928_v56, 1e-20 }
 0x26b   : > { %6023 = vlog2.f32 %v2483_v13  ;;  %v3387_v38 = vmax.f32 %v3379_v30, 1e-20  ;;  %v3388_v44 = vmax.f32 %v3380_v28, 1e-20  ;;  %v3831_v41 = vadd.f32 %v9261_v19, %v12667_v32  ;;  %v12751_v13 = vld [vmem:[#allocation15_spill] sm:$0xff]  ;;  %v12752_v28 = vld [vmem:[#allocation49_spill] sm:$0xff] }
 0x26c   : > { %6025 = vlog2.f32 %v2484_v57  ;;  %v3832_v35 = vadd.f32 %v9264_v37, %v12668_v55  ;;  %v4283_v51 = vadd.f32 %v9261_v19, %v9135_v62  ;;  %v4284_v7 = vadd.f32 %v9264_v37, %v9138_v40 }
 0x26d   : > { %6027 = vlog2.f32 %v2935_v15  ;;  %v3839_v60 = vmax.f32 %v3831_v41, 1e-20  ;;  %v9331_v4 = vmul.f32 %v12747_v9, %v1615_v11  ;;  %v9334_v24 = vmul.f32 %v12749_v31, %v1615_v11  ;;  %v12754_v41 = vld [vmem:[#allocation23_spill] sm:$0xff]  ;;  %v12755_v11 = vld [vmem:[#allocation28_spill] sm:$0xff] }
 0x26e   : > { %6029 = vlog2.f32 %v2936_v14  ;;  %v3840_v48 = vmax.f32 %v3832_v35, 1e-20  ;;  %v4291_v21 = vmax.f32 %v4283_v51, 1e-20  ;;  %v4292_v56 = vmax.f32 %v4284_v7, 1e-20 }
 0x26f   : > { %12748 = vst [vmem:[#allocation20_spill] sm:$0xff] %v9331_v4  ;;  %12750 = vst [vmem:[#allocation21_spill] sm:$0xff] %v9334_v24  ;;  %6031 = vlog2.f32 %v3387_v38  ;;  %v1920_v30 = vadd.f32 %v9331_v4, %v12751_v13  ;;  %v1921_v57 = vadd.f32 %v9334_v24, %v12752_v28  ;;  %v2379_v15 = vadd.f32 %v9331_v4, %v12753_v52  ;;  %v12756_v35 = vld [vmem:[#allocation65_spill] sm:$0xff]  ;;  %v12815_v28 = vld [vmem:[#allocation63_spill] sm:$0xff] }
 0x270   : > { %6033 = vlog2.f32 %v3388_v44  ;;  %v2380_v9 = vadd.f32 %v9334_v24, %v12754_v41  ;;  %v2831_v14 = vadd.f32 %v9331_v4, %v12755_v11  ;;  %v2832_v51 = vadd.f32 %v9334_v24, %v12756_v35  ;;  %v12783_v41 = vld [vmem:[#allocation133_spill] sm:$0xff] }
 0x271   : > { %v9348_v38 = vadd.f32 %v2716_v61, %v2715_v1  ;;  %v9350_v7 = vadd.f32 %v2725_v34, %v2724_v50  ;;  %6035 = vlog2.f32 %v3839_v60  ;;  %v1928_v31 = vmax.f32 %v1920_v30, 1e-20  ;;  %v12761_v61 = vld [vmem:[#allocation84_spill] sm:$0xff]  ;;  %v12763_v60 = vld [vmem:[#allocation85_spill] sm:$0xff] }
 0x272   : > { %6037 = vlog2.f32 %v3840_v48  ;;  %v1929_v8 = vmax.f32 %v1921_v57, 1e-20  ;;  %v2387_v29 = vmax.f32 %v2379_v15, 1e-20  ;;  %v2388_v44 = vmax.f32 %v2380_v9, 1e-20 }
 0x273   : > { %12757 = vst [vmem:[#allocation170_spill] sm:$0xff] %v9348_v38  ;;  %12758 = vst [vmem:[#allocation171_spill] sm:$0xff] %v9350_v7  ;;  %6039 = vlog2.f32 %v4291_v21  ;;  %v3283_v5 = vadd.f32 %v9331_v4, %v12759_v23  ;;  %v3284_v22 = vadd.f32 %v9334_v24, %v12760_v47  ;;  %v3735_v1 = vadd.f32 %v9331_v4, %v12614_v33  ;;  %v12774_v33 = vld [vmem:[#allocation29_spill] sm:$0xff]  ;;  %v12775_v47 = vld [vmem:[#allocation67_spill] sm:$0xff] }
 0x274   : > { %6041 = vlog2.f32 %v4292_v56  ;;  %v3736_v50 = vadd.f32 %v9334_v24, %v8386_v0  ;;  %v9361_v34 = vmul.f32 %v12761_v61, %v1409_v45  ;;  %v9364_v48 = vmul.f32 %v12763_v60, %v1409_v45  ;;  %v12765_v56 = vld [vmem:[#allocation87_spill] sm:$0xff] }
 0x275   : > { %6043 = vlog2.f32 %v1928_v31  ;;  %v2839_v21 = vmax.f32 %v2831_v14, 1e-20  ;;  %v2840_v30 = vmax.f32 %v2832_v51, 1e-20  ;;  %v3291_v57 = vmax.f32 %v3283_v5, 1e-20 }
 0x276   : > { %12762 = vst [vmem:[#allocation84_spill] sm:$0xff] %v9361_v34  ;;  %12764 = vst [vmem:[#allocation85_spill] sm:$0xff] %v9364_v48  ;;  %v6020_v15 = vpop.eup %6019  ;;  %6045 = vlog2.f32 %v1929_v8  ;;  %v3292_v9 = vmax.f32 %v3284_v22, 1e-20  ;;  %v4485_v7 = vadd.f32 %v12679_v2, %v9361_v34  ;;  %v4486_v38 = vadd.f32 %v12765_v56, %v9364_v48  ;;  %v12767_v31 = vld [vmem:[#allocation96_spill] sm:$0xff]  ;;  %v12772_v24 = vld [vmem:[#allocation59_spill] sm:$0xff] }
 0x277   : > { %v6022_v42 = vpop.eup %6021  ;;  %6047 = vlog2.f32 %v2387_v29  ;;  %v3743_v49 = vmax.f32 %v3735_v1, 1e-20  ;;  %v4535_v45 = vadd.f32 %v12766_v59, %v9361_v34  ;;  %v4536_v14 = vadd.f32 %v12767_v31, %v9364_v48  ;;  %v12768_v59 = vld [vmem:[#allocation98_spill] sm:$0xff]  ;;  %v12769_v31 = vld [vmem:[#allocation105_spill] sm:$0xff] }
 0x278   : > { %v6024_v51 = vpop.eup %6023  ;;  %v9374_v5 = vmul.f32 0.6931472, %v6020_v15  ;;  %v9376_v8 = vmul.f32 0.6931472, %v6022_v42  ;;  %6049 = vlog2.f32 %v2388_v44  ;;  %v3744_v22 = vmax.f32 %v3736_v50, 1e-20 }
 0x279   : > { %v6026_v2 = vpop.eup %6025  ;;  %v9378_v20 = vmul.f32 0.6931472, %v6024_v51  ;;  %6051 = vlog2.f32 %v2839_v21  ;;  %v4493_v56 = vmax.f32 %v4485_v7, 1e-20  ;;  %v4494_v29 = vmax.f32 %v4486_v38, 1e-20 }
 0x27a   : > { %v6028_v1 = vpop.eup %6027  ;;  %6053 = vlog2.f32 %v2840_v30  ;;  %v4543_v17 = vmax.f32 %v4535_v45, 1e-20  ;;  %v4585_v54 = vadd.f32 %v12768_v59, %v9361_v34  ;;  %v4586_v15 = vadd.f32 %v12769_v31, %v9364_v48  ;;  %v12770_v44 = vld [vmem:[#allocation16_spill] sm:$0xff]  ;;  %v12771_v51 = vld [vmem:[#allocation51_spill] sm:$0xff] }
 0x27b   : > { %v6030_v25 = vpop.eup %6029  ;;  %6055 = vlog2.f32 %v3291_v57  ;;  %v4544_v42 = vmax.f32 %v4536_v14, 1e-20  ;;  %v4635_v50 = vadd.f32 %v12770_v44, %v9361_v34  ;;  %v4636_v21 = vadd.f32 %v12771_v51, %v9364_v48 }
 0x27c   : > { %v6032_v7 = vpop.eup %6031  ;;  %v9388_v38 = vmul.f32 0.6931472, %v6026_v2  ;;  %v9390_v30 = vmul.f32 0.6931472, %v6028_v1  ;;  %v9392_v45 = vmul.f32 0.6931472, %v6030_v25  ;;  %6057 = vlog2.f32 %v3292_v9 }
 0x27d   : > { %v6034_v59 = vpop.eup %6033  ;;  %v9394_v18 = vmul.f32 0.6931472, %v6032_v7  ;;  %6059 = vlog2.f32 %v3743_v49  ;;  %v4593_v57 = vmax.f32 %v4585_v54, 1e-20  ;;  %v4594_v14 = vmax.f32 %v4586_v15, 1e-20  ;;  %v1650_v54 = vpop.permute.xlu0 %1649 }
 0x27e   : > { %v6036_v31 = vpop.eup %6035  ;;  %6061 = vlog2.f32 %v3744_v22  ;;  %v4643_v44 = vmax.f32 %v4635_v50, 1e-20  ;;  %v4685_v51 = vadd.f32 %v12772_v24, %v9361_v34  ;;  %v12773_v2 = vld [vmem:[#allocation61_spill] sm:$0xff]  ;;  %v4644_v25 = vmax.f32 %v4636_v21, 1e-20 }
 0x27f   : > { %v4686_v4 = vadd.f32 %v12773_v2, %v9364_v48  ;;  %v6038_v1 = vpop.eup %6037  ;;  %6063 = vlog2.f32 %v4493_v56  ;;  %v4735_v9 = vadd.f32 %v9261_v19, %v9361_v34  ;;  %v4736_v49 = vadd.f32 %v9264_v37, %v9364_v48 }
 0x280   : > { %v6040_v15 = vpop.eup %6039  ;;  %v9404_v7 = vmul.f32 0.6931472, %v6034_v59  ;;  %v9406_v22 = vmul.f32 0.6931472, %v6036_v31  ;;  %v9408_v50 = vmul.f32 0.6931472, %v6038_v1  ;;  %6065 = vlog2.f32 %v4494_v29 }
 0x281   : > { %v6042_v24 = vpop.eup %6041  ;;  %v9410_v2 = vmul.f32 0.6931472, %v6040_v15  ;;  %6067 = vlog2.f32 %v4543_v17  ;;  %v4693_v56 = vmax.f32 %v4685_v51, 1e-20  ;;  %v4694_v21 = vmax.f32 %v4686_v4, 1e-20 }
 0x282   : > { %v6044_v0 = vpop.eup %6043  ;;  %6069 = vlog2.f32 %v4544_v42  ;;  %v4743_v19 = vmax.f32 %v4735_v9, 1e-20  ;;  %v9413_v37 = vmul.f32 %v12774_v33, %v1650_v54  ;;  %v9416_v59 = vmul.f32 %v12775_v47, %v1650_v54  ;;  %v12776_v17 = vld [vmem:[#allocation43_spill] sm:$0xff] }
 0x283   : > { %v6046_v31 = vpop.eup %6045  ;;  %v9418_v23 = vmul.f32 0.6931472, %v6042_v24  ;;  %v1941_v1 = vmul.f32 0.6931472, %v6044_v0  ;;  %6071 = vlog2.f32 %v4593_v57  ;;  %v4744_v29 = vmax.f32 %v4736_v49, 1e-20 }
 0x284   : > { %v6048_v15 = vpop.eup %6047  ;;  %v1943_v35 = vmul.f32 0.6931472, %v6046_v31  ;;  %6073 = vlog2.f32 %v4594_v14  ;;  %v2018_v4 = vadd.f32 %v9413_v37, %v12776_v17  ;;  %v12777_v42 = vld [vmem:[#allocation11_spill] sm:$0xff]  ;;  %v12780_v24 = vld [vmem:[#allocation52_spill] sm:$0xff] }
 0x285   : > { %v2019_v51 = vadd.f32 %v9416_v59, %v12777_v42  ;;  %v6050_v33 = vpop.eup %6049  ;;  %v12778_v9 = vld [vmem:[#allocation131_spill] sm:$0xff]  ;;  %v2400_v47 = vmul.f32 0.6931472, %v6048_v15  ;;  %6075 = vlog2.f32 %v4643_v44  ;;  %v2477_v0 = vadd.f32 %v9413_v37, %v12780_v24  ;;  %v12781_v49 = vld [vmem:[#allocation132_spill] sm:$0xff]  ;;  %v12785_v15 = vld [vmem:[#allocation134_spill] sm:$0xff] }
 0x286   : > { %v9425_v11 = vadd.f32 %v12778_v9, %v1941_v1  ;;  %v6052_v57 = vpop.eup %6051  ;;  %v9430_v54 = vadd.f32 %v12781_v49, %v1943_v35  ;;  %v2402_v14 = vmul.f32 0.6931472, %v6050_v33  ;;  %6077 = vlog2.f32 %v4644_v25  ;;  %v12787_v24 = vld [vmem:[#allocation17_spill] sm:$0xff]  ;;  %v12788_v33 = vld [vmem:[#allocation135_spill] sm:$0xff] }
 0x287   : > { %v2026_v31 = vmax.f32 %v2018_v4, 1e-20  ;;  %v6054_v17 = vpop.eup %6053  ;;  %v9433_v52 = vadd.f32 %v12783_v41, %v2400_v47  ;;  %v2852_v42 = vmul.f32 0.6931472, %v6052_v57  ;;  %6079 = vlog2.f32 %v4693_v56  ;;  %v12790_v57 = vld [vmem:[#allocation136_spill] sm:$0xff] }
 0x288   : > { %12779 = vst [vmem:[#allocation29_spill] sm:$0xff] %v9425_v11  ;;  %12782 = vst [vmem:[#allocation67_spill] sm:$0xff] %v9430_v54  ;;  %v2027_v1 = vmax.f32 %v2019_v51, 1e-20  ;;  %v6056_v9 = vpop.eup %6055  ;;  %v9436_v44 = vadd.f32 %v12785_v15, %v2402_v14  ;;  %v2854_v11 = vmul.f32 0.6931472, %v6054_v17  ;;  %6081 = vlog2.f32 %v4694_v21  ;;  %v1600_v15 = vpop.permute.xlu1 %1599 }
 0x289   : > { %12784 = vst [vmem:[#allocation131_spill] sm:$0xff] %v9433_v52  ;;  %v2478_v35 = vadd.f32 %v9416_v59, %v12787_v24  ;;  %v6058_v49 = vpop.eup %6057  ;;  %v9441_v25 = vadd.f32 %v12788_v33, %v2852_v42  ;;  %v3304_v4 = vmul.f32 0.6931472, %v6056_v9  ;;  %6083 = vlog2.f32 %v4743_v19  ;;  %v12792_v21 = vld [vmem:[#allocation137_spill] sm:$0xff]  ;;  %v12794_v54 = vld [vmem:[#allocation58_spill] sm:$0xff] }
 0x28a   : > { %12786 = vst [vmem:[#allocation132_spill] sm:$0xff] %v9436_v44  ;;  %v2485_v41 = vmax.f32 %v2477_v0, 1e-20  ;;  %v6060_v47 = vpop.eup %6059  ;;  %v9444_v56 = vadd.f32 %v12790_v57, %v2854_v11  ;;  %v3306_v51 = vmul.f32 0.6931472, %v6058_v49  ;;  %6085 = vlog2.f32 %v4744_v29  ;;  %v12795_v19 = vld [vmem:[#allocation118_spill] sm:$0xff] }
 0x28b   : > { %12789 = vst [vmem:[#allocation133_spill] sm:$0xff] %v9441_v25  ;;  %v2486_v14 = vmax.f32 %v2478_v35, 1e-20  ;;  %v6062_v17 = vpop.eup %6061  ;;  %v9447_v44 = vadd.f32 %v12792_v21, %v3304_v4  ;;  %v3756_v52 = vmul.f32 0.6931472, %v6060_v47  ;;  %6087 = vlog2.f32 %v2026_v31  ;;  %v12797_v11 = vld [vmem:[#allocation24_spill] sm:$0xff] }
 0x28c   : > { %12791 = vst [vmem:[#allocation134_spill] sm:$0xff] %v9444_v56  ;;  %v2929_v42 = vadd.f32 %v9413_v37, %v12794_v54  ;;  %v6064_v9 = vpop.eup %6063  ;;  %v9452_v0 = vadd.f32 %v12795_v19, %v3306_v51  ;;  %v3758_v33 = vmul.f32 0.6931472, %v6062_v17  ;;  %6089 = vlog2.f32 %v2027_v1  ;;  %v12798_v49 = vld [vmem:[#allocation138_spill] sm:$0xff]  ;;  %v12800_v47 = vld [vmem:[#allocation12_spill] sm:$0xff] }
 0x28d   : > { %12793 = vst [vmem:[#allocation135_spill] sm:$0xff] %v9447_v44  ;;  %v2930_v29 = vadd.f32 %v9416_v59, %v12797_v11  ;;  %v6066_v35 = vpop.eup %6065  ;;  %v9457_v57 = vadd.f32 %v12798_v49, %v3756_v52  ;;  %6091 = vlog2.f32 %v2485_v41  ;;  %v9460_v31 = vmul.f32 %v12800_v47, %v1600_v15  ;;  %v12802_v44 = vld [vmem:[#allocation139_spill] sm:$0xff]  ;;  %v12804_v17 = vld [vmem:[#allocation54_spill] sm:$0xff]  ;;  %v12806_v52 = vld [vmem:[#allocation37_spill] sm:$0xff] }
 0x28e   : > { %12796 = vst [vmem:[#allocation136_spill] sm:$0xff] %v9452_v0  ;;  %v2937_v4 = vmax.f32 %v2929_v42, 1e-20  ;;  %v6068_v21 = vpop.eup %6067  ;;  %v9463_v56 = vadd.f32 %v12802_v44, %v3758_v33  ;;  %6093 = vlog2.f32 %v2486_v14  ;;  %v9466_v1 = vmul.f32 %v12804_v17, %v1600_v15  ;;  %v12807_v42 = vld [vmem:[#allocation68_spill] sm:$0xff]  ;;  %v12808_v44 = vld [vmem:[#allocation78_spill] sm:$0xff]  ;;  %v12809_v33 = vld [vmem:[#allocation79_spill] sm:$0xff] }
 0x28f   : > { %12799 = vst [vmem:[#allocation137_spill] sm:$0xff] %v9457_v57  ;;  %12801 = vst [vmem:[#allocation118_spill] sm:$0xff] %v9460_v31  ;;  %v2938_v51 = vmax.f32 %v2930_v29, 1e-20  ;;  %v6070_v19 = vpop.eup %6069  ;;  %v9468_v0 = vmul.f32 0.6931472, %v6064_v9  ;;  %v3381_v41 = vadd.f32 %v9413_v37, %v12806_v52  ;;  %v3382_v49 = vadd.f32 %v9416_v59, %v12807_v42 }
 0x290   : > { %12803 = vst [vmem:[#allocation138_spill] sm:$0xff] %v9463_v56  ;;  %12805 = vst [vmem:[#allocation12_spill] sm:$0xff] %v9466_v1  ;;  %6095 = vlog2.f32 %v2937_v4  ;;  %v6072_v47 = vpop.eup %6071  ;;  %v9474_v57 = vmul.f32 0.6931472, %v6066_v35  ;;  %v3833_v14 = vadd.f32 %v9413_v37, %v12808_v44  ;;  %v3834_v15 = vadd.f32 %v9416_v59, %v12809_v33  ;;  %v12810_v56 = vld [vmem:[#allocation140_spill] sm:$0xff] }
 0x291   : > { %6097 = vlog2.f32 %v2938_v51  ;;  %v6074_v29 = vpop.eup %6073  ;;  %v9480_v9 = vmul.f32 0.6931472, %v6068_v21  ;;  %v3389_v4 = vmax.f32 %v3381_v41, 1e-20  ;;  %v3390_v17 = vmax.f32 %v3382_v49, 1e-20 }
 0x292   : > { %v4285_v25 = vadd.f32 %v9413_v37, %v12810_v56  ;;  %v6076_v52 = vpop.eup %6075  ;;  %v9484_v42 = vmul.f32 0.6931472, %v6070_v19  ;;  %v3841_v35 = vmax.f32 %v3833_v14, 1e-20  ;;  %v3842_v11 = vmax.f32 %v3834_v15, 1e-20 }
 0x293   : > { %v12811_v51 = vld [vmem:[#allocation141_spill] sm:$0xff]  ;;  %v6078_v44 = vpop.eup %6077  ;;  %v9488_v24 = vmul.f32 0.6931472, %v6072_v47  ;;  %6099 = vlog2.f32 %v3389_v4  ;;  %v1872_v21 = vadd.f32 %v9460_v31, %v12701_v16  ;;  %v9492_v49 = vmul.f32 0.6931472, %v6074_v29 }
 0x294   : > { %v4286_v54 = vadd.f32 %v9416_v59, %v12811_v51  ;;  %v4293_v33 = vmax.f32 %v4285_v25, 1e-20  ;;  %v6080_v41 = vpop.eup %6079  ;;  %6101 = vlog2.f32 %v3390_v17  ;;  %v1873_v19 = vadd.f32 %v9466_v1, %v12702_v58 }
 0x295   : > { %v6082_v14 = vpop.eup %6081  ;;  %v9496_v15 = vmul.f32 0.6931472, %v6076_v52  ;;  %6103 = vlog2.f32 %v3841_v35  ;;  %v1880_v51 = vmax.f32 %v1872_v21, 1e-20  ;;  %v2331_v47 = vadd.f32 %v9460_v31, %v12703_v6  ;;  %v12813_v35 = vld [vmem:[#allocation27_spill] sm:$0xff] }
 0x296   : > { %v4294_v56 = vmax.f32 %v4286_v54, 1e-20  ;;  %v9500_v25 = vpop.eup %6083  ;;  %v9502_v4 = vmul.f32 0.6931472, %v6078_v44  ;;  %6105 = vlog2.f32 %v3842_v11  ;;  %v1881_v29 = vmax.f32 %v1873_v19, 1e-20 }
 0x297   : > { %v2332_v54 = vadd.f32 %v9466_v1, %v12704_v53  ;;  %v9506_v17 = vpop.eup %6085  ;;  %v9508_v58 = vmul.f32 0.6931472, %v6080_v41  ;;  %6107 = vlog2.f32 %v4293_v33  ;;  %v2339_v52 = vmax.f32 %v2331_v47, 1e-20 }
 0x298   : > { %v2783_v21 = vadd.f32 %v9460_v31, %v12813_v35  ;;  %v6088_v16 = vpop.eup %6087  ;;  %v9512_v6 = vmul.f32 0.6931472, %v6082_v14  ;;  %6109 = vlog2.f32 %v4294_v56  ;;  %v2784_v11 = vadd.f32 %v9466_v1, %v12815_v28  ;;  %v1414_v35 = vpop.permute.xlu0 %1413 }
 0x299   : > { %12812 = vst [vmem:[#allocation139_spill] sm:$0xff] %v9508_v58  ;;  %v2340_v44 = vmax.f32 %v2332_v54, 1e-20  ;;  %v6090_v19 = vpop.eup %6089  ;;  %v2037_v13 = vmul.f32 0.6931472, %v6088_v16  ;;  %6111 = vlog2.f32 %v1880_v51  ;;  %v3235_v41 = vadd.f32 %v9460_v31, %v12707_v12 }
 0x29a   : > { %12814 = vst [vmem:[#allocation54_spill] sm:$0xff] %v9512_v6  ;;  %v2791_v53 = vmax.f32 %v2783_v21, 1e-20  ;;  %v6092_v33 = vpop.eup %6091  ;;  %v2039_v47 = vmul.f32 0.6931472, %v6090_v19  ;;  %6113 = vlog2.f32 %v1881_v29  ;;  %v3236_v14 = vadd.f32 %v9466_v1, %v12708_v26  ;;  %v12819_v26 = vld [vmem:[#allocation80_spill] sm:$0xff] }
 0x29b   : > { %v2792_v58 = vmax.f32 %v2784_v11, 1e-20  ;;  %v6094_v56 = vpop.eup %6093  ;;  %v9521_v54 = vadd.f32 %v2037_v13, %v9374_v5  ;;  %v2496_v28 = vmul.f32 0.6931472, %v6092_v33  ;;  %6115 = vlog2.f32 %v2339_v52  ;;  %v12821_v52 = vld [vmem:[#allocation83_spill] sm:$0xff] }
 0x29c   : > { %v3243_v16 = vmax.f32 %v3235_v41, 1e-20  ;;  %v9524_v21 = vadd.f32 %v2039_v47, %v9376_v8  ;;  %v2498_v31 = vmul.f32 0.6931472, %v6094_v56  ;;  %6117 = vlog2.f32 %v2340_v44 }
 0x29d   : > { %12816 = vst [vmem:[#allocation172_spill] sm:$0xff] %v9521_v54  ;;  %v6096_v51 = vpop.eup %6095  ;;  %v3244_v19 = vmax.f32 %v3236_v14, 1e-20  ;;  %v9527_v11 = vadd.f32 %v2496_v28, %v9378_v20  ;;  %6119 = vlog2.f32 %v2791_v53  ;;  %v9530_v12 = vmul.f32 %v12819_v26, %v1414_v35  ;;  %v12824_v20 = vld [vmem:[#allocation33_spill] sm:$0xff]  ;;  %v12825_v53 = vld [vmem:[#allocation106_spill] sm:$0xff] }
 0x29e   : > { %12817 = vst [vmem:[#allocation173_spill] sm:$0xff] %v9524_v21  ;;  %v6098_v29 = vpop.eup %6097  ;;  %v2948_v1 = vmul.f32 0.6931472, %v6096_v51  ;;  %v9533_v13 = vadd.f32 %v2498_v31, %v9388_v38  ;;  %6121 = vlog2.f32 %v2792_v58  ;;  %v9536_v8 = vmul.f32 %v12821_v52, %v1414_v35  ;;  %v12827_v58 = vld [vmem:[#allocation34_spill] sm:$0xff]  ;;  %v12828_v31 = vld [vmem:[#allocation107_spill] sm:$0xff] }
 0x29f   : > { %12818 = vst [vmem:[#allocation174_spill] sm:$0xff] %v9527_v11  ;;  %v2950_v5 = vmul.f32 0.6931472, %v6098_v29  ;;  %6123 = vlog2.f32 %v3243_v16  ;;  %v4487_v28 = vadd.f32 %v12824_v20, %v9530_v12  ;;  %v4537_v41 = vadd.f32 %v12825_v53, %v9530_v12  ;;  %v12829_v16 = vld [vmem:[#allocation41_spill] sm:$0xff] }
 0x2a0   : > { %12820 = vst [vmem:[#allocation175_spill] sm:$0xff] %v9533_v13  ;;  %12822 = vst [vmem:[#allocation176_spill] sm:$0xff] %v9536_v8  ;;  %v9539_v44 = vadd.f32 %v2948_v1, %v9390_v30  ;;  %v6100_v33 = vpop.eup %6099  ;;  %6125 = vlog2.f32 %v3244_v19  ;;  %v4488_v38 = vadd.f32 %v12827_v58, %v9536_v8  ;;  %v4538_v35 = vadd.f32 %v12828_v31, %v9536_v8 }
 0x2a1   : > { %v9546_v47 = vadd.f32 %v2950_v5, %v9392_v45  ;;  %v6102_v30 = vpop.eup %6101  ;;  %v3400_v1 = vmul.f32 0.6931472, %v6100_v33  ;;  %v4495_v14 = vmax.f32 %v4487_v28, 1e-20  ;;  %v4545_v56 = vmax.f32 %v4537_v41, 1e-20 }
 0x2a2   : > { %12823 = vst [vmem:[#allocation177_spill] sm:$0xff] %v9539_v44  ;;  %v4587_v51 = vadd.f32 %v12829_v16, %v9530_v12  ;;  %v6104_v29 = vpop.eup %6103  ;;  %v3402_v44 = vmul.f32 0.6931472, %v6102_v30  ;;  %v4496_v13 = vmax.f32 %v4488_v38, 1e-20  ;;  %v12830_v45 = vld [vmem:[#allocation10_spill] sm:$0xff] }
 0x2a3   : > { %12826 = vst [vmem:[#allocation178_spill] sm:$0xff] %v9546_v47  ;;  %v4546_v11 = vmax.f32 %v4538_v35, 1e-20  ;;  %v4588_v19 = vadd.f32 %v12830_v45, %v9536_v8  ;;  %v6106_v5 = vpop.eup %6105  ;;  %v9557_v47 = vadd.f32 %v3400_v1, %v9394_v18  ;;  %v3852_v21 = vmul.f32 0.6931472, %v6104_v29  ;;  %v12834_v45 = vld [vmem:[#allocation48_spill] sm:$0xff] }
 0x2a4   : > { %6127 = vlog2.f32 %v4495_v14  ;;  %v4595_v54 = vmax.f32 %v4587_v51, 1e-20  ;;  %v6108_v33 = vpop.eup %6107  ;;  %v9560_v28 = vadd.f32 %v3402_v44, %v9404_v7  ;;  %v3854_v41 = vmul.f32 0.6931472, %v6106_v5  ;;  %v12836_v7 = vld [vmem:[#allocation50_spill] sm:$0xff] }
 0x2a5   : > { %12831 = vst [vmem:[#allocation179_spill] sm:$0xff] %v9557_v47  ;;  %6129 = vlog2.f32 %v4496_v13  ;;  %v4596_v16 = vmax.f32 %v4588_v19, 1e-20  ;;  %v6110_v30 = vpop.eup %6109  ;;  %v9563_v38 = vadd.f32 %v3852_v21, %v9406_v22  ;;  %v4304_v35 = vmul.f32 0.6931472, %v6108_v33  ;;  %v12847_v47 = vld [vmem:[#allocation125_spill] sm:$0xff] }
 0x2a6   : > { %12832 = vst [vmem:[#allocation180_spill] sm:$0xff] %v9560_v28  ;;  %6131 = vlog2.f32 %v4545_v56  ;;  %v4637_v18 = vadd.f32 %v12834_v45, %v9530_v12  ;;  %v6112_v1 = vpop.eup %6111  ;;  %v9568_v14 = vadd.f32 %v3854_v41, %v9408_v50  ;;  %v4306_v51 = vmul.f32 0.6931472, %v6110_v30  ;;  %v12839_v41 = vld [vmem:[#allocation121_spill] sm:$0xff] }
 0x2a7   : > { %12833 = vst [vmem:[#allocation181_spill] sm:$0xff] %v9563_v38  ;;  %6133 = vlog2.f32 %v4546_v11  ;;  %v4638_v44 = vadd.f32 %v12836_v7, %v9536_v8  ;;  %v6114_v13 = vpop.eup %6113  ;;  %v9573_v29 = vadd.f32 %v4304_v35, %v9410_v2  ;;  %v1895_v22 = vmul.f32 0.6931472, %v6112_v1  ;;  %v12841_v35 = vld [vmem:[#allocation122_spill] sm:$0xff] }
 0x2a8   : > { %12835 = vst [vmem:[#allocation182_spill] sm:$0xff] %v9568_v14  ;;  %6135 = vlog2.f32 %v4595_v54  ;;  %v4645_v21 = vmax.f32 %v4637_v18, 1e-20  ;;  %v6116_v56 = vpop.eup %6115  ;;  %v9576_v19 = vadd.f32 %v4306_v51, %v9418_v23  ;;  %v1897_v5 = vmul.f32 0.6931472, %v6114_v13  ;;  %v12840_v14 = vld [vmem:[#allocation31_spill] sm:$0xff] }
 0x2a9   : > { %12837 = vst [vmem:[#allocation183_spill] sm:$0xff] %v9573_v29  ;;  %6137 = vlog2.f32 %v4596_v16  ;;  %v4646_v50 = vmax.f32 %v4638_v44, 1e-20  ;;  %v6118_v33 = vpop.eup %6117  ;;  %v1900_v11 = vadd.f32 %v12839_v41, %v1895_v22  ;;  %v2354_v30 = vmul.f32 0.6931472, %v6116_v56  ;;  %v12842_v23 = vld [vmem:[#allocation32_spill] sm:$0xff] }
 0x2aa   : > { %12838 = vst [vmem:[#allocation184_spill] sm:$0xff] %v9576_v19  ;;  %6139 = vlog2.f32 %v4645_v21  ;;  %v9581_v38 = vadd.f32 %v12840_v14, %v9530_v12  ;;  %v6120_v2 = vpop.eup %6119  ;;  %v1909_v54 = vadd.f32 %v12841_v35, %v1897_v5  ;;  %v2356_v18 = vmul.f32 0.6931472, %v6118_v33  ;;  %v12844_v13 = vld [vmem:[#allocation123_spill] sm:$0xff]  ;;  %v12846_v5 = vld [vmem:[#allocation124_spill] sm:$0xff]  ;;  %v12848_v7 = vld [vmem:[#allocation126_spill] sm:$0xff] }
 0x2ab   : > { %6141 = vlog2.f32 %v4646_v50  ;;  %v9586_v1 = vadd.f32 %v12842_v23, %v9536_v8  ;;  %v6122_v16 = vpop.eup %6121  ;;  %v9589_v51 = vmul.f32 0.6931472, %v9500_v25  ;;  %v1901_v44 = vrot.slane %v1900_v11, 4 }
 0x2ac   : > { %v2359_v22 = vadd.f32 %v12844_v13, %v2354_v30  ;;  %v2806_v21 = vmul.f32 0.6931472, %v6120_v2  ;;  %v6124_v56 = vpop.eup %6123  ;;  %v9593_v41 = vmul.f32 0.6931472, %v9506_v17  ;;  %v1910_v19 = vrot.slane %v1909_v54, 4  ;;  %v12849_v17 = vld [vmem:[#allocation127_spill] sm:$0xff] }
 0x2ad   : > { %12843 = vst [vmem:[#allocation121_spill] sm:$0xff] %v9589_v51  ;;  %v2368_v33 = vadd.f32 %v12846_v5, %v2356_v18  ;;  %v2808_v50 = vmul.f32 0.6931472, %v6122_v16  ;;  %v6126_v35 = vpop.eup %6125  ;;  %v1902_v29 = vadd.f32 %v1901_v44, %v1900_v11  ;;  %v3258_v14 = vmul.f32 0.6931472, %v6124_v56  ;;  %v12850_v5 = vld [vmem:[#allocation128_spill] sm:$0xff] }
 0x2ae   : > { %12845 = vst [vmem:[#allocation122_spill] sm:$0xff] %v9593_v41  ;;  %v2360_v28 = vrot.slane %v2359_v22, 4  ;;  %v2811_v23 = vadd.f32 %v12847_v47, %v2806_v21  ;;  %v1911_v25 = vadd.f32 %v1910_v19, %v1909_v54  ;;  %v3260_v30 = vmul.f32 0.6931472, %v6126_v35 }
 0x2af   : > { %v2369_v51 = vrot.slane %v2368_v33, 4  ;;  %v2820_v45 = vadd.f32 %v12848_v7, %v2808_v50  ;;  %v1903_v2 = vrot.slane %v1902_v29, 2  ;;  %v3263_v41 = vadd.f32 %v12849_v17, %v3258_v14 }
 0x2b0   : > { %v2361_v13 = vadd.f32 %v2360_v28, %v2359_v22  ;;  %v2812_v31 = vrot.slane %v2811_v23, 4  ;;  %v1912_v58 = vrot.slane %v1911_v25, 2  ;;  %v3272_v11 = vadd.f32 %v12850_v5, %v3260_v30 }
 0x2b1   : > { %v6128_v53 = vpop.eup %6127  ;;  %v2370_v18 = vadd.f32 %v2369_v51, %v2368_v33  ;;  %v2821_v16 = vrot.slane %v2820_v45, 4  ;;  %v1904_v20 = vadd.f32 %v1903_v2, %v1902_v29  ;;  %v3264_v19 = vrot.slane %v3263_v41, 4 }
 0x2b2   : > { %v6130_v44 = vpop.eup %6129  ;;  %v2362_v47 = vrot.slane %v2361_v13, 2  ;;  %v2813_v21 = vadd.f32 %v2812_v31, %v2811_v23  ;;  %v1913_v56 = vadd.f32 %v1912_v58, %v1911_v25  ;;  %v3273_v35 = vrot.slane %v3272_v11, 4 }
 0x2b3   : > { %v6132_v54 = vpop.eup %6131  ;;  %v2371_v7 = vrot.slane %v2370_v18, 2  ;;  %v2822_v50 = vadd.f32 %v2821_v16, %v2820_v45  ;;  %v1905_v22 = vrot.slane %v1904_v20, 1  ;;  %v3265_v17 = vadd.f32 %v3264_v19, %v3263_v41 }
 0x2b4   : > { %v6134_v28 = vpop.eup %6133  ;;  %v2363_v52 = vadd.f32 %v2362_v47, %v2361_v13  ;;  %v2814_v14 = vrot.slane %v2813_v21, 2  ;;  %v1914_v51 = vrot.slane %v1913_v56, 1  ;;  %v3274_v30 = vadd.f32 %v3273_v35, %v3272_v11 }
 0x2b5   : > { %v6136_v26 = vpop.eup %6135  ;;  %v2372_v33 = vadd.f32 %v2371_v7, %v2370_v18  ;;  %v2823_v6 = vrot.slane %v2822_v50, 2  ;;  %v3266_v31 = vrot.slane %v3265_v17, 2  ;;  %v4695_v58 = vmax.f32 %v9581_v38, 1e-20 }
 0x2b6   : > { %v6138_v5 = vpop.eup %6137  ;;  %v2364_v29 = vrot.slane %v2363_v52, 1  ;;  %v9600_v2 = vadd.f32 %v2814_v14, %v2813_v21  ;;  %v9603_v45 = vadd.f32 %v1905_v22, %v1904_v20  ;;  %v9605_v25 = vadd.f32 %v1914_v51, %v1913_v56  ;;  %v1665_v14 = vpop.permute.xlu1 %1664 }
 0x2b7   : > { %v6140_v23 = vpop.eup %6139  ;;  %v2373_v13 = vrot.slane %v2372_v33, 1  ;;  %v4696_v41 = vmax.f32 %v9586_v1, 1e-20  ;;  %v9610_v18 = vadd.f32 %v2823_v6, %v2822_v50  ;;  %v3275_v11 = vrot.slane %v3274_v30, 2 }
 0x2b8   : > { %12851 = vst [vmem:[#allocation123_spill] sm:$0xff] %v9600_v2  ;;  %12852 = vst [vmem:[#allocation124_spill] sm:$0xff] %v9603_v45  ;;  %v6142_v16 = vpop.eup %6141  ;;  %v9608_v47 = vadd.f32 %v2364_v29, %v2363_v52  ;;  %v4506_v19 = vmul.f32 0.6931472, %v6128_v53  ;;  %v9615_v38 = vadd.f32 %v3266_v31, %v3265_v17  ;;  %v4508_v20 = vmul.f32 0.6931472, %v6130_v44 }
 0x2b9   : > { %12853 = vst [vmem:[#allocation125_spill] sm:$0xff] %v9605_v25  ;;  %12855 = vst [vmem:[#allocation127_spill] sm:$0xff] %v9610_v18  ;;  %v9612_v21 = vadd.f32 %v2373_v13, %v2372_v33  ;;  %v4556_v35 = vmul.f32 0.6931472, %v6132_v54  ;;  %v4558_v22 = vmul.f32 0.6931472, %v6134_v28  ;;  %6143 = vlog2.f32 %v4695_v58 }
 0x2ba   : > { %12854 = vst [vmem:[#allocation126_spill] sm:$0xff] %v9608_v47  ;;  %12857 = vst [vmem:[#allocation185_spill] sm:$0xff] %v9615_v38  ;;  %v9618_v56 = vadd.f32 %v4506_v19, %v9468_v0  ;;  %v4606_v1 = vmul.f32 0.6931472, %v6136_v26  ;;  %v9621_v52 = vadd.f32 %v4508_v20, %v9474_v57  ;;  %v4608_v6 = vmul.f32 0.6931472, %v6138_v5  ;;  %v1635_v0 = vpop.permute.xlu0 %1634 }
 0x2bb   : > { %12856 = vst [vmem:[#allocation128_spill] sm:$0xff] %v9612_v21  ;;  %v4656_v50 = vmul.f32 0.6931472, %v6140_v23  ;;  %v4658_v53 = vmul.f32 0.6931472, %v6142_v16  ;;  %v9624_v51 = vadd.f32 %v4556_v35, %v9480_v9  ;;  %v9627_v17 = vadd.f32 %v4558_v22, %v9484_v42  ;;  %v12867_v33 = vld [vmem:[#allocation64_spill] sm:$0xff] }
 0x2bc   : > { %12858 = vst [vmem:[#allocation186_spill] sm:$0xff] %v9618_v56  ;;  %12859 = vst [vmem:[#allocation187_spill] sm:$0xff] %v9621_v52  ;;  %v9630_v44 = vadd.f32 %v4606_v1, %v9488_v24  ;;  %v9633_v26 = vadd.f32 %v4608_v6, %v9492_v49  ;;  %6145 = vlog2.f32 %v4696_v41  ;;  %v4737_v9 = vadd.f32 %v9413_v37, %v9530_v12  ;;  %v12869_v5 = vld [vmem:[#allocation66_spill] sm:$0xff]  ;;  %v12871_v1 = vld [vmem:[#allocation76_spill] sm:$0xff] }
 0x2bd   : > { %12860 = vst [vmem:[#allocation188_spill] sm:$0xff] %v9624_v51  ;;  %12861 = vst [vmem:[#allocation189_spill] sm:$0xff] %v9627_v17  ;;  %v9636_v57 = vadd.f32 %v4656_v50, %v9496_v15  ;;  %v9639_v54 = vadd.f32 %v4658_v53, %v9502_v4  ;;  %v4738_v42 = vadd.f32 %v9416_v59, %v9536_v8  ;;  %v12879_v38 = vld [vmem:[#allocation139_spill] sm:$0xff]  ;;  %v12881_v47 = vld [vmem:[#allocation54_spill] sm:$0xff] }
 0x2be   : > { %12862 = vst [vmem:[#allocation190_spill] sm:$0xff] %v9630_v44  ;;  %12863 = vst [vmem:[#allocation191_spill] sm:$0xff] %v9633_v26  ;;  %v9646_v24 = vmul.f32 %v12761_v61, %v1665_v14  ;;  %v9649_v28 = vmul.f32 %v12763_v60, %v1665_v14  ;;  %v9652_v15 = vadd.f32 %v3275_v11, %v3274_v30  ;;  %v4745_v31 = vmax.f32 %v4737_v9, 1e-20  ;;  %v1399_v60 = vpop.permute.xlu1 %1398  ;;  %v12892_v51 = vld [vmem:[#allocation7_spill] sm:$0xff] }
 0x2bf   : > { %12864 = vst [vmem:[#allocation192_spill] sm:$0xff] %v9636_v57  ;;  %12865 = vst [vmem:[#allocation193_spill] sm:$0xff] %v9639_v54  ;;  %v9655_v4 = vmul.f32 %v12867_v33, %v1635_v0  ;;  %v9658_v29 = vmul.f32 %v12869_v5, %v1635_v0  ;;  %v4746_v58 = vmax.f32 %v4738_v42, 1e-20  ;;  %v9675_v14 = vmul.f32 %v12871_v1, %v1399_v60 }
 0x2c0   : > { %12866 = vst [vmem:[#allocation194_spill] sm:$0xff] %v9652_v15  ;;  %v2066_v23 = vadd.f32 %v9646_v24, %v12653_v3  ;;  %v2067_v61 = vadd.f32 %v9649_v28, %v12654_v39  ;;  %v2525_v13 = vadd.f32 %v9646_v24, %v12655_v36  ;;  %v2526_v30 = vadd.f32 %v9649_v28, %v12656_v46  ;;  %v12908_v39 = vld [vmem:[#allocation24_spill] sm:$0xff] }
 0x2c1   : > { %12868 = vst [vmem:[#allocation64_spill] sm:$0xff] %v9655_v4  ;;  %12870 = vst [vmem:[#allocation66_spill] sm:$0xff] %v9658_v29  ;;  %v2977_v41 = vadd.f32 %v9646_v24, %v12658_v27  ;;  %v2978_v16 = vadd.f32 %v9649_v28, %v12660_v43  ;;  %6147 = vlog2.f32 %v4745_v31  ;;  %v3429_v20 = vadd.f32 %v9646_v24, %v12661_v63  ;;  %v12873_v31 = vld [vmem:[#allocation77_spill] sm:$0xff] }
 0x2c2   : > { %v2074_v11 = vmax.f32 %v2066_v23, 1e-20  ;;  %v2075_v19 = vmax.f32 %v2067_v61, 1e-20  ;;  %6149 = vlog2.f32 %v4746_v58  ;;  %v2533_v35 = vmax.f32 %v2525_v13, 1e-20 }
 0x2c3   : > { %v2534_v22 = vmax.f32 %v2526_v30, 1e-20  ;;  %12872 = vst [vmem:[#allocation76_spill] sm:$0xff] %v9675_v14  ;;  %v2985_v6 = vmax.f32 %v2977_v41, 1e-20  ;;  %v3430_v53 = vadd.f32 %v9649_v28, %v12664_v10  ;;  %v3881_v0 = vadd.f32 %v9646_v24, %v12667_v32 }
 0x2c4   : > { %6151 = vlog2.f32 %v2074_v11  ;;  %v2986_v50 = vmax.f32 %v2978_v16, 1e-20  ;;  %v3882_v9 = vadd.f32 %v9649_v28, %v12668_v55  ;;  %v4333_v42 = vadd.f32 %v9646_v24, %v9135_v62 }
 0x2c5   : > { %6153 = vlog2.f32 %v2075_v19  ;;  %v3437_v33 = vmax.f32 %v3429_v20, 1e-20  ;;  %v4334_v5 = vadd.f32 %v9649_v28, %v9138_v40  ;;  %v9688_v58 = vmul.f32 %v12873_v31, %v1399_v60  ;;  %v12875_v19 = vld [vmem:[#allocation15_spill] sm:$0xff] }
 0x2c6   : > { %6155 = vlog2.f32 %v2533_v35  ;;  %v3438_v23 = vmax.f32 %v3430_v53, 1e-20  ;;  %v3889_v61 = vmax.f32 %v3881_v0, 1e-20  ;;  %v4785_v13 = vadd.f32 %v9646_v24, %v9361_v34  ;;  %v6144_v11 = vpop.eup %6143  ;;  %v12876_v35 = vld [vmem:[#allocation49_spill] sm:$0xff] }
 0x2c7   : > { %12874 = vst [vmem:[#allocation77_spill] sm:$0xff] %v9688_v58  ;;  %6157 = vlog2.f32 %v2534_v22  ;;  %v3890_v30 = vmax.f32 %v3882_v9, 1e-20  ;;  %v4341_v41 = vmax.f32 %v4333_v42, 1e-20  ;;  %v4786_v16 = vadd.f32 %v9649_v28, %v9364_v48  ;;  %v12877_v22 = vld [vmem:[#allocation57_spill] sm:$0xff] }
 0x2c8   : > { %6159 = vlog2.f32 %v2985_v6  ;;  %v1970_v20 = vadd.f32 %v9655_v4, %v12875_v19  ;;  %v1971_v60 = vadd.f32 %v9658_v29, %v12876_v35  ;;  %v2429_v53 = vadd.f32 %v9655_v4, %v12877_v22  ;;  %v12878_v9 = vld [vmem:[#allocation23_spill] sm:$0xff] }
 0x2c9   : > { %6161 = vlog2.f32 %v2986_v50  ;;  %v6146_v0 = vpop.eup %6145  ;;  %v4706_v49 = vmul.f32 0.6931472, %v6144_v11  ;;  %v4342_v6 = vmax.f32 %v4334_v5, 1e-20  ;;  %v2430_v42 = vadd.f32 %v9658_v29, %v12878_v9  ;;  %v12883_v11 = vld [vmem:[#allocation28_spill] sm:$0xff]  ;;  %v12884_v5 = vld [vmem:[#allocation65_spill] sm:$0xff] }
 0x2ca   : > { %6163 = vlog2.f32 %v3437_v33  ;;  %v4708_v7 = vmul.f32 0.6931472, %v6146_v0  ;;  %v4793_v15 = vmax.f32 %v4785_v13, 1e-20  ;;  %v4794_v50 = vmax.f32 %v4786_v16, 1e-20 }
 0x2cb   : > { %6165 = vlog2.f32 %v3438_v23  ;;  %v9703_v18 = vadd.f32 %v4706_v49, %v12879_v38  ;;  %v1978_v2 = vmax.f32 %v1970_v20, 1e-20  ;;  %v1979_v21 = vmax.f32 %v1971_v60, 1e-20  ;;  %v12885_v23 = vld [vmem:[#allocation73_spill] sm:$0xff]  ;;  %v12886_v16 = vld [vmem:[#allocation74_spill] sm:$0xff] }
 0x2cc   : > { %6167 = vlog2.f32 %v3889_v61  ;;  %v9706_v25 = vadd.f32 %v4708_v7, %v12881_v47  ;;  %v2881_v33 = vadd.f32 %v9655_v4, %v12883_v11  ;;  %v2882_v45 = vadd.f32 %v9658_v29, %v12884_v5  ;;  %v12887_v49 = vld [vmem:[#allocation88_spill] sm:$0xff] }
 0x2cd   : > { %12880 = vst [vmem:[#allocation15_spill] sm:$0xff] %v9703_v18  ;;  %6169 = vlog2.f32 %v3890_v30  ;;  %v3333_v13 = vadd.f32 %v9655_v4, %v12885_v23  ;;  %v3334_v38 = vadd.f32 %v9658_v29, %v12886_v16  ;;  %v3785_v61 = vadd.f32 %v9655_v4, %v12887_v49  ;;  %v12888_v30 = vld [vmem:[#allocation89_spill] sm:$0xff] }
 0x2ce   : > { %12882 = vst [vmem:[#allocation49_spill] sm:$0xff] %v9706_v25  ;;  %6171 = vlog2.f32 %v4341_v41  ;;  %v6148_v20 = vpop.eup %6147  ;;  %v2437_v47 = vmax.f32 %v2429_v53, 1e-20  ;;  %v2438_v7 = vmax.f32 %v2430_v42, 1e-20  ;;  %v3786_v60 = vadd.f32 %v9658_v29, %v12888_v30  ;;  %v12891_v53 = vld [vmem:[#allocation36_spill] sm:$0xff] }
 0x2cf   : > { %6173 = vlog2.f32 %v4342_v6  ;;  %v6150_v0 = vpop.eup %6149  ;;  %v9720_v25 = vmul.f32 0.6931472, %v6148_v20  ;;  %v2889_v41 = vmax.f32 %v2881_v33, 1e-20  ;;  %v2890_v18 = vmax.f32 %v2882_v45, 1e-20 }
 0x2d0   : > { %6175 = vlog2.f32 %v4793_v15  ;;  %v9722_v57 = vmul.f32 0.6931472, %v6150_v0  ;;  %v3341_v26 = vmax.f32 %v3333_v13, 1e-20  ;;  %v3342_v44 = vmax.f32 %v3334_v38, 1e-20 }
 0x2d1   : > { %12889 = vst [vmem:[#allocation57_spill] sm:$0xff] %v9720_v25  ;;  %v6152_v54 = vpop.eup %6151  ;;  %6177 = vlog2.f32 %v4794_v50  ;;  %v3793_v6 = vmax.f32 %v3785_v61, 1e-20  ;;  %v4037_v42 = vadd.f32 %v12891_v53, %v9675_v14  ;;  %v4038_v52 = vadd.f32 %v12892_v51, %v9688_v58  ;;  %v12893_v45 = vld [vmem:[#allocation40_spill] sm:$0xff]  ;;  %v12894_v0 = vld [vmem:[#allocation9_spill] sm:$0xff] }
 0x2d2   : > { %12890 = vst [vmem:[#allocation23_spill] sm:$0xff] %v9722_v57  ;;  %v6154_v17 = vpop.eup %6153  ;;  %6179 = vlog2.f32 %v1978_v2  ;;  %v3794_v15 = vmax.f32 %v3786_v60, 1e-20  ;;  %v4087_v33 = vadd.f32 %v12893_v45, %v9675_v14  ;;  %v4088_v50 = vadd.f32 %v12894_v0, %v9688_v58  ;;  %v12895_v51 = vld [vmem:[#allocation45_spill] sm:$0xff] }
 0x2d3   : > { %v6156_v20 = vpop.eup %6155  ;;  %6181 = vlog2.f32 %v1979_v21  ;;  %v9732_v38 = vmul.f32 0.6931472, %v6152_v54  ;;  %v9734_v2 = vmul.f32 0.6931472, %v6154_v17  ;;  %v4045_v21 = vmax.f32 %v4037_v42, 1e-20 }
 0x2d4   : > { %v6158_v13 = vpop.eup %6157  ;;  %v9736_v61 = vmul.f32 0.6931472, %v6156_v20  ;;  %6183 = vlog2.f32 %v2437_v47  ;;  %v4046_v60 = vmax.f32 %v4038_v52, 1e-20  ;;  %v4095_v45 = vmax.f32 %v4087_v33, 1e-20 }
 0x2d5   : > { %v6160_v57 = vpop.eup %6159  ;;  %v9738_v25 = vmul.f32 0.6931472, %v6158_v13  ;;  %6185 = vlog2.f32 %v2438_v7  ;;  %v4137_v0 = vadd.f32 %v12895_v51, %v9675_v14  ;;  %v12896_v54 = vld [vmem:[#allocation46_spill] sm:$0xff]  ;;  %v4096_v20 = vmax.f32 %v4088_v50, 1e-20  ;;  %v12897_v47 = vld [vmem:[#allocation20_spill] sm:$0xff]  ;;  %v1670_v51 = vpop.permute.xlu0 %1669 }
 0x2d6   : > { %v6162_v56 = vpop.eup %6161  ;;  %6187 = vlog2.f32 %v2889_v41  ;;  %v4138_v53 = vadd.f32 %v12896_v54, %v9688_v58  ;;  %v4187_v48 = vadd.f32 %v12897_v47, %v9675_v14  ;;  %v12898_v13 = vld [vmem:[#allocation21_spill] sm:$0xff]  ;;  %v9748_v52 = vmul.f32 0.6931472, %v6160_v57 }
 0x2d7   : > { %v6164_v17 = vpop.eup %6163  ;;  %6189 = vlog2.f32 %v2890_v18  ;;  %v4188_v7 = vadd.f32 %v12898_v13, %v9688_v58  ;;  %v9750_v41 = vmul.f32 0.6931472, %v6162_v56  ;;  %v4145_v18 = vmax.f32 %v4137_v0, 1e-20 }
 0x2d8   : > { %v6166_v42 = vpop.eup %6165  ;;  %v9752_v33 = vmul.f32 0.6931472, %v6164_v17  ;;  %6191 = vlog2.f32 %v3341_v26  ;;  %v4146_v50 = vmax.f32 %v4138_v53, 1e-20  ;;  %v4195_v47 = vmax.f32 %v4187_v48, 1e-20 }
 0x2d9   : > { %v6168_v34 = vpop.eup %6167  ;;  %v9754_v54 = vmul.f32 0.6931472, %v6166_v42  ;;  %6193 = vlog2.f32 %v3342_v44  ;;  %v4237_v13 = vadd.f32 %v9655_v4, %v9675_v14  ;;  %v4238_v56 = vadd.f32 %v9658_v29, %v9688_v58  ;;  %v12899_v26 = vld [vmem:[#allocation80_spill] sm:$0xff]  ;;  %v12900_v42 = vld [vmem:[#allocation83_spill] sm:$0xff] }
 0x2da   : > { %v6170_v40 = vpop.eup %6169  ;;  %6195 = vlog2.f32 %v3793_v6  ;;  %v4196_v17 = vmax.f32 %v4188_v7, 1e-20  ;;  %v9761_v62 = vmul.f32 %v12899_v26, %v1670_v51  ;;  %v9764_v55 = vmul.f32 %v12900_v42, %v1670_v51  ;;  %v12903_v26 = vld [vmem:[#allocation11_spill] sm:$0xff]  ;;  %v12904_v42 = vld [vmem:[#allocation52_spill] sm:$0xff] }
 0x2db   : > { %v6172_v57 = vpop.eup %6171  ;;  %6197 = vlog2.f32 %v3794_v15  ;;  %v9766_v53 = vmul.f32 0.6931472, %v6168_v34  ;;  %v9768_v6 = vmul.f32 0.6931472, %v6170_v40  ;;  %v4245_v29 = vmax.f32 %v4237_v13, 1e-20 }
 0x2dc   : > { %v6174_v44 = vpop.eup %6173  ;;  %v9770_v48 = vmul.f32 0.6931472, %v6172_v57  ;;  %6199 = vlog2.f32 %v4045_v21  ;;  %v12902_v15 = vld [vmem:[#allocation43_spill] sm:$0xff]  ;;  %v2069_v4 = vadd.f32 %v9764_v55, %v12903_v26  ;;  %v4246_v34 = vmax.f32 %v4238_v56, 1e-20  ;;  %v12905_v57 = vld [vmem:[#allocation17_spill] sm:$0xff] }
 0x2dd   : > { %v9772_v0 = vpop.eup %6175  ;;  %6201 = vlog2.f32 %v4046_v60  ;;  %v2068_v7 = vadd.f32 %v9761_v62, %v12902_v15  ;;  %v2527_v40 = vadd.f32 %v9761_v62, %v12904_v42  ;;  %v2528_v21 = vadd.f32 %v9764_v55, %v12905_v57  ;;  %v12907_v56 = vld [vmem:[#allocation58_spill] sm:$0xff] }
 0x2de   : > { %12901 = vst [vmem:[#allocation139_spill] sm:$0xff] %v9770_v48  ;;  %v9778_v51 = vpop.eup %6177  ;;  %6203 = vlog2.f32 %v4095_v45  ;;  %v9784_v32 = vmul.f32 0.6931472, %v6174_v44  ;;  %v2077_v13 = vmax.f32 %v2069_v4, 1e-20  ;;  %v2979_v36 = vadd.f32 %v9761_v62, %v12907_v56  ;;  %v12909_v44 = vld [vmem:[#allocation142_spill] sm:$0xff] }
 0x2df   : > { %v6180_v48 = vpop.eup %6179  ;;  %6205 = vlog2.f32 %v4096_v20  ;;  %v2076_v60 = vmax.f32 %v2068_v7, 1e-20  ;;  %v2535_v43 = vmax.f32 %v2527_v40, 1e-20  ;;  %v2536_v27 = vmax.f32 %v2528_v21, 1e-20 }
 0x2e0   : > { %12906 = vst [vmem:[#allocation54_spill] sm:$0xff] %v9784_v32  ;;  %v6182_v10 = vpop.eup %6181  ;;  %v1991_v63 = vmul.f32 0.6931472, %v6180_v48  ;;  %6207 = vlog2.f32 %v4145_v18  ;;  %v2980_v3 = vadd.f32 %v9764_v55, %v12908_v39  ;;  %v12911_v4 = vld [vmem:[#allocation37_spill] sm:$0xff]  ;;  %v12912_v7 = vld [vmem:[#allocation143_spill] sm:$0xff]  ;;  %v12914_v56 = vld [vmem:[#allocation144_spill] sm:$0xff] }
 0x2e1   : > { %v6184_v46 = vpop.eup %6183  ;;  %v1993_v45 = vmul.f32 0.6931472, %v6182_v10  ;;  %6209 = vlog2.f32 %v4146_v50  ;;  %v3431_v18 = vadd.f32 %v9761_v62, %v12911_v4  ;;  %v2987_v50 = vmax.f32 %v2979_v36, 1e-20  ;;  %v12918_v4 = vld [vmem:[#allocation68_spill] sm:$0xff] }
 0x2e2   : > { %v6186_v57 = vpop.eup %6185  ;;  %v9791_v32 = vadd.f32 %v12909_v44, %v1991_v63  ;;  %v2450_v20 = vmul.f32 0.6931472, %v6184_v46  ;;  %6211 = vlog2.f32 %v4195_v47  ;;  %v2988_v63 = vmax.f32 %v2980_v3, 1e-20  ;;  %v12916_v46 = vld [vmem:[#allocation145_spill] sm:$0xff] }
 0x2e3   : > { %v6188_v48 = vpop.eup %6187  ;;  %v9796_v40 = vadd.f32 %v12912_v7, %v1993_v45  ;;  %v2452_v10 = vmul.f32 0.6931472, %v6186_v57  ;;  %6213 = vlog2.f32 %v4196_v17  ;;  %v3432_v45 = vadd.f32 %v9764_v55, %v12918_v4  ;;  %v12919_v57 = vld [vmem:[#allocation146_spill] sm:$0xff] }
 0x2e4   : > { %12910 = vst [vmem:[#allocation80_spill] sm:$0xff] %v9791_v32  ;;  %v6190_v21 = vpop.eup %6189  ;;  %v9799_v42 = vadd.f32 %v12914_v56, %v2450_v20  ;;  %v2902_v39 = vmul.f32 0.6931472, %v6188_v48  ;;  %6215 = vlog2.f32 %v4245_v29  ;;  %v3439_v56 = vmax.f32 %v3431_v18, 1e-20  ;;  %v12921_v48 = vld [vmem:[#allocation147_spill] sm:$0xff] }
 0x2e5   : > { %12913 = vst [vmem:[#allocation83_spill] sm:$0xff] %v9796_v40  ;;  %v6192_v44 = vpop.eup %6191  ;;  %v9802_v47 = vadd.f32 %v12916_v46, %v2452_v10  ;;  %v2904_v32 = vmul.f32 0.6931472, %v6190_v21  ;;  %6217 = vlog2.f32 %v4246_v34  ;;  %v3440_v10 = vmax.f32 %v3432_v45, 1e-20  ;;  %v12923_v21 = vld [vmem:[#allocation148_spill] sm:$0xff] }
 0x2e6   : > { %12915 = vst [vmem:[#allocation43_spill] sm:$0xff] %v9799_v42  ;;  %v6194_v7 = vpop.eup %6193  ;;  %v9807_v17 = vadd.f32 %v12919_v57, %v2902_v39  ;;  %v3354_v36 = vmul.f32 0.6931472, %v6192_v44  ;;  %6219 = vlog2.f32 %v2076_v60  ;;  %v12925_v42 = vld [vmem:[#allocation78_spill] sm:$0xff]  ;;  %v12926_v44 = vld [vmem:[#allocation149_spill] sm:$0xff] }
 0x2e7   : > { %12917 = vst [vmem:[#allocation11_spill] sm:$0xff] %v9802_v47  ;;  %v6196_v20 = vpop.eup %6195  ;;  %v9810_v29 = vadd.f32 %v12921_v48, %v2904_v32  ;;  %v3356_v3 = vmul.f32 0.6931472, %v6194_v7  ;;  %6221 = vlog2.f32 %v2077_v13  ;;  %v3883_v39 = vadd.f32 %v9761_v62, %v12925_v42  ;;  %v12928_v32 = vld [vmem:[#allocation79_spill] sm:$0xff]  ;;  %v12929_v45 = vld [vmem:[#allocation150_spill] sm:$0xff] }
 0x2e8   : > { %12920 = vst [vmem:[#allocation142_spill] sm:$0xff] %v9807_v17  ;;  %v6198_v46 = vpop.eup %6197  ;;  %v9813_v34 = vadd.f32 %v12923_v21, %v3354_v36  ;;  %v3806_v47 = vmul.f32 0.6931472, %v6196_v20  ;;  %6223 = vlog2.f32 %v2535_v43  ;;  %v3884_v7 = vadd.f32 %v9764_v55, %v12928_v32  ;;  %v12931_v21 = vld [vmem:[#allocation151_spill] sm:$0xff]  ;;  %v12935_v17 = vld [vmem:[#allocation140_spill] sm:$0xff] }
 0x2e9   : > { %12922 = vst [vmem:[#allocation143_spill] sm:$0xff] %v9810_v29  ;;  %v6200_v57 = vpop.eup %6199  ;;  %v9818_v60 = vadd.f32 %v12926_v44, %v3356_v3  ;;  %v3808_v18 = vmul.f32 0.6931472, %v6198_v46  ;;  %6225 = vlog2.f32 %v2536_v27  ;;  %v3891_v20 = vmax.f32 %v3883_v39, 1e-20  ;;  %v12933_v46 = vld [vmem:[#allocation152_spill] sm:$0xff] }
 0x2ea   : > { %12924 = vst [vmem:[#allocation144_spill] sm:$0xff] %v9813_v34  ;;  %v6202_v13 = vpop.eup %6201  ;;  %v9823_v48 = vadd.f32 %v12929_v45, %v3806_v47  ;;  %v4058_v36 = vmul.f32 0.6931472, %v6200_v57  ;;  %6227 = vlog2.f32 %v2987_v50  ;;  %v3892_v3 = vmax.f32 %v3884_v7, 1e-20  ;;  %v12936_v57 = vld [vmem:[#allocation153_spill] sm:$0xff] }
 0x2eb   : > { %12927 = vst [vmem:[#allocation145_spill] sm:$0xff] %v9818_v60  ;;  %v6204_v43 = vpop.eup %6203  ;;  %v9826_v34 = vadd.f32 %v12931_v21, %v3808_v18  ;;  %v4060_v29 = vmul.f32 0.6931472, %v6202_v13  ;;  %6229 = vlog2.f32 %v2988_v63  ;;  %v4335_v47 = vadd.f32 %v9761_v62, %v12935_v17  ;;  %v12938_v18 = vld [vmem:[#allocation141_spill] sm:$0xff]  ;;  %v12939_v7 = vld [vmem:[#allocation154_spill] sm:$0xff] }
 0x2ec   : > { %12930 = vst [vmem:[#allocation68_spill] sm:$0xff] %v9823_v48  ;;  %v6206_v44 = vpop.eup %6205  ;;  %v9829_v27 = vadd.f32 %v12933_v46, %v4058_v36  ;;  %v4108_v60 = vmul.f32 0.6931472, %v6204_v43  ;;  %6231 = vlog2.f32 %v3439_v56  ;;  %v4336_v13 = vadd.f32 %v9764_v55, %v12938_v18  ;;  %v12941_v46 = vld [vmem:[#allocation155_spill] sm:$0xff] }
 0x2ed   : > { %12932 = vst [vmem:[#allocation146_spill] sm:$0xff] %v9826_v34  ;;  %v6208_v45 = vpop.eup %6207  ;;  %v9834_v50 = vadd.f32 %v12936_v57, %v4060_v29  ;;  %v4110_v39 = vmul.f32 0.6931472, %v6206_v44  ;;  %6233 = vlog2.f32 %v3440_v10  ;;  %v4343_v43 = vmax.f32 %v4335_v47, 1e-20  ;;  %v1434_v57 = vpop.permute.xlu1 %1433  ;;  %v12943_v10 = vld [vmem:[#allocation156_spill] sm:$0xff] }
 0x2ee   : > { %12934 = vst [vmem:[#allocation147_spill] sm:$0xff] %v9829_v27  ;;  %v6210_v63 = vpop.eup %6209  ;;  %v9839_v21 = vadd.f32 %v12939_v7, %v4108_v60  ;;  %v4158_v36 = vmul.f32 0.6931472, %v6208_v45  ;;  %6235 = vlog2.f32 %v3891_v20  ;;  %v4344_v29 = vmax.f32 %v4336_v13, 1e-20  ;;  %v12945_v20 = vld [vmem:[#allocation157_spill] sm:$0xff] }
 0x2ef   : > { %12937 = vst [vmem:[#allocation148_spill] sm:$0xff] %v9834_v50  ;;  %v6212_v56 = vpop.eup %6211  ;;  %v9842_v27 = vadd.f32 %v12941_v46, %v4110_v39  ;;  %v4160_v34 = vmul.f32 0.6931472, %v6210_v63  ;;  %6237 = vlog2.f32 %v3892_v3  ;;  %v4787_v60 = vadd.f32 %v9761_v62, %v9530_v12  ;;  %v12947_v13 = vld [vmem:[#allocation158_spill] sm:$0xff] }
 0x2f0   : > { %12940 = vst [vmem:[#allocation78_spill] sm:$0xff] %v9839_v21  ;;  %v6214_v44 = vpop.eup %6213  ;;  %v9845_v50 = vadd.f32 %v12943_v10, %v4158_v36  ;;  %v4208_v48 = vmul.f32 0.6931472, %v6212_v56  ;;  %6239 = vlog2.f32 %v4343_v43  ;;  %v4788_v3 = vadd.f32 %v9764_v55, %v9536_v8  ;;  %v12949_v56 = vld [vmem:[#allocation94_spill] sm:$0xff]  ;;  %v12953_v21 = vld [vmem:[#allocation160_spill] sm:$0xff] }
 0x2f1   : > { %12942 = vst [vmem:[#allocation149_spill] sm:$0xff] %v9842_v27  ;;  %v6216_v45 = vpop.eup %6215  ;;  %v9850_v47 = vadd.f32 %v12945_v20, %v4160_v34  ;;  %v4210_v7 = vmul.f32 0.6931472, %v6214_v44  ;;  %6241 = vlog2.f32 %v4344_v29  ;;  %v4795_v46 = vmax.f32 %v4787_v60, 1e-20  ;;  %v12952_v44 = vld [vmem:[#allocation97_spill] sm:$0xff] }
 0x2f2   : > { %12944 = vst [vmem:[#allocation79_spill] sm:$0xff] %v9845_v50  ;;  %v6218_v39 = vpop.eup %6217  ;;  %v9855_v63 = vadd.f32 %v12947_v13, %v4208_v48  ;;  %v4258_v36 = vmul.f32 0.6931472, %v6216_v45  ;;  %v9858_v43 = vmul.f32 %v12949_v56, %v1434_v57  ;;  %v12950_v50 = vld [vmem:[#allocation159_spill] sm:$0xff]  ;;  %v4796_v20 = vmax.f32 %v4788_v3, 1e-20 }
 0x2f3   : > { %12946 = vst [vmem:[#allocation150_spill] sm:$0xff] %v9850_v47  ;;  %v6220_v10 = vpop.eup %6219  ;;  %v9861_v27 = vadd.f32 %v12950_v50, %v4210_v7  ;;  %v4260_v34 = vmul.f32 0.6931472, %v6218_v39  ;;  %v9864_v29 = vmul.f32 %v12952_v44, %v1434_v57  ;;  %6243 = vlog2.f32 %v4795_v46  ;;  %v12955_v60 = vld [vmem:[#allocation33_spill] sm:$0xff]  ;;  %v12958_v7 = vld [vmem:[#allocation34_spill] sm:$0xff] }
 0x2f4   : > { %12948 = vst [vmem:[#allocation151_spill] sm:$0xff] %v9855_v63  ;;  %v6222_v47 = vpop.eup %6221  ;;  %v9867_v40 = vadd.f32 %v12953_v21, %v4258_v36  ;;  %v2087_v48 = vmul.f32 0.6931472, %v6220_v10  ;;  %v4939_v45 = vadd.f32 %v12955_v60, %v9858_v43  ;;  %v12956_v63 = vld [vmem:[#allocation161_spill] sm:$0xff]  ;;  %6245 = vlog2.f32 %v4796_v20  ;;  %v12960_v46 = vld [vmem:[#allocation106_spill] sm:$0xff] }
 0x2f5   : > { %12951 = vst [vmem:[#allocation152_spill] sm:$0xff] %v9861_v27  ;;  %v6224_v13 = vpop.eup %6223  ;;  %v9872_v8 = vadd.f32 %v12956_v63, %v4260_v34  ;;  %v2089_v50 = vmul.f32 0.6931472, %v6222_v47  ;;  %v4940_v3 = vadd.f32 %v12958_v7, %v9864_v29  ;;  %v4989_v10 = vadd.f32 %v12960_v46, %v9858_v43  ;;  %v12962_v47 = vld [vmem:[#allocation107_spill] sm:$0xff] }
 0x2f6   : > { %12954 = vst [vmem:[#allocation140_spill] sm:$0xff] %v9867_v40  ;;  %v6226_v57 = vpop.eup %6225  ;;  %v9877_v39 = vadd.f32 %v2087_v48, %v9732_v38  ;;  %v2546_v21 = vmul.f32 0.6931472, %v6224_v13  ;;  %v4947_v36 = vmax.f32 %v4939_v45, 1e-20  ;;  %v4990_v20 = vadd.f32 %v12962_v47, %v9864_v29  ;;  %v12966_v47 = vld [vmem:[#allocation41_spill] sm:$0xff] }
 0x2f7   : > { %12957 = vst [vmem:[#allocation153_spill] sm:$0xff] %v9872_v8  ;;  %v6228_v40 = vpop.eup %6227  ;;  %v9882_v60 = vadd.f32 %v2089_v50, %v9734_v2  ;;  %v2548_v63 = vmul.f32 0.6931472, %v6226_v57  ;;  %v4948_v34 = vmax.f32 %v4940_v3, 1e-20 }
 0x2f8   : > { %12959 = vst [vmem:[#allocation141_spill] sm:$0xff] %v9877_v39  ;;  %v6230_v8 = vpop.eup %6229  ;;  %v9887_v7 = vadd.f32 %v2546_v21, %v9736_v61  ;;  %v2998_v38 = vmul.f32 0.6931472, %v6228_v40  ;;  %6247 = vlog2.f32 %v4947_v36  ;;  %v4997_v48 = vmax.f32 %v4989_v10, 1e-20 }
 0x2f9   : > { %12961 = vst [vmem:[#allocation154_spill] sm:$0xff] %v9882_v60  ;;  %v6232_v45 = vpop.eup %6231  ;;  %v9890_v13 = vadd.f32 %v2548_v63, %v9738_v25  ;;  %v3000_v46 = vmul.f32 0.6931472, %v6230_v8  ;;  %6249 = vlog2.f32 %v4948_v34  ;;  %v4998_v2 = vmax.f32 %v4990_v20, 1e-20  ;;  %v12968_v25 = vld [vmem:[#allocation10_spill] sm:$0xff] }
 0x2fa   : > { %12963 = vst [vmem:[#allocation155_spill] sm:$0xff] %v9887_v7  ;;  %v6234_v50 = vpop.eup %6233  ;;  %v9893_v3 = vadd.f32 %v2998_v38, %v9748_v52  ;;  %v3450_v57 = vmul.f32 0.6931472, %v6232_v45  ;;  %6251 = vlog2.f32 %v4997_v48  ;;  %v5039_v61 = vadd.f32 %v12966_v47, %v9858_v43  ;;  %v12970_v20 = vld [vmem:[#allocation48_spill] sm:$0xff] }
 0x2fb   : > { %12964 = vst [vmem:[#allocation156_spill] sm:$0xff] %v9890_v13  ;;  %v6236_v21 = vpop.eup %6235  ;;  %v9898_v40 = vadd.f32 %v3000_v46, %v9750_v41  ;;  %v3452_v36 = vmul.f32 0.6931472, %v6234_v50  ;;  %6253 = vlog2.f32 %v4998_v2  ;;  %v5040_v8 = vadd.f32 %v12968_v25, %v9864_v29  ;;  %v12972_v2 = vld [vmem:[#allocation50_spill] sm:$0xff] }
 0x2fc   : > { %12965 = vst [vmem:[#allocation157_spill] sm:$0xff] %v9893_v3  ;;  %v6238_v10 = vpop.eup %6237  ;;  %v9903_v63 = vadd.f32 %v3450_v57, %v9752_v33  ;;  %v3902_v52 = vmul.f32 0.6931472, %v6236_v21  ;;  %v5047_v34 = vmax.f32 %v5039_v61, 1e-20  ;;  %v5089_v38 = vadd.f32 %v12970_v20, %v9858_v43 }
 0x2fd   : > { %12967 = vst [vmem:[#allocation158_spill] sm:$0xff] %v9898_v40  ;;  %v6240_v48 = vpop.eup %6239  ;;  %v9908_v45 = vadd.f32 %v3452_v36, %v9754_v54  ;;  %v3904_v41 = vmul.f32 0.6931472, %v6238_v10  ;;  %v5048_v46 = vmax.f32 %v5040_v8, 1e-20  ;;  %v5090_v50 = vadd.f32 %v12972_v2, %v9864_v29  ;;  %v1429_v36 = vpop.permute.xlu0 %1428  ;;  %v12977_v8 = vld [vmem:[#allocation31_spill] sm:$0xff] }
 0x2fe   : > { %12969 = vst [vmem:[#allocation94_spill] sm:$0xff] %v9903_v63  ;;  %v6242_v47 = vpop.eup %6241  ;;  %v9913_v25 = vmul.f32 0.6931472, %v9772_v0  ;;  %v9916_v33 = vadd.f32 %v3902_v52, %v9766_v53  ;;  %6255 = vlog2.f32 %v5047_v34  ;;  %v5097_v57 = vmax.f32 %v5089_v38, 1e-20  ;;  %v12978_v0 = vld [vmem:[#allocation32_spill] sm:$0xff]  ;;  %v1655_v63 = vpop.permute.xlu1 %1654 }
 0x2ff   : > { %12971 = vst [vmem:[#allocation159_spill] sm:$0xff] %v9908_v45  ;;  %v9919_v61 = vmul.f32 0.6931472, %v9778_v51  ;;  %v9922_v54 = vadd.f32 %v3904_v41, %v9768_v6  ;;  %6257 = vlog2.f32 %v5048_v46  ;;  %v5098_v21 = vmax.f32 %v5090_v50, 1e-20  ;;  %v12980_v50 = vld [vmem:[#allocation99_spill] sm:$0xff] }
 0x300   : > { %12973 = vst [vmem:[#allocation97_spill] sm:$0xff] %v9913_v25  ;;  %12974 = vst [vmem:[#allocation160_spill] sm:$0xff] %v9916_v33  ;;  %6259 = vlog2.f32 %v5097_v57  ;;  %v5139_v10 = vadd.f32 %v12977_v8, %v9858_v43  ;;  %v5140_v20 = vadd.f32 %v12978_v0, %v9864_v29  ;;  %v5189_v53 = vadd.f32 %v9413_v37, %v9858_v43  ;;  %v6244_v52 = vpop.eup %6243  ;;  %v12982_v0 = vld [vmem:[#allocation100_spill] sm:$0xff] }
 0x301   : > { %12975 = vst [vmem:[#allocation33_spill] sm:$0xff] %v9919_v61  ;;  %12976 = vst [vmem:[#allocation161_spill] sm:$0xff] %v9922_v54  ;;  %6261 = vlog2.f32 %v5098_v21  ;;  %v5190_v51 = vadd.f32 %v9416_v59, %v9864_v29  ;;  %v5239_v6 = vadd.f32 %v9761_v62, %v9858_v43  ;;  %v5240_v34 = vadd.f32 %v9764_v55, %v9864_v29  ;;  %v6246_v38 = vpop.eup %6245  ;;  %v12983_v55 = vld [vmem:[#allocation86_spill] sm:$0xff] }
 0x302   : > { %v9936_v41 = vmul.f32 0.6931472, %v6240_v48  ;;  %v5147_v46 = vmax.f32 %v5139_v10, 1e-20  ;;  %v5148_v2 = vmax.f32 %v5140_v20, 1e-20  ;;  %v9939_v57 = vmul.f32 %v12980_v50, %v1429_v36 }
 0x303   : > { %v9941_v37 = vmul.f32 0.6931472, %v6242_v47  ;;  %v5197_v21 = vmax.f32 %v5189_v53, 1e-20  ;;  %v5198_v8 = vmax.f32 %v5190_v51, 1e-20  ;;  %v9944_v59 = vmul.f32 %v12982_v0, %v1429_v36 }
 0x304   : > { %12979 = vst [vmem:[#allocation34_spill] sm:$0xff] %v9936_v41  ;;  %6263 = vlog2.f32 %v5147_v46  ;;  %v5247_v62 = vmax.f32 %v5239_v6, 1e-20  ;;  %v5248_v61 = vmax.f32 %v5240_v34, 1e-20  ;;  %v4937_v25 = vadd.f32 %v12983_v55, %v9939_v57  ;;  %v12984_v10 = vld [vmem:[#allocation87_spill] sm:$0xff] }
 0x305   : > { %12981 = vst [vmem:[#allocation106_spill] sm:$0xff] %v9941_v37  ;;  %v6248_v48 = vpop.eup %6247  ;;  %6265 = vlog2.f32 %v5148_v2  ;;  %v4938_v20 = vadd.f32 %v12984_v10, %v9944_v59  ;;  %v12985_v41 = vld [vmem:[#allocation95_spill] sm:$0xff]  ;;  %v12986_v53 = vld [vmem:[#allocation96_spill] sm:$0xff]  ;;  %v9954_v36 = vmul.f32 0.6931472, %v6244_v52  ;;  %v12988_v34 = vld [vmem:[#allocation98_spill] sm:$0xff] }
 0x306   : > { %v4987_v47 = vadd.f32 %v12985_v41, %v9939_v57  ;;  %v4988_v51 = vadd.f32 %v12986_v53, %v9944_v59  ;;  %v6250_v37 = vpop.eup %6249  ;;  %6267 = vlog2.f32 %v5197_v21  ;;  %v4945_v6 = vmax.f32 %v4937_v25, 1e-20  ;;  %v12990_v52 = vld [vmem:[#allocation105_spill] sm:$0xff] }
 0x307   : > { %12987 = vst [vmem:[#allocation107_spill] sm:$0xff] %v9954_v36  ;;  %v5037_v46 = vadd.f32 %v12988_v34, %v9939_v57  ;;  %v6252_v55 = vpop.eup %6251  ;;  %v9958_v54 = vmul.f32 0.6931472, %v6246_v38  ;;  %v9960_v2 = vmul.f32 0.6931472, %v6248_v48  ;;  %6269 = vlog2.f32 %v5198_v8  ;;  %v12991_v34 = vld [vmem:[#allocation16_spill] sm:$0xff] }
 0x308   : > { %v4946_v10 = vmax.f32 %v4938_v20, 1e-20  ;;  %v6254_v33 = vpop.eup %6253  ;;  %v9962_v41 = vmul.f32 0.6931472, %v6250_v37  ;;  %6271 = vlog2.f32 %v5247_v62  ;;  %v4995_v53 = vmax.f32 %v4987_v47, 1e-20 }
 0x309   : > { %12989 = vst [vmem:[#allocation41_spill] sm:$0xff] %v9958_v54  ;;  %v5038_v36 = vadd.f32 %v12990_v52, %v9944_v59  ;;  %v9966_v21 = vmul.f32 0.6931472, %v6252_v55  ;;  %6273 = vlog2.f32 %v5248_v61  ;;  %v4996_v25 = vmax.f32 %v4988_v51, 1e-20  ;;  %v12992_v8 = vld [vmem:[#allocation51_spill] sm:$0xff] }
 0x30a   : > { %v5087_v38 = vadd.f32 %v12991_v34, %v9939_v57  ;;  %6275 = vlog2.f32 %v4945_v6  ;;  %v5045_v48 = vmax.f32 %v5037_v46, 1e-20  ;;  %v5088_v20 = vadd.f32 %v12992_v8, %v9944_v59  ;;  %v12993_v37 = vld [vmem:[#allocation59_spill] sm:$0xff]  ;;  %v12994_v52 = vld [vmem:[#allocation61_spill] sm:$0xff]  ;;  %v12995_v61 = vld [vmem:[#allocation162_spill] sm:$0xff] }
 0x30b   : > { %v5137_v54 = vadd.f32 %v12993_v37, %v9939_v57  ;;  %v6256_v62 = vpop.eup %6255  ;;  %6277 = vlog2.f32 %v4946_v10  ;;  %v5046_v47 = vmax.f32 %v5038_v36, 1e-20  ;;  %v5138_v55 = vadd.f32 %v12994_v52, %v9944_v59  ;;  %v12996_v10 = vld [vmem:[#allocation163_spill] sm:$0xff] }
 0x30c   : > { %v5187_v51 = vadd.f32 %v12995_v61, %v9939_v57  ;;  %v6258_v27 = vpop.eup %6257  ;;  %v9978_v45 = vmul.f32 0.6931472, %v6254_v33  ;;  %v9980_v6 = vmul.f32 0.6931472, %v6256_v62  ;;  %6279 = vlog2.f32 %v4995_v53 }
 0x30d   : > { %v5095_v46 = vmax.f32 %v5087_v38, 1e-20  ;;  %v6260_v34 = vpop.eup %6259  ;;  %6281 = vlog2.f32 %v4996_v25  ;;  %v5096_v8 = vmax.f32 %v5088_v20, 1e-20  ;;  %v5145_v37 = vmax.f32 %v5137_v54, 1e-20  ;;  %v1620_v54 = vpop.permute.xlu0 %1619 }
 0x30e   : > { %v5188_v36 = vadd.f32 %v12996_v10, %v9944_v59  ;;  %v6262_v40 = vpop.eup %6261  ;;  %v9984_v52 = vmul.f32 0.6931472, %v6258_v27  ;;  %6283 = vlog2.f32 %v5045_v48  ;;  %v5146_v61 = vmax.f32 %v5138_v55, 1e-20 }
 0x30f   : > { %v5237_v33 = vadd.f32 %v9646_v24, %v9939_v57  ;;  %v9988_v62 = vmul.f32 0.6931472, %v6260_v34  ;;  %6285 = vlog2.f32 %v5046_v47  ;;  %v5195_v53 = vmax.f32 %v5187_v51, 1e-20  ;;  %v12999_v51 = vld [vmem:[#allocation53_spill] sm:$0xff] }
 0x310   : > { %v5238_v25 = vadd.f32 %v9649_v28, %v9944_v59  ;;  %v9992_v38 = vmul.f32 0.6931472, %v6262_v40  ;;  %6287 = vlog2.f32 %v5095_v46  ;;  %v9995_v20 = vmul.f32 %v12871_v1, %v1655_v63 }
 0x311   : > { %v9998_v27 = vmul.f32 %v12873_v31, %v1655_v63  ;;  %v6264_v48 = vpop.eup %6263  ;;  %6289 = vlog2.f32 %v5096_v8  ;;  %v5196_v24 = vmax.f32 %v5188_v36, 1e-20  ;;  %v5245_v55 = vmax.f32 %v5237_v33, 1e-20  ;;  %v13000_v8 = vld [vmem:[#allocation19_spill] sm:$0xff] }
 0x312   : > { %12997 = vst [vmem:[#allocation10_spill] sm:$0xff] %v9995_v20  ;;  %v5246_v34 = vmax.f32 %v5238_v25, 1e-20  ;;  %v6266_v47 = vpop.eup %6265  ;;  %6291 = vlog2.f32 %v5145_v37  ;;  %v2020_v28 = vadd.f32 %v9995_v20, %v12875_v19  ;;  %v10005_v46 = vmul.f32 %v12999_v51, %v1620_v54 }
 0x313   : > { %12998 = vst [vmem:[#allocation48_spill] sm:$0xff] %v9998_v27  ;;  %v2021_v40 = vadd.f32 %v9998_v27, %v12876_v35  ;;  %v10007_v1 = vpop.eup %6267  ;;  %6293 = vlog2.f32 %v5146_v61  ;;  %v2479_v31 = vadd.f32 %v9995_v20, %v12877_v22  ;;  %v2480_v63 = vadd.f32 %v9998_v27, %v12878_v9 }
 0x314   : > { %v10014_v37 = vmul.f32 %v13000_v8, %v1620_v54  ;;  %v10016_v10 = vpop.eup %6269  ;;  %v10018_v36 = vmul.f32 0.6931472, %v6264_v48  ;;  %v10020_v33 = vmul.f32 0.6931472, %v6266_v47  ;;  %6295 = vlog2.f32 %v5195_v53 }
 0x315   : > { %v2028_v25 = vmax.f32 %v2020_v28, 1e-20  ;;  %v10022_v51 = vpop.eup %6271  ;;  %6297 = vlog2.f32 %v5196_v24  ;;  %v2029_v61 = vmax.f32 %v2021_v40, 1e-20  ;;  %v2487_v3 = vmax.f32 %v2479_v31, 1e-20 }
 0x316   : > { %13001 = vst [vmem:[#allocation50_spill] sm:$0xff] %v10018_v36  ;;  %13002 = vst [vmem:[#allocation31_spill] sm:$0xff] %v10020_v33  ;;  %v2488_v13 = vmax.f32 %v2480_v63, 1e-20  ;;  %v10024_v7 = vpop.eup %6273  ;;  %6299 = vlog2.f32 %v5245_v55  ;;  %v2931_v54 = vadd.f32 %v9995_v20, %v12883_v11  ;;  %v2932_v48 = vadd.f32 %v9998_v27, %v12884_v5 }
 0x317   : > { %13003 = vst [vmem:[#allocation32_spill] sm:$0xff] %v10022_v51  ;;  %13004 = vst [vmem:[#allocation99_spill] sm:$0xff] %v10024_v7  ;;  %v3383_v47 = vadd.f32 %v9995_v20, %v12885_v23  ;;  %v6276_v53 = vpop.eup %6275  ;;  %6301 = vlog2.f32 %v5246_v34  ;;  %v3384_v24 = vadd.f32 %v9998_v27, %v12886_v16  ;;  %v3835_v28 = vadd.f32 %v9995_v20, %v12887_v49 }
 0x318   : > { %v3836_v55 = vadd.f32 %v9998_v27, %v12888_v30  ;;  %v6278_v40 = vpop.eup %6277  ;;  %v4954_v31 = vmul.f32 0.6931472, %v6276_v53  ;;  %6303 = vlog2.f32 %v2028_v25  ;;  %v2939_v63 = vmax.f32 %v2931_v54, 1e-20 }
 0x319   : > { %v2940_v8 = vmax.f32 %v2932_v48, 1e-20  ;;  %v6280_v7 = vpop.eup %6279  ;;  %v4956_v51 = vmul.f32 0.6931472, %v6278_v40  ;;  %6305 = vlog2.f32 %v2029_v61  ;;  %v3391_v33 = vmax.f32 %v3383_v47, 1e-20 }
 0x31a   : > { %v3392_v36 = vmax.f32 %v3384_v24, 1e-20  ;;  %v6282_v34 = vpop.eup %6281  ;;  %v10039_v60 = vadd.f32 %v9960_v2, %v4954_v31  ;;  %v5004_v39 = vmul.f32 0.6931472, %v6280_v7  ;;  %6307 = vlog2.f32 %v2487_v3 }
 0x31b   : > { %v3843_v49 = vmax.f32 %v3835_v28, 1e-20  ;;  %v6284_v16 = vpop.eup %6283  ;;  %v10042_v30 = vadd.f32 %v9962_v41, %v4956_v51  ;;  %v5006_v53 = vmul.f32 0.6931472, %v6282_v34  ;;  %6309 = vlog2.f32 %v2488_v13 }
 0x31c   : > { %13005 = vst [vmem:[#allocation100_spill] sm:$0xff] %v10039_v60  ;;  %v3844_v25 = vmax.f32 %v3836_v55, 1e-20  ;;  %v6286_v54 = vpop.eup %6285  ;;  %v10045_v48 = vadd.f32 %v9966_v21, %v5004_v39  ;;  %v5054_v61 = vmul.f32 0.6931472, %v6284_v16  ;;  %6311 = vlog2.f32 %v2939_v63 }
 0x31d   : > { %13006 = vst [vmem:[#allocation86_spill] sm:$0xff] %v10042_v30  ;;  %v4287_v2 = vadd.f32 %v9995_v20, %v9675_v14  ;;  %v6288_v47 = vpop.eup %6287  ;;  %v10050_v7 = vadd.f32 %v9978_v45, %v5006_v53  ;;  %v5056_v3 = vmul.f32 0.6931472, %v6286_v54  ;;  %6313 = vlog2.f32 %v2940_v8  ;;  %v13018_v53 = vld [vmem:[#allocation56_spill] sm:$0xff] }
 0x31e   : > { %13007 = vst [vmem:[#allocation87_spill] sm:$0xff] %v10045_v48  ;;  %v4288_v41 = vadd.f32 %v9998_v27, %v9688_v58  ;;  %v6290_v13 = vpop.eup %6289  ;;  %v10055_v51 = vadd.f32 %v9980_v6, %v5054_v61  ;;  %v5104_v39 = vmul.f32 0.6931472, %v6288_v47  ;;  %6315 = vlog2.f32 %v3391_v33  ;;  %v13013_v6 = vld [vmem:[#allocation14_spill] sm:$0xff]  ;;  %v13029_v48 = vld [vmem:[#allocation173_spill] sm:$0xff] }
 0x31f   : > { %13008 = vst [vmem:[#allocation95_spill] sm:$0xff] %v10050_v7  ;;  %v4295_v16 = vmax.f32 %v4287_v2, 1e-20  ;;  %v6292_v21 = vpop.eup %6291  ;;  %v10058_v24 = vadd.f32 %v9984_v52, %v5056_v3  ;;  %v5106_v28 = vmul.f32 0.6931472, %v6290_v13  ;;  %6317 = vlog2.f32 %v3392_v36  ;;  %v13016_v36 = vld [vmem:[#allocation47_spill] sm:$0xff] }
 0x320   : > { %13009 = vst [vmem:[#allocation96_spill] sm:$0xff] %v10055_v51  ;;  %v4296_v45 = vmax.f32 %v4288_v41, 1e-20  ;;  %v6294_v55 = vpop.eup %6293  ;;  %v10061_v40 = vmul.f32 0.6931472, %v10007_v1  ;;  %v10064_v31 = vadd.f32 %v9988_v62, %v5104_v39  ;;  %6319 = vlog2.f32 %v3843_v49  ;;  %v13021_v2 = vld [vmem:[#allocation22_spill] sm:$0xff] }
 0x321   : > { %13010 = vst [vmem:[#allocation98_spill] sm:$0xff] %v10058_v24  ;;  %v1922_v63 = vadd.f32 %v10005_v46, %v13013_v6  ;;  %v10068_v33 = vpop.eup %6295  ;;  %v10071_v8 = vmul.f32 0.6931472, %v10016_v10  ;;  %v10074_v52 = vadd.f32 %v9992_v38, %v5106_v28  ;;  %6321 = vlog2.f32 %v3844_v25  ;;  %v13023_v41 = vld [vmem:[#allocation27_spill] sm:$0xff] }
 0x322   : > { %13011 = vst [vmem:[#allocation105_spill] sm:$0xff] %v10061_v40  ;;  %13012 = vst [vmem:[#allocation16_spill] sm:$0xff] %v10064_v31  ;;  %v1923_v1 = vadd.f32 %v10014_v37, %v13016_v36  ;;  %v10078_v34 = vpop.eup %6297  ;;  %v10080_v62 = vmul.f32 0.6931472, %v6292_v21  ;;  %6323 = vlog2.f32 %v4295_v16  ;;  %v2381_v54 = vadd.f32 %v10005_v46, %v13018_v53  ;;  %v13024_v39 = vld [vmem:[#allocation63_spill] sm:$0xff] }
 0x323   : > { %13014 = vst [vmem:[#allocation51_spill] sm:$0xff] %v10071_v8  ;;  %13015 = vst [vmem:[#allocation59_spill] sm:$0xff] %v10074_v52  ;;  %v1930_v49 = vmax.f32 %v1922_v63, 1e-20  ;;  %v10084_v61 = vpop.eup %6299  ;;  %v10086_v10 = vmul.f32 0.6931472, %v6294_v55  ;;  %6325 = vlog2.f32 %v4296_v45  ;;  %v2382_v25 = vadd.f32 %v10014_v37, %v13021_v2 }
 0x324   : > { %13017 = vst [vmem:[#allocation61_spill] sm:$0xff] %v10080_v62  ;;  %13019 = vst [vmem:[#allocation162_spill] sm:$0xff] %v10084_v61  ;;  %v1931_v38 = vmax.f32 %v1923_v1, 1e-20  ;;  %v10090_v47 = vpop.eup %6301  ;;  %v2389_v3 = vmax.f32 %v2381_v54, 1e-20  ;;  %v2833_v13 = vadd.f32 %v10005_v46, %v13023_v41  ;;  %v2834_v16 = vadd.f32 %v10014_v37, %v13024_v39  ;;  %v1690_v61 = vpop.permute.xlu1 %1689 }
 0x325   : > { %13020 = vst [vmem:[#allocation163_spill] sm:$0xff] %v10086_v10  ;;  %13022 = vst [vmem:[#allocation53_spill] sm:$0xff] %v10090_v47  ;;  %6327 = vlog2.f32 %v1930_v49  ;;  %v6304_v21 = vpop.eup %6303  ;;  %v2390_v28 = vmax.f32 %v2382_v25, 1e-20  ;;  %v13025_v55 = vld [vmem:[#allocation70_spill] sm:$0xff]  ;;  %v13026_v63 = vld [vmem:[#allocation71_spill] sm:$0xff]  ;;  %v10104_v51 = vmul.f32 %v12949_v56, %v1690_v61 }
 0x326   : > { %6329 = vlog2.f32 %v1931_v38  ;;  %v3285_v45 = vadd.f32 %v10005_v46, %v13025_v55  ;;  %v3286_v1 = vadd.f32 %v10014_v37, %v13026_v63  ;;  %v6306_v8 = vpop.eup %6305  ;;  %v2041_v47 = vmul.f32 0.6931472, %v6304_v21  ;;  %v13027_v38 = vld [vmem:[#allocation172_spill] sm:$0xff] }
 0x327   : > { %6331 = vlog2.f32 %v2389_v3  ;;  %v2841_v49 = vmax.f32 %v2833_v13, 1e-20  ;;  %v2842_v54 = vmax.f32 %v2834_v16, 1e-20  ;;  %v6308_v40 = vpop.eup %6307  ;;  %v2043_v10 = vmul.f32 0.6931472, %v6306_v8 }
 0x328   : > { %6333 = vlog2.f32 %v2390_v28  ;;  %v3293_v62 = vmax.f32 %v3285_v45, 1e-20  ;;  %v3294_v52 = vmax.f32 %v3286_v1, 1e-20  ;;  %v6310_v31 = vpop.eup %6309  ;;  %v10101_v25 = vadd.f32 %v13027_v38, %v2041_v47  ;;  %v13031_v16 = vld [vmem:[#allocation174_spill] sm:$0xff]  ;;  %v13033_v45 = vld [vmem:[#allocation175_spill] sm:$0xff] }
 0x329   : > { %v2500_v24 = vmul.f32 0.6931472, %v6308_v40  ;;  %6335 = vlog2.f32 %v2841_v49  ;;  %v6312_v7 = vpop.eup %6311  ;;  %v10107_v21 = vadd.f32 %v13029_v48, %v2043_v10  ;;  %v2502_v3 = vmul.f32 0.6931472, %v6310_v31 }
 0x32a   : > { %13028 = vst [vmem:[#allocation19_spill] sm:$0xff] %v10101_v25  ;;  %6337 = vlog2.f32 %v2842_v54  ;;  %v10110_v8 = vmul.f32 %v12952_v44, %v1690_v61  ;;  %v6314_v13 = vpop.eup %6313  ;;  %v2952_v47 = vmul.f32 0.6931472, %v6312_v7  ;;  %v2118_v40 = vadd.f32 %v10104_v51, %v12902_v15  ;;  %v13035_v61 = vld [vmem:[#allocation177_spill] sm:$0xff]  ;;  %v13037_v7 = vld [vmem:[#allocation52_spill] sm:$0xff]  ;;  %v13038_v15 = vld [vmem:[#allocation178_spill] sm:$0xff] }
 0x32b   : > { %13030 = vst [vmem:[#allocation14_spill] sm:$0xff] %v10107_v21  ;;  %v10113_v28 = vadd.f32 %v13031_v16, %v2500_v24  ;;  %6339 = vlog2.f32 %v3293_v62  ;;  %v6316_v56 = vpop.eup %6315  ;;  %v10118_v1 = vadd.f32 %v13033_v45, %v2502_v3  ;;  %v2954_v48 = vmul.f32 0.6931472, %v6314_v13  ;;  %v13040_v13 = vld [vmem:[#allocation17_spill] sm:$0xff] }
 0x32c   : > { %6341 = vlog2.f32 %v3294_v52  ;;  %v2119_v31 = vadd.f32 %v10110_v8, %v12903_v26  ;;  %v6318_v44 = vpop.eup %6317  ;;  %v10123_v10 = vadd.f32 %v13035_v61, %v2952_v47  ;;  %v3404_v24 = vmul.f32 0.6931472, %v6316_v56  ;;  %v13041_v26 = vld [vmem:[#allocation179_spill] sm:$0xff]  ;;  %v13043_v61 = vld [vmem:[#allocation180_spill] sm:$0xff] }
 0x32d   : > { %13032 = vst [vmem:[#allocation47_spill] sm:$0xff] %v10113_v28  ;;  %13034 = vst [vmem:[#allocation56_spill] sm:$0xff] %v10118_v1  ;;  %v2126_v49 = vmax.f32 %v2118_v40, 1e-20  ;;  %v2577_v62 = vadd.f32 %v10104_v51, %v13037_v7  ;;  %v6320_v54 = vpop.eup %6319  ;;  %v10128_v38 = vadd.f32 %v13038_v15, %v2954_v48  ;;  %v3406_v3 = vmul.f32 0.6931472, %v6318_v44 }
 0x32e   : > { %13036 = vst [vmem:[#allocation22_spill] sm:$0xff] %v10123_v10  ;;  %v2127_v16 = vmax.f32 %v2119_v31, 1e-20  ;;  %v2578_v52 = vadd.f32 %v10110_v8, %v13040_v13  ;;  %v6322_v45 = vpop.eup %6321  ;;  %v10133_v1 = vadd.f32 %v13041_v26, %v3404_v24  ;;  %v3856_v47 = vmul.f32 0.6931472, %v6320_v54  ;;  %v13046_v44 = vld [vmem:[#allocation181_spill] sm:$0xff] }
 0x32f   : > { %13039 = vst [vmem:[#allocation172_spill] sm:$0xff] %v10128_v38  ;;  %6343 = vlog2.f32 %v2126_v49  ;;  %v2585_v56 = vmax.f32 %v2577_v62, 1e-20  ;;  %v6324_v40 = vpop.eup %6323  ;;  %v10136_v10 = vadd.f32 %v13043_v61, %v3406_v3  ;;  %v3858_v7 = vmul.f32 0.6931472, %v6322_v45  ;;  %v13048_v24 = vld [vmem:[#allocation58_spill] sm:$0xff] }
 0x330   : > { %13042 = vst [vmem:[#allocation173_spill] sm:$0xff] %v10133_v1  ;;  %6345 = vlog2.f32 %v2127_v16  ;;  %v2586_v48 = vmax.f32 %v2578_v52, 1e-20  ;;  %v6326_v15 = vpop.eup %6325  ;;  %v10139_v31 = vmul.f32 0.6931472, %v10068_v33  ;;  %v10142_v13 = vadd.f32 %v13046_v44, %v3856_v47  ;;  %v13050_v3 = vld [vmem:[#allocation182_spill] sm:$0xff] }
 0x331   : > { %13044 = vst [vmem:[#allocation174_spill] sm:$0xff] %v10136_v10  ;;  %6347 = vlog2.f32 %v2585_v56  ;;  %v3029_v54 = vadd.f32 %v10104_v51, %v13048_v24  ;;  %v10147_v62 = vmul.f32 0.6931472, %v10078_v34  ;;  %v10150_v26 = vadd.f32 %v13050_v3, %v3858_v7  ;;  %v13052_v16 = vld [vmem:[#allocation24_spill] sm:$0xff]  ;;  %v13053_v47 = vld [vmem:[#allocation37_spill] sm:$0xff]  ;;  %v13058_v10 = vld [vmem:[#allocation131_spill] sm:$0xff] }
 0x332   : > { %13045 = vst [vmem:[#allocation175_spill] sm:$0xff] %v10139_v31  ;;  %13047 = vst [vmem:[#allocation177_spill] sm:$0xff] %v10142_v13  ;;  %v6328_v49 = vpop.eup %6327  ;;  %6349 = vlog2.f32 %v2586_v48  ;;  %v3030_v52 = vadd.f32 %v10110_v8, %v13052_v16  ;;  %v3481_v56 = vadd.f32 %v10104_v51, %v13053_v47  ;;  %v3482_v44 = vadd.f32 %v10110_v8, %v12918_v4 }
 0x333   : > { %13049 = vst [vmem:[#allocation52_spill] sm:$0xff] %v10147_v62  ;;  %13051 = vst [vmem:[#allocation178_spill] sm:$0xff] %v10150_v26  ;;  %v6330_v33 = vpop.eup %6329  ;;  %v1945_v45 = vmul.f32 0.6931472, %v6328_v49  ;;  %v3037_v61 = vmax.f32 %v3029_v54, 1e-20  ;;  %v10160_v7 = vadd.f32 %v10104_v51, %v12925_v42  ;;  %v10164_v48 = vadd.f32 %v10110_v8, %v12928_v32 }
 0x334   : > { %v6332_v24 = vpop.eup %6331  ;;  %v1947_v31 = vmul.f32 0.6931472, %v6330_v33  ;;  %v3038_v34 = vmax.f32 %v3030_v52, 1e-20  ;;  %v10166_v49 = vmul.f32 0.6931472, %v6324_v40 }
 0x335   : > { %v6334_v3 = vpop.eup %6333  ;;  %v13055_v54 = vld [vmem:[#allocation29_spill] sm:$0xff]  ;;  %v2404_v47 = vmul.f32 0.6931472, %v6332_v24  ;;  %6351 = vlog2.f32 %v3037_v61  ;;  %v10169_v4 = vmul.f32 0.6931472, %v6326_v15  ;;  %v13057_v33 = vld [vmem:[#allocation67_spill] sm:$0xff] }
 0x336   : > { %13054 = vst [vmem:[#allocation17_spill] sm:$0xff] %v10166_v49  ;;  %v1950_v16 = vadd.f32 %v13055_v54, %v1945_v45  ;;  %v6336_v62 = vpop.eup %6335  ;;  %v1959_v52 = vadd.f32 %v13057_v33, %v1947_v31  ;;  %v2406_v26 = vmul.f32 0.6931472, %v6334_v3  ;;  %6353 = vlog2.f32 %v3038_v34  ;;  %v13059_v49 = vld [vmem:[#allocation132_spill] sm:$0xff]  ;;  %v13061_v33 = vld [vmem:[#allocation134_spill] sm:$0xff] }
 0x337   : > { %13056 = vst [vmem:[#allocation179_spill] sm:$0xff] %v10169_v4  ;;  %v6338_v42 = vpop.eup %6337  ;;  %v2409_v1 = vadd.f32 %v13058_v10, %v2404_v47  ;;  %v2856_v32 = vmul.f32 0.6931472, %v6336_v62  ;;  %v3489_v38 = vmax.f32 %v3481_v56, 1e-20  ;;  %v13060_v4 = vld [vmem:[#allocation133_spill] sm:$0xff] }
 0x338   : > { %v1951_v13 = vrot.slane %v1950_v16, 4  ;;  %v6340_v28 = vpop.eup %6339  ;;  %v1960_v40 = vrot.slane %v1959_v52, 4  ;;  %v2418_v21 = vadd.f32 %v13059_v49, %v2406_v26  ;;  %v2858_v45 = vmul.f32 0.6931472, %v6338_v42  ;;  %v13062_v47 = vld [vmem:[#allocation135_spill] sm:$0xff]  ;;  %v13063_v42 = vld [vmem:[#allocation136_spill] sm:$0xff] }
 0x339   : > { %v3490_v24 = vmax.f32 %v3482_v44, 1e-20  ;;  %v6342_v61 = vpop.eup %6341  ;;  %v2410_v15 = vrot.slane %v2409_v1, 4  ;;  %v2861_v25 = vadd.f32 %v13060_v4, %v2856_v32  ;;  %v3308_v31 = vmul.f32 0.6931472, %v6340_v28 }
 0x33a   : > { %v1952_v54 = vadd.f32 %v1951_v13, %v1950_v16  ;;  %v1961_v3 = vadd.f32 %v1960_v40, %v1959_v52  ;;  %v2419_v34 = vrot.slane %v2418_v21, 4  ;;  %v2870_v30 = vadd.f32 %v13061_v33, %v2858_v45 }
 0x33b   : > { %v3310_v60 = vmul.f32 0.6931472, %v6342_v61  ;;  %v2411_v62 = vadd.f32 %v2410_v15, %v2409_v1  ;;  %v2862_v56 = vrot.slane %v2861_v25, 4  ;;  %v3313_v63 = vadd.f32 %v13062_v47, %v3308_v31 }
 0x33c   : > { %v1953_v10 = vrot.slane %v1952_v54, 2  ;;  %v6344_v55 = vpop.eup %6343  ;;  %v1962_v26 = vrot.slane %v1961_v3, 2  ;;  %v2420_v49 = vadd.f32 %v2419_v34, %v2418_v21  ;;  %v2871_v44 = vrot.slane %v2870_v30, 4 }
 0x33d   : > { %v3322_v13 = vadd.f32 %v13063_v42, %v3310_v60  ;;  %v6346_v16 = vpop.eup %6345  ;;  %v2412_v28 = vrot.slane %v2411_v62, 2  ;;  %v2863_v4 = vadd.f32 %v2862_v56, %v2861_v25  ;;  %v3314_v52 = vrot.slane %v3313_v63, 4 }
 0x33e   : > { %v10178_v39 = vadd.f32 %v1953_v10, %v1952_v54  ;;  %v6348_v32 = vpop.eup %6347  ;;  %v10180_v40 = vadd.f32 %v1962_v26, %v1961_v3  ;;  %v2421_v45 = vrot.slane %v2420_v49, 2  ;;  %v2872_v1 = vadd.f32 %v2871_v44, %v2870_v30 }
 0x33f   : > { %v3323_v61 = vrot.slane %v3322_v13, 4  ;;  %v6350_v15 = vpop.eup %6349  ;;  %v10182_v31 = vadd.f32 %v2412_v28, %v2411_v62  ;;  %v2864_v33 = vrot.slane %v2863_v4, 2  ;;  %v10184_v21 = vadd.f32 %v3314_v52, %v3313_v63 }
 0x340   : > { %13064 = vst [vmem:[#allocation180_spill] sm:$0xff] %v10178_v39  ;;  %13065 = vst [vmem:[#allocation181_spill] sm:$0xff] %v10180_v40  ;;  %6355 = vlog2.f32 %v3489_v38  ;;  %v10186_v60 = vadd.f32 %v2421_v45, %v2420_v49  ;;  %v2873_v54 = vrot.slane %v2872_v1, 2  ;;  %v10199_v47 = vmul.f32 0.6931472, %v6344_v55 }
 0x341   : > { %13066 = vst [vmem:[#allocation58_spill] sm:$0xff] %v10182_v31  ;;  %13067 = vst [vmem:[#allocation182_spill] sm:$0xff] %v10184_v21  ;;  %v10188_v34 = vadd.f32 %v3323_v61, %v3322_v13  ;;  %6357 = vlog2.f32 %v3490_v24  ;;  %v10193_v10 = vadd.f32 %v2864_v33, %v2863_v4  ;;  %v10202_v49 = vmul.f32 0.6931472, %v6346_v16  ;;  %v1685_v61 = vpop.permute.xlu0 %1684  ;;  %v13105_v31 = vld [vmem:[#allocation64_spill] sm:$0xff] }
 0x342   : > { %13068 = vst [vmem:[#allocation24_spill] sm:$0xff] %v10186_v60  ;;  %v6352_v62 = vpop.eup %6351  ;;  %v10196_v63 = vadd.f32 %v2873_v54, %v2872_v1  ;;  %v10204_v44 = vmul.f32 0.6931472, %v6348_v32  ;;  %v4385_v42 = vadd.f32 %v10104_v51, %v12935_v17  ;;  %v10208_v13 = vmul.f32 0.6931472, %v6350_v15  ;;  %v13072_v32 = vld [vmem:[#allocation176_spill] sm:$0xff] }
 0x343   : > { %13069 = vst [vmem:[#allocation37_spill] sm:$0xff] %v10188_v34  ;;  %13070 = vst [vmem:[#allocation29_spill] sm:$0xff] %v10193_v10  ;;  %v6354_v26 = vpop.eup %6353  ;;  %v3941_v28 = vmax.f32 %v10160_v7, 1e-20  ;;  %v3942_v4 = vmax.f32 %v10164_v48, 1e-20  ;;  %v4386_v55 = vadd.f32 %v10110_v8, %v12938_v18  ;;  %v4837_v16 = vadd.f32 %v10104_v51, %v9530_v12  ;;  %v1419_v48 = vpop.permute.xlu1 %1418 }
 0x344   : > { %13071 = vst [vmem:[#allocation67_spill] sm:$0xff] %v10196_v63  ;;  %v10214_v52 = vmul.f32 0.6931472, %v6352_v62  ;;  %v4393_v45 = vmax.f32 %v4385_v42, 1e-20  ;;  %v4838_v1 = vadd.f32 %v10110_v8, %v13072_v32  ;;  %v5289_v7 = vadd.f32 %v10104_v51, %v9858_v43  ;;  %v13074_v32 = vld [vmem:[#allocation93_spill] sm:$0xff] }
 0x345   : > { %v10220_v17 = vmul.f32 0.6931472, %v6354_v26  ;;  %6359 = vlog2.f32 %v3941_v28  ;;  %v4394_v15 = vmax.f32 %v4386_v55, 1e-20  ;;  %v4845_v18 = vmax.f32 %v4837_v16, 1e-20 }
 0x346   : > { %6361 = vlog2.f32 %v3942_v4  ;;  %v4846_v33 = vmax.f32 %v4838_v1, 1e-20  ;;  %v5290_v54 = vadd.f32 %v10110_v8, %v9864_v29  ;;  %v5297_v12 = vmax.f32 %v5289_v7, 1e-20  ;;  %v13073_v28 = vld [vmem:[#allocation92_spill] sm:$0xff]  ;;  %v13076_v16 = vld [vmem:[#allocation13_spill] sm:$0xff] }
 0x347   : > { %6363 = vlog2.f32 %v4393_v45  ;;  %v1758_v62 = vmul.f32 %v12980_v50, %v1685_v61  ;;  %v1759_v42 = vmul.f32 %v12982_v0, %v1685_v61  ;;  %v10229_v55 = vmul.f32 %v13073_v28, %v1419_v48  ;;  %v13075_v51 = vld [vmem:[#allocation44_spill] sm:$0xff]  ;;  %v13077_v29 = vld [vmem:[#allocation18_spill] sm:$0xff]  ;;  %v13078_v45 = vld [vmem:[#allocation55_spill] sm:$0xff] }
 0x348   : > { %6365 = vlog2.f32 %v4394_v15  ;;  %v5298_v26 = vmax.f32 %v5290_v54, 1e-20  ;;  %v10232_v43 = vmul.f32 %v13074_v32, %v1419_v48  ;;  %v13079_v7 = vld [vmem:[#allocation60_spill] sm:$0xff]  ;;  %v13080_v61 = vld [vmem:[#allocation25_spill] sm:$0xff] }
 0x349   : > { %6367 = vlog2.f32 %v4845_v18  ;;  %v2116_v4 = vadd.f32 %v1758_v62, %v13075_v51  ;;  %v2117_v1 = vadd.f32 %v1759_v42, %v13076_v16  ;;  %v2575_v8 = vadd.f32 %v1758_v62, %v13077_v29  ;;  %v13081_v16 = vld [vmem:[#allocation30_spill] sm:$0xff]  ;;  %v13085_v34 = vld [vmem:[#allocation69_spill] sm:$0xff] }
 0x34a   : > { %6369 = vlog2.f32 %v4846_v33  ;;  %v2576_v50 = vadd.f32 %v1759_v42, %v13078_v45  ;;  %v3027_v0 = vadd.f32 %v1758_v62, %v13079_v7  ;;  %v3028_v15 = vadd.f32 %v1759_v42, %v13080_v61  ;;  %v13082_v33 = vld [vmem:[#allocation42_spill] sm:$0xff]  ;;  %v13083_v45 = vld [vmem:[#allocation81_spill] sm:$0xff] }
 0x34b   : > { %6371 = vlog2.f32 %v5297_v12  ;;  %v2124_v24 = vmax.f32 %v2116_v4, 1e-20  ;;  %v2125_v38 = vmax.f32 %v2117_v1, 1e-20  ;;  %v2583_v48 = vmax.f32 %v2575_v8, 1e-20 }
 0x34c   : > { %6373 = vlog2.f32 %v5298_v26  ;;  %v2584_v18 = vmax.f32 %v2576_v50, 1e-20  ;;  %v3035_v51 = vmax.f32 %v3027_v0, 1e-20  ;;  %v3036_v30 = vmax.f32 %v3028_v15, 1e-20 }
 0x34d   : > { %v6356_v54 = vpop.eup %6355  ;;  %6375 = vlog2.f32 %v2124_v24  ;;  %v3479_v29 = vadd.f32 %v1758_v62, %v13081_v16  ;;  %v3480_v3 = vadd.f32 %v1759_v42, %v13082_v33  ;;  %v3931_v25 = vadd.f32 %v1758_v62, %v13083_v45  ;;  %v13084_v7 = vld [vmem:[#allocation82_spill] sm:$0xff]  ;;  %v13087_v16 = vld [vmem:[#allocation84_spill] sm:$0xff] }
 0x34e   : > { %v6358_v56 = vpop.eup %6357  ;;  %6377 = vlog2.f32 %v2125_v38  ;;  %v3932_v61 = vadd.f32 %v1759_v42, %v13084_v7  ;;  %v4383_v12 = vadd.f32 %v1758_v62, %v13085_v34  ;;  %v13086_v4 = vld [vmem:[#allocation38_spill] sm:$0xff]  ;;  %v10246_v8 = vmul.f32 0.6931472, %v6356_v54  ;;  %v13088_v38 = vld [vmem:[#allocation85_spill] sm:$0xff] }
 0x34f   : > { %v4384_v1 = vadd.f32 %v1759_v42, %v13086_v4  ;;  %v10248_v26 = vmul.f32 0.6931472, %v6358_v56  ;;  %6379 = vlog2.f32 %v2583_v48  ;;  %v3487_v50 = vmax.f32 %v3479_v29, 1e-20  ;;  %v13089_v56 = vld [vmem:[#allocation36_spill] sm:$0xff]  ;;  %v13090_v48 = vld [vmem:[#allocation7_spill] sm:$0xff] }
 0x350   : > { %6381 = vlog2.f32 %v2584_v18  ;;  %v3488_v24 = vmax.f32 %v3480_v3, 1e-20  ;;  %v3939_v0 = vmax.f32 %v3931_v25, 1e-20  ;;  %v3940_v15 = vmax.f32 %v3932_v61, 1e-20 }
 0x351   : > { %6383 = vlog2.f32 %v3035_v51  ;;  %v4835_v33 = vadd.f32 %v1758_v62, %v13087_v16  ;;  %v4836_v45 = vadd.f32 %v1759_v42, %v13088_v38  ;;  %v5287_v7 = vadd.f32 %v1758_v62, %v9939_v57 }
 0x352   : > { %v6360_v34 = vpop.eup %6359  ;;  %6385 = vlog2.f32 %v3036_v30  ;;  %v5288_v54 = vadd.f32 %v1759_v42, %v9944_v59  ;;  %v4489_v4 = vadd.f32 %v13089_v56, %v10229_v55  ;;  %v4490_v18 = vadd.f32 %v13090_v48, %v10232_v43 }
 0x353   : > { %v6362_v3 = vpop.eup %6361  ;;  %v10258_v25 = vmul.f32 0.6931472, %v6360_v34  ;;  %6387 = vlog2.f32 %v3487_v50  ;;  %v4391_v51 = vmax.f32 %v4383_v12, 1e-20  ;;  %v4392_v29 = vmax.f32 %v4384_v1, 1e-20 }
 0x354   : > { %v6364_v61 = vpop.eup %6363  ;;  %v10260_v16 = vmul.f32 0.6931472, %v6362_v3  ;;  %6389 = vlog2.f32 %v3488_v24  ;;  %v4843_v57 = vmax.f32 %v4835_v33, 1e-20  ;;  %v4844_v30 = vmax.f32 %v4836_v45, 1e-20 }
 0x355   : > { %13091 = vst [vmem:[#allocation131_spill] sm:$0xff] %v10258_v25  ;;  %v6366_v62 = vpop.eup %6365  ;;  %v10262_v59 = vmul.f32 0.6931472, %v6364_v61  ;;  %6391 = vlog2.f32 %v3939_v0  ;;  %v5295_v42 = vmax.f32 %v5287_v7, 1e-20  ;;  %v13095_v50 = vld [vmem:[#allocation40_spill] sm:$0xff]  ;;  %v4689_v40 = vadd.f32 %v13105_v31, %v10229_v55 }
 0x356   : > { %13092 = vst [vmem:[#allocation132_spill] sm:$0xff] %v10260_v16  ;;  %v5296_v38 = vmax.f32 %v5288_v54, 1e-20  ;;  %v10264_v21 = vpop.eup %6367  ;;  %6393 = vlog2.f32 %v3940_v15  ;;  %v4497_v34 = vmax.f32 %v4489_v4, 1e-20  ;;  %v4539_v12 = vadd.f32 %v13095_v50, %v10229_v55  ;;  %v13096_v1 = vld [vmem:[#allocation9_spill] sm:$0xff] }
 0x357   : > { %13093 = vst [vmem:[#allocation133_spill] sm:$0xff] %v10262_v59  ;;  %13094 = vst [vmem:[#allocation134_spill] sm:$0xff] %v10264_v21  ;;  %v4540_v3 = vadd.f32 %v13096_v1, %v10232_v43  ;;  %v10270_v16 = vpop.eup %6369  ;;  %6395 = vlog2.f32 %v4391_v51  ;;  %v13098_v24 = vld [vmem:[#allocation45_spill] sm:$0xff]  ;;  %v13099_v0 = vld [vmem:[#allocation46_spill] sm:$0xff]  ;;  %v10280_v4 = vmul.f32 0.6931472, %v6366_v62 }
 0x358   : > { %13097 = vst [vmem:[#allocation135_spill] sm:$0xff] %v10270_v16  ;;  %v4589_v33 = vadd.f32 %v13098_v24, %v10229_v55  ;;  %v4590_v45 = vadd.f32 %v13099_v0, %v10232_v43  ;;  %v13100_v7 = vld [vmem:[#allocation20_spill] sm:$0xff]  ;;  %v10278_v15 = vpop.eup %6371  ;;  %6397 = vlog2.f32 %v4392_v29  ;;  %v4498_v61 = vmax.f32 %v4490_v18, 1e-20  ;;  %v13103_v21 = vld [vmem:[#allocation21_spill] sm:$0xff]  ;;  %v13106_v62 = vld [vmem:[#allocation66_spill] sm:$0xff] }
 0x359   : > { %v4639_v54 = vadd.f32 %v13100_v7, %v10229_v55  ;;  %13101 = vst [vmem:[#allocation136_spill] sm:$0xff] %v10278_v15  ;;  %13102 = vst [vmem:[#allocation176_spill] sm:$0xff] %v10280_v4  ;;  %v4640_v59 = vadd.f32 %v13103_v21, %v10232_v43  ;;  %v10284_v16 = vpop.eup %6373  ;;  %6399 = vlog2.f32 %v4843_v57  ;;  %v4547_v51 = vmax.f32 %v4539_v12, 1e-20 }
 0x35a   : > { %13104 = vst [vmem:[#allocation92_spill] sm:$0xff] %v10284_v16  ;;  %v4548_v25 = vmax.f32 %v4540_v3, 1e-20  ;;  %v4597_v63 = vmax.f32 %v4589_v33, 1e-20  ;;  %v6376_v10 = vpop.eup %6375  ;;  %6401 = vlog2.f32 %v4844_v30  ;;  %v4690_v15 = vadd.f32 %v13106_v62, %v10232_v43 }
 0x35b   : > { %v4598_v60 = vmax.f32 %v4590_v45, 1e-20  ;;  %v6378_v29 = vpop.eup %6377  ;;  %v2133_v18 = vmul.f32 0.6931472, %v6376_v10  ;;  %6403 = vlog2.f32 %v5295_v42  ;;  %v4739_v4 = vadd.f32 %v9995_v20, %v10229_v55  ;;  %v1384_v45 = vpop.permute.xlu0 %1383 }
 0x35c   : > { %v10294_v57 = vadd.f32 %v9998_v27, %v10232_v43  ;;  %v6380_v12 = vpop.eup %6379  ;;  %v2135_v3 = vmul.f32 0.6931472, %v6378_v29  ;;  %6405 = vlog2.f32 %v5296_v38  ;;  %v4647_v30 = vmax.f32 %v4639_v54, 1e-20  ;;  %v13110_v54 = vld [vmem:[#allocation26_spill] sm:$0xff] }
 0x35d   : > { %v4648_v33 = vmax.f32 %v4640_v59, 1e-20  ;;  %v6382_v16 = vpop.eup %6381  ;;  %v10297_v39 = vadd.f32 %v10199_v47, %v2133_v18  ;;  %v2592_v62 = vmul.f32 0.6931472, %v6380_v12  ;;  %6407 = vlog2.f32 %v4497_v34 }
 0x35e   : > { %v4697_v10 = vmax.f32 %v4689_v40, 1e-20  ;;  %v6384_v42 = vpop.eup %6383  ;;  %v10300_v20 = vadd.f32 %v10202_v49, %v2135_v3  ;;  %v2594_v31 = vmul.f32 0.6931472, %v6382_v16  ;;  %6409 = vlog2.f32 %v4498_v61  ;;  %v13113_v49 = vld [vmem:[#allocation62_spill] sm:$0xff] }
 0x35f   : > { %13107 = vst [vmem:[#allocation93_spill] sm:$0xff] %v10297_v39  ;;  %v4698_v27 = vmax.f32 %v4690_v15, 1e-20  ;;  %v6386_v21 = vpop.eup %6385  ;;  %v10303_v38 = vadd.f32 %v10204_v44, %v2592_v62  ;;  %v3044_v59 = vmul.f32 0.6931472, %v6384_v42  ;;  %6411 = vlog2.f32 %v4547_v51  ;;  %v13116_v61 = vld [vmem:[#allocation6_spill] sm:$0xff] }
 0x360   : > { %13108 = vst [vmem:[#allocation44_spill] sm:$0xff] %v10300_v20  ;;  %v10306_v29 = vmul.f32 %v13110_v54, %v1384_v45  ;;  %v6388_v47 = vpop.eup %6387  ;;  %v10309_v34 = vadd.f32 %v10208_v13, %v2594_v31  ;;  %v3046_v40 = vmul.f32 0.6931472, %v6386_v21  ;;  %6413 = vlog2.f32 %v4548_v25  ;;  %v13118_v21 = vld [vmem:[#allocation35_spill] sm:$0xff] }
 0x361   : > { %13109 = vst [vmem:[#allocation13_spill] sm:$0xff] %v10303_v38  ;;  %v10312_v18 = vmul.f32 %v13113_v49, %v1384_v45  ;;  %v6390_v16 = vpop.eup %6389  ;;  %v10315_v15 = vadd.f32 %v10214_v52, %v3044_v59  ;;  %v3496_v44 = vmul.f32 0.6931472, %v6388_v47  ;;  %6415 = vlog2.f32 %v4597_v63 }
 0x362   : > { %13111 = vst [vmem:[#allocation18_spill] sm:$0xff] %v10306_v29  ;;  %13112 = vst [vmem:[#allocation55_spill] sm:$0xff] %v10309_v34  ;;  %v3587_v51 = vadd.f32 %v13116_v61, %v10306_v29  ;;  %v6392_v62 = vpop.eup %6391  ;;  %v10320_v12 = vadd.f32 %v10220_v17, %v3046_v40  ;;  %v3498_v31 = vmul.f32 0.6931472, %v6390_v16  ;;  %6417 = vlog2.f32 %v4598_v60  ;;  %v13123_v40 = vld [vmem:[#allocation8_spill] sm:$0xff] }
 0x363   : > { %13114 = vst [vmem:[#allocation60_spill] sm:$0xff] %v10312_v18  ;;  %13115 = vst [vmem:[#allocation25_spill] sm:$0xff] %v10315_v15  ;;  %v3588_v13 = vadd.f32 %v13118_v21, %v10312_v18  ;;  %v6394_v25 = vpop.eup %6393  ;;  %v10325_v3 = vadd.f32 %v10246_v8, %v3496_v44  ;;  %6419 = vlog2.f32 %v4647_v30  ;;  %v4747_v52 = vmax.f32 %v4739_v4, 1e-20  ;;  %v13124_v30 = vld [vmem:[#allocation39_spill] sm:$0xff]  ;;  %v13137_v15 = vld [vmem:[#allocation188_spill] sm:$0xff] }
 0x364   : > { %13117 = vst [vmem:[#allocation30_spill] sm:$0xff] %v10320_v12  ;;  %v4748_v63 = vmax.f32 %v10294_v57, 1e-20  ;;  %v6396_v45 = vpop.eup %6395  ;;  %v10329_v42 = vadd.f32 %v10248_v26, %v3498_v31  ;;  %v10331_v59 = vmul.f32 0.6931472, %v6392_v62  ;;  %6421 = vlog2.f32 %v4648_v33  ;;  %v13126_v26 = vld [vmem:[#allocation118_spill] sm:$0xff]  ;;  %v1675_v62 = vpop.permute.xlu1 %1674 }
 0x365   : > { %13119 = vst [vmem:[#allocation42_spill] sm:$0xff] %v10325_v3  ;;  %v3595_v17 = vmax.f32 %v3587_v51, 1e-20  ;;  %v6398_v60 = vpop.eup %6397  ;;  %v10333_v47 = vmul.f32 0.6931472, %v6394_v25  ;;  %6423 = vlog2.f32 %v4697_v10  ;;  %v3637_v8 = vadd.f32 %v13123_v40, %v10306_v29  ;;  %v13127_v33 = vld [vmem:[#allocation12_spill] sm:$0xff] }
 0x366   : > { %13120 = vst [vmem:[#allocation81_spill] sm:$0xff] %v10329_v42  ;;  %13121 = vst [vmem:[#allocation82_spill] sm:$0xff] %v10331_v59  ;;  %v3638_v4 = vadd.f32 %v13124_v30, %v10312_v18  ;;  %v10339_v16 = vpop.eup %6399  ;;  %6425 = vlog2.f32 %v4698_v27  ;;  %v3596_v57 = vmax.f32 %v3588_v13, 1e-20  ;;  %v3687_v44 = vadd.f32 %v13126_v26, %v10306_v29 }
 0x367   : > { %13122 = vst [vmem:[#allocation69_spill] sm:$0xff] %v10333_v47  ;;  %13125 = vst [vmem:[#allocation38_spill] sm:$0xff] %v10339_v16  ;;  %v3688_v51 = vadd.f32 %v13127_v33, %v10312_v18  ;;  %v10345_v31 = vpop.eup %6401  ;;  %v10347_v10 = vmul.f32 0.6931472, %v6396_v45  ;;  %6427 = vlog2.f32 %v4747_v52  ;;  %v3645_v25 = vmax.f32 %v3637_v8, 1e-20 }
 0x368   : > { %13128 = vst [vmem:[#allocation84_spill] sm:$0xff] %v10345_v31  ;;  %v3737_v47 = vadd.f32 %v10005_v46, %v10306_v29  ;;  %v10351_v59 = vpop.eup %6403  ;;  %v10353_v27 = vmul.f32 0.6931472, %v6398_v60  ;;  %6429 = vlog2.f32 %v4748_v63  ;;  %v3646_v13 = vmax.f32 %v3638_v4, 1e-20 }
 0x369   : > { %13129 = vst [vmem:[#allocation85_spill] sm:$0xff] %v10347_v10  ;;  %13130 = vst [vmem:[#allocation36_spill] sm:$0xff] %v10351_v59  ;;  %v3738_v16 = vadd.f32 %v10014_v37, %v10312_v18  ;;  %v10357_v42 = vpop.eup %6405  ;;  %6431 = vlog2.f32 %v3595_v17  ;;  %v3695_v31 = vmax.f32 %v3687_v44, 1e-20  ;;  %v10360_v45 = vmul.f32 %v13073_v28, %v1675_v62 }
 0x36a   : > { %13131 = vst [vmem:[#allocation7_spill] sm:$0xff] %v10353_v27  ;;  %13132 = vst [vmem:[#allocation40_spill] sm:$0xff] %v10357_v42  ;;  %v10363_v52 = vmul.f32 %v13074_v32, %v1675_v62  ;;  %v6408_v8 = vpop.eup %6407  ;;  %6433 = vlog2.f32 %v3596_v57  ;;  %v3696_v59 = vmax.f32 %v3688_v51, 1e-20  ;;  %v3745_v60 = vmax.f32 %v3737_v47, 1e-20 }
 0x36b   : > { %v3746_v27 = vmax.f32 %v3738_v16, 1e-20  ;;  %v6410_v63 = vpop.eup %6409  ;;  %v4510_v4 = vmul.f32 0.6931472, %v6408_v8  ;;  %6435 = vlog2.f32 %v3645_v25  ;;  %v2070_v10 = vadd.f32 %v10360_v45, %v12875_v19  ;;  %v13133_v16 = vld [vmem:[#allocation186_spill] sm:$0xff]  ;;  %v13135_v42 = vld [vmem:[#allocation187_spill] sm:$0xff] }
 0x36c   : > { %v2071_v17 = vadd.f32 %v10363_v52, %v12876_v35  ;;  %v6412_v44 = vpop.eup %6411  ;;  %v4512_v28 = vmul.f32 0.6931472, %v6410_v63  ;;  %6437 = vlog2.f32 %v3646_v13  ;;  %v2529_v32 = vadd.f32 %v10360_v45, %v12877_v22 }
 0x36d   : > { %v2530_v57 = vadd.f32 %v10363_v52, %v12878_v9  ;;  %v6414_v47 = vpop.eup %6413  ;;  %v10374_v51 = vadd.f32 %v13133_v16, %v4510_v4  ;;  %v4560_v62 = vmul.f32 0.6931472, %v6412_v44  ;;  %6439 = vlog2.f32 %v3695_v31  ;;  %v13139_v4 = vld [vmem:[#allocation189_spill] sm:$0xff]  ;;  %v1640_v44 = vpop.permute.xlu0 %1639 }
 0x36e   : > { %v2078_v25 = vmax.f32 %v2070_v10, 1e-20  ;;  %v6416_v8 = vpop.eup %6415  ;;  %v10377_v3 = vadd.f32 %v13135_v42, %v4512_v28  ;;  %v4562_v12 = vmul.f32 0.6931472, %v6414_v47  ;;  %6441 = vlog2.f32 %v3696_v59  ;;  %v13141_v28 = vld [vmem:[#allocation190_spill] sm:$0xff] }
 0x36f   : > { %13134 = vst [vmem:[#allocation9_spill] sm:$0xff] %v10374_v51  ;;  %v2079_v13 = vmax.f32 %v2071_v17, 1e-20  ;;  %v6418_v63 = vpop.eup %6417  ;;  %v10380_v34 = vadd.f32 %v13137_v15, %v4560_v62  ;;  %v4610_v38 = vmul.f32 0.6931472, %v6416_v8  ;;  %6443 = vlog2.f32 %v3745_v60  ;;  %v13143_v60 = vld [vmem:[#allocation191_spill] sm:$0xff] }
 0x370   : > { %13136 = vst [vmem:[#allocation45_spill] sm:$0xff] %v10377_v3  ;;  %v2537_v20 = vmax.f32 %v2529_v32, 1e-20  ;;  %v6420_v39 = vpop.eup %6419  ;;  %v10383_v16 = vadd.f32 %v13139_v4, %v4562_v12  ;;  %v4612_v31 = vmul.f32 0.6931472, %v6418_v63  ;;  %6445 = vlog2.f32 %v3746_v27  ;;  %v13147_v63 = vld [vmem:[#allocation193_spill] sm:$0xff] }
 0x371   : > { %13138 = vst [vmem:[#allocation46_spill] sm:$0xff] %v10380_v34  ;;  %v2538_v10 = vmax.f32 %v2530_v57, 1e-20  ;;  %v6422_v42 = vpop.eup %6421  ;;  %v10386_v47 = vadd.f32 %v13141_v28, %v4610_v38  ;;  %v4660_v59 = vmul.f32 0.6931472, %v6420_v39  ;;  %6447 = vlog2.f32 %v2078_v25  ;;  %v13145_v57 = vld [vmem:[#allocation192_spill] sm:$0xff] }
 0x372   : > { %13140 = vst [vmem:[#allocation20_spill] sm:$0xff] %v10383_v16  ;;  %v2981_v15 = vadd.f32 %v10360_v45, %v12883_v11  ;;  %v6424_v17 = vpop.eup %6423  ;;  %v10391_v32 = vadd.f32 %v13143_v60, %v4612_v31  ;;  %v4662_v62 = vmul.f32 0.6931472, %v6422_v42  ;;  %6449 = vlog2.f32 %v2079_v13  ;;  %v13157_v34 = vld [vmem:[#allocation117_spill] sm:$0xff] }
 0x373   : > { %13142 = vst [vmem:[#allocation26_spill] sm:$0xff] %v10386_v47  ;;  %v2982_v12 = vadd.f32 %v10363_v52, %v12884_v5  ;;  %v6426_v27 = vpop.eup %6425  ;;  %v10396_v8 = vadd.f32 %v13145_v57, %v4660_v59  ;;  %6451 = vlog2.f32 %v2537_v20  ;;  %v10399_v39 = vmul.f32 %v13110_v54, %v1640_v44  ;;  %v13150_v59 = vld [vmem:[#allocation74_spill] sm:$0xff]  ;;  %v13155_v47 = vld [vmem:[#allocation116_spill] sm:$0xff]  ;;  %v13162_v11 = vld [vmem:[#allocation137_spill] sm:$0xff] }
 0x374   : > { %13144 = vst [vmem:[#allocation62_spill] sm:$0xff] %v10391_v32  ;;  %v2989_v38 = vmax.f32 %v2981_v15, 1e-20  ;;  %v6428_v25 = vpop.eup %6427  ;;  %v10402_v4 = vadd.f32 %v13147_v63, %v4662_v62  ;;  %6453 = vlog2.f32 %v2538_v10  ;;  %v10405_v13 = vmul.f32 %v13113_v49, %v1640_v44  ;;  %v13152_v62 = vld [vmem:[#allocation88_spill] sm:$0xff] }
 0x375   : > { %13146 = vst [vmem:[#allocation8_spill] sm:$0xff] %v10396_v8  ;;  %v2990_v31 = vmax.f32 %v2982_v12, 1e-20  ;;  %v6430_v42 = vpop.eup %6429  ;;  %v10407_v28 = vmul.f32 0.6931472, %v6424_v17  ;;  %v3433_v20 = vadd.f32 %v10360_v45, %v12885_v23  ;;  %v3434_v54 = vadd.f32 %v10363_v52, %v13150_v59  ;;  %v13153_v12 = vld [vmem:[#allocation89_spill] sm:$0xff] }
 0x376   : > { %13148 = vst [vmem:[#allocation39_spill] sm:$0xff] %v10402_v4  ;;  %6455 = vlog2.f32 %v2989_v38  ;;  %v6432_v15 = vpop.eup %6431  ;;  %v10413_v60 = vmul.f32 0.6931472, %v6426_v27  ;;  %v3885_v10 = vadd.f32 %v10360_v45, %v13152_v62  ;;  %v3886_v49 = vadd.f32 %v10363_v52, %v13153_v12  ;;  %v13161_v59 = vld [vmem:[#allocation130_spill] sm:$0xff] }
 0x377   : > { %13149 = vst [vmem:[#allocation118_spill] sm:$0xff] %v10407_v28  ;;  %6457 = vlog2.f32 %v2990_v31  ;;  %v6434_v44 = vpop.eup %6433  ;;  %v3610_v17 = vmul.f32 0.6931472, %v6432_v15  ;;  %v3441_v57 = vmax.f32 %v3433_v20, 1e-20  ;;  %v10421_v63 = vadd.f32 %v10360_v45, %v9675_v14 }
 0x378   : > { %13151 = vst [vmem:[#allocation12_spill] sm:$0xff] %v10413_v60  ;;  %v3442_v38 = vmax.f32 %v3434_v54, 1e-20  ;;  %v6436_v28 = vpop.eup %6435  ;;  %v3612_v4 = vmul.f32 0.6931472, %v6434_v44  ;;  %v10425_v31 = vadd.f32 %v10363_v52, %v9688_v58  ;;  %v13158_v44 = vld [vmem:[#allocation119_spill] sm:$0xff] }
 0x379   : > { %v3893_v8 = vmax.f32 %v3885_v10, 1e-20  ;;  %v3894_v27 = vmax.f32 %v3886_v49, 1e-20  ;;  %v6438_v60 = vpop.eup %6437  ;;  %v10427_v32 = vmul.f32 0.6931472, %v6428_v25  ;;  %v3615_v16 = vadd.f32 %v13155_v47, %v3610_v17 }
 0x37a   : > { %v3660_v15 = vmul.f32 0.6931472, %v6436_v28  ;;  %6459 = vlog2.f32 %v3441_v57  ;;  %v6440_v20 = vpop.eup %6439  ;;  %v10430_v54 = vmul.f32 0.6931472, %v6430_v42  ;;  %v3624_v3 = vadd.f32 %v13157_v34, %v3612_v4  ;;  %v13160_v57 = vld [vmem:[#allocation129_spill] sm:$0xff] }
 0x37b   : > { %13154 = vst [vmem:[#allocation186_spill] sm:$0xff] %v10427_v32  ;;  %v3662_v51 = vmul.f32 0.6931472, %v6438_v60  ;;  %6461 = vlog2.f32 %v3442_v38  ;;  %v6442_v10 = vpop.eup %6441  ;;  %v3616_v49 = vrot.slane %v3615_v16, 4  ;;  %v3710_v58 = vmul.f32 0.6931472, %v6440_v20 }
 0x37c   : > { %13156 = vst [vmem:[#allocation187_spill] sm:$0xff] %v10430_v54  ;;  %v3665_v14 = vadd.f32 %v13158_v44, %v3660_v15  ;;  %6463 = vlog2.f32 %v3893_v8  ;;  %v6444_v12 = vpop.eup %6443  ;;  %v3625_v25 = vrot.slane %v3624_v3, 4  ;;  %v13159_v32 = vld [vmem:[#allocation120_spill] sm:$0xff]  ;;  %v3712_v47 = vmul.f32 0.6931472, %v6442_v10 }
 0x37d   : > { %v3674_v62 = vadd.f32 %v13159_v32, %v3662_v51  ;;  %6465 = vlog2.f32 %v3894_v27  ;;  %v6446_v28 = vpop.eup %6445  ;;  %v3617_v17 = vadd.f32 %v3616_v49, %v3615_v16  ;;  %v3715_v54 = vadd.f32 %v13160_v57, %v3710_v58  ;;  %v13164_v49 = vld [vmem:[#allocation138_spill] sm:$0xff] }
 0x37e   : > { %v3666_v42 = vrot.slane %v3665_v14, 4  ;;  %v3760_v34 = vmul.f32 0.6931472, %v6444_v12  ;;  %v6448_v4 = vpop.eup %6447  ;;  %v3626_v60 = vadd.f32 %v3625_v25, %v3624_v3  ;;  %v3724_v23 = vadd.f32 %v13161_v59, %v3712_v47 }
 0x37f   : > { %v3675_v38 = vrot.slane %v3674_v62, 4  ;;  %v3762_v15 = vmul.f32 0.6931472, %v6446_v28  ;;  %v6450_v20 = vpop.eup %6449  ;;  %v3618_v8 = vrot.slane %v3617_v17, 2  ;;  %v3716_v5 = vrot.slane %v3715_v54, 4 }
 0x380   : > { %v3667_v44 = vadd.f32 %v3666_v42, %v3665_v14  ;;  %v10438_v51 = vadd.f32 %v13162_v11, %v3760_v34  ;;  %v6452_v32 = vpop.eup %6451  ;;  %v3627_v27 = vrot.slane %v3626_v60, 2  ;;  %v3725_v10 = vrot.slane %v3724_v23, 4 }
 0x381   : > { %v3676_v16 = vadd.f32 %v3675_v38, %v3674_v62  ;;  %v10441_v58 = vadd.f32 %v13164_v49, %v3762_v15  ;;  %v6454_v12 = vpop.eup %6453  ;;  %v10443_v25 = vadd.f32 %v3716_v5, %v3715_v54  ;;  %v4345_v59 = vmax.f32 %v10421_v63, 1e-20  ;;  %v13188_v38 = vld [vmem:[#allocation63_spill] sm:$0xff] }
 0x382   : > { %13163 = vst [vmem:[#allocation188_spill] sm:$0xff] %v10438_v51  ;;  %v3668_v3 = vrot.slane %v3667_v44, 2  ;;  %v4346_v47 = vmax.f32 %v10425_v31, 1e-20  ;;  %v10447_v28 = vadd.f32 %v3618_v8, %v3617_v17  ;;  %v10449_v11 = vadd.f32 %v3627_v27, %v3626_v60  ;;  %v13171_v17 = vld [vmem:[#allocation141_spill] sm:$0xff]  ;;  %v13173_v60 = vld [vmem:[#allocation154_spill] sm:$0xff] }
 0x383   : > { %13165 = vst [vmem:[#allocation189_spill] sm:$0xff] %v10441_v58  ;;  %13166 = vst [vmem:[#allocation190_spill] sm:$0xff] %v10443_v25  ;;  %v6456_v14 = vpop.eup %6455  ;;  %v3677_v42 = vrot.slane %v3676_v16, 2  ;;  %v10452_v34 = vadd.f32 %v3725_v10, %v3724_v23  ;;  %v2091_v15 = vmul.f32 0.6931472, %v6448_v4  ;;  %v13175_v10 = vld [vmem:[#allocation155_spill] sm:$0xff]  ;;  %6467 = vlog2.f32 %v4345_v59 }
 0x384   : > { %13167 = vst [vmem:[#allocation191_spill] sm:$0xff] %v10447_v28  ;;  %13168 = vst [vmem:[#allocation192_spill] sm:$0xff] %v10449_v11  ;;  %v6458_v57 = vpop.eup %6457  ;;  %v2093_v5 = vmul.f32 0.6931472, %v6450_v20  ;;  %v10455_v54 = vadd.f32 %v3668_v3, %v3667_v44  ;;  %v2550_v31 = vmul.f32 0.6931472, %v6452_v32  ;;  %v4789_v44 = vadd.f32 %v10360_v45, %v10229_v55 }
 0x385   : > { %13169 = vst [vmem:[#allocation193_spill] sm:$0xff] %v10452_v34  ;;  %v2552_v49 = vmul.f32 0.6931472, %v6454_v12  ;;  %v10459_v8 = vadd.f32 %v13171_v17, %v2091_v15  ;;  %v3002_v62 = vmul.f32 0.6931472, %v6456_v14  ;;  %v13177_v4 = vld [vmem:[#allocation156_spill] sm:$0xff]  ;;  %v10472_v12 = vadd.f32 %v3677_v42, %v3676_v16 }
 0x386   : > { %13170 = vst [vmem:[#allocation116_spill] sm:$0xff] %v10455_v54  ;;  %v10462_v27 = vadd.f32 %v13173_v60, %v2093_v5  ;;  %v3004_v51 = vmul.f32 0.6931472, %v6458_v57  ;;  %v10465_v11 = vadd.f32 %v13175_v10, %v2550_v31  ;;  %v13180_v3 = vld [vmem:[#allocation157_spill] sm:$0xff]  ;;  %v13182_v5 = vld [vmem:[#allocation158_spill] sm:$0xff]  ;;  %v1972_v59 = vadd.f32 %v10399_v39, %v13013_v6  ;;  %v13193_v54 = vld [vmem:[#allocation103_spill] sm:$0xff] }
 0x387   : > { %13172 = vst [vmem:[#allocation117_spill] sm:$0xff] %v10459_v8  ;;  %v6460_v23 = vpop.eup %6459  ;;  %v10468_v20 = vadd.f32 %v13177_v4, %v2552_v49  ;;  %13179 = vst [vmem:[#allocation130_spill] sm:$0xff] %v10472_v12  ;;  %v10475_v15 = vadd.f32 %v13180_v3, %v3002_v62  ;;  %v4790_v49 = vadd.f32 %v10363_v52, %v10232_v43  ;;  %v4797_v60 = vmax.f32 %v4789_v44, 1e-20  ;;  %v13184_v4 = vld [vmem:[#allocation94_spill] sm:$0xff]  ;;  %v1404_v12 = vpop.permute.xlu0 %1403 }
 0x388   : > { %13174 = vst [vmem:[#allocation119_spill] sm:$0xff] %v10462_v27  ;;  %13176 = vst [vmem:[#allocation120_spill] sm:$0xff] %v10465_v11  ;;  %v6462_v32 = vpop.eup %6461  ;;  %v10478_v14 = vadd.f32 %v13182_v5, %v3004_v51  ;;  %v3454_v57 = vmul.f32 0.6931472, %v6460_v23  ;;  %6469 = vlog2.f32 %v4346_v47  ;;  %v1973_v42 = vadd.f32 %v10405_v13, %v13016_v36  ;;  %v13186_v23 = vld [vmem:[#allocation159_spill] sm:$0xff]  ;;  %v13189_v58 = vld [vmem:[#allocation70_spill] sm:$0xff] }
 0x389   : > { %13178 = vst [vmem:[#allocation129_spill] sm:$0xff] %v10468_v20  ;;  %13181 = vst [vmem:[#allocation137_spill] sm:$0xff] %v10475_v15  ;;  %v6464_v17 = vpop.eup %6463  ;;  %v3456_v31 = vmul.f32 0.6931472, %v6462_v32  ;;  %v2431_v51 = vadd.f32 %v10399_v39, %v13018_v53  ;;  %v4798_v44 = vmax.f32 %v4790_v49, 1e-20  ;;  %6471 = vlog2.f32 %v4797_v60 }
 0x38a   : > { %13183 = vst [vmem:[#allocation138_spill] sm:$0xff] %v10478_v14  ;;  %v6466_v10 = vpop.eup %6465  ;;  %v10485_v16 = vadd.f32 %v13184_v4, %v3454_v57  ;;  %v1980_v3 = vmax.f32 %v1972_v59, 1e-20  ;;  %v1981_v5 = vmax.f32 %v1973_v42, 1e-20  ;;  %v2432_v57 = vadd.f32 %v10405_v13, %v13021_v2  ;;  %v13190_v60 = vld [vmem:[#allocation71_spill] sm:$0xff] }
 0x38b   : > { %v10493_v32 = vadd.f32 %v13186_v23, %v3456_v31  ;;  %v2439_v4 = vmax.f32 %v2431_v51, 1e-20  ;;  %6473 = vlog2.f32 %v4798_v44  ;;  %v2883_v47 = vadd.f32 %v10399_v39, %v13023_v41  ;;  %v1439_v31 = vpop.permute.xlu1 %1438  ;;  %v13208_v20 = vld [vmem:[#allocation43_spill] sm:$0xff]  ;;  %v13212_v41 = vld [vmem:[#allocation144_spill] sm:$0xff] }
 0x38c   : > { %13185 = vst [vmem:[#allocation141_spill] sm:$0xff] %v10485_v16  ;;  %v2884_v63 = vadd.f32 %v10405_v13, %v13188_v38  ;;  %v3335_v62 = vadd.f32 %v10399_v39, %v13189_v58  ;;  %6475 = vlog2.f32 %v1980_v3  ;;  %v2440_v49 = vmax.f32 %v2432_v57, 1e-20 }
 0x38d   : > { %13187 = vst [vmem:[#allocation154_spill] sm:$0xff] %v10493_v32  ;;  %v3336_v59 = vadd.f32 %v10405_v13, %v13190_v60  ;;  %v3787_v42 = vadd.f32 %v10399_v39, %v10306_v29  ;;  %v10507_v51 = vmul.f32 0.6931472, %v6464_v17  ;;  %6477 = vlog2.f32 %v1981_v5  ;;  %v13194_v32 = vld [vmem:[#allocation104_spill] sm:$0xff]  ;;  %v13211_v60 = vld [vmem:[#allocation143_spill] sm:$0xff] }
 0x38e   : > { %v2891_v23 = vmax.f32 %v2883_v47, 1e-20  ;;  %v2892_v44 = vmax.f32 %v2884_v63, 1e-20  ;;  %v10509_v34 = vmul.f32 0.6931472, %v6466_v10  ;;  %6479 = vlog2.f32 %v2439_v4 }
 0x38f   : > { %13191 = vst [vmem:[#allocation155_spill] sm:$0xff] %v10507_v51  ;;  %v3343_v25 = vmax.f32 %v3335_v62, 1e-20  ;;  %v3788_v3 = vadd.f32 %v10405_v13, %v10312_v18  ;;  %6481 = vlog2.f32 %v2440_v49  ;;  %v3344_v57 = vmax.f32 %v3336_v59, 1e-20  ;;  %v13195_v63 = vld [vmem:[#allocation72_spill] sm:$0xff]  ;;  %v10528_v49 = vpop.permute.xlu1 %1694 }
 0x390   : > { %13192 = vst [vmem:[#allocation156_spill] sm:$0xff] %v10509_v34  ;;  %v10514_v28 = vmul.f32 %v13193_v54, %v1439_v31  ;;  %v10517_v16 = vmul.f32 %v13194_v32, %v1439_v31  ;;  %6483 = vlog2.f32 %v2891_v23  ;;  %v3795_v17 = vmax.f32 %v3787_v42, 1e-20  ;;  %v6468_v31 = vpop.eup %6467 }
 0x391   : > { %v3796_v5 = vmax.f32 %v3788_v3, 1e-20  ;;  %v10520_v47 = vmul.f32 %v13195_v63, %v1404_v12  ;;  %6485 = vlog2.f32 %v2892_v44 }
 0x392   : > { %v4941_v10 = vadd.f32 %v13089_v56, %v10514_v28  ;;  %v4942_v62 = vadd.f32 %v13090_v48, %v10517_v16  ;;  %v4991_v4 = vadd.f32 %v13095_v50, %v10514_v28  ;;  %6487 = vlog2.f32 %v3343_v25  ;;  %v13196_v48 = vld [vmem:[#allocation75_spill] sm:$0xff] }
 0x393   : > { %v4992_v59 = vadd.f32 %v13096_v1, %v10517_v16  ;;  %v5041_v42 = vadd.f32 %v13098_v24, %v10514_v28  ;;  %v5042_v23 = vadd.f32 %v13099_v0, %v10517_v16  ;;  %6489 = vlog2.f32 %v3344_v57 }
 0x394   : > { %v4949_v56 = vmax.f32 %v4941_v10, 1e-20  ;;  %v4950_v44 = vmax.f32 %v4942_v62, 1e-20  ;;  %v10537_v3 = vmul.f32 %v13196_v48, %v1404_v12  ;;  %v10539_v50 = vmul.f32 0.6931472, %v6468_v31 }
 0x395   : > { %6491 = vlog2.f32 %v3795_v17  ;;  %v4999_v34 = vmax.f32 %v4991_v4, 1e-20  ;;  %v10543_v25 = vmul.f32 %v13193_v54, %v10528_v49  ;;  %v6470_v1 = vpop.eup %6469  ;;  %v5000_v24 = vmax.f32 %v4992_v59, 1e-20  ;;  %v13199_v12 = vld [vmem:[#allocation21_spill] sm:$0xff]  ;;  %v13200_v17 = vld [vmem:[#allocation64_spill] sm:$0xff] }
 0x396   : > { %13197 = vst [vmem:[#allocation157_spill] sm:$0xff] %v10539_v50  ;;  %6493 = vlog2.f32 %v3796_v5  ;;  %v5049_v51 = vmax.f32 %v5041_v42, 1e-20  ;;  %v5091_v0 = vadd.f32 %v13100_v7, %v10514_v28  ;;  %v10547_v57 = vpop.eup %6471  ;;  %v5092_v10 = vadd.f32 %v13199_v12, %v10517_v16  ;;  %v13201_v4 = vld [vmem:[#allocation66_spill] sm:$0xff]  ;;  %v13203_v7 = vld [vmem:[#allocation48_spill] sm:$0xff] }
 0x397   : > { %13198 = vst [vmem:[#allocation158_spill] sm:$0xff] %v10547_v57  ;;  %6495 = vlog2.f32 %v4949_v56  ;;  %v5141_v62 = vadd.f32 %v13200_v17, %v10514_v28  ;;  %v10555_v54 = vadd.f32 %v13201_v4, %v10517_v16  ;;  %v5050_v5 = vmax.f32 %v5042_v23, 1e-20  ;;  %v13202_v31 = vld [vmem:[#allocation10_spill] sm:$0xff] }
 0x398   : > { %6497 = vlog2.f32 %v4950_v44  ;;  %v10559_v59 = vadd.f32 %v13202_v31, %v10514_v28  ;;  %v10563_v42 = vadd.f32 %v13203_v7, %v10517_v16  ;;  %v10565_v56 = vpop.eup %6473  ;;  %v10567_v12 = vmul.f32 0.6931472, %v6470_v1 }
 0x399   : > { %13204 = vst [vmem:[#allocation94_spill] sm:$0xff] %v10565_v56  ;;  %6499 = vlog2.f32 %v4999_v34  ;;  %v5099_v17 = vmax.f32 %v5091_v0, 1e-20  ;;  %v5100_v57 = vmax.f32 %v5092_v10, 1e-20  ;;  %v6476_v50 = vpop.eup %6475  ;;  %v10572_v44 = vadd.f32 %v10360_v45, %v10514_v28  ;;  %v13207_v56 = vld [vmem:[#allocation83_spill] sm:$0xff] }
 0x39a   : > { %13205 = vst [vmem:[#allocation159_spill] sm:$0xff] %v10567_v12  ;;  %6501 = vlog2.f32 %v5000_v24  ;;  %v5149_v4 = vmax.f32 %v5141_v62, 1e-20  ;;  %v5150_v23 = vmax.f32 %v10555_v54, 1e-20  ;;  %v6478_v31 = vpop.eup %6477  ;;  %v10576_v7 = vadd.f32 %v10363_v52, %v10517_v16 }
 0x39b   : > { %v1995_v14 = vmul.f32 0.6931472, %v6476_v50  ;;  %6503 = vlog2.f32 %v5049_v51  ;;  %v10580_v34 = vadd.f32 %v13116_v61, %v10520_v47  ;;  %v6480_v1 = vpop.eup %6479  ;;  %v1997_v24 = vmul.f32 0.6931472, %v6478_v31  ;;  %v13206_v50 = vld [vmem:[#allocation80_spill] sm:$0xff] }
 0x39c   : > { %6505 = vlog2.f32 %v5050_v5  ;;  %v10585_v45 = vadd.f32 %v13118_v21, %v10537_v3  ;;  %v6482_v10 = vpop.eup %6481  ;;  %v2454_v62 = vmul.f32 0.6931472, %v6480_v1  ;;  %v13209_v1 = vld [vmem:[#allocation11_spill] sm:$0xff] }
 0x39d   : > { %v2000_v51 = vadd.f32 %v13206_v50, %v1995_v14  ;;  %6507 = vlog2.f32 %v5099_v17  ;;  %v6484_v54 = vpop.eup %6483  ;;  %v2009_v12 = vadd.f32 %v13207_v56, %v1997_v24  ;;  %v2456_v15 = vmul.f32 0.6931472, %v6482_v10  ;;  %v13210_v24 = vld [vmem:[#allocation142_spill] sm:$0xff] }
 0x39e   : > { %6509 = vlog2.f32 %v5100_v57  ;;  %v6486_v31 = vpop.eup %6485  ;;  %v2459_v11 = vadd.f32 %v13208_v20, %v2454_v62  ;;  %v2906_v27 = vmul.f32 0.6931472, %v6484_v54 }
 0x39f   : > { %v2001_v0 = vrot.slane %v2000_v51, 4  ;;  %v6488_v21 = vpop.eup %6487  ;;  %v2010_v14 = vrot.slane %v2009_v12, 4  ;;  %v2468_v17 = vadd.f32 %v13209_v1, %v2456_v15  ;;  %v2908_v50 = vmul.f32 0.6931472, %v6486_v31  ;;  %v13214_v1 = vld [vmem:[#allocation145_spill] sm:$0xff] }
 0x3a0   : > { %6511 = vlog2.f32 %v5149_v4  ;;  %v6490_v52 = vpop.eup %6489  ;;  %v2460_v56 = vrot.slane %v2459_v11, 4  ;;  %v2911_v57 = vadd.f32 %v13210_v24, %v2906_v27  ;;  %v3358_v10 = vmul.f32 0.6931472, %v6488_v21  ;;  %v13223_v24 = vld [vmem:[#allocation100_spill] sm:$0xff] }
 0x3a1   : > { %v2002_v61 = vadd.f32 %v2001_v0, %v2000_v51  ;;  %v2011_v18 = vadd.f32 %v2010_v14, %v2009_v12  ;;  %v2469_v29 = vrot.slane %v2468_v17, 4  ;;  %v2920_v20 = vadd.f32 %v13211_v60, %v2908_v50 }
 0x3a2   : > { %v6492_v5 = vpop.eup %6491  ;;  %v3360_v62 = vmul.f32 0.6931472, %v6490_v52  ;;  %v2461_v58 = vadd.f32 %v2460_v56, %v2459_v11  ;;  %v2912_v38 = vrot.slane %v2911_v57, 4  ;;  %v10597_v15 = vadd.f32 %v13212_v41, %v3358_v10 }
 0x3a3   : > { %v6494_v54 = vpop.eup %6493  ;;  %v2003_v8 = vrot.slane %v2002_v61, 2  ;;  %v2012_v31 = vrot.slane %v2011_v18, 2  ;;  %v2470_v0 = vadd.f32 %v2469_v29, %v2468_v17  ;;  %v2921_v51 = vrot.slane %v2920_v20, 4 }
 0x3a4   : > { %13213 = vst [vmem:[#allocation103_spill] sm:$0xff] %v10597_v15  ;;  %v6496_v4 = vpop.eup %6495  ;;  %v10600_v27 = vadd.f32 %v13214_v1, %v3360_v62  ;;  %v2462_v12 = vrot.slane %v2461_v58, 2  ;;  %v10602_v14 = vadd.f32 %v2912_v38, %v2911_v57  ;;  %6513 = vlog2.f32 %v5150_v23  ;;  %v13221_v1 = vld [vmem:[#allocation146_spill] sm:$0xff] }
 0x3a5   : > { %v6498_v21 = vpop.eup %6497  ;;  %v4047_v60 = vmax.f32 %v10580_v34, 1e-20  ;;  %v10605_v11 = vadd.f32 %v2003_v8, %v2002_v61  ;;  %v10607_v50 = vadd.f32 %v2012_v31, %v2011_v18  ;;  %v2471_v41 = vrot.slane %v2470_v0, 2  ;;  %v13219_v18 = vld [vmem:[#allocation68_spill] sm:$0xff] }
 0x3a6   : > { %13215 = vst [vmem:[#allocation104_spill] sm:$0xff] %v10600_v27  ;;  %13216 = vst [vmem:[#allocation72_spill] sm:$0xff] %v10602_v14  ;;  %v6500_v52 = vpop.eup %6499  ;;  %v10610_v17 = vadd.f32 %v2921_v51, %v2920_v20  ;;  %v3810_v10 = vmul.f32 0.6931472, %v6492_v5  ;;  %v3812_v62 = vmul.f32 0.6931472, %v6494_v54  ;;  %v10613_v57 = vadd.f32 %v2462_v12, %v2461_v58 }
 0x3a7   : > { %v6502_v29 = vpop.eup %6501  ;;  %v4962_v34 = vmul.f32 0.6931472, %v6496_v4  ;;  %v4964_v61 = vmul.f32 0.6931472, %v6498_v21  ;;  %v5012_v20 = vmul.f32 0.6931472, %v6500_v52  ;;  %v10628_v21 = vadd.f32 %v2471_v41, %v2470_v0 }
 0x3a8   : > { %13217 = vst [vmem:[#allocation75_spill] sm:$0xff] %v10610_v17  ;;  %v6504_v38 = vpop.eup %6503  ;;  %13218 = vst [vmem:[#allocation21_spill] sm:$0xff] %v10613_v57  ;;  %v10617_v31 = vadd.f32 %v13219_v18, %v3810_v10  ;;  %v10620_v56 = vadd.f32 %v13221_v1, %v3812_v62  ;;  %v5014_v51 = vmul.f32 0.6931472, %v6502_v29  ;;  %v13225_v54 = vld [vmem:[#allocation86_spill] sm:$0xff]  ;;  %v13228_v27 = vld [vmem:[#allocation87_spill] sm:$0xff]  ;;  %v4089_v1 = vadd.f32 %v13123_v40, %v10520_v47  ;;  %v1660_v29 = vpop.permute.xlu0 %1659 }
 0x3a9   : > { %v6506_v8 = vpop.eup %6505  ;;  %v10623_v5 = vadd.f32 %v13223_v24, %v4962_v34  ;;  %v10626_v58 = vadd.f32 %v13225_v54, %v4964_v61  ;;  %v5062_v12 = vmul.f32 0.6931472, %v6504_v38  ;;  %13227 = vst [vmem:[#allocation80_spill] sm:$0xff] %v10628_v21  ;;  %v10631_v10 = vadd.f32 %v13228_v27, %v5012_v20  ;;  %v13230_v18 = vld [vmem:[#allocation95_spill] sm:$0xff]  ;;  %v13233_v24 = vld [vmem:[#allocation96_spill] sm:$0xff]  ;;  %v13235_v61 = vld [vmem:[#allocation98_spill] sm:$0xff] }
 0x3aa   : > { %13220 = vst [vmem:[#allocation64_spill] sm:$0xff] %v10617_v31  ;;  %13222 = vst [vmem:[#allocation66_spill] sm:$0xff] %v10620_v56  ;;  %v6508_v15 = vpop.eup %6507  ;;  %v5064_v23 = vmul.f32 0.6931472, %v6506_v8  ;;  %v10634_v62 = vadd.f32 %v13230_v18, %v5014_v51  ;;  %v13232_v52 = vmax.f32 %v10559_v59, 1e-20 }
 0x3ab   : > { %13224 = vst [vmem:[#allocation10_spill] sm:$0xff] %v10623_v5  ;;  %13226 = vst [vmem:[#allocation48_spill] sm:$0xff] %v10626_v58  ;;  %v6510_v4 = vpop.eup %6509  ;;  %v10640_v34 = vadd.f32 %v13233_v24, %v5062_v12  ;;  %v13237_v0 = vmax.f32 %v10563_v42, 1e-20  ;;  %v10647_v27 = vmul.f32 0.6931472, %v6508_v15  ;;  %v4090_v42 = vadd.f32 %v13124_v30, %v10537_v3 }
 0x3ac   : > { %13229 = vst [vmem:[#allocation83_spill] sm:$0xff] %v10631_v10  ;;  %13231 = vst [vmem:[#allocation43_spill] sm:$0xff] %v10634_v62  ;;  %6515 = vlog2.f32 %v13232_v52  ;;  %v10643_v38 = vadd.f32 %v13235_v61, %v5064_v23  ;;  %v13239_v8 = vmax.f32 %v10572_v44, 1e-20  ;;  %v4048_v59 = vmax.f32 %v10585_v45, 1e-20 }
 0x3ad   : > { %13234 = vst [vmem:[#allocation11_spill] sm:$0xff] %v10640_v34  ;;  %6517 = vlog2.f32 %v13237_v0  ;;  %v6512_v41 = vpop.eup %6511  ;;  %13238 = vst [vmem:[#allocation143_spill] sm:$0xff] %v10647_v27  ;;  %v10654_v20 = vmul.f32 0.6931472, %v6510_v4  ;;  %v13241_v51 = vmax.f32 %v10576_v7, 1e-20  ;;  %v4139_v15 = vadd.f32 %v13126_v26, %v10520_v47 }
 0x3ae   : > { %13236 = vst [vmem:[#allocation142_spill] sm:$0xff] %v10643_v38  ;;  %6519 = vlog2.f32 %v13239_v8  ;;  %v4097_v23 = vmax.f32 %v4089_v1, 1e-20  ;;  %v4140_v44 = vadd.f32 %v13127_v33, %v10537_v3  ;;  %v4189_v45 = vadd.f32 %v10005_v46, %v10520_v47  ;;  %v13299_v14 = vld [vmem:[#allocation14_spill] sm:$0xff] }
 0x3af   : > { %13240 = vst [vmem:[#allocation144_spill] sm:$0xff] %v10654_v20  ;;  %6521 = vlog2.f32 %v13241_v51  ;;  %v4098_v54 = vmax.f32 %v4090_v42, 1e-20  ;;  %v4147_v12 = vmax.f32 %v4139_v15, 1e-20  ;;  %v4190_v7 = vadd.f32 %v10014_v37, %v10537_v3  ;;  %v13302_v58 = vld [vmem:[#allocation22_spill] sm:$0xff] }
 0x3b0   : > { %6523 = vlog2.f32 %v4047_v60  ;;  %v4148_v4 = vmax.f32 %v4140_v44, 1e-20  ;;  %v4197_v18 = vmax.f32 %v4189_v45, 1e-20  ;;  %v4239_v52 = vadd.f32 %v10399_v39, %v10520_v47  ;;  %v13243_v45 = vld [vmem:[#allocation28_spill] sm:$0xff] }
 0x3b1   : > { %6525 = vlog2.f32 %v4048_v59  ;;  %v6514_v60 = vpop.eup %6513  ;;  %v4198_v24 = vmax.f32 %v4190_v7, 1e-20  ;;  %v4240_v61 = vadd.f32 %v10405_v13, %v10537_v3  ;;  %v1763_v0 = vmul.f32 %v13194_v32, %v10528_v49  ;;  %v13246_v7 = vld [vmem:[#allocation73_spill] sm:$0xff] }
 0x3b2   : > { %6527 = vlog2.f32 %v4097_v23  ;;  %v4247_v8 = vmax.f32 %v4239_v52, 1e-20  ;;  %v2120_v59 = vadd.f32 %v10543_v25, %v12875_v19  ;;  %v2579_v1 = vadd.f32 %v10543_v25, %v12877_v22  ;;  %v13249_v52 = vld [vmem:[#allocation88_spill] sm:$0xff] }
 0x3b3   : > { %6529 = vlog2.f32 %v4098_v54  ;;  %v4248_v51 = vmax.f32 %v4240_v61, 1e-20  ;;  %v2121_v42 = vadd.f32 %v1763_v0, %v12876_v35  ;;  %v2580_v15 = vadd.f32 %v1763_v0, %v12878_v9  ;;  %v13245_v54 = vld [vmem:[#allocation65_spill] sm:$0xff] }
 0x3b4   : > { %6531 = vlog2.f32 %v4147_v12  ;;  %v10680_v23 = vmul.f32 0.6931472, %v6512_v41  ;;  %v2128_v44 = vmax.f32 %v2120_v59, 1e-20  ;;  %v3031_v32 = vadd.f32 %v10543_v25, %v13243_v45 }
 0x3b5   : > { %6533 = vlog2.f32 %v4148_v4  ;;  %v10684_v49 = vmul.f32 0.6931472, %v6514_v60  ;;  %v2129_v19 = vmax.f32 %v2121_v42, 1e-20  ;;  %v3032_v12 = vadd.f32 %v1763_v0, %v13245_v54  ;;  %v13247_v4 = vld [vmem:[#allocation74_spill] sm:$0xff]  ;;  %v13250_v60 = vld [vmem:[#allocation89_spill] sm:$0xff] }
 0x3b6   : > { %13242 = vst [vmem:[#allocation145_spill] sm:$0xff] %v10680_v23  ;;  %6535 = vlog2.f32 %v4197_v18  ;;  %v2587_v22 = vmax.f32 %v2579_v1, 1e-20  ;;  %v3483_v35 = vadd.f32 %v10543_v25, %v13246_v7  ;;  %v3484_v9 = vadd.f32 %v1763_v0, %v13247_v4  ;;  %v13252_v42 = vld [vmem:[#allocation76_spill] sm:$0xff]  ;;  %v13254_v7 = vld [vmem:[#allocation77_spill] sm:$0xff] }
 0x3b7   : > { %13244 = vst [vmem:[#allocation68_spill] sm:$0xff] %v10684_v49  ;;  %6537 = vlog2.f32 %v4198_v24  ;;  %v2588_v18 = vmax.f32 %v2580_v15, 1e-20  ;;  %v3935_v61 = vadd.f32 %v10543_v25, %v13249_v52  ;;  %v10695_v59 = vadd.f32 %v1763_v0, %v13250_v60 }
 0x3b8   : > { %6539 = vlog2.f32 %v4247_v8  ;;  %v3039_v8 = vmax.f32 %v3031_v32, 1e-20  ;;  %v3040_v1 = vmax.f32 %v3032_v12, 1e-20  ;;  %v10701_v45 = vadd.f32 %v10543_v25, %v13252_v42 }
 0x3b9   : > { %v10690_v41 = vpop.eup %6515  ;;  %6541 = vlog2.f32 %v4248_v51  ;;  %v3491_v51 = vmax.f32 %v3483_v35, 1e-20  ;;  %v3492_v15 = vmax.f32 %v3484_v9, 1e-20  ;;  %v10706_v4 = vadd.f32 %v1763_v0, %v13254_v7 }
 0x3ba   : > { %13248 = vst [vmem:[#allocation146_spill] sm:$0xff] %v10690_v41  ;;  %v10697_v24 = vpop.eup %6517  ;;  %6543 = vlog2.f32 %v2128_v44  ;;  %v3943_v60 = vmax.f32 %v3935_v61, 1e-20  ;;  %v10712_v44 = vadd.f32 %v10543_v25, %v10229_v55  ;;  %v10715_v32 = vadd.f32 %v1763_v0, %v10232_v43 }
 0x3bb   : > { %13251 = vst [vmem:[#allocation100_spill] sm:$0xff] %v10697_v24  ;;  %v10703_v54 = vpop.eup %6519  ;;  %6545 = vlog2.f32 %v2129_v19  ;;  %v3944_v19 = vmax.f32 %v10695_v59, 1e-20  ;;  %v10720_v35 = vadd.f32 %v10543_v25, %v10514_v28  ;;  %v10723_v9 = vadd.f32 %v1763_v0, %v10517_v16  ;;  %v13256_v25 = vld [vmem:[#allocation147_spill] sm:$0xff] }
 0x3bc   : > { %13253 = vst [vmem:[#allocation86_spill] sm:$0xff] %v10703_v54  ;;  %v10708_v52 = vpop.eup %6521  ;;  %6547 = vlog2.f32 %v2587_v22  ;;  %v4395_v55 = vmax.f32 %v10701_v45, 1e-20  ;;  %v4396_v42 = vmax.f32 %v10706_v4, 1e-20  ;;  %v10735_v41 = vmul.f32 %v13195_v63, %v1660_v29  ;;  %v13264_v63 = vld [vmem:[#allocation150_spill] sm:$0xff] }
 0x3bd   : > { %13255 = vst [vmem:[#allocation87_spill] sm:$0xff] %v10708_v52  ;;  %v6524_v12 = vpop.eup %6523  ;;  %6549 = vlog2.f32 %v2588_v18  ;;  %v4847_v18 = vmax.f32 %v10712_v44, 1e-20  ;;  %v4848_v59 = vmax.f32 %v10715_v32, 1e-20  ;;  %v13258_v44 = vld [vmem:[#allocation78_spill] sm:$0xff] }
 0x3be   : > { %v6526_v22 = vpop.eup %6525  ;;  %v4062_v61 = vmul.f32 0.6931472, %v6524_v12  ;;  %6551 = vlog2.f32 %v3039_v8  ;;  %v5299_v0 = vmax.f32 %v10720_v35, 1e-20  ;;  %v13257_v12 = vld [vmem:[#allocation148_spill] sm:$0xff] }
 0x3bf   : > { %v6528_v43 = vpop.eup %6527  ;;  %v4064_v7 = vmul.f32 0.6931472, %v6526_v22  ;;  %6553 = vlog2.f32 %v3040_v1  ;;  %v5300_v4 = vmax.f32 %v10723_v9, 1e-20 }
 0x3c0   : > { %v6530_v28 = vpop.eup %6529  ;;  %v4067_v52 = vadd.f32 %v13256_v25, %v4062_v61  ;;  %v4112_v16 = vmul.f32 0.6931472, %v6528_v43  ;;  %6555 = vlog2.f32 %v3491_v51  ;;  %v13259_v51 = vld [vmem:[#allocation149_spill] sm:$0xff] }
 0x3c1   : > { %v6532_v8 = vpop.eup %6531  ;;  %v4076_v45 = vadd.f32 %v13257_v12, %v4064_v7  ;;  %v4114_v54 = vmul.f32 0.6931472, %v6530_v28  ;;  %6557 = vlog2.f32 %v3492_v15  ;;  %v13261_v28 = vld [vmem:[#allocation79_spill] sm:$0xff] }
 0x3c2   : > { %v6534_v1 = vpop.eup %6533  ;;  %v4068_v22 = vrot.slane %v4067_v52, 4  ;;  %v4117_v24 = vadd.f32 %v13258_v44, %v4112_v16  ;;  %v4162_v32 = vmul.f32 0.6931472, %v6532_v8  ;;  %6559 = vlog2.f32 %v3943_v60  ;;  %v13267_v60 = vld [vmem:[#allocation151_spill] sm:$0xff] }
 0x3c3   : > { %v6536_v61 = vpop.eup %6535  ;;  %v4077_v43 = vrot.slane %v4076_v45, 4  ;;  %v4126_v25 = vadd.f32 %v13259_v51, %v4114_v54  ;;  %v4164_v35 = vmul.f32 0.6931472, %v6534_v1  ;;  %6561 = vlog2.f32 %v3944_v19 }
 0x3c4   : > { %v6538_v49 = vpop.eup %6537  ;;  %v10738_v7 = vadd.f32 %v4068_v22, %v4067_v52  ;;  %v4118_v15 = vrot.slane %v4117_v24, 4  ;;  %v10741_v9 = vadd.f32 %v13261_v28, %v4162_v32  ;;  %v4212_v12 = vmul.f32 0.6931472, %v6536_v61 }
 0x3c5   : > { %v6540_v23 = vpop.eup %6539  ;;  %v10743_v16 = vadd.f32 %v4077_v43, %v4076_v45  ;;  %v4127_v8 = vrot.slane %v4126_v25, 4  ;;  %v10746_v44 = vadd.f32 %v13264_v63, %v4164_v35  ;;  %v4214_v20 = vmul.f32 0.6931472, %v6538_v49  ;;  %v13269_v43 = vld [vmem:[#allocation152_spill] sm:$0xff] }
 0x3c6   : > { %13260 = vst [vmem:[#allocation95_spill] sm:$0xff] %v10738_v7  ;;  %13262 = vst [vmem:[#allocation96_spill] sm:$0xff] %v10741_v9  ;;  %v6542_v27 = vpop.eup %6541  ;;  %v10748_v54 = vadd.f32 %v4118_v15, %v4117_v24  ;;  %v10751_v1 = vadd.f32 %v13267_v60, %v4212_v12  ;;  %v10754_v52 = vmul.f32 %v13196_v48, %v1660_v29  ;;  %6563 = vlog2.f32 %v4395_v55  ;;  %v13274_v55 = vld [vmem:[#allocation44_spill] sm:$0xff]  ;;  %v13276_v24 = vld [vmem:[#allocation55_spill] sm:$0xff] }
 0x3c7   : > { %13263 = vst [vmem:[#allocation98_spill] sm:$0xff] %v10743_v16  ;;  %13265 = vst [vmem:[#allocation28_spill] sm:$0xff] %v10746_v44  ;;  %v6544_v22 = vpop.eup %6543  ;;  %v10760_v51 = vadd.f32 %v13269_v43, %v4214_v20  ;;  %v10763_v35 = vadd.f32 %v4127_v8, %v4126_v25  ;;  %v10766_v29 = vmul.f32 0.6931472, %v6540_v23  ;;  %6565 = vlog2.f32 %v4396_v42  ;;  %v13273_v8 = vld [vmem:[#allocation93_spill] sm:$0xff] }
 0x3c8   : > { %13266 = vst [vmem:[#allocation65_spill] sm:$0xff] %v10748_v54  ;;  %13268 = vst [vmem:[#allocation73_spill] sm:$0xff] %v10751_v1  ;;  %v6546_v49 = vpop.eup %6545  ;;  %v2141_v15 = vmul.f32 0.6931472, %v6544_v22  ;;  %6567 = vlog2.f32 %v4847_v18  ;;  %v2022_v20 = vadd.f32 %v10735_v41, %v13013_v6  ;;  %v2023_v60 = vadd.f32 %v10754_v52, %v13016_v36  ;;  %v13275_v42 = vld [vmem:[#allocation13_spill] sm:$0xff]  ;;  %v13289_v54 = vld [vmem:[#allocation90_spill] sm:$0xff] }
 0x3c9   : > { %13270 = vst [vmem:[#allocation74_spill] sm:$0xff] %v10760_v51  ;;  %13271 = vst [vmem:[#allocation88_spill] sm:$0xff] %v10763_v35  ;;  %v6548_v48 = vpop.eup %6547  ;;  %v2143_v28 = vmul.f32 0.6931472, %v6546_v49  ;;  %6569 = vlog2.f32 %v4848_v59  ;;  %v2481_v59 = vadd.f32 %v10735_v41, %v13018_v53  ;;  %v4289_v35 = vadd.f32 %v10735_v41, %v10520_v47 }
 0x3ca   : > { %13272 = vst [vmem:[#allocation89_spill] sm:$0xff] %v10766_v29  ;;  %v6550_v12 = vpop.eup %6549  ;;  %v2600_v63 = vmul.f32 0.6931472, %v6548_v48  ;;  %v10773_v43 = vadd.f32 %v13273_v8, %v2141_v15  ;;  %6571 = vlog2.f32 %v5299_v0  ;;  %v2030_v48 = vmax.f32 %v2022_v20, 1e-20  ;;  %v13286_v0 = vld [vmem:[#allocation18_spill] sm:$0xff] }
 0x3cb   : > { %v6552_v25 = vpop.eup %6551  ;;  %v10776_v19 = vadd.f32 %v13274_v55, %v2143_v28  ;;  %v2602_v23 = vmul.f32 0.6931472, %v6550_v12  ;;  %6573 = vlog2.f32 %v5300_v4  ;;  %v2031_v15 = vmax.f32 %v2023_v60, 1e-20  ;;  %v13278_v28 = vld [vmem:[#allocation25_spill] sm:$0xff] }
 0x3cc   : > { %v6554_v22 = vpop.eup %6553  ;;  %v10779_v49 = vadd.f32 %v13275_v42, %v2600_v63  ;;  %v3052_v18 = vmul.f32 0.6931472, %v6552_v25  ;;  %v10784_v29 = vmul.f32 0.6931472, %v6542_v27  ;;  %6575 = vlog2.f32 %v2030_v48  ;;  %v13279_v63 = vld [vmem:[#allocation30_spill] sm:$0xff]  ;;  %v13281_v25 = vld [vmem:[#allocation27_spill] sm:$0xff] }
 0x3cd   : > { %v6556_v61 = vpop.eup %6555  ;;  %v10782_v45 = vadd.f32 %v13276_v24, %v2602_v23  ;;  %v3054_v32 = vmul.f32 0.6931472, %v6554_v22  ;;  %6577 = vlog2.f32 %v2031_v15  ;;  %v2482_v4 = vadd.f32 %v10754_v52, %v13021_v2  ;;  %v13282_v23 = vld [vmem:[#allocation63_spill] sm:$0xff]  ;;  %v13284_v48 = vld [vmem:[#allocation70_spill] sm:$0xff] }
 0x3ce   : > { %v6558_v8 = vpop.eup %6557  ;;  %13277 = vst [vmem:[#allocation76_spill] sm:$0xff] %v10784_v29  ;;  %v10787_v12 = vadd.f32 %v13278_v28, %v3052_v18  ;;  %v10797_v60 = vmul.f32 0.6931472, %v6556_v61  ;;  %v2489_v27 = vmax.f32 %v2481_v59, 1e-20  ;;  %v2933_v55 = vadd.f32 %v10735_v41, %v13281_v25  ;;  %v13285_v15 = vld [vmem:[#allocation71_spill] sm:$0xff]  ;;  %v1680_v29 = vpop.permute.xlu1 %1679 }
 0x3cf   : > { %v10793_v20 = vadd.f32 %v13279_v63, %v3054_v32  ;;  %v6560_v24 = vpop.eup %6559  ;;  %v2934_v22 = vadd.f32 %v10754_v52, %v13282_v23  ;;  %v10803_v42 = vmul.f32 0.6931472, %v6558_v8  ;;  %v2490_v18 = vmax.f32 %v2482_v4, 1e-20  ;;  %v13287_v8 = vld [vmem:[#allocation60_spill] sm:$0xff] }
 0x3d0   : > { %13280 = vst [vmem:[#allocation77_spill] sm:$0xff] %v10797_v60  ;;  %v3385_v32 = vadd.f32 %v10735_v41, %v13284_v48  ;;  %v3386_v28 = vadd.f32 %v10754_v52, %v13285_v15  ;;  %6579 = vlog2.f32 %v2489_v27  ;;  %v2941_v63 = vmax.f32 %v2933_v55, 1e-20  ;;  %v6562_v51 = vpop.eup %6561 }
 0x3d1   : > { %13283 = vst [vmem:[#allocation147_spill] sm:$0xff] %v10803_v42  ;;  %v2942_v61 = vmax.f32 %v2934_v22, 1e-20  ;;  %v3837_v59 = vadd.f32 %v10735_v41, %v13286_v0  ;;  %6581 = vlog2.f32 %v2490_v18  ;;  %v3838_v4 = vadd.f32 %v10754_v52, %v13287_v8  ;;  %v13290_v18 = vld [vmem:[#allocation91_spill] sm:$0xff]  ;;  %v1424_v42 = vpop.permute.xlu0 %1423 }
 0x3d2   : > { %v3393_v1 = vmax.f32 %v3385_v32, 1e-20  ;;  %v3394_v44 = vmax.f32 %v3386_v28, 1e-20  ;;  %6583 = vlog2.f32 %v2941_v63  ;;  %v4290_v27 = vadd.f32 %v10754_v52, %v10537_v3 }
 0x3d3   : > { %v3845_v9 = vmax.f32 %v3837_v59, 1e-20  ;;  %v10817_v55 = vpop.eup %6563  ;;  %6585 = vlog2.f32 %v2942_v61  ;;  %v3846_v22 = vmax.f32 %v3838_v4, 1e-20  ;;  %v10820_v16 = vmul.f32 %v13289_v54, %v1680_v29 }
 0x3d4   : > { %13288 = vst [vmem:[#allocation148_spill] sm:$0xff] %v10817_v55  ;;  %v10823_v32 = vmul.f32 %v13290_v18, %v1680_v29  ;;  %v10825_v28 = vpop.eup %6565  ;;  %v10827_v63 = vmul.f32 0.6931472, %v6560_v24  ;;  %6587 = vlog2.f32 %v3393_v1  ;;  %v4297_v59 = vmax.f32 %v4289_v35, 1e-20 }
 0x3d5   : > { %13291 = vst [vmem:[#allocation78_spill] sm:$0xff] %v10825_v28  ;;  %v4298_v7 = vmax.f32 %v4290_v27, 1e-20  ;;  %v10829_v56 = vpop.eup %6567  ;;  %6589 = vlog2.f32 %v3394_v44  ;;  %v2072_v61 = vadd.f32 %v10820_v16, %v13013_v6  ;;  %v2531_v29 = vadd.f32 %v10820_v16, %v13018_v53 }
 0x3d6   : > { %13292 = vst [vmem:[#allocation149_spill] sm:$0xff] %v10827_v63  ;;  %13293 = vst [vmem:[#allocation79_spill] sm:$0xff] %v10829_v56  ;;  %v2073_v4 = vadd.f32 %v10823_v32, %v13016_v36  ;;  %v10837_v55 = vpop.eup %6569  ;;  %6591 = vlog2.f32 %v3845_v9  ;;  %v2532_v1 = vadd.f32 %v10823_v32, %v13021_v2  ;;  %v2983_v35 = vadd.f32 %v10820_v16, %v13281_v25 }
 0x3d7   : > { %13294 = vst [vmem:[#allocation150_spill] sm:$0xff] %v10837_v55  ;;  %v2984_v44 = vadd.f32 %v10823_v32, %v13282_v23  ;;  %v10845_v24 = vpop.eup %6571  ;;  %v10847_v27 = vmul.f32 0.6931472, %v6562_v51  ;;  %6593 = vlog2.f32 %v3846_v22  ;;  %v2080_v56 = vmax.f32 %v2072_v61, 1e-20 }
 0x3d8   : > { %13295 = vst [vmem:[#allocation151_spill] sm:$0xff] %v10845_v24  ;;  %v2081_v28 = vmax.f32 %v2073_v4, 1e-20  ;;  %v10849_v63 = vpop.eup %6573  ;;  %6595 = vlog2.f32 %v4297_v59  ;;  %v2539_v9 = vmax.f32 %v2531_v29, 1e-20  ;;  %v3435_v17 = vadd.f32 %v10820_v16, %v13284_v48 }
 0x3d9   : > { %13296 = vst [vmem:[#allocation152_spill] sm:$0xff] %v10847_v27  ;;  %13297 = vst [vmem:[#allocation93_spill] sm:$0xff] %v10849_v63  ;;  %v2540_v55 = vmax.f32 %v2532_v1, 1e-20  ;;  %v2991_v31 = vmax.f32 %v2983_v35, 1e-20  ;;  %v6576_v60 = vpop.eup %6575  ;;  %6597 = vlog2.f32 %v4298_v7  ;;  %v3436_v24 = vadd.f32 %v10823_v32, %v13285_v15 }
 0x3da   : > { %v3887_v51 = vadd.f32 %v10820_v16, %v13286_v0  ;;  %v6578_v22 = vpop.eup %6577  ;;  %v2045_v61 = vmul.f32 0.6931472, %v6576_v60  ;;  %6599 = vlog2.f32 %v2080_v56  ;;  %v10859_v59 = vadd.f32 %v10823_v32, %v13287_v8  ;;  %v13298_v35 = vld [vmem:[#allocation19_spill] sm:$0xff] }
 0x3db   : > { %v10863_v4 = vadd.f32 %v10820_v16, %v10520_v47  ;;  %v2047_v7 = vmul.f32 0.6931472, %v6578_v22  ;;  %6601 = vlog2.f32 %v2081_v28  ;;  %v2992_v29 = vmax.f32 %v2984_v44, 1e-20 }
 0x3dc   : > { %v10866_v1 = vmul.f32 %v13289_v54, %v1424_v42  ;;  %v2050_v63 = vadd.f32 %v13298_v35, %v2045_v61  ;;  %6603 = vlog2.f32 %v2539_v9  ;;  %v3443_v27 = vmax.f32 %v3435_v17, 1e-20 }
 0x3dd   : > { %v3444_v60 = vmax.f32 %v3436_v24, 1e-20  ;;  %v6580_v56 = vpop.eup %6579  ;;  %v2059_v21 = vadd.f32 %v13299_v14, %v2047_v7  ;;  %6605 = vlog2.f32 %v2540_v55  ;;  %v3895_v57 = vmax.f32 %v3887_v51, 1e-20  ;;  %v13300_v14 = vld [vmem:[#allocation47_spill] sm:$0xff] }
 0x3de   : > { %v4340_v38 = vadd.f32 %v10823_v32, %v10537_v3  ;;  %v6582_v34 = vpop.eup %6581  ;;  %v2051_v22 = vrot.slane %v2050_v63, 4  ;;  %v2504_v28 = vmul.f32 0.6931472, %v6580_v56  ;;  %6607 = vlog2.f32 %v2991_v31  ;;  %v13301_v56 = vld [vmem:[#allocation56_spill] sm:$0xff] }
 0x3df   : > { %v3896_v54 = vmax.f32 %v10859_v59, 1e-20  ;;  %v6584_v44 = vpop.eup %6583  ;;  %v2060_v62 = vrot.slane %v2059_v21, 4  ;;  %v2506_v61 = vmul.f32 0.6931472, %v6582_v34  ;;  %6609 = vlog2.f32 %v2992_v29 }
 0x3e0   : > { %v4347_v17 = vmax.f32 %v10863_v4, 1e-20  ;;  %v6586_v24 = vpop.eup %6585  ;;  %v10874_v9 = vadd.f32 %v2051_v22, %v2050_v63  ;;  %v2509_v55 = vadd.f32 %v13300_v14, %v2504_v28  ;;  %v2956_v51 = vmul.f32 0.6931472, %v6584_v44  ;;  %v13304_v44 = vld [vmem:[#allocation172_spill] sm:$0xff] }
 0x3e1   : > { %6611 = vlog2.f32 %v3443_v27  ;;  %v6588_v7 = vpop.eup %6587  ;;  %v10877_v35 = vadd.f32 %v2060_v62, %v2059_v21  ;;  %v2518_v31 = vadd.f32 %v13301_v56, %v2506_v61  ;;  %v2958_v10 = vmul.f32 0.6931472, %v6586_v24  ;;  %v13307_v24 = vld [vmem:[#allocation173_spill] sm:$0xff] }
 0x3e2   : > { %v10881_v59 = vmul.f32 %v13290_v18, %v1424_v42  ;;  %v6590_v34 = vpop.eup %6589  ;;  %v2510_v29 = vrot.slane %v2509_v55, 4  ;;  %v10884_v4 = vadd.f32 %v13302_v58, %v2956_v51  ;;  %v3408_v63 = vmul.f32 0.6931472, %v6588_v7  ;;  %v13310_v7 = vld [vmem:[#allocation174_spill] sm:$0xff]  ;;  %v13317_v61 = vld [vmem:[#allocation117_spill] sm:$0xff] }
 0x3e3   : > { %v4348_v22 = vmax.f32 %v4340_v38, 1e-20  ;;  %v6592_v5 = vpop.eup %6591  ;;  %v2519_v28 = vrot.slane %v2518_v31, 4  ;;  %v10887_v27 = vadd.f32 %v13304_v44, %v2958_v10  ;;  %v3410_v21 = vmul.f32 0.6931472, %v6590_v34 }
 0x3e4   : > { %13303 = vst [vmem:[#allocation44_spill] sm:$0xff] %v10884_v4  ;;  %6613 = vlog2.f32 %v3444_v60  ;;  %v6594_v62 = vpop.eup %6593  ;;  %v10891_v18 = vadd.f32 %v2510_v29, %v2509_v55  ;;  %v10894_v14 = vadd.f32 %v13307_v24, %v3408_v63  ;;  %v10902_v56 = vmul.f32 0.6931472, %v6592_v5  ;;  %v13314_v55 = vld [vmem:[#allocation6_spill] sm:$0xff] }
 0x3e5   : > { %13305 = vst [vmem:[#allocation13_spill] sm:$0xff] %v10887_v27  ;;  %v6596_v58 = vpop.eup %6595  ;;  %v10896_v51 = vadd.f32 %v2519_v28, %v2518_v31  ;;  %v10900_v10 = vadd.f32 %v13310_v7, %v3410_v21  ;;  %v10905_v44 = vmul.f32 0.6931472, %v6594_v62  ;;  %6615 = vlog2.f32 %v3895_v57  ;;  %v13316_v21 = vld [vmem:[#allocation35_spill] sm:$0xff] }
 0x3e6   : > { %13306 = vst [vmem:[#allocation55_spill] sm:$0xff] %v10891_v18  ;;  %13308 = vst [vmem:[#allocation25_spill] sm:$0xff] %v10894_v14  ;;  %v6598_v60 = vpop.eup %6597  ;;  %v4491_v29 = vadd.f32 %v13314_v55, %v10866_v1  ;;  %v10910_v28 = vmul.f32 0.6931472, %v6596_v58  ;;  %6617 = vlog2.f32 %v3896_v54  ;;  %v4492_v24 = vadd.f32 %v13316_v21, %v10881_v59 }
 0x3e7   : > { %13309 = vst [vmem:[#allocation30_spill] sm:$0xff] %v10896_v51  ;;  %13311 = vst [vmem:[#allocation27_spill] sm:$0xff] %v10900_v10  ;;  %v6600_v63 = vpop.eup %6599  ;;  %6619 = vlog2.f32 %v4347_v17  ;;  %v4541_v62 = vadd.f32 %v13123_v40, %v10866_v1  ;;  %v4542_v31 = vadd.f32 %v13124_v30, %v10881_v59  ;;  %v13318_v17 = vld [vmem:[#allocation119_spill] sm:$0xff]  ;;  %v4791_v4 = vadd.f32 %v10820_v16, %v10866_v1 }
 0x3e8   : > { %13312 = vst [vmem:[#allocation63_spill] sm:$0xff] %v10902_v56  ;;  %13313 = vst [vmem:[#allocation70_spill] sm:$0xff] %v10905_v44  ;;  %v6602_v5 = vpop.eup %6601  ;;  %v2095_v7 = vmul.f32 0.6931472, %v6600_v63  ;;  %v4499_v38 = vmax.f32 %v4491_v29, 1e-20  ;;  %6621 = vlog2.f32 %v4348_v22 }
 0x3e9   : > { %13315 = vst [vmem:[#allocation71_spill] sm:$0xff] %v10910_v28  ;;  %v6604_v57 = vpop.eup %6603  ;;  %v2097_v34 = vmul.f32 0.6931472, %v6602_v5  ;;  %v4500_v42 = vmax.f32 %v4492_v24, 1e-20  ;;  %v13320_v24 = vld [vmem:[#allocation120_spill] sm:$0xff] }
 0x3ea   : > { %v6606_v58 = vpop.eup %6605  ;;  %v10919_v54 = vadd.f32 %v13317_v61, %v2095_v7  ;;  %v2554_v28 = vmul.f32 0.6931472, %v6604_v57  ;;  %6623 = vlog2.f32 %v4499_v38  ;;  %v4549_v44 = vmax.f32 %v4541_v62, 1e-20  ;;  %v13323_v38 = vld [vmem:[#allocation129_spill] sm:$0xff] }
 0x3eb   : > { %v6608_v63 = vpop.eup %6607  ;;  %v10922_v29 = vadd.f32 %v13318_v17, %v2097_v34  ;;  %v2556_v56 = vmul.f32 0.6931472, %v6606_v58  ;;  %6625 = vlog2.f32 %v4500_v42  ;;  %v4550_v10 = vmax.f32 %v4542_v31, 1e-20  ;;  %v13325_v31 = vld [vmem:[#allocation137_spill] sm:$0xff]  ;;  %v1700_v42 = vpop.permute.xlu1 %1699 }
 0x3ec   : > { %v6610_v5 = vpop.eup %6609  ;;  %v10926_v14 = vadd.f32 %v13320_v24, %v2554_v28  ;;  %v3006_v27 = vmul.f32 0.6931472, %v6608_v63  ;;  %6627 = vlog2.f32 %v4549_v44  ;;  %v10928_v7 = vmul.f32 0.6931472, %v6598_v60  ;;  %v13327_v63 = vld [vmem:[#allocation138_spill] sm:$0xff] }
 0x3ed   : > { %13319 = vst [vmem:[#allocation18_spill] sm:$0xff] %v10922_v29  ;;  %v10931_v62 = vadd.f32 %v13323_v38, %v2556_v56  ;;  %v3008_v57 = vmul.f32 0.6931472, %v6610_v5  ;;  %6629 = vlog2.f32 %v4550_v10  ;;  %v4591_v28 = vadd.f32 %v13126_v26, %v10866_v1 }
 0x3ee   : > { %13321 = vst [vmem:[#allocation60_spill] sm:$0xff] %v10926_v14  ;;  %v6612_v61 = vpop.eup %6611  ;;  %13322 = vst [vmem:[#allocation90_spill] sm:$0xff] %v10928_v7  ;;  %v10936_v58 = vadd.f32 %v13325_v31, %v3006_v27  ;;  %v4592_v10 = vadd.f32 %v13127_v33, %v10881_v59  ;;  %v4641_v24 = vadd.f32 %v10005_v46, %v10866_v1 }
 0x3ef   : > { %13324 = vst [vmem:[#allocation91_spill] sm:$0xff] %v10931_v62  ;;  %v10942_v60 = vadd.f32 %v13327_v63, %v3008_v57  ;;  %v10944_v17 = vmul.f32 0.6931472, %v6612_v61  ;;  %v4599_v5 = vmax.f32 %v4591_v28, 1e-20  ;;  %v4642_v27 = vadd.f32 %v10014_v37, %v10881_v59 }
 0x3f0   : > { %13326 = vst [vmem:[#allocation19_spill] sm:$0xff] %v10936_v58  ;;  %v4691_v38 = vadd.f32 %v10399_v39, %v10866_v1  ;;  %v4600_v31 = vmax.f32 %v4592_v10, 1e-20  ;;  %v4692_v57 = vadd.f32 %v10405_v13, %v10881_v59  ;;  %v4741_v61 = vadd.f32 %v10735_v41, %v10866_v1 }
 0x3f1   : > { %13328 = vst [vmem:[#allocation14_spill] sm:$0xff] %v10942_v60  ;;  %13329 = vst [vmem:[#allocation47_spill] sm:$0xff] %v10944_v17  ;;  %v6614_v56 = vpop.eup %6613  ;;  %v4742_v63 = vadd.f32 %v10754_v52, %v10881_v59  ;;  %6631 = vlog2.f32 %v4599_v5  ;;  %v4649_v28 = vmax.f32 %v4641_v24, 1e-20  ;;  %v4650_v44 = vmax.f32 %v4642_v27, 1e-20 }
 0x3f2   : > { %v4699_v22 = vmax.f32 %v4691_v38, 1e-20  ;;  %v6616_v34 = vpop.eup %6615  ;;  %v10961_v17 = vmul.f32 0.6931472, %v6614_v56  ;;  %6633 = vlog2.f32 %v4600_v31  ;;  %v4700_v10 = vmax.f32 %v4692_v57, 1e-20 }
 0x3f3   : > { %v6618_v60 = vpop.eup %6617  ;;  %6635 = vlog2.f32 %v4649_v28  ;;  %v4749_v58 = vmax.f32 %v4741_v61, 1e-20  ;;  %v4792_v5 = vadd.f32 %v10823_v32, %v10881_v59  ;;  %v4750_v27 = vmax.f32 %v4742_v63, 1e-20  ;;  %v13332_v38 = vld [vmem:[#allocation101_spill] sm:$0xff]  ;;  %v13333_v56 = vld [vmem:[#allocation102_spill] sm:$0xff] }
 0x3f4   : > { %13330 = vst [vmem:[#allocation56_spill] sm:$0xff] %v10961_v17  ;;  %v10967_v24 = vpop.eup %6619  ;;  %6637 = vlog2.f32 %v4650_v44  ;;  %v10970_v14 = vmul.f32 %v13332_v38, %v1700_v42  ;;  %v10973_v7 = vmul.f32 %v13333_v56, %v1700_v42  ;;  %v10977_v57 = vmul.f32 0.6931472, %v6616_v34 }
 0x3f5   : > { %13331 = vst [vmem:[#allocation22_spill] sm:$0xff] %v10967_v24  ;;  %v10975_v31 = vpop.eup %6621  ;;  %6639 = vlog2.f32 %v4699_v22  ;;  %v4799_v61 = vmax.f32 %v4791_v4, 1e-20  ;;  %v4800_v28 = vmax.f32 %v4792_v5, 1e-20 }
 0x3f6   : > { %13334 = vst [vmem:[#allocation172_spill] sm:$0xff] %v10975_v31  ;;  %13335 = vst [vmem:[#allocation173_spill] sm:$0xff] %v10977_v57  ;;  %6641 = vlog2.f32 %v4700_v10  ;;  %v2122_v24 = vadd.f32 %v10970_v14, %v13013_v6  ;;  %v2123_v44 = vadd.f32 %v10973_v7, %v13016_v36  ;;  %v2581_v63 = vadd.f32 %v10970_v14, %v13018_v53  ;;  %v13336_v57 = vld [vmem:[#allocation9_spill] sm:$0xff] }
 0x3f7   : > { %v6624_v17 = vpop.eup %6623  ;;  %6643 = vlog2.f32 %v4749_v58  ;;  %v2582_v34 = vadd.f32 %v10973_v7, %v13021_v2  ;;  %v3033_v4 = vadd.f32 %v10970_v14, %v13281_v25  ;;  %v13337_v58 = vld [vmem:[#allocation45_spill] sm:$0xff]  ;;  %v10995_v25 = vmul.f32 0.6931472, %v6618_v60 }
 0x3f8   : > { %v6626_v42 = vpop.eup %6625  ;;  %v4514_v62 = vmul.f32 0.6931472, %v6624_v17  ;;  %6645 = vlog2.f32 %v4750_v27  ;;  %v2130_v5 = vmax.f32 %v2122_v24, 1e-20  ;;  %v2131_v6 = vmax.f32 %v2123_v44, 1e-20  ;;  %v1444_v17 = vpop.permute.xlu0 %1443 }
 0x3f9   : > { %v6628_v22 = vpop.eup %6627  ;;  %v4516_v10 = vmul.f32 0.6931472, %v6626_v42  ;;  %6647 = vlog2.f32 %v4799_v61  ;;  %v2589_v53 = vmax.f32 %v2581_v63, 1e-20  ;;  %v2590_v29 = vmax.f32 %v2582_v34, 1e-20 }
 0x3fa   : > { %v6630_v31 = vpop.eup %6629  ;;  %v10990_v36 = vadd.f32 %v13336_v57, %v4514_v62  ;;  %v4564_v51 = vmul.f32 0.6931472, %v6628_v22  ;;  %6649 = vlog2.f32 %v4800_v28  ;;  %v13338_v42 = vld [vmem:[#allocation46_spill] sm:$0xff]  ;;  %v3034_v62 = vadd.f32 %v10973_v7, %v13282_v23  ;;  %v13339_v24 = vld [vmem:[#allocation20_spill] sm:$0xff]  ;;  %v13360_v63 = vld [vmem:[#allocation83_spill] sm:$0xff] }
 0x3fb   : > { %v10993_v18 = vadd.f32 %v13337_v58, %v4516_v10  ;;  %v4566_v2 = vmul.f32 0.6931472, %v6630_v31  ;;  %6651 = vlog2.f32 %v2130_v5  ;;  %v3041_v61 = vmax.f32 %v3033_v4, 1e-20 }
 0x3fc   : > { %v10998_v27 = vadd.f32 %v13338_v42, %v4564_v51  ;;  %6653 = vlog2.f32 %v2131_v6  ;;  %v11006_v44 = vmul.f32 %v13332_v38, %v1444_v17  ;;  %v3042_v60 = vmax.f32 %v3034_v62, 1e-20 }
 0x3fd   : > { %v11003_v57 = vadd.f32 %v13339_v24, %v4566_v2  ;;  %6655 = vlog2.f32 %v2589_v53  ;;  %v3485_v51 = vadd.f32 %v10970_v14, %v13284_v48  ;;  %v3486_v23 = vadd.f32 %v10973_v7, %v13285_v15  ;;  %v13340_v2 = vld [vmem:[#allocation26_spill] sm:$0xff] }
 0x3fe   : > { %v6632_v28 = vpop.eup %6631  ;;  %6657 = vlog2.f32 %v2590_v29  ;;  %v3937_v34 = vadd.f32 %v10970_v14, %v13286_v0  ;;  %v3938_v10 = vadd.f32 %v10973_v7, %v13287_v8  ;;  %v13341_v24 = vld [vmem:[#allocation62_spill] sm:$0xff]  ;;  %v4389_v8 = vadd.f32 %v10970_v14, %v10520_v47 }
 0x3ff   : > { %v6634_v4 = vpop.eup %6633  ;;  %v4614_v38 = vmul.f32 0.6931472, %v6632_v28  ;;  %6659 = vlog2.f32 %v3041_v61  ;;  %v3493_v22 = vmax.f32 %v3485_v51, 1e-20  ;;  %v3494_v48 = vmax.f32 %v3486_v23, 1e-20 }
 0x400   : > { %v6636_v5 = vpop.eup %6635  ;;  %v4616_v6 = vmul.f32 0.6931472, %v6634_v4  ;;  %6661 = vlog2.f32 %v3042_v60  ;;  %v3945_v53 = vmax.f32 %v3937_v34, 1e-20  ;;  %v3946_v0 = vmax.f32 %v3938_v10, 1e-20 }
 0x401   : > { %v6638_v58 = vpop.eup %6637  ;;  %v11020_v15 = vadd.f32 %v13340_v2, %v4614_v38  ;;  %6663 = vlog2.f32 %v3493_v22  ;;  %v11028_v51 = vmul.f32 0.6931472, %v6636_v5  ;;  %v4390_v28 = vadd.f32 %v10973_v7, %v10537_v3 }
 0x402   : > { %v6640_v42 = vpop.eup %6639  ;;  %v11024_v61 = vadd.f32 %v13341_v24, %v4616_v6  ;;  %6665 = vlog2.f32 %v3494_v48  ;;  %v4841_v23 = vadd.f32 %v10970_v14, %v10866_v1  ;;  %v11036_v4 = vmul.f32 0.6931472, %v6638_v58 }
 0x403   : > { %v6642_v60 = vpop.eup %6641  ;;  %6667 = vlog2.f32 %v3945_v53  ;;  %v4397_v38 = vmax.f32 %v4389_v8, 1e-20  ;;  %v4842_v22 = vadd.f32 %v10973_v7, %v10881_v59  ;;  %v4398_v10 = vmax.f32 %v4390_v28, 1e-20 }
 0x404   : > { %v11034_v34 = vpop.eup %6643  ;;  %6669 = vlog2.f32 %v3946_v0  ;;  %v4849_v5 = vmax.f32 %v4841_v23, 1e-20  ;;  %v11043_v6 = vmul.f32 %v13333_v56, %v1444_v17  ;;  %v4943_v3 = vadd.f32 %v13314_v55, %v11006_v44 }
 0x405   : > { %13342 = vst [vmem:[#allocation174_spill] sm:$0xff] %v11034_v34  ;;  %v11040_v47 = vpop.eup %6645  ;;  %6671 = vlog2.f32 %v4397_v38  ;;  %v4850_v48 = vmax.f32 %v4842_v22, 1e-20  ;;  %v4993_v53 = vadd.f32 %v13123_v40, %v11006_v44  ;;  %v5043_v59 = vadd.f32 %v13126_v26, %v11006_v44 }
 0x406   : > { %13343 = vst [vmem:[#allocation6_spill] sm:$0xff] %v11040_v47  ;;  %v11047_v1 = vpop.eup %6647  ;;  %6673 = vlog2.f32 %v4398_v10  ;;  %v4944_v56 = vadd.f32 %v13316_v21, %v11043_v6  ;;  %v4951_v17 = vmax.f32 %v4943_v3, 1e-20  ;;  %v4994_v55 = vadd.f32 %v13124_v30, %v11043_v6 }
 0x407   : > { %13344 = vst [vmem:[#allocation35_spill] sm:$0xff] %v11047_v1  ;;  %v11053_v58 = vpop.eup %6649  ;;  %6675 = vlog2.f32 %v4849_v5  ;;  %v5001_v0 = vmax.f32 %v4993_v53, 1e-20  ;;  %v5044_v24 = vadd.f32 %v13127_v33, %v11043_v6  ;;  %v5051_v40 = vmax.f32 %v5043_v59, 1e-20 }
 0x408   : > { %13345 = vst [vmem:[#allocation117_spill] sm:$0xff] %v11053_v58  ;;  %v6652_v2 = vpop.eup %6651  ;;  %6677 = vlog2.f32 %v4850_v48  ;;  %v4952_v26 = vmax.f32 %v4944_v56, 1e-20  ;;  %v5002_v23 = vmax.f32 %v4994_v55, 1e-20  ;;  %v5093_v10 = vadd.f32 %v10005_v46, %v11006_v44 }
 0x409   : > { %v6654_v8 = vpop.eup %6653  ;;  %v2145_v28 = vmul.f32 0.6931472, %v6652_v2  ;;  %6679 = vlog2.f32 %v4951_v17  ;;  %v5052_v21 = vmax.f32 %v5044_v24, 1e-20  ;;  %v5094_v33 = vadd.f32 %v10014_v37, %v11043_v6 }
 0x40a   : > { %v6656_v38 = vpop.eup %6655  ;;  %v2147_v22 = vmul.f32 0.6931472, %v6654_v8  ;;  %6681 = vlog2.f32 %v4952_v26  ;;  %v11068_v48 = vmul.f32 0.6931472, %v6640_v42  ;;  %v11076_v24 = vmul.f32 0.6931472, %v6642_v60 }
 0x40b   : > { %v6658_v30 = vpop.eup %6657  ;;  %v11064_v5 = vadd.f32 %v10773_v43, %v2145_v28  ;;  %v2604_v3 = vmul.f32 0.6931472, %v6656_v38  ;;  %6683 = vlog2.f32 %v5001_v0  ;;  %v5101_v43 = vmax.f32 %v5093_v10, 1e-20 }
 0x40c   : > { %v6660_v53 = vpop.eup %6659  ;;  %v11071_v59 = vadd.f32 %v10776_v19, %v2147_v22  ;;  %v2606_v56 = vmul.f32 0.6931472, %v6658_v30  ;;  %6685 = vlog2.f32 %v5002_v23  ;;  %13346 = vst [vmem:[#allocation119_spill] sm:$0xff] %v11076_v24  ;;  %v5143_v22 = vadd.f32 %v10399_v39, %v11006_v44  ;;  %v13452_v24 = vld [vmem:[#allocation77_spill] sm:$0xff] }
 0x40d   : > { %v6662_v17 = vpop.eup %6661  ;;  %v11074_v46 = vadd.f32 %v10779_v49, %v2604_v3  ;;  %v3056_v55 = vmul.f32 0.6931472, %v6660_v53  ;;  %6687 = vlog2.f32 %v5051_v40  ;;  %v2151_v19 = vrot.slane %v11064_v5, 4 }
 0x40e   : > { %v6664_v2 = vpop.eup %6663  ;;  %v11079_v37 = vadd.f32 %v10782_v45, %v2606_v56  ;;  %v3058_v42 = vmul.f32 0.6931472, %v6662_v17  ;;  %v2160_v0 = vrot.slane %v11071_v59, 4  ;;  %6689 = vlog2.f32 %v5052_v21 }
 0x40f   : > { %v6666_v8 = vpop.eup %6665  ;;  %v11084_v28 = vadd.f32 %v10787_v12, %v3056_v55  ;;  %v11090_v23 = vmul.f32 0.6931472, %v6664_v2  ;;  %v5102_v45 = vmax.f32 %v5094_v33, 1e-20  ;;  %6691 = vlog2.f32 %v5101_v43 }
 0x410   : > { %v6668_v49 = vpop.eup %6667  ;;  %v11088_v60 = vadd.f32 %v10793_v20, %v3058_v42  ;;  %v5144_v12 = vadd.f32 %v10405_v13, %v11043_v6  ;;  %v11097_v21 = vmul.f32 0.6931472, %v6666_v8  ;;  %v5193_v20 = vadd.f32 %v10735_v41, %v11006_v44 }
 0x411   : > { %v6670_v38 = vpop.eup %6669  ;;  %6693 = vlog2.f32 %v5102_v45  ;;  %v5194_v10 = vadd.f32 %v10754_v52, %v11043_v6  ;;  %v5151_v3 = vmax.f32 %v5143_v22, 1e-20  ;;  %v5243_v53 = vadd.f32 %v10820_v16, %v11006_v44  ;;  %v13349_v45 = vld [vmem:[#allocation180_spill] sm:$0xff] }
 0x412   : > { %v11103_v30 = vpop.eup %6671  ;;  %v5152_v33 = vmax.f32 %v5144_v12, 1e-20  ;;  %v5244_v39 = vadd.f32 %v10823_v32, %v11043_v6  ;;  %v5201_v56 = vmax.f32 %v5193_v20, 1e-20  ;;  %v5293_v41 = vadd.f32 %v10970_v14, %v11006_v44 }
 0x413   : > { %v11109_v13 = vpop.eup %6673  ;;  %v5202_v17 = vmax.f32 %v5194_v10, 1e-20  ;;  %v5294_v52 = vadd.f32 %v10973_v7, %v11043_v6  ;;  %v11117_v43 = vmul.f32 0.6931472, %v6668_v49  ;;  %v11119_v2 = vmul.f32 0.6931472, %v6670_v38 }
 0x414   : > { %v11115_v55 = vpop.eup %6675  ;;  %6695 = vlog2.f32 %v5151_v3  ;;  %v5251_v16 = vmax.f32 %v5243_v53, 1e-20  ;;  %v5252_v32 = vmax.f32 %v5244_v39, 1e-20  ;;  %v5301_v8 = vmax.f32 %v5293_v41, 1e-20 }
 0x415   : > { %13347 = vst [vmem:[#allocation120_spill] sm:$0xff] %v11115_v55  ;;  %v11121_v42 = vpop.eup %6677  ;;  %6697 = vlog2.f32 %v5152_v33  ;;  %v13350_v22 = vrot.slane %v13349_v45, 1  ;;  %v5302_v7 = vmax.f32 %v5294_v52, 1e-20  ;;  %v2005_v6 = vrot.slane %v10605_v11, 1 }
 0x416   : > { %13348 = vst [vmem:[#allocation129_spill] sm:$0xff] %v11121_v42  ;;  %v6680_v44 = vpop.eup %6679  ;;  %6699 = vlog2.f32 %v5201_v56  ;;  %v13351_v49 = vrot.slane %v10874_v9, 2  ;;  %v2014_v10 = vrot.slane %v10607_v50, 1  ;;  %v13352_v3 = vrot.slane %v10877_v35, 2  ;;  %v13353_v56 = vld [vmem:[#allocation181_spill] sm:$0xff] }
 0x417   : > { %v11126_v14 = vadd.f32 %v13350_v22, %v13349_v45  ;;  %v6682_v12 = vpop.eup %6681  ;;  %v4966_v20 = vmul.f32 0.6931472, %v6680_v44  ;;  %6701 = vlog2.f32 %v5202_v17  ;;  %v13354_v41 = vrot.slane %v13353_v56, 1  ;;  %v13356_v17 = vld [vmem:[#allocation10_spill] sm:$0xff] }
 0x418   : > { %v2054_v38 = vadd.f32 %v13351_v49, %v10874_v9  ;;  %v2063_v33 = vadd.f32 %v13352_v3, %v10877_v35  ;;  %v6684_v53 = vpop.eup %6683  ;;  %v4968_v39 = vmul.f32 0.6931472, %v6682_v12  ;;  %6703 = vlog2.f32 %v5251_v16  ;;  %v13358_v12 = vld [vmem:[#allocation48_spill] sm:$0xff] }
 0x419   : > { %v11139_v52 = vadd.f32 %v13354_v41, %v13353_v56  ;;  %v13355_v9 = vrot.slane %v10919_v54, 4  ;;  %v6686_v22 = vpop.eup %6685  ;;  %v11145_v44 = vadd.f32 %v13356_v17, %v4966_v20  ;;  %v5016_v49 = vmul.f32 0.6931472, %v6684_v53  ;;  %v13368_v53 = vld [vmem:[#allocation18_spill] sm:$0xff] }
 0x41a   : > { %v2006_v62 = vadd.f32 %v2005_v6, %v10605_v11  ;;  %v2055_v35 = vrot.slane %v2054_v38, 1  ;;  %v6688_v3 = vpop.eup %6687  ;;  %v11149_v16 = vadd.f32 %v13358_v12, %v4968_v39  ;;  %v5018_v29 = vmul.f32 0.6931472, %v6686_v22 }
 0x41b   : > { %v2102_v45 = vadd.f32 %v13355_v9, %v10919_v54  ;;  %13357 = vst [vmem:[#allocation137_spill] sm:$0xff] %v11145_v44  ;;  %6705 = vlog2.f32 %v5252_v32  ;;  %v2064_v56 = vrot.slane %v2063_v33, 1  ;;  %v6690_v41 = vpop.eup %6689  ;;  %v11152_v31 = vadd.f32 %v13360_v63, %v5016_v49  ;;  %v13362_v9 = vld [vmem:[#allocation43_spill] sm:$0xff]  ;;  %v13402_v44 = vld [vmem:[#allocation168_spill] sm:$0xff] }
 0x41c   : > { %13359 = vst [vmem:[#allocation138_spill] sm:$0xff] %v11149_v16  ;;  %v5066_v54 = vmul.f32 0.6931472, %v6688_v3  ;;  %6707 = vlog2.f32 %v5301_v8  ;;  %v2015_v20 = vadd.f32 %v2014_v10, %v10607_v50  ;;  %v11157_v11 = vadd.f32 %v13362_v9, %v5018_v29  ;;  %v6692_v39 = vpop.eup %6691  ;;  %v13364_v32 = vld [vmem:[#allocation11_spill] sm:$0xff]  ;;  %v13366_v3 = vld [vmem:[#allocation142_spill] sm:$0xff] }
 0x41d   : > { %13361 = vst [vmem:[#allocation101_spill] sm:$0xff] %v11152_v31  ;;  %v5068_v6 = vmul.f32 0.6931472, %v6690_v41  ;;  %6709 = vlog2.f32 %v5302_v7  ;;  %v2056_v12 = vadd.f32 %v2055_v35, %v2054_v38  ;;  %v2103_v63 = vrot.slane %v2102_v45, 2  ;;  %v13375_v7 = vld [vmem:[#allocation124_spill] sm:$0xff] }
 0x41e   : > { %13363 = vst [vmem:[#allocation102_spill] sm:$0xff] %v11157_v11  ;;  %v11161_v17 = vadd.f32 %v13364_v32, %v5066_v54  ;;  %v6694_v49 = vpop.eup %6693  ;;  %v2065_v10 = vadd.f32 %v2064_v56, %v2063_v33  ;;  %v13369_v29 = vrot.slane %v13368_v53, 4  ;;  %v2152_v54 = vadd.f32 %v2151_v19, %v11064_v5  ;;  %v13370_v32 = vld [vmem:[#allocation164_spill] sm:$0xff]  ;;  %v13401_v11 = vld [vmem:[#allocation114_spill] sm:$0xff] }
 0x41f   : > { %v11165_v50 = vadd.f32 %v13366_v3, %v5068_v6  ;;  %v2104_v9 = vadd.f32 %v2103_v63, %v2102_v45  ;;  %v2161_v38 = vadd.f32 %v2160_v0, %v11071_v59  ;;  %v13371_v3 = vld [vmem:[#allocation112_spill] sm:$0xff]  ;;  %v11184_v5 = vmul.f32 0.6931472, %v6692_v39  ;;  %v13374_v59 = vld [vmem:[#allocation113_spill] sm:$0xff] }
 0x420   : > { %13365 = vst [vmem:[#allocation9_spill] sm:$0xff] %v11161_v17  ;;  %v2111_v41 = vadd.f32 %v13369_v29, %v13368_v53  ;;  %v2153_v6 = vrot.slane %v2152_v54, 2  ;;  %v2167_v45 = vsel %vm2166_vm0, %v13371_v3, %v13370_v32  ;;  %v13373_v29 = vld [vmem:[#allocation166_spill] sm:$0xff]  ;;  %v11193_v40 = vmul.f32 0.6931472, %v6694_v49  ;;  %v13379_v39 = vld [vmem:[#allocation125_spill] sm:$0xff] }
 0x421   : > { %13367 = vst [vmem:[#allocation45_spill] sm:$0xff] %v11165_v50  ;;  %v11177_v33 = vpop.eup %6695  ;;  %v2105_v56 = vrot.slane %v2104_v9, 1  ;;  %v2162_v53 = vrot.slane %v2161_v38, 2  ;;  %13372 = vst [vmem:[#allocation46_spill] sm:$0xff] %v11184_v5  ;;  %v2168_v0 = vsel %vm2166_vm0, %v13374_v59, %v13373_v29  ;;  %v2170_v8 = vsel %vm2169_vm1, %v2167_v45, %v13375_v7  ;;  %v13400_v5 = vld [vmem:[#allocation167_spill] sm:$0xff] }
 0x422   : > { %v2112_v35 = vrot.slane %v2111_v41, 2  ;;  %v11182_v63 = vpop.eup %6697  ;;  %13377 = vst [vmem:[#allocation26_spill] sm:$0xff] %v11193_v40  ;;  %v2154_v50 = vadd.f32 %v2153_v6, %v2152_v54  ;;  %v2625_v31 = vsel %vm2166_vm0, %v13401_v11, %v13400_v5 }
 0x423   : > { %v11191_v22 = vpop.eup %6699  ;;  %v2106_v26 = vadd.f32 %v2105_v56, %v2104_v9  ;;  %v2163_v17 = vadd.f32 %v2162_v53, %v2161_v38 }
 0x424   : > { %v2113_v19 = vadd.f32 %v2112_v35, %v2111_v41  ;;  %13376 = vst [vmem:[#allocation20_spill] sm:$0xff] %v11191_v22  ;;  %v11195_v32 = vpop.eup %6701  ;;  %v2171_v41 = vsel %vm2169_vm1, %v2168_v0, %v13379_v39  ;;  %v2173_v35 = vsel %vm2172_vm2, %v2170_v8, %v11126_v14  ;;  %v2155_v7 = vrot.slane %v2154_v50, 1 }
 0x425   : > { %13378 = vst [vmem:[#allocation62_spill] sm:$0xff] %v11195_v32  ;;  %v11201_v29 = vpop.eup %6703  ;;  %v2164_v45 = vrot.slane %v2163_v17, 1  ;;  %v2174_v49 = vsel %vm2172_vm2, %v2171_v41, %v11139_v52  ;;  %v2176_v9 = vsel %vm2175_vm3, %v2173_v35, %v2006_v62  ;;  %v13383_v62 = vld [vmem:[#allocation58_spill] sm:$0xff]  ;;  %v13388_v41 = vld [vmem:[#allocation21_spill] sm:$0xff] }
 0x426   : > { %v2114_v3 = vrot.slane %v2113_v19, 1  ;;  %13380 = vst [vmem:[#allocation180_spill] sm:$0xff] %v11201_v29  ;;  %v2177_v38 = vsel %vm2175_vm3, %v2174_v49, %v2015_v20  ;;  %v2156_v6 = vadd.f32 %v2155_v7, %v2154_v50  ;;  %v2179_v14 = vsel %vm2178_vm4, %v2176_v9, %v2056_v12  ;;  %v13386_v12 = vld [vmem:[#allocation24_spill] sm:$0xff]  ;;  %v13390_v9 = vld [vmem:[#allocation55_spill] sm:$0xff] }
 0x427   : > { %v2165_v53 = vadd.f32 %v2164_v45, %v2163_v17  ;;  %v2180_v8 = vsel %vm2178_vm4, %v2177_v38, %v2065_v10  ;;  %v2182_v0 = vsel %vm2181_vm5, %v2179_v14, %v2106_v26  ;;  %v13384_v20 = vrot.slane %v13383_v62, 1  ;;  %v13389_v45 = vld [vmem:[#allocation80_spill] sm:$0xff] }
 0x428   : > { %v2115_v54 = vadd.f32 %v2114_v3, %v2113_v19  ;;  %v11207_v56 = vpop.eup %6705  ;;  %v2185_v50 = vsel %vm2184_vm6, %v2182_v0, %v2156_v6  ;;  %v13387_v10 = vrot.slane %v13386_v12, 1  ;;  %v2464_v35 = vrot.slane %v13388_v41, 1  ;;  %v13394_v0 = vld [vmem:[#allocation60_spill] sm:$0xff] }
 0x429   : > { %13381 = vst [vmem:[#allocation181_spill] sm:$0xff] %v11207_v56  ;;  %v11211_v59 = vpop.eup %6707  ;;  %v2415_v19 = vadd.f32 %v13384_v20, %v13383_v62  ;;  %v2187_v26 = vrot.slane %v2185_v50, 4  ;;  %v2473_v49 = vrot.slane %v13389_v45, 1  ;;  %v13396_v20 = vld [vmem:[#allocation91_spill] sm:$0xff] }
 0x42a   : > { %13382 = vst [vmem:[#allocation10_spill] sm:$0xff] %v11211_v59  ;;  %v2183_v52 = vsel %vm2181_vm5, %v2180_v8, %v2115_v54  ;;  %v11218_v3 = vpop.eup %6709  ;;  %v2424_v39 = vadd.f32 %v13387_v10, %v13386_v12  ;;  %v13391_v54 = vrot.slane %v13390_v9, 2  ;;  %v2465_v14 = vadd.f32 %v2464_v35, %v13388_v41  ;;  %v13392_v8 = vld [vmem:[#allocation30_spill] sm:$0xff] }
 0x42b   : > { %13385 = vst [vmem:[#allocation48_spill] sm:$0xff] %v11218_v3  ;;  %v2186_v17 = vsel %vm2184_vm6, %v2183_v52, %v2165_v53  ;;  %v13393_v6 = vrot.slane %v13392_v8, 2  ;;  %v13395_v52 = vrot.slane %v13394_v0, 4  ;;  %v13397_v12 = vrot.slane %v13396_v20, 4 }
 0x42c   : > { %v2193_v7 = vrot.slane %v2186_v17, 4  ;;  %v2513_v38 = vadd.f32 %v13391_v54, %v13390_v9  ;;  %v2188_v3 = vmax.f32 %v2185_v50, %v2187_v26  ;;  %v2474_v56 = vadd.f32 %v2473_v49, %v13389_v45 }
 0x42d   : > { %v2522_v53 = vadd.f32 %v13393_v6, %v13392_v8  ;;  %v2561_v62 = vadd.f32 %v13395_v52, %v13394_v0  ;;  %v2570_v10 = vadd.f32 %v13397_v12, %v13396_v20  ;;  %v13398_v35 = vrot.slane %v11074_v46, 4 }
 0x42e   : > { %v2194_v59 = vmax.f32 %v2186_v17, %v2193_v7  ;;  %v2514_v29 = vrot.slane %v2513_v38, 1  ;;  %v2189_v6 = vrot.slane %v2188_v3, 2  ;;  %v13399_v0 = vrot.slane %v11079_v37, 4 }
 0x42f   : > { %v2523_v9 = vrot.slane %v2522_v53, 1  ;;  %v2562_v54 = vrot.slane %v2561_v62, 2  ;;  %v2571_v41 = vrot.slane %v2570_v10, 2  ;;  %v2611_v8 = vadd.f32 %v13398_v35, %v11074_v46 }
 0x430   : > { %v2195_v32 = vrot.slane %v2194_v59, 2  ;;  %v2515_v22 = vadd.f32 %v2514_v29, %v2513_v38  ;;  %v2620_v52 = vadd.f32 %v13399_v0, %v11079_v37  ;;  %v2190_v45 = vmax.f32 %v2188_v3, %v2189_v6  ;;  %v13403_v29 = vld [vmem:[#allocation115_spill] sm:$0xff] }
 0x431   : > { %v2524_v20 = vadd.f32 %v2523_v9, %v2522_v53  ;;  %v2563_v26 = vadd.f32 %v2562_v54, %v2561_v62  ;;  %v2572_v7 = vadd.f32 %v2571_v41, %v2570_v10  ;;  %v2612_v12 = vrot.slane %v2611_v8, 2  ;;  %v13404_v62 = vld [vmem:[#allocation126_spill] sm:$0xff]  ;;  %v13405_v9 = vld [vmem:[#allocation128_spill] sm:$0xff]  ;;  %v13406_v0 = vld [vmem:[#allocation123_spill] sm:$0xff] }
 0x432   : > { %v2196_v49 = vmax.f32 %v2194_v59, %v2195_v32  ;;  %v2621_v40 = vrot.slane %v2620_v52, 2  ;;  %v2626_v38 = vsel %vm2166_vm0, %v13403_v29, %v13402_v44  ;;  %v2191_v42 = vrot.slane %v2190_v45, 1 }
 0x433   : > { %v2564_v16 = vrot.slane %v2563_v26, 1  ;;  %v2573_v46 = vrot.slane %v2572_v7, 1  ;;  %v2613_v35 = vadd.f32 %v2612_v12, %v2611_v8  ;;  %v2627_v10 = vsel %vm2169_vm1, %v2625_v31, %v13404_v62 }
 0x434   : > { %v2197_v37 = vrot.slane %v2196_v49, 1  ;;  %v2622_v53 = vadd.f32 %v2621_v40, %v2620_v52  ;;  %v2628_v54 = vsel %vm2169_vm1, %v2626_v38, %v13405_v9  ;;  %v11257_v11 = vmax.f32 %v2190_v45, %v2191_v42  ;;  %v13408_v45 = vld [vmem:[#allocation127_spill] sm:$0xff] }
 0x435   : > { %v2565_v3 = vadd.f32 %v2564_v16, %v2563_v26  ;;  %v2574_v32 = vadd.f32 %v2573_v46, %v2572_v7  ;;  %v2614_v59 = vrot.slane %v2613_v35, 1  ;;  %v2629_v8 = vsel %vm2172_vm2, %v2627_v10, %v2415_v19  ;;  %v13412_v10 = vld [vmem:[#allocation72_spill] sm:$0xff]  ;;  %v13414_v9 = vld [vmem:[#allocation75_spill] sm:$0xff] }
 0x436   : > { %v11259_v5 = vmax.f32 %v2196_v49, %v2197_v37  ;;  %v2623_v41 = vrot.slane %v2622_v53, 1  ;;  %v2630_v6 = vsel %vm2172_vm2, %v2628_v54, %v2424_v39  ;;  %v2631_v40 = vsel %vm2175_vm3, %v2629_v8, %v2465_v14  ;;  %v13410_v49 = vld [vmem:[#allocation29_spill] sm:$0xff]  ;;  %v13416_v8 = vld [vmem:[#allocation44_spill] sm:$0xff] }
 0x437   : > { %v2615_v44 = vadd.f32 %v2614_v59, %v2613_v35  ;;  %v13407_v31 = vrot.slane %v13406_v0, 1  ;;  %v2199_v52 = vsub.f32 %v2185_v50, %v11257_v11  ;;  %v2632_v7 = vsel %vm2175_vm3, %v2630_v6, %v2474_v56 }
 0x438   : > { %v2200_v42 = vsub.f32 %v2186_v17, %v11259_v5  ;;  %v2624_v26 = vadd.f32 %v2623_v41, %v2622_v53  ;;  %v2633_v12 = vsel %vm2178_vm4, %v2631_v40, %v2515_v22  ;;  %v2634_v19 = vsel %vm2178_vm4, %v2632_v7, %v2524_v20  ;;  %v13411_v20 = vld [vmem:[#allocation67_spill] sm:$0xff] }
 0x439   : > { %v11267_v16 = vadd.f32 %v13407_v31, %v13406_v0  ;;  %v13409_v39 = vrot.slane %v13408_v45, 1  ;;  %v2866_v46 = vrot.slane %v13410_v49, 1  ;;  %v2201_v35 = vmul.f32 1.442695, %v2199_v52  ;;  %v13418_v52 = vld [vmem:[#allocation13_spill] sm:$0xff] }
 0x43a   : > { %v2203_v29 = vmul.f32 1.442695, %v2200_v42  ;;  %v2635_v50 = vsel %vm2181_vm5, %v2633_v12, %v2565_v3  ;;  %v2636_v17 = vsel %vm2181_vm5, %v2634_v19, %v2574_v32  ;;  %v2875_v37 = vrot.slane %v13411_v20, 1  ;;  %v13420_v19 = vld [vmem:[#allocation19_spill] sm:$0xff] }
 0x43b   : > { %v11277_v14 = vadd.f32 %v13409_v39, %v13408_v45  ;;  %v11283_v38 = vsel %vm2184_vm6, %v2635_v50, %v2615_v44  ;;  %v11286_v22 = vsel %vm2184_vm6, %v2636_v17, %v2624_v26  ;;  %v11289_v56 = vadd.f32 %v2866_v46, %v13410_v49  ;;  %v13421_v39 = vld [vmem:[#allocation14_spill] sm:$0xff] }
 0x43c   : > { %6711 = vpow2.f32 %v2201_v35  ;;  %v2639_v53 = vrot.slane %v11283_v38, 4  ;;  %v2645_v62 = vrot.slane %v11286_v22, 4  ;;  %v13413_v3 = vrot.slane %v13412_v10, 2 }
 0x43d   : > { %6713 = vpow2.f32 %v2203_v29  ;;  %v11298_v59 = vadd.f32 %v2875_v37, %v13411_v20  ;;  %v13415_v54 = vrot.slane %v13414_v9, 2  ;;  %v13417_v44 = vrot.slane %v13416_v8, 4 }
 0x43e   : > { %v2915_v32 = vadd.f32 %v13413_v3, %v13412_v10  ;;  %v2640_v40 = vmax.f32 %v11283_v38, %v2639_v53  ;;  %v2646_v0 = vmax.f32 %v11286_v22, %v2645_v62  ;;  %v13419_v42 = vrot.slane %v13418_v52, 4 }
 0x43f   : > { %v2924_v41 = vadd.f32 %v13415_v54, %v13414_v9  ;;  %v2963_v6 = vadd.f32 %v13417_v44, %v13416_v8  ;;  %v3012_v45 = vrot.slane %v13420_v19, 4  ;;  %v3021_v49 = vrot.slane %v13421_v39, 4 }
 0x440   : > { %v2916_v31 = vrot.slane %v2915_v32, 1  ;;  %v2972_v26 = vadd.f32 %v13419_v42, %v13418_v52  ;;  %v2641_v46 = vrot.slane %v2640_v40, 2  ;;  %v2647_v35 = vrot.slane %v2646_v0, 2 }
 0x441   : > { %v2925_v7 = vrot.slane %v2924_v41, 1  ;;  %v2964_v12 = vrot.slane %v2963_v6, 2  ;;  %v3013_v37 = vadd.f32 %v3012_v45, %v13420_v19  ;;  %v3022_v53 = vadd.f32 %v3021_v49, %v13421_v39 }
 0x442   : > { %v2917_v29 = vadd.f32 %v2916_v31, %v2915_v32  ;;  %v2973_v50 = vrot.slane %v2972_v26, 2  ;;  %v2642_v62 = vmax.f32 %v2640_v40, %v2641_v46  ;;  %v2648_v10 = vmax.f32 %v2646_v0, %v2647_v35  ;;  %v13422_v46 = vld [vmem:[#allocation108_spill] sm:$0xff]  ;;  %v13423_v35 = vld [vmem:[#allocation170_spill] sm:$0xff] }
 0x443   : > { %v2926_v17 = vadd.f32 %v2925_v7, %v2924_v41  ;;  %v2965_v20 = vadd.f32 %v2964_v12, %v2963_v6  ;;  %v3062_v9 = vrot.slane %v11084_v28, 4  ;;  %v3014_v8 = vrot.slane %v3013_v37, 2 }
 0x444   : > { %v2974_v3 = vadd.f32 %v2973_v50, %v2972_v26  ;;  %v3023_v44 = vrot.slane %v3022_v53, 2  ;;  %v3071_v52 = vrot.slane %v11088_v60, 4  ;;  %v2643_v42 = vrot.slane %v2642_v62, 1 }
 0x445   : > { %v2966_v54 = vrot.slane %v2965_v20, 1  ;;  %v2649_v55 = vrot.slane %v2648_v10, 1  ;;  %v3063_v41 = vadd.f32 %v3062_v9, %v11084_v28  ;;  %v3015_v31 = vadd.f32 %v3014_v8, %v3013_v37  ;;  %v13424_v37 = vld [vmem:[#allocation109_spill] sm:$0xff] }
 0x446   : > { %v2975_v32 = vrot.slane %v2974_v3, 1  ;;  %v3024_v7 = vadd.f32 %v3023_v44, %v3022_v53  ;;  %v3072_v12 = vadd.f32 %v3071_v52, %v11088_v60  ;;  %v11319_v40 = vmax.f32 %v2642_v62, %v2643_v42  ;;  %v13425_v53 = vld [vmem:[#allocation171_spill] sm:$0xff] }
 0x447   : > { %v2967_v6 = vadd.f32 %v2966_v54, %v2965_v20  ;;  %v11321_v0 = vmax.f32 %v2648_v10, %v2649_v55  ;;  %v3064_v19 = vrot.slane %v3063_v41, 2  ;;  %v3016_v45 = vrot.slane %v3015_v31, 1 }
 0x448   : > { %v2976_v26 = vadd.f32 %v2975_v32, %v2974_v3  ;;  %v3025_v39 = vrot.slane %v3024_v7, 1  ;;  %v3073_v49 = vrot.slane %v3072_v12, 2  ;;  %v3077_v50 = vsel %vm2166_vm0, %v13423_v35, %v13422_v46 }
 0x449   : > { %v2651_v28 = vsub.f32 %v11283_v38, %v11319_v40  ;;  %v2652_v20 = vsub.f32 %v11286_v22, %v11321_v0  ;;  %v3065_v60 = vadd.f32 %v3064_v19, %v3063_v41  ;;  %v3078_v55 = vsel %vm2166_vm0, %v13425_v53, %v13424_v37  ;;  %v6712_v62 = vpop.eup %6711 }
 0x44a   : > { %v3017_v10 = vadd.f32 %v3016_v45, %v3015_v31  ;;  %v3026_v3 = vadd.f32 %v3025_v39, %v3024_v7  ;;  %v3074_v9 = vadd.f32 %v3073_v49, %v3072_v12  ;;  %v3079_v54 = vsel %vm2169_vm1, %v3077_v50, %v11267_v16  ;;  %v6714_v8 = vpop.eup %6713 }
 0x44b   : > { %v2205_v44 = vrot.slane %v6712_v62, 4  ;;  %v2653_v52 = vmul.f32 1.442695, %v2651_v28  ;;  %v2655_v42 = vmul.f32 1.442695, %v2652_v20  ;;  %v3066_v38 = vrot.slane %v3065_v60, 1 }
 0x44c   : > { %v2211_v32 = vrot.slane %v6714_v8, 4  ;;  %v3075_v46 = vrot.slane %v3074_v9, 1  ;;  %v3080_v22 = vsel %vm2169_vm1, %v3078_v55, %v11277_v14  ;;  %v3081_v41 = vsel %vm2172_vm2, %v3079_v54, %v11289_v56  ;;  %v13430_v55 = vld [vmem:[#allocation111_spill] sm:$0xff]  ;;  %v13432_v54 = vld [vmem:[#allocation185_spill] sm:$0xff] }
 0x44d   : > { %v2206_v19 = vadd.f32 %v6712_v62, %v2205_v44  ;;  %6715 = vpow2.f32 %v2653_v52  ;;  %v3067_v31 = vadd.f32 %v3066_v38, %v3065_v60  ;;  %v3082_v7 = vsel %vm2172_vm2, %v3080_v22, %v11298_v59  ;;  %v13434_v38 = vld [vmem:[#allocation182_spill] sm:$0xff]  ;;  %v13436_v22 = vld [vmem:[#allocation37_spill] sm:$0xff] }
 0x44e   : > { %v2212_v16 = vadd.f32 %v6714_v8, %v2211_v32  ;;  %6717 = vpow2.f32 %v2655_v42  ;;  %v3076_v12 = vadd.f32 %v3075_v46, %v3074_v9  ;;  %v3083_v45 = vsel %vm2175_vm3, %v3081_v41, %v2917_v29  ;;  %v13433_v8 = vld [vmem:[#allocation194_spill] sm:$0xff] }
 0x44f   : > { %v11343_v39 = vmul.f32 0.6931472, %v11177_v33  ;;  %v2207_v49 = vrot.slane %v2206_v19, 2  ;;  %v3084_v14 = vsel %vm2175_vm3, %v3082_v7, %v2926_v17  ;;  %v3085_v35 = vsel %vm2178_vm4, %v3083_v45, %v2967_v6  ;;  %v13428_v33 = vld [vmem:[#allocation110_spill] sm:$0xff] }
 0x450   : > { %v11348_v56 = vmul.f32 0.6931472, %v11182_v63  ;;  %v2213_v50 = vrot.slane %v2212_v16, 2  ;;  %v3086_v28 = vsel %vm2178_vm4, %v3084_v14, %v2976_v26  ;;  %v3087_v59 = vsel %vm2181_vm5, %v3085_v35, %v3017_v10 }
 0x451   : > { %13426 = vst [vmem:[#allocation83_spill] sm:$0xff] %v11343_v39  ;;  %v2208_v20 = vadd.f32 %v2207_v49, %v2206_v19  ;;  %v3088_v60 = vsel %vm2181_vm5, %v3086_v28, %v3026_v3  ;;  %v3089_v29 = vsel %vm2184_vm6, %v3087_v59, %v3067_v31  ;;  %v13429_v37 = vrot.slane %v13428_v33, 1  ;;  %v13440_v49 = vld [vmem:[#allocation169_spill] sm:$0xff] }
 0x452   : > { %13427 = vst [vmem:[#allocation43_spill] sm:$0xff] %v11348_v56  ;;  %v2214_v17 = vadd.f32 %v2213_v50, %v2212_v16  ;;  %v3090_v6 = vsel %vm2184_vm6, %v3088_v60, %v3076_v12  ;;  %v3091_v63 = vrot.slane %v3089_v29, 4  ;;  %v13431_v62 = vrot.slane %v13430_v55, 1  ;;  %v13438_v16 = vld [vmem:[#allocation165_spill] sm:$0xff] }
 0x453   : > { %v11357_v53 = vadd.f32 %v13429_v37, %v13428_v33  ;;  %v2209_v10 = vrot.slane %v2208_v20, 1  ;;  %v3097_v9 = vrot.slane %v3090_v6, 4  ;;  %v3268_v3 = vrot.slane %v13432_v54, 1  ;;  %v13442_v33 = vld [vmem:[#allocation103_spill] sm:$0xff] }
 0x454   : > { %v11363_v26 = vadd.f32 %v13431_v62, %v13430_v55  ;;  %v3277_v44 = vrot.slane %v13433_v8, 1  ;;  %v2215_v52 = vrot.slane %v2214_v17, 1  ;;  %v3092_v42 = vmax.f32 %v3089_v29, %v3091_v63  ;;  %v13444_v55 = vld [vmem:[#allocation104_spill] sm:$0xff] }
 0x455   : > { %v13435_v32 = vrot.slane %v13434_v38, 2  ;;  %v13437_v41 = vrot.slane %v13436_v22, 2  ;;  %v2210_v31 = vadd.f32 %v2209_v10, %v2208_v20  ;;  %v3098_v7 = vmax.f32 %v3090_v6, %v3097_v9 }
 0x456   : > { %v13439_v12 = vrot.slane %v13438_v16, 1  ;;  %v13441_v14 = vrot.slane %v13440_v49, 1  ;;  %v2216_v50 = vadd.f32 %v2215_v52, %v2214_v17  ;;  %v3093_v28 = vrot.slane %v3092_v42, 2 }
 0x457   : > { %v3317_v46 = vadd.f32 %v13435_v32, %v13434_v38  ;;  %v3326_v19 = vadd.f32 %v13437_v41, %v13436_v22  ;;  %v11384_v59 = vadd.f32 %v3268_v3, %v13432_v54  ;;  %v11387_v60 = vadd.f32 %v3277_v44, %v13433_v8  ;;  %v13446_v32 = vld [vmem:[#allocation25_spill] sm:$0xff]  ;;  %v13447_v41 = vld [vmem:[#allocation27_spill] sm:$0xff] }
 0x458   : > { %v11376_v45 = vadd.f32 %v13439_v12, %v13438_v16  ;;  %v11381_v35 = vadd.f32 %v13441_v14, %v13440_v49  ;;  %6719 = vlog2.f32 %v2210_v31  ;;  %v3099_v20 = vrot.slane %v3098_v7, 2  ;;  %v13448_v16 = vld [vmem:[#allocation47_spill] sm:$0xff]  ;;  %v13449_v12 = vld [vmem:[#allocation141_spill] sm:$0xff]  ;;  %v13450_v14 = vld [vmem:[#allocation56_spill] sm:$0xff] }
 0x459   : > { %v13443_v37 = vrot.slane %v13442_v33, 4  ;;  %v13445_v62 = vrot.slane %v13444_v55, 4  ;;  %6721 = vlog2.f32 %v2216_v50  ;;  %v3094_v9 = vmax.f32 %v3092_v42, %v3093_v28 }
 0x45a   : > { %v3318_v17 = vrot.slane %v3317_v46, 1  ;;  %v3327_v52 = vrot.slane %v3326_v19, 1  ;;  %v3100_v38 = vmax.f32 %v3098_v7, %v3099_v20  ;;  %v3414_v8 = vrot.slane %v13446_v32, 4  ;;  %v6716_v44 = vpop.eup %6715 }
 0x45b   : > { %v3365_v63 = vadd.f32 %v13443_v37, %v13442_v33  ;;  %v3374_v10 = vadd.f32 %v13445_v62, %v13444_v55  ;;  %v3095_v22 = vrot.slane %v3094_v9, 1  ;;  %v3423_v31 = vrot.slane %v13447_v41, 4  ;;  %v13451_v33 = vld [vmem:[#allocation154_spill] sm:$0xff]  ;;  %v6718_v55 = vpop.eup %6717 }
 0x45c   : > { %v3463_v49 = vadd.f32 %v13449_v12, %v13448_v16  ;;  %v3472_v37 = vadd.f32 %v13451_v33, %v13450_v14  ;;  %v2657_v50 = vrot.slane %v6716_v44, 4  ;;  %v3101_v42 = vrot.slane %v3100_v38, 1 }
 0x45d   : > { %v3366_v54 = vrot.slane %v3365_v63, 2  ;;  %v3375_v3 = vrot.slane %v3374_v10, 2  ;;  %v2663_v7 = vrot.slane %v6718_v55, 4  ;;  %v11401_v20 = vmax.f32 %v3094_v9, %v3095_v22 }
 0x45e   : > { %v3415_v56 = vadd.f32 %v3414_v8, %v13446_v32  ;;  %v3424_v39 = vadd.f32 %v3423_v31, %v13447_v41  ;;  %v2658_v58 = vadd.f32 %v6716_v44, %v2657_v50  ;;  %v11405_v1 = vmax.f32 %v3100_v38, %v3101_v42 }
 0x45f   : > { %v3367_v28 = vadd.f32 %v3366_v54, %v3365_v63  ;;  %v3376_v62 = vadd.f32 %v3375_v3, %v3374_v10  ;;  %v11407_v47 = vadd.f32 %v3318_v17, %v3317_v46  ;;  %v2664_v12 = vadd.f32 %v6718_v55, %v2663_v7 }
 0x460   : > { %v3103_v14 = vsub.f32 %v3089_v29, %v11401_v20  ;;  %v3416_v33 = vrot.slane %v3415_v56, 2  ;;  %v3425_v34 = vrot.slane %v3424_v39, 2  ;;  %v2659_v63 = vrot.slane %v2658_v58, 2 }
 0x461   : > { %v3368_v16 = vrot.slane %v3367_v28, 1  ;;  %v3104_v10 = vsub.f32 %v3090_v6, %v11405_v1  ;;  %v3328_v9 = vadd.f32 %v3327_v52, %v3326_v19  ;;  %v3377_v54 = vrot.slane %v3376_v62, 1 }
 0x462   : > { %v2665_v3 = vrot.slane %v2664_v12, 2  ;;  %v3105_v32 = vmul.f32 1.442695, %v3103_v14  ;;  %v3417_v8 = vadd.f32 %v3416_v33, %v3415_v56  ;;  %v3426_v22 = vadd.f32 %v3425_v34, %v3424_v39  ;;  %v13453_v14 = vld [vmem:[#allocation42_spill] sm:$0xff] }
 0x463   : > { %v2660_v44 = vadd.f32 %v2659_v63, %v2658_v58  ;;  %v3107_v38 = vmul.f32 1.442695, %v3104_v10  ;;  %v3464_v41 = vrot.slane %v3463_v49, 4  ;;  %v3473_v46 = vrot.slane %v3472_v37, 4 }
 0x464   : > { %v2666_v17 = vadd.f32 %v2665_v3, %v2664_v12  ;;  %6723 = vpow2.f32 %v3105_v32  ;;  %v3369_v31 = vadd.f32 %v3368_v16, %v3367_v28  ;;  %v3418_v55 = vrot.slane %v3417_v8, 1  ;;  %v13454_v16 = vld [vmem:[#allocation147_spill] sm:$0xff]  ;;  %v13455_v3 = vld [vmem:[#allocation81_spill] sm:$0xff] }
 0x465   : > { %v2661_v29 = vrot.slane %v2660_v44, 1  ;;  %6725 = vpow2.f32 %v3107_v38  ;;  %v3465_v50 = vadd.f32 %v3464_v41, %v3463_v49  ;;  %v3474_v42 = vadd.f32 %v3473_v46, %v3472_v37  ;;  %v6720_v7 = vpop.eup %6719 }
 0x466   : > { %v2667_v6 = vrot.slane %v2666_v17, 1  ;;  %v3378_v19 = vadd.f32 %v3377_v54, %v3376_v62  ;;  %v3427_v52 = vrot.slane %v3426_v22, 1  ;;  %v3512_v56 = vadd.f32 %v13453_v14, %v13452_v24  ;;  %v6722_v34 = vpop.eup %6721 }
 0x467   : > { %v2218_v58 = vmul.f32 0.6931472, %v6720_v7  ;;  %v2662_v39 = vadd.f32 %v2661_v29, %v2660_v44  ;;  %v3466_v33 = vrot.slane %v3465_v50, 2  ;;  %v3475_v63 = vrot.slane %v3474_v42, 2 }
 0x468   : > { %v2220_v12 = vmul.f32 0.6931472, %v6722_v34  ;;  %v2668_v10 = vadd.f32 %v2667_v6, %v2666_v17  ;;  %v3513_v28 = vadd.f32 %v3512_v56, %v11090_v23  ;;  %v3521_v49 = vadd.f32 %v13455_v3, %v13454_v16 }
 0x469   : > { %6727 = vlog2.f32 %v2662_v39  ;;  %v3419_v37 = vadd.f32 %v3418_v55, %v3417_v8  ;;  %v3467_v32 = vadd.f32 %v3466_v33, %v3465_v50  ;;  %v3476_v62 = vadd.f32 %v3475_v63, %v3474_v42  ;;  %v13457_v39 = vld [vmem:[#allocation192_spill] sm:$0xff] }
 0x46a   : > { %6729 = vlog2.f32 %v2668_v10  ;;  %v3428_v54 = vadd.f32 %v3427_v52, %v3426_v22  ;;  %v3514_v38 = vrot.slane %v3513_v28, 4  ;;  %v3522_v24 = vadd.f32 %v3521_v49, %v11097_v21  ;;  %v13458_v10 = vld [vmem:[#allocation116_spill] sm:$0xff]  ;;  %v13459_v49 = vld [vmem:[#allocation190_spill] sm:$0xff] }
 0x46b   : > { %v2221_v44 = vadd.f32 %v2218_v58, %v11257_v11  ;;  %v3468_v41 = vrot.slane %v3467_v32, 1  ;;  %v3477_v46 = vrot.slane %v3476_v62, 1  ;;  %v3529_v23 = vsel %vm2166_vm0, %v11357_v53, %v11376_v45 }
 0x46c   : > { %v2222_v17 = vadd.f32 %v2220_v12, %v11259_v5  ;;  %v3515_v29 = vadd.f32 %v3514_v38, %v3513_v28  ;;  %v3523_v7 = vrot.slane %v3522_v24, 4  ;;  %v3530_v8 = vsel %vm2166_vm0, %v11363_v26, %v11381_v35  ;;  %v13456_v35 = vld [vmem:[#allocation191_spill] sm:$0xff] }
 0x46d   : > { %v3469_v22 = vadd.f32 %v3468_v41, %v3467_v32  ;;  %v3478_v55 = vadd.f32 %v3477_v46, %v3476_v62  ;;  %v3531_v21 = vsel %vm2169_vm1, %v3529_v23, %v11384_v59  ;;  %v3532_v11 = vsel %vm2169_vm1, %v3530_v8, %v11387_v60  ;;  %v13461_v62 = vld [vmem:[#allocation193_spill] sm:$0xff]  ;;  %v13463_v46 = vld [vmem:[#allocation130_spill] sm:$0xff] }
 0x46e   : > { %v3516_v50 = vrot.slane %v3515_v29, 2  ;;  %v3524_v42 = vadd.f32 %v3523_v7, %v3522_v24  ;;  %v3533_v53 = vsel %vm2172_vm2, %v3531_v21, %v11407_v47  ;;  %v3534_v5 = vsel %vm2172_vm2, %v3532_v11, %v3328_v9 }
 0x46f   : > { %v11432_v45 = vadd.f32 -2.0794415, %v2221_v44  ;;  %v3535_v6 = vsel %vm2175_vm3, %v3533_v53, %v3369_v31  ;;  %v3536_v26 = vsel %vm2175_vm3, %v3534_v5, %v3378_v19  ;;  %v3620_v52 = vrot.slane %v13456_v35, 1 }
 0x470   : > { %v3517_v14 = vadd.f32 %v3516_v50, %v3515_v29  ;;  %v3525_v59 = vrot.slane %v3524_v42, 2  ;;  %v3537_v56 = vsel %vm2178_vm4, %v3535_v6, %v3419_v37  ;;  %v3538_v60 = vsel %vm2178_vm4, %v3536_v26, %v3428_v54  ;;  %v13464_v50 = vld [vmem:[#allocation188_spill] sm:$0xff] }
 0x471   : > { %v6724_v34 = vpop.eup %6723  ;;  %v11439_v58 = vadd.f32 -2.0794415, %v2222_v17  ;;  %v3539_v47 = vsel %vm2181_vm5, %v3537_v56, %v3469_v22  ;;  %v3540_v9 = vsel %vm2181_vm5, %v3538_v60, %v3478_v55  ;;  %v3629_v33 = vrot.slane %v13457_v39, 1 }
 0x472   : > { %v6726_v31 = vpop.eup %6725  ;;  %v3109_v63 = vrot.slane %v6724_v34, 4  ;;  %v3518_v19 = vrot.slane %v3517_v14, 1  ;;  %v3526_v12 = vadd.f32 %v3525_v59, %v3524_v42  ;;  %v3670_v28 = vrot.slane %v13458_v10, 1 }
 0x473   : > { %v3115_v16 = vrot.slane %v6726_v31, 4  ;;  %v11446_v3 = vadd.f32 %v3620_v52, %v13456_v35  ;;  %v13460_v37 = vrot.slane %v13459_v49, 2  ;;  %v13462_v54 = vrot.slane %v13461_v62, 2 }
 0x474   : > { %v3110_v24 = vadd.f32 %v6724_v34, %v3109_v63  ;;  %v3519_v44 = vadd.f32 %v3518_v19, %v3517_v14  ;;  %v3527_v41 = vrot.slane %v3526_v12, 1  ;;  %v3679_v23 = vrot.slane %v13463_v46, 1 }
 0x475   : > { %v3719_v32 = vadd.f32 %v13460_v37, %v13459_v49  ;;  %v3728_v38 = vadd.f32 %v13462_v54, %v13461_v62  ;;  %v3116_v17 = vadd.f32 %v6726_v31, %v3115_v16  ;;  %v11456_v29 = vadd.f32 %v3629_v33, %v13457_v39 }
 0x476   : > { %v11459_v7 = vadd.f32 %v3670_v28, %v13458_v10  ;;  %v6728_v22 = vpop.eup %6727  ;;  %v3111_v55 = vrot.slane %v3110_v24, 2  ;;  %v3528_v21 = vadd.f32 %v3527_v41, %v3526_v12  ;;  %v3541_v11 = vsel %vm2184_vm6, %v3539_v47, %v3519_v44  ;;  %v13466_v12 = vld [vmem:[#allocation189_spill] sm:$0xff] }
 0x477   : > { %v3720_v8 = vrot.slane %v3719_v32, 1  ;;  %v13465_v42 = vrot.slane %v13464_v50, 4  ;;  %v6730_v5 = vpop.eup %6729  ;;  %v2670_v6 = vmul.f32 0.6931472, %v6728_v22  ;;  %v3117_v26 = vrot.slane %v3116_v17, 2  ;;  %v13469_v22 = vld [vmem:[#allocation66_spill] sm:$0xff] }
 0x478   : > { %v3543_v35 = vrot.slane %v3541_v11, 4  ;;  %v3729_v52 = vrot.slane %v3728_v38, 1  ;;  %v2672_v14 = vmul.f32 0.6931472, %v6730_v5  ;;  %v3112_v59 = vadd.f32 %v3111_v55, %v3110_v24  ;;  %v13470_v5 = vld [vmem:[#allocation63_spill] sm:$0xff] }
 0x479   : > { %v3767_v53 = vadd.f32 %v13465_v42, %v13464_v50  ;;  %v3542_v56 = vsel %vm2184_vm6, %v3540_v9, %v3528_v21  ;;  %v11467_v60 = vadd.f32 %v3679_v23, %v13463_v46  ;;  %v3118_v34 = vadd.f32 %v3117_v26, %v3116_v17 }
 0x47a   : > { %v3544_v39 = vmax.f32 %v3541_v11, %v3543_v35  ;;  %v3549_v33 = vrot.slane %v3542_v56, 4  ;;  %v11469_v47 = vadd.f32 %v3720_v8, %v3719_v32  ;;  %v2673_v31 = vadd.f32 %v2670_v6, %v11319_v40  ;;  %v13468_v40 = vld [vmem:[#allocation64_spill] sm:$0xff]  ;;  %v13471_v6 = vld [vmem:[#allocation177_spill] sm:$0xff] }
 0x47b   : > { %v3113_v63 = vrot.slane %v3112_v59, 1  ;;  %v3768_v19 = vrot.slane %v3767_v53, 2  ;;  %v13467_v10 = vrot.slane %v13466_v12, 4  ;;  %v3119_v16 = vrot.slane %v3118_v34, 1 }
 0x47c   : > { %v3545_v49 = vrot.slane %v3544_v39, 2  ;;  %v3550_v37 = vmax.f32 %v3542_v56, %v3549_v33  ;;  %v11475_v9 = vadd.f32 %v3729_v52, %v3728_v38  ;;  %v2674_v62 = vadd.f32 %v2672_v14, %v11321_v0 }
 0x47d   : > { %v3776_v28 = vadd.f32 %v13467_v10, %v13466_v12  ;;  %v3114_v54 = vadd.f32 %v3113_v63, %v3112_v59  ;;  %v3769_v24 = vadd.f32 %v3768_v19, %v3767_v53  ;;  %v3120_v32 = vadd.f32 %v3119_v16, %v3118_v34  ;;  %v13472_v59 = vld [vmem:[#allocation70_spill] sm:$0xff]  ;;  %v13474_v19 = vld [vmem:[#allocation155_spill] sm:$0xff]  ;;  %v13475_v12 = vld [vmem:[#allocation160_spill] sm:$0xff] }
 0x47e   : > { %v3546_v41 = vmax.f32 %v3544_v39, %v3545_v49  ;;  %v3551_v46 = vrot.slane %v3550_v37, 2  ;;  %v3816_v23 = vrot.slane %v13468_v40, 4  ;;  %v11479_v17 = vadd.f32 -2.0794415, %v2673_v31  ;;  %v13473_v34 = vld [vmem:[#allocation178_spill] sm:$0xff] }
 0x47f   : > { %v3777_v44 = vrot.slane %v3776_v28, 2  ;;  %6731 = vlog2.f32 %v3114_v54  ;;  %v3825_v55 = vrot.slane %v13469_v22, 4  ;;  %v11483_v0 = vadd.f32 -2.0794415, %v2674_v62 }
 0x480   : > { %6733 = vlog2.f32 %v3120_v32  ;;  %v3547_v21 = vrot.slane %v3546_v41, 1  ;;  %v3552_v38 = vmax.f32 %v3550_v37, %v3551_v46  ;;  %v3817_v50 = vadd.f32 %v3816_v23, %v13468_v40  ;;  %v13478_v46 = vld [vmem:[#allocation161_spill] sm:$0xff] }
 0x481   : > { %v3778_v8 = vadd.f32 %v3777_v44, %v3776_v28  ;;  %v3770_v42 = vrot.slane %v3769_v24, 1  ;;  %v3826_v53 = vadd.f32 %v3825_v55, %v13469_v22  ;;  %v3865_v26 = vadd.f32 %v13471_v6, %v13470_v5  ;;  %v13476_v44 = vld [vmem:[#allocation173_spill] sm:$0xff] }
 0x482   : > { %v11488_v35 = vmax.f32 %v3546_v41, %v3547_v21  ;;  %v3553_v52 = vrot.slane %v3552_v38, 1  ;;  %v3818_v14 = vrot.slane %v3817_v50, 2  ;;  %v3874_v39 = vadd.f32 %v13473_v34, %v13472_v59  ;;  %v13477_v41 = vld [vmem:[#allocation156_spill] sm:$0xff] }
 0x483   : > { %v3779_v33 = vrot.slane %v3778_v8, 1  ;;  %v3827_v31 = vrot.slane %v3826_v53, 2  ;;  %v3866_v63 = vrot.slane %v3865_v26, 4  ;;  %v3914_v10 = vadd.f32 %v13475_v12, %v13474_v19 }
 0x484   : > { %v11494_v28 = vmax.f32 %v3552_v38, %v3553_v52  ;;  %v3555_v16 = vsub.f32 %v3541_v11, %v11488_v35  ;;  %v3819_v49 = vadd.f32 %v3818_v14, %v3817_v50  ;;  %v3875_v37 = vrot.slane %v3874_v39, 4 }
 0x485   : > { %v3828_v62 = vadd.f32 %v3827_v31, %v3826_v53  ;;  %v3867_v54 = vadd.f32 %v3866_v63, %v3865_v26  ;;  %v3915_v32 = vadd.f32 %v3914_v10, %v13476_v44  ;;  %v3923_v40 = vadd.f32 %v13478_v46, %v13477_v41  ;;  %v13479_v63 = vld [vmem:[#allocation82_spill] sm:$0xff]  ;;  %v13484_v44 = vld [vmem:[#allocation152_spill] sm:$0xff] }
 0x486   : > { %v3556_v23 = vsub.f32 %v3542_v56, %v11494_v28  ;;  %v3557_v22 = vmul.f32 1.442695, %v3555_v16  ;;  %v3771_v55 = vadd.f32 %v3770_v42, %v3769_v24  ;;  %v3876_v21 = vadd.f32 %v3875_v37, %v3874_v39  ;;  %v13480_v56 = vld [vmem:[#allocation131_spill] sm:$0xff]  ;;  %v13481_v24 = vld [vmem:[#allocation69_spill] sm:$0xff]  ;;  %v13482_v42 = vld [vmem:[#allocation132_spill] sm:$0xff] }
 0x487   : > { %v3780_v5 = vadd.f32 %v3779_v33, %v3778_v8  ;;  %v3868_v6 = vrot.slane %v3867_v54, 2  ;;  %v3916_v38 = vrot.slane %v3915_v32, 4  ;;  %v3924_v52 = vadd.f32 %v3923_v40, %v10995_v25  ;;  %v13483_v37 = vld [vmem:[#allocation149_spill] sm:$0xff] }
 0x488   : > { %6735 = vpow2.f32 %v3557_v22  ;;  %v3559_v11 = vmul.f32 1.442695, %v3556_v23  ;;  %v3820_v50 = vrot.slane %v3819_v49, 1  ;;  %v3877_v53 = vrot.slane %v3876_v21, 2 }
 0x489   : > { %v3829_v26 = vrot.slane %v3828_v62, 1  ;;  %v3869_v14 = vadd.f32 %v3868_v6, %v3867_v54  ;;  %v3917_v59 = vadd.f32 %v3916_v38, %v3915_v32  ;;  %v3925_v34 = vrot.slane %v3924_v52, 4 }
 0x48a   : > { %6737 = vpow2.f32 %v3559_v11  ;;  %v3878_v31 = vadd.f32 %v3877_v53, %v3876_v21  ;;  %v3963_v19 = vadd.f32 %v13480_v56, %v13479_v63  ;;  %v3972_v8 = vadd.f32 %v13482_v42, %v13481_v24  ;;  %v13485_v24 = vld [vmem:[#allocation95_spill] sm:$0xff] }
 0x48b   : > { %v3870_v39 = vrot.slane %v3869_v14, 1  ;;  %v3918_v33 = vrot.slane %v3917_v59, 2  ;;  %v3926_v12 = vadd.f32 %v3925_v34, %v3924_v52  ;;  %v3981_v25 = vsel %vm2166_vm0, %v11446_v3, %v11459_v7 }
 0x48c   : > { %v6732_v10 = vpop.eup %6731  ;;  %v3879_v16 = vrot.slane %v3878_v31, 1  ;;  %v3964_v54 = vadd.f32 %v3963_v19, %v13483_v37  ;;  %v3973_v32 = vadd.f32 %v3972_v8, %v13484_v44  ;;  %v3982_v41 = vsel %vm2166_vm0, %v11456_v29, %v11467_v60 }
 0x48d   : > { %v6734_v46 = vpop.eup %6733  ;;  %v3122_v40 = vmul.f32 0.6931472, %v6732_v10  ;;  %v3821_v23 = vadd.f32 %v3820_v50, %v3819_v49  ;;  %v3919_v22 = vadd.f32 %v3918_v33, %v3917_v59  ;;  %v3927_v21 = vrot.slane %v3926_v12, 2 }
 0x48e   : > { %v3124_v6 = vmul.f32 0.6931472, %v6734_v46  ;;  %v3830_v38 = vadd.f32 %v3829_v26, %v3828_v62  ;;  %v3965_v52 = vadd.f32 %v3964_v54, %v11117_v43  ;;  %v3974_v3 = vadd.f32 %v3973_v32, %v11119_v2  ;;  %v13489_v32 = vld [vmem:[#allocation65_spill] sm:$0xff] }
 0x48f   : > { %v3871_v7 = vadd.f32 %v3870_v39, %v3869_v14  ;;  %v3920_v11 = vrot.slane %v3919_v22, 1  ;;  %v3928_v53 = vadd.f32 %v3927_v21, %v3926_v12  ;;  %v3983_v34 = vsel %vm2169_vm1, %v3981_v25, %v11469_v47  ;;  %v13487_v25 = vld [vmem:[#allocation98_spill] sm:$0xff]  ;;  %v13491_v21 = vld [vmem:[#allocation88_spill] sm:$0xff] }
 0x490   : > { %v3880_v63 = vadd.f32 %v3879_v16, %v3878_v31  ;;  %v3966_v56 = vrot.slane %v3965_v52, 4  ;;  %v3975_v29 = vrot.slane %v3974_v3, 4  ;;  %v3984_v60 = vsel %vm2169_vm1, %v3982_v41, %v11475_v9 }
 0x491   : > { %v3125_v49 = vadd.f32 %v3122_v40, %v11401_v20  ;;  %v3921_v50 = vadd.f32 %v3920_v11, %v3919_v22  ;;  %v3929_v62 = vrot.slane %v3928_v53, 1  ;;  %v3985_v43 = vsel %vm2172_vm2, %v3983_v34, %v3771_v55 }
 0x492   : > { %v3126_v2 = vadd.f32 %v3124_v6, %v11405_v1  ;;  %v3967_v26 = vadd.f32 %v3966_v56, %v3965_v52  ;;  %v3976_v14 = vadd.f32 %v3975_v29, %v3974_v3  ;;  %v3986_v59 = vsel %vm2172_vm2, %v3984_v60, %v3780_v5  ;;  %v13493_v52 = vld [vmem:[#allocation96_spill] sm:$0xff] }
 0x493   : > { %v3930_v19 = vadd.f32 %v3929_v62, %v3928_v53  ;;  %v3987_v47 = vsel %vm2175_vm3, %v3985_v43, %v3821_v23  ;;  %v3988_v31 = vsel %vm2175_vm3, %v3986_v59, %v3830_v38  ;;  %v13486_v9 = vrot.slane %v13485_v24, 2 }
 0x494   : > { %v3968_v20 = vrot.slane %v3967_v26, 2  ;;  %v3977_v8 = vrot.slane %v3976_v14, 2  ;;  %v3989_v39 = vsel %vm2178_vm4, %v3987_v47, %v3871_v7  ;;  %v3990_v55 = vsel %vm2178_vm4, %v3988_v31, %v3880_v63  ;;  %v13495_v47 = vld [vmem:[#allocation28_spill] sm:$0xff] }
 0x495   : > { %v4071_v42 = vadd.f32 %v13486_v9, %v13485_v24  ;;  %v6736_v1 = vpop.eup %6735  ;;  %v3991_v33 = vsel %vm2181_vm5, %v3989_v39, %v3921_v50  ;;  %v3992_v5 = vsel %vm2181_vm5, %v3990_v55, %v3930_v19  ;;  %v13488_v10 = vrot.slane %v13487_v25, 2 }
 0x496   : > { %v3561_v37 = vrot.slane %v6736_v1, 4  ;;  %v3969_v54 = vadd.f32 %v3968_v20, %v3967_v26  ;;  %v3978_v44 = vadd.f32 %v3977_v8, %v3976_v14  ;;  %v13490_v41 = vrot.slane %v13489_v32, 2 }
 0x497   : > { %v4072_v12 = vrot.slane %v4071_v42, 1  ;;  %v4080_v16 = vadd.f32 %v13488_v10, %v13487_v25  ;;  %v6738_v40 = vpop.eup %6737  ;;  %v11539_v23 = vadd.f32 -2.0794415, %v3125_v49  ;;  %v13492_v6 = vrot.slane %v13491_v21, 2  ;;  %v13497_v10 = vld [vmem:[#allocation73_spill] sm:$0xff] }
 0x498   : > { %v4121_v46 = vadd.f32 %v13490_v41, %v13489_v32  ;;  %v13494_v3 = vrot.slane %v13493_v52, 4  ;;  %v3562_v11 = vadd.f32 %v6736_v1, %v3561_v37  ;;  %v3567_v53 = vrot.slane %v6738_v40, 4  ;;  %v13498_v37 = vld [vmem:[#allocation74_spill] sm:$0xff] }
 0x499   : > { %v4081_v22 = vrot.slane %v4080_v16, 1  ;;  %v4130_v38 = vadd.f32 %v13492_v6, %v13491_v21  ;;  %v3970_v34 = vrot.slane %v3969_v54, 1  ;;  %v3979_v63 = vrot.slane %v3978_v44, 1 }
 0x49a   : > { %v4169_v7 = vadd.f32 %v13494_v3, %v13493_v52  ;;  %v11547_v56 = vadd.f32 -2.0794415, %v3126_v2  ;;  %v11549_v29 = vadd.f32 %v4072_v12, %v4071_v42  ;;  %v4122_v60 = vrot.slane %v4121_v46, 1  ;;  %v13499_v3 = vld [vmem:[#allocation89_spill] sm:$0xff] }
 0x49b   : > { %v3563_v50 = vrot.slane %v3562_v11, 2  ;;  %v3568_v62 = vadd.f32 %v6738_v40, %v3567_v53  ;;  %v3971_v43 = vadd.f32 %v3970_v34, %v3969_v54  ;;  %v3980_v26 = vadd.f32 %v3979_v63, %v3978_v44 }
 0x49c   : > { %v4170_v49 = vrot.slane %v4169_v7, 2  ;;  %v11551_v14 = vadd.f32 %v4081_v22, %v4080_v16  ;;  %v11553_v59 = vadd.f32 %v4122_v60, %v4121_v46  ;;  %v4131_v19 = vrot.slane %v4130_v38, 1 }
 0x49d   : > { %v13496_v31 = vrot.slane %v13495_v47, 4  ;;  %v3564_v9 = vadd.f32 %v3563_v50, %v3562_v11  ;;  %v3569_v2 = vrot.slane %v3568_v62, 2  ;;  %v3993_v42 = vsel %vm2184_vm6, %v3991_v33, %v3971_v43 }
 0x49e   : > { %v3994_v20 = vsel %vm2184_vm6, %v3992_v5, %v3980_v26  ;;  %v3995_v8 = vrot.slane %v3993_v42, 4  ;;  %v4171_v55 = vadd.f32 %v4170_v49, %v4169_v7  ;;  %v4218_v16 = vrot.slane %v13497_v10, 4  ;;  %v13500_v7 = vld [vmem:[#allocation140_spill] sm:$0xff] }
 0x49f   : > { %v4178_v24 = vadd.f32 %v13496_v31, %v13495_v47  ;;  %v4001_v39 = vrot.slane %v3994_v20, 4  ;;  %v3565_v12 = vrot.slane %v3564_v9, 1  ;;  %v3570_v25 = vadd.f32 %v3569_v2, %v3568_v62  ;;  %v13501_v26 = vld [vmem:[#allocation76_spill] sm:$0xff]  ;;  %v13503_v2 = vld [vmem:[#allocation17_spill] sm:$0xff] }
 0x4a0   : > { %v4227_v54 = vrot.slane %v13498_v37, 4  ;;  %v3996_v44 = vmax.f32 %v3993_v42, %v3995_v8  ;;  %v11562_v41 = vadd.f32 %v4131_v19, %v4130_v38  ;;  %v4219_v33 = vadd.f32 %v4218_v16, %v13497_v10  ;;  %v13502_v19 = vld [vmem:[#allocation153_spill] sm:$0xff]  ;;  %v13504_v8 = vld [vmem:[#allocation183_spill] sm:$0xff]  ;;  %v13506_v16 = vld [vmem:[#allocation184_spill] sm:$0xff] }
 0x4a1   : > { %v4179_v1 = vrot.slane %v4178_v24, 2  ;;  %v4002_v32 = vmax.f32 %v3994_v20, %v4001_v39  ;;  %v3566_v40 = vadd.f32 %v3565_v12, %v3564_v9  ;;  %v3571_v22 = vrot.slane %v3570_v25, 1  ;;  %v13505_v10 = vld [vmem:[#allocation179_spill] sm:$0xff] }
 0x4a2   : > { %v4228_v5 = vadd.f32 %v4227_v54, %v13498_v37  ;;  %v3997_v21 = vrot.slane %v3996_v44, 2  ;;  %v4172_v52 = vrot.slane %v4171_v55, 1  ;;  %v4267_v11 = vadd.f32 %v13500_v7, %v13499_v3 }
 0x4a3   : > { %v4180_v46 = vadd.f32 %v4179_v1, %v4178_v24  ;;  %v4003_v6 = vrot.slane %v4002_v32, 2  ;;  %v3572_v53 = vadd.f32 %v3571_v22, %v3570_v25  ;;  %6739 = vlog2.f32 %v3566_v40  ;;  %v13507_v40 = vld [vmem:[#allocation71_spill] sm:$0xff] }
 0x4a4   : > { %v4220_v34 = vrot.slane %v4219_v33, 2  ;;  %v4229_v63 = vrot.slane %v4228_v5, 2  ;;  %v3998_v60 = vmax.f32 %v3996_v44, %v3997_v21  ;;  %v4268_v50 = vrot.slane %v4267_v11, 4 }
 0x4a5   : > { %v4004_v38 = vmax.f32 %v4002_v32, %v4003_v6  ;;  %v4181_v49 = vrot.slane %v4180_v46, 1  ;;  %6741 = vlog2.f32 %v3572_v53  ;;  %v4276_v47 = vadd.f32 %v13502_v19, %v13501_v26  ;;  %v13508_v6 = vld [vmem:[#allocation90_spill] sm:$0xff] }
 0x4a6   : > { %v4221_v62 = vadd.f32 %v4220_v34, %v4219_v33  ;;  %v4230_v43 = vadd.f32 %v4229_v63, %v4228_v5  ;;  %v3999_v31 = vrot.slane %v3998_v60, 1  ;;  %v4269_v9 = vadd.f32 %v4268_v50, %v4267_v11 }
 0x4a7   : > { %v4005_v24 = vrot.slane %v4004_v38, 1  ;;  %v4316_v39 = vadd.f32 %v13504_v8, %v13503_v2  ;;  %v11572_v1 = vadd.f32 %v4172_v52, %v4171_v55  ;;  %v4277_v25 = vrot.slane %v4276_v47, 4  ;;  %v13512_v8 = vld [vmem:[#allocation54_spill] sm:$0xff] }
 0x4a8   : > { %v4222_v12 = vrot.slane %v4221_v62, 1  ;;  %v4325_v37 = vadd.f32 %v13506_v16, %v13505_v10  ;;  %v11576_v54 = vmax.f32 %v3998_v60, %v3999_v31  ;;  %v4270_v32 = vrot.slane %v4269_v9, 2  ;;  %v13509_v60 = vld [vmem:[#allocation22_spill] sm:$0xff]  ;;  %v13515_v16 = vld [vmem:[#allocation157_spill] sm:$0xff] }
 0x4a9   : > { %v11578_v44 = vmax.f32 %v4004_v38, %v4005_v24  ;;  %v4317_v22 = vadd.f32 %v4316_v39, %v13507_v40  ;;  %v11581_v33 = vadd.f32 %v4181_v49, %v4180_v46  ;;  %v4231_v5 = vrot.slane %v4230_v43, 1  ;;  %v13511_v24 = vld [vmem:[#allocation34_spill] sm:$0xff] }
 0x4aa   : > { %v4278_v21 = vadd.f32 %v4277_v25, %v4276_v47  ;;  %v4326_v3 = vadd.f32 %v4325_v37, %v13508_v6  ;;  %v4007_v55 = vsub.f32 %v3993_v42, %v11576_v54  ;;  %v4271_v7 = vadd.f32 %v4270_v32, %v4269_v9  ;;  %v13510_v47 = vld [vmem:[#allocation139_spill] sm:$0xff]  ;;  %v13513_v42 = vld [vmem:[#allocation106_spill] sm:$0xff] }
 0x4ab   : > { %v4008_v52 = vsub.f32 %v3994_v20, %v11578_v44  ;;  %v4318_v11 = vrot.slane %v4317_v22, 4  ;;  %v4223_v53 = vadd.f32 %v4222_v12, %v4221_v62  ;;  %v4362_v38 = vmul.f32 0.6931472, %v13509_v60  ;;  %v13514_v62 = vld [vmem:[#allocation172_spill] sm:$0xff] }
 0x4ac   : > { %v4279_v34 = vrot.slane %v4278_v21, 2  ;;  %v4327_v63 = vrot.slane %v4326_v3, 4  ;;  %v4009_v50 = vmul.f32 1.442695, %v4007_v55  ;;  %v4272_v19 = vrot.slane %v4271_v7, 1 }
 0x4ad   : > { %v4011_v26 = vmul.f32 1.442695, %v4008_v52  ;;  %v4319_v46 = vadd.f32 %v4318_v11, %v4317_v22  ;;  %v4365_v2 = vadd.f32 %v13511_v24, %v13510_v47  ;;  %v4374_v39 = vadd.f32 %v13513_v42, %v13512_v8  ;;  %v13519_v47 = vld [vmem:[#allocation85_spill] sm:$0xff] }
 0x4ae   : > { %v4280_v49 = vadd.f32 %v4279_v34, %v4278_v21  ;;  %v4328_v31 = vadd.f32 %v4327_v63, %v4326_v3  ;;  %6743 = vpow2.f32 %v4009_v50  ;;  %v4232_v20 = vadd.f32 %v4231_v5, %v4230_v43  ;;  %v13516_v21 = vld [vmem:[#allocation159_spill] sm:$0xff]  ;;  %v13517_v3 = vld [vmem:[#allocation148_spill] sm:$0xff]  ;;  %v13518_v63 = vld [vmem:[#allocation78_spill] sm:$0xff] }
 0x4af   : > { %v4320_v9 = vrot.slane %v4319_v46, 2  ;;  %v4364_v12 = vmul.f32 0.6931472, %v13514_v62  ;;  %6745 = vpow2.f32 %v4011_v26  ;;  %v4366_v37 = vadd.f32 %v4365_v2, %v13515_v16  ;;  %v13520_v24 = vld [vmem:[#allocation133_spill] sm:$0xff] }
 0x4b0   : > { %v4281_v25 = vrot.slane %v4280_v49, 1  ;;  %v4329_v10 = vrot.slane %v4328_v31, 2  ;;  %v6740_v32 = vpop.eup %6739  ;;  %v4273_v40 = vadd.f32 %v4272_v19, %v4271_v7  ;;  %v4375_v6 = vadd.f32 %v4374_v39, %v13516_v21 }
 0x4b1   : > { %v4321_v22 = vadd.f32 %v4320_v9, %v4319_v46  ;;  %v4408_v55 = vmul.f32 0.6931472, %v13517_v3  ;;  %v3574_v52 = vmul.f32 0.6931472, %v6740_v32  ;;  %v4367_v34 = vadd.f32 %v4366_v37, %v4362_v38  ;;  %v13522_v38 = vld [vmem:[#allocation176_spill] sm:$0xff] }
 0x4b2   : > { %v4330_v11 = vadd.f32 %v4329_v10, %v4328_v31  ;;  %v4410_v43 = vmul.f32 0.6931472, %v13518_v63  ;;  %v6742_v5 = vpop.eup %6741  ;;  %v4376_v50 = vadd.f32 %v4375_v6, %v4364_v12  ;;  %v4412_v26 = vmul.f32 0.6931472, %v11103_v30  ;;  %v13521_v31 = vld [vmem:[#allocation7_spill] sm:$0xff] }
 0x4b3   : > { %v4322_v60 = vrot.slane %v4321_v22, 1  ;;  %v4415_v2 = vadd.f32 %v13520_v24, %v13519_v47  ;;  %v3576_v8 = vmul.f32 0.6931472, %v6742_v5  ;;  %v4282_v7 = vadd.f32 %v4281_v25, %v4280_v49 }
 0x4b4   : > { %v4331_v19 = vrot.slane %v4330_v11, 1  ;;  %v4368_v46 = vrot.slane %v4367_v34, 4  ;;  %v4377_v42 = vrot.slane %v4376_v50, 4  ;;  %v4414_v39 = vmul.f32 0.6931472, %v11109_v13 }
 0x4b5   : > { %v4416_v9 = vadd.f32 %v4415_v2, %v4408_v55  ;;  %v4424_v62 = vadd.f32 %v13522_v38, %v13521_v31  ;;  %v3577_v10 = vadd.f32 %v3574_v52, %v11488_v35  ;;  %v11604_v12 = vadd.f32 %v3576_v8, %v11494_v28 }
 0x4b6   : > { %v4323_v30 = vadd.f32 %v4322_v60, %v4321_v22  ;;  %v4369_v16 = vadd.f32 %v4368_v46, %v4367_v34  ;;  %v4378_v37 = vadd.f32 %v4377_v42, %v4376_v50  ;;  %v4433_v49 = vsel %vm2166_vm0, %v11549_v29, %v11553_v59 }
 0x4b7   : > { %v4417_v32 = vadd.f32 %v4416_v9, %v4412_v26  ;;  %v4425_v21 = vadd.f32 %v4424_v62, %v4410_v43  ;;  %v4332_v25 = vadd.f32 %v4331_v19, %v4330_v11  ;;  %v4434_v6 = vsel %vm2166_vm0, %v11551_v14, %v11562_v41 }
 0x4b8   : > { %v4370_v13 = vrot.slane %v4369_v16, 2  ;;  %v4435_v35 = vsel %vm2169_vm1, %v4433_v49, %v11572_v1  ;;  %v4379_v28 = vrot.slane %v4378_v37, 2  ;;  %v4436_v55 = vsel %vm2169_vm1, %v4434_v6, %v11581_v33 }
 0x4b9   : > { %v4418_v3 = vrot.slane %v4417_v32, 4  ;;  %v4426_v22 = vadd.f32 %v4425_v21, %v4414_v39  ;;  %v4437_v34 = vsel %vm2172_vm2, %v4435_v35, %v4223_v53  ;;  %v4438_v29 = vsel %vm2172_vm2, %v4436_v55, %v4232_v20 }
 0x4ba   : > { %v4371_v52 = vadd.f32 %v4370_v13, %v4369_v16  ;;  %v13523_v59 = vrot.slane %v10990_v36, 4  ;;  %v4380_v63 = vadd.f32 %v4379_v28, %v4378_v37  ;;  %v4439_v1 = vsel %vm2175_vm3, %v4437_v34, %v4273_v40 }
 0x4bb   : > { %v4419_v14 = vadd.f32 %v4418_v3, %v4417_v32  ;;  %v4427_v41 = vrot.slane %v4426_v22, 4  ;;  %v6744_v43 = vpop.eup %6743  ;;  %v4440_v60 = vsel %vm2175_vm3, %v4438_v29, %v4282_v7  ;;  %v4441_v33 = vsel %vm2178_vm4, %v4439_v1, %v4323_v30 }
 0x4bc   : > { %v4521_v11 = vadd.f32 %v13523_v59, %v10990_v36  ;;  %v4372_v5 = vrot.slane %v4371_v52, 1  ;;  %v6746_v26 = vpop.eup %6745  ;;  %v4013_v53 = vrot.slane %v6744_v43, 4  ;;  %v4381_v47 = vrot.slane %v4380_v63, 1 }
 0x4bd   : > { %v4420_v20 = vrot.slane %v4419_v14, 2  ;;  %v4428_v24 = vadd.f32 %v4427_v41, %v4426_v22  ;;  %v4019_v2 = vrot.slane %v6746_v26, 4  ;;  %v4442_v36 = vsel %vm2178_vm4, %v4440_v60, %v4332_v25 }
 0x4be   : > { %v4522_v50 = vrot.slane %v4521_v11, 2  ;;  %v4373_v8 = vadd.f32 %v4372_v5, %v4371_v52  ;;  %v4014_v46 = vadd.f32 %v6744_v43, %v4013_v53  ;;  %v4382_v42 = vadd.f32 %v4381_v47, %v4380_v63 }
 0x4bf   : > { %v4421_v40 = vadd.f32 %v4420_v20, %v4419_v14  ;;  %v4429_v39 = vrot.slane %v4428_v24, 2  ;;  %v11625_v9 = vadd.f32 -2.0794415, %v3577_v10  ;;  %v4020_v7 = vadd.f32 %v6746_v26, %v4019_v2 }
 0x4c0   : > { %v4523_v19 = vadd.f32 %v4522_v50, %v4521_v11  ;;  %v4443_v31 = vsel %vm2181_vm5, %v4441_v33, %v4373_v8  ;;  %v13524_v38 = vrot.slane %v10993_v18, 4  ;;  %v4015_v30 = vrot.slane %v4014_v46, 2 }
 0x4c1   : > { %v4422_v16 = vrot.slane %v4421_v40, 1  ;;  %v4430_v37 = vadd.f32 %v4429_v39, %v4428_v24  ;;  %v4444_v32 = vsel %vm2181_vm5, %v4442_v36, %v4382_v42  ;;  %v4021_v21 = vrot.slane %v4020_v7, 2 }
 0x4c2   : > { %v4530_v62 = vadd.f32 %v13524_v38, %v10993_v18  ;;  %v4524_v49 = vrot.slane %v4523_v19, 1  ;;  %v13525_v13 = vrot.slane %v10998_v27, 4  ;;  %v4016_v6 = vadd.f32 %v4015_v30, %v4014_v46 }
 0x4c3   : > { %v4423_v35 = vadd.f32 %v4422_v16, %v4421_v40  ;;  %v4431_v28 = vrot.slane %v4430_v37, 1  ;;  %v13526_v3 = vrot.slane %v11003_v57, 4  ;;  %v4022_v18 = vadd.f32 %v4021_v21, %v4020_v7  ;;  %v13529_v16 = vld [vmem:[#allocation118_spill] sm:$0xff]  ;;  %v13531_v21 = vld [vmem:[#allocation12_spill] sm:$0xff] }
 0x4c4   : > { %v4531_v25 = vrot.slane %v4530_v62, 2  ;;  %v4571_v10 = vadd.f32 %v13525_v13, %v10998_v27  ;;  %v4620_v34 = vrot.slane %v11020_v15, 4  ;;  %v4017_v29 = vrot.slane %v4016_v6, 1 }
 0x4c5   : > { %v4580_v22 = vadd.f32 %v13526_v3, %v11003_v57  ;;  %v4432_v59 = vadd.f32 %v4431_v28, %v4430_v37  ;;  %v4445_v11 = vsel %vm2184_vm6, %v4443_v31, %v4423_v35  ;;  %v4023_v14 = vrot.slane %v4022_v18, 1  ;;  %v13530_v37 = vld [vmem:[#allocation15_spill] sm:$0xff] }
 0x4c6   : > { %v4532_v55 = vadd.f32 %v4531_v25, %v4530_v62  ;;  %v4572_v52 = vrot.slane %v4571_v10, 2  ;;  %v4447_v41 = vrot.slane %v4445_v11, 4  ;;  %v4018_v43 = vadd.f32 %v4017_v29, %v4016_v6  ;;  %v13533_v3 = vld [vmem:[#allocation119_spill] sm:$0xff] }
 0x4c7   : > { %v4581_v63 = vrot.slane %v4580_v22, 2  ;;  %v4446_v5 = vsel %vm2184_vm6, %v4444_v32, %v4432_v59  ;;  %v4621_v57 = vadd.f32 %v4620_v34, %v11020_v15  ;;  %v11643_v33 = vadd.f32 -2.0794415, %v11604_v12  ;;  %v13527_v12 = vld [vmem:[#allocation8_spill] sm:$0xff] }
 0x4c8   : > { %v4533_v27 = vrot.slane %v4532_v55, 1  ;;  %v4573_v1 = vadd.f32 %v4572_v52, %v4571_v10  ;;  %v4024_v50 = vadd.f32 %v4023_v14, %v4022_v18  ;;  %v4448_v26 = vmax.f32 %v4445_v11, %v4447_v41 }
 0x4c9   : > { %v4582_v60 = vadd.f32 %v4581_v63, %v4580_v22  ;;  %v4453_v53 = vrot.slane %v4446_v5, 4  ;;  %6747 = vlog2.f32 %v4018_v43  ;;  %v11645_v47 = vadd.f32 %v4524_v49, %v4523_v19  ;;  %v13528_v19 = vld [vmem:[#allocation39_spill] sm:$0xff]  ;;  %v13532_v49 = vld [vmem:[#allocation49_spill] sm:$0xff] }
 0x4ca   : > { %v11647_v20 = vadd.f32 %v4533_v27, %v4532_v55  ;;  %v4622_v24 = vrot.slane %v4621_v57, 2  ;;  %6749 = vlog2.f32 %v4024_v50  ;;  %v4449_v2 = vrot.slane %v4448_v26, 2  ;;  %v13534_v50 = vld [vmem:[#allocation174_spill] sm:$0xff] }
 0x4cb   : > { %v4454_v8 = vmax.f32 %v4446_v5, %v4453_v53  ;;  %v4629_v36 = vrot.slane %v11024_v61, 4  ;;  %v4574_v46 = vrot.slane %v4573_v1, 1  ;;  %v4583_v42 = vrot.slane %v4582_v60, 1 }
 0x4cc   : > { %v4623_v15 = vadd.f32 %v4622_v24, %v4621_v57  ;;  %v4669_v40 = vadd.f32 %v13527_v12, %v11028_v51  ;;  %v4450_v39 = vmax.f32 %v4448_v26, %v4449_v2  ;;  %v4678_v38 = vadd.f32 %v13528_v19, %v11036_v4  ;;  %v13536_v12 = vld [vmem:[#allocation57_spill] sm:$0xff] }
 0x4cd   : > { %v4455_v7 = vrot.slane %v4454_v8, 2  ;;  %v4630_v31 = vadd.f32 %v4629_v36, %v11024_v61  ;;  %v4718_v32 = vadd.f32 %v13530_v37, %v13529_v16  ;;  %v4727_v25 = vadd.f32 %v13532_v49, %v13531_v21  ;;  %v13539_v16 = vld [vmem:[#allocation6_spill] sm:$0xff] }
 0x4ce   : > { %v4624_v62 = vrot.slane %v4623_v15, 1  ;;  %v4670_v30 = vrot.slane %v4669_v40, 4  ;;  %v4451_v13 = vrot.slane %v4450_v39, 1  ;;  %v4679_v35 = vrot.slane %v4678_v38, 4  ;;  %v13540_v49 = vld [vmem:[#allocation186_spill] sm:$0xff] }
 0x4cf   : > { %v4456_v10 = vmax.f32 %v4454_v8, %v4455_v7  ;;  %v4631_v6 = vrot.slane %v4630_v31, 2  ;;  %v11659_v51 = vadd.f32 %v4574_v46, %v4573_v1  ;;  %v4719_v61 = vadd.f32 %v4718_v32, %v11068_v48  ;;  %v13537_v7 = vld [vmem:[#allocation122_spill] sm:$0xff] }
 0x4d0   : > { %v4671_v28 = vadd.f32 %v4670_v30, %v4669_v40  ;;  %v4728_v22 = vadd.f32 %v4727_v25, %v13533_v3  ;;  %v11663_v4 = vmax.f32 %v4450_v39, %v4451_v13  ;;  %v4680_v52 = vadd.f32 %v4679_v35, %v4678_v38  ;;  %v13541_v35 = vld [vmem:[#allocation187_spill] sm:$0xff] }
 0x4d1   : > { %v4457_v18 = vrot.slane %v4456_v10, 1  ;;  %v4632_v55 = vadd.f32 %v4631_v6, %v4630_v31  ;;  %v11665_v34 = vadd.f32 %v4583_v42, %v4582_v60  ;;  %v4720_v59 = vrot.slane %v4719_v61, 4  ;;  %v13535_v42 = vld [vmem:[#allocation121_spill] sm:$0xff]  ;;  %v13538_v31 = vld [vmem:[#allocation23_spill] sm:$0xff] }
 0x4d2   : > { %v4672_v29 = vrot.slane %v4671_v28, 2  ;;  %v4729_v63 = vrot.slane %v4728_v22, 4  ;;  %v4459_v41 = vsub.f32 %v4445_v11, %v11663_v4  ;;  %v11670_v27 = vadd.f32 %v4624_v62, %v4623_v15 }
 0x4d3   : > { %v11667_v14 = vmax.f32 %v4456_v10, %v4457_v18  ;;  %v4681_v1 = vrot.slane %v4680_v52, 2  ;;  %v4721_v43 = vadd.f32 %v4720_v59, %v4719_v61  ;;  %v4764_v26 = vmul.f32 0.6931472, %v13534_v50  ;;  %v13542_v18 = vld [vmem:[#allocation158_spill] sm:$0xff]  ;;  %v13546_v50 = vld [vmem:[#allocation107_spill] sm:$0xff] }
 0x4d4   : > { %v4673_v48 = vadd.f32 %v4672_v29, %v4671_v28  ;;  %v4730_v57 = vadd.f32 %v4729_v63, %v4728_v22  ;;  %v4461_v24 = vmul.f32 1.442695, %v4459_v41  ;;  %v4633_v60 = vrot.slane %v4632_v55, 1  ;;  %v13543_v63 = vld [vmem:[#allocation94_spill] sm:$0xff] }
 0x4d5   : > { %v4460_v53 = vsub.f32 %v4446_v5, %v11667_v14  ;;  %v4682_v2 = vadd.f32 %v4681_v1, %v4680_v52  ;;  %v4722_v36 = vrot.slane %v4721_v43, 2  ;;  %v4767_v40 = vadd.f32 %v13536_v12, %v13535_v42 }
 0x4d6   : > { %v4674_v8 = vrot.slane %v4673_v48, 1  ;;  %v4731_v46 = vrot.slane %v4730_v57, 2  ;;  %v6748_v11 = vpop.eup %6747  ;;  %6751 = vpow2.f32 %v4461_v24  ;;  %v4776_v19 = vadd.f32 %v13538_v31, %v13537_v7 }
 0x4d7   : > { %v4463_v15 = vmul.f32 1.442695, %v4460_v53  ;;  %v4683_v39 = vrot.slane %v4682_v2, 1  ;;  %v6750_v38 = vpop.eup %6749  ;;  %v4026_v62 = vmul.f32 0.6931472, %v6748_v11  ;;  %v4723_v30 = vadd.f32 %v4722_v36, %v4721_v43  ;;  %v13544_v43 = vld [vmem:[#allocation35_spill] sm:$0xff] }
 0x4d8   : > { %v4732_v5 = vadd.f32 %v4731_v46, %v4730_v57  ;;  %v4766_v37 = vmul.f32 0.6931472, %v13539_v16  ;;  %v4028_v32 = vmul.f32 0.6931472, %v6750_v38  ;;  %v11679_v21 = vadd.f32 %v4633_v60, %v4632_v55  ;;  %v13550_v36 = vld [vmem:[#allocation38_spill] sm:$0xff] }
 0x4d9   : > { %6753 = vpow2.f32 %v4463_v15  ;;  %v4768_v25 = vadd.f32 %v4767_v40, %v13540_v49  ;;  %v11682_v13 = vadd.f32 %v4674_v8, %v4673_v48  ;;  %v4724_v10 = vrot.slane %v4723_v30, 1  ;;  %v13549_v8 = vld [vmem:[#allocation41_spill] sm:$0xff]  ;;  %v13551_v40 = vld [vmem:[#allocation84_spill] sm:$0xff]  ;;  %v13552_v15 = vld [vmem:[#allocation134_spill] sm:$0xff] }
 0x4da   : > { %v4733_v6 = vrot.slane %v4732_v5, 1  ;;  %v4777_v28 = vadd.f32 %v4776_v19, %v13541_v35  ;;  %v11686_v61 = vadd.f32 %v4026_v62, %v11576_v54  ;;  %v11688_v3 = vadd.f32 %v4683_v39, %v4682_v2  ;;  %v13545_v54 = vld [vmem:[#allocation97_spill] sm:$0xff]  ;;  %v13553_v19 = vld [vmem:[#allocation135_spill] sm:$0xff]  ;;  %v13556_v49 = vld [vmem:[#allocation120_spill] sm:$0xff] }
 0x4db   : > { %v4769_v22 = vadd.f32 %v4768_v25, %v4764_v26  ;;  %v4810_v52 = vmul.f32 0.6931472, %v13542_v18  ;;  %v11692_v29 = vadd.f32 %v4028_v32, %v11578_v44  ;;  %v11694_v55 = vadd.f32 %v4724_v10, %v4723_v30  ;;  %v13547_v26 = vld [vmem:[#allocation117_spill] sm:$0xff]  ;;  %v13554_v62 = vld [vmem:[#allocation79_spill] sm:$0xff] }
 0x4dc   : > { %v4778_v59 = vadd.f32 %v4777_v28, %v4766_v37  ;;  %v4812_v41 = vmul.f32 0.6931472, %v13543_v63  ;;  %v11697_v1 = vadd.f32 %v4733_v6, %v4732_v5  ;;  %v4814_v57 = vmul.f32 0.6931472, %v13544_v43  ;;  %v13548_v2 = vld [vmem:[#allocation33_spill] sm:$0xff]  ;;  %v13555_v37 = vld [vmem:[#allocation150_spill] sm:$0xff] }
 0x4dd   : > { %v4770_v48 = vrot.slane %v4769_v22, 4  ;;  %v4817_v53 = vadd.f32 %v13546_v50, %v13545_v54  ;;  %v4816_v60 = vmul.f32 0.6931472, %v13547_v26  ;;  %v4826_v44 = vadd.f32 %v13549_v8, %v13548_v2  ;;  %v13557_v35 = vld [vmem:[#allocation129_spill] sm:$0xff] }
 0x4de   : > { %v4779_v24 = vrot.slane %v4778_v59, 4  ;;  %v4852_v46 = vmul.f32 0.6931472, %v13550_v36  ;;  %v4854_v11 = vmul.f32 0.6931472, %v13551_v40  ;;  %v4886_v54 = vsel %vm2166_vm0, %v11647_v20, %v11665_v34 }
 0x4df   : > { %v4771_v42 = vadd.f32 %v4770_v48, %v4769_v22  ;;  %v4818_v12 = vadd.f32 %v4817_v53, %v4810_v52  ;;  %v4856_v39 = vmul.f32 0.6931472, %v13552_v15  ;;  %v4827_v31 = vadd.f32 %v4826_v44, %v4812_v41 }
 0x4e0   : > { %v4780_v7 = vadd.f32 %v4779_v24, %v4778_v59  ;;  %v4858_v38 = vmul.f32 0.6931472, %v13553_v19  ;;  %v4860_v30 = vmul.f32 0.6931472, %v13554_v62  ;;  %v4862_v32 = vmul.f32 0.6931472, %v13555_v37 }
 0x4e1   : > { %v4772_v5 = vrot.slane %v4771_v42, 2  ;;  %v4819_v16 = vadd.f32 %v4818_v12, %v4814_v57  ;;  %v4864_v25 = vmul.f32 0.6931472, %v13556_v49  ;;  %v4828_v6 = vadd.f32 %v4827_v31, %v4816_v60 }
 0x4e2   : > { %v4781_v10 = vrot.slane %v4780_v7, 2  ;;  %v4866_v28 = vmul.f32 0.6931472, %v13557_v35  ;;  %v4867_v22 = vadd.f32 %v4856_v39, %v4852_v46  ;;  %v4876_v63 = vadd.f32 %v4858_v38, %v4854_v11 }
 0x4e3   : > { %v4773_v18 = vadd.f32 %v4772_v5, %v4771_v42  ;;  %v4820_v52 = vrot.slane %v4819_v16, 4  ;;  %v4885_v59 = vsel %vm2166_vm0, %v11645_v47, %v11659_v51  ;;  %v6752_v41 = vpop.eup %6751  ;;  %v4829_v43 = vrot.slane %v4828_v6, 4 }
 0x4e4   : > { %v4782_v48 = vadd.f32 %v4781_v10, %v4780_v7  ;;  %v4868_v57 = vadd.f32 %v4867_v22, %v4860_v30  ;;  %v4465_v50 = vrot.slane %v6752_v41, 4  ;;  %v4877_v26 = vadd.f32 %v4876_v63, %v4862_v32 }
 0x4e5   : > { %v4774_v53 = vrot.slane %v4773_v18, 1  ;;  %v4821_v24 = vadd.f32 %v4820_v52, %v4819_v16  ;;  %v4830_v8 = vadd.f32 %v4829_v43, %v4828_v6  ;;  %v4887_v36 = vsel %vm2169_vm1, %v4885_v59, %v11670_v27  ;;  %v13558_v43 = vld [vmem:[#allocation137_spill] sm:$0xff] }
 0x4e6   : > { %v6754_v60 = vpop.eup %6753  ;;  %v4783_v2 = vrot.slane %v4782_v48, 1  ;;  %v4869_v44 = vadd.f32 %v4868_v57, %v4864_v25  ;;  %v4466_v47 = vadd.f32 %v6752_v41, %v4465_v50  ;;  %v4878_v15 = vadd.f32 %v4877_v26, %v4866_v28  ;;  %v13560_v50 = vld [vmem:[#allocation138_spill] sm:$0xff]  ;;  %v13562_v26 = vld [vmem:[#allocation101_spill] sm:$0xff] }
 0x4e7   : > { %v4471_v51 = vrot.slane %v6754_v60, 4  ;;  %v4775_v46 = vadd.f32 %v4774_v53, %v4773_v18  ;;  %v4822_v42 = vrot.slane %v4821_v24, 2  ;;  %v4831_v40 = vrot.slane %v4830_v8, 2 }
 0x4e8   : > { %v4784_v12 = vadd.f32 %v4783_v2, %v4782_v48  ;;  %v4870_v11 = vrot.slane %v4869_v44, 4  ;;  %v4467_v20 = vrot.slane %v4466_v47, 2  ;;  %v4888_v7 = vsel %vm2169_vm1, %v4886_v54, %v11679_v21 }
 0x4e9   : > { %v4472_v34 = vadd.f32 %v6754_v60, %v4471_v51  ;;  %v4823_v39 = vadd.f32 %v4822_v42, %v4821_v24  ;;  %v4832_v31 = vadd.f32 %v4831_v40, %v4830_v8  ;;  %v4879_v38 = vrot.slane %v4878_v15, 4  ;;  %v13566_v40 = vld [vmem:[#allocation9_spill] sm:$0xff] }
 0x4ea   : > { %v4871_v19 = vadd.f32 %v4870_v11, %v4869_v44  ;;  %v4889_v27 = vsel %vm2172_vm2, %v4887_v36, %v11682_v13  ;;  %v4468_v62 = vadd.f32 %v4467_v20, %v4466_v47  ;;  %v4890_v16 = vsel %vm2172_vm2, %v4888_v7, %v11688_v3  ;;  %v13564_v47 = vld [vmem:[#allocation102_spill] sm:$0xff] }
 0x4eb   : > { %v4473_v30 = vrot.slane %v4472_v34, 2  ;;  %v4824_v5 = vrot.slane %v4823_v39, 1  ;;  %v4833_v37 = vrot.slane %v4832_v31, 1  ;;  %v4880_v49 = vadd.f32 %v4879_v38, %v4878_v15 }
 0x4ec   : > { %v4872_v32 = vrot.slane %v4871_v19, 2  ;;  %v4891_v25 = vsel %vm2175_vm3, %v4889_v27, %v11694_v55  ;;  %v4469_v10 = vrot.slane %v4468_v62, 1  ;;  %v4892_v35 = vsel %vm2175_vm3, %v4890_v16, %v11697_v1 }
 0x4ed   : > { %v4474_v21 = vadd.f32 %v4473_v30, %v4472_v34  ;;  %v4825_v6 = vadd.f32 %v4824_v5, %v4823_v39  ;;  %v4834_v28 = vadd.f32 %v4833_v37, %v4832_v31  ;;  %v4881_v22 = vrot.slane %v4880_v49, 2  ;;  %v13567_v5 = vld [vmem:[#allocation45_spill] sm:$0xff] }
 0x4ee   : > { %v4873_v13 = vadd.f32 %v4872_v32, %v4871_v19  ;;  %v4893_v18 = vsel %vm2178_vm4, %v4891_v25, %v4775_v46  ;;  %v4470_v52 = vadd.f32 %v4469_v10, %v4468_v62  ;;  %v4894_v3 = vsel %vm2178_vm4, %v4892_v35, %v4784_v12 }
 0x4ef   : > { %v4475_v63 = vrot.slane %v4474_v21, 1  ;;  %v4895_v59 = vsel %vm2181_vm5, %v4893_v18, %v4825_v6  ;;  %v4882_v48 = vadd.f32 %v4881_v22, %v4880_v49  ;;  %v4896_v55 = vsel %vm2181_vm5, %v4894_v3, %v4834_v28  ;;  %v13568_v3 = vld [vmem:[#allocation143_spill] sm:$0xff] }
 0x4f0   : > { %v4874_v41 = vrot.slane %v4873_v13, 1  ;;  %v13559_v57 = vrot.slane %v13558_v43, 4  ;;  %6755 = vlog2.f32 %v4470_v52  ;;  %v13561_v53 = vrot.slane %v13560_v50, 4 }
 0x4f1   : > { %v4476_v1 = vadd.f32 %v4475_v63, %v4474_v21  ;;  %v13563_v60 = vrot.slane %v13562_v26, 4  ;;  %v4883_v44 = vrot.slane %v4882_v48, 1  ;;  %v13565_v51 = vrot.slane %v13564_v47, 4 }
 0x4f2   : > { %v4973_v54 = vadd.f32 %v13559_v57, %v13558_v43  ;;  %v4982_v24 = vadd.f32 %v13561_v53, %v13560_v50  ;;  %v4875_v8 = vadd.f32 %v4874_v41, %v4873_v13  ;;  %v5072_v11 = vrot.slane %v13566_v40, 4  ;;  %v13571_v43 = vld [vmem:[#allocation59_spill] sm:$0xff] }
 0x4f3   : > { %v5023_v2 = vadd.f32 %v13563_v60, %v13562_v26  ;;  %v5032_v46 = vadd.f32 %v13565_v51, %v13564_v47  ;;  %6757 = vlog2.f32 %v4476_v1  ;;  %v4884_v15 = vadd.f32 %v4883_v44, %v4882_v48  ;;  %v13573_v1 = vld [vmem:[#allocation50_spill] sm:$0xff] }
 0x4f4   : > { %v4974_v36 = vrot.slane %v4973_v54, 2  ;;  %v4983_v42 = vrot.slane %v4982_v24, 2  ;;  %v11749_v20 = vsel %vm2184_vm6, %v4895_v59, %v4875_v8  ;;  %v5073_v38 = vadd.f32 %v5072_v11, %v13566_v40  ;;  %v13569_v59 = vld [vmem:[#allocation16_spill] sm:$0xff]  ;;  %v13574_v26 = vld [vmem:[#allocation46_spill] sm:$0xff]  ;;  %v13576_v8 = vld [vmem:[#allocation31_spill] sm:$0xff] }
 0x4f5   : > { %v5024_v12 = vrot.slane %v5023_v2, 2  ;;  %v5033_v39 = vrot.slane %v5032_v46, 2  ;;  %v4899_v7 = vrot.slane %v11749_v20, 4  ;;  %v11754_v27 = vsel %vm2184_vm6, %v4896_v55, %v4884_v15  ;;  %v13570_v55 = vld [vmem:[#allocation144_spill] sm:$0xff]  ;;  %v13577_v51 = vld [vmem:[#allocation26_spill] sm:$0xff] }
 0x4f6   : > { %v4975_v34 = vadd.f32 %v4974_v36, %v4973_v54  ;;  %v4984_v31 = vadd.f32 %v4983_v42, %v4982_v24  ;;  %v5081_v16 = vrot.slane %v13567_v5, 4  ;;  %v11758_v37 = vadd.f32 -2.0794415, %v11686_v61  ;;  %v13572_v54 = vld [vmem:[#allocation61_spill] sm:$0xff] }
 0x4f7   : > { %v5025_v19 = vadd.f32 %v5024_v12, %v5023_v2  ;;  %v5034_v30 = vadd.f32 %v5033_v39, %v5032_v46  ;;  %v4900_v32 = vmax.f32 %v11749_v20, %v4899_v7  ;;  %v4905_v49 = vrot.slane %v11754_v27, 4  ;;  %v13575_v2 = vld [vmem:[#allocation163_spill] sm:$0xff]  ;;  %v13578_v42 = vld [vmem:[#allocation145_spill] sm:$0xff]  ;;  %v13579_v39 = vld [vmem:[#allocation68_spill] sm:$0xff] }
 0x4f8   : > { %v4976_v62 = vrot.slane %v4975_v34, 1  ;;  %v4985_v25 = vrot.slane %v4984_v31, 1  ;;  %v11763_v10 = vadd.f32 -2.0794415, %v11692_v29  ;;  %v5074_v6 = vrot.slane %v5073_v38, 2 }
 0x4f9   : > { %v5026_v21 = vrot.slane %v5025_v19, 1  ;;  %v5082_v35 = vadd.f32 %v5081_v16, %v13567_v5  ;;  %v4901_v28 = vrot.slane %v4900_v32, 2  ;;  %v4906_v13 = vmax.f32 %v11754_v27, %v4905_v49 }
 0x4fa   : > { %v11767_v22 = vadd.f32 %v4976_v62, %v4975_v34  ;;  %v5035_v18 = vrot.slane %v5034_v30, 1  ;;  %v11769_v61 = vadd.f32 %v4985_v25, %v4984_v31  ;;  %v5075_v52 = vadd.f32 %v5074_v6, %v5073_v38  ;;  %v13580_v25 = vld [vmem:[#allocation83_spill] sm:$0xff] }
 0x4fb   : > { %v5083_v63 = vrot.slane %v5082_v35, 2  ;;  %v5120_v41 = vadd.f32 %v13569_v59, %v13568_v3  ;;  %v4902_v48 = vmax.f32 %v4900_v32, %v4901_v28  ;;  %v4907_v29 = vrot.slane %v4906_v13, 2 }
 0x4fc   : > { %v5129_v57 = vadd.f32 %v13571_v43, %v13570_v55  ;;  %v5169_v50 = vadd.f32 %v13573_v1, %v13572_v54  ;;  %v5076_v53 = vrot.slane %v5075_v52, 1  ;;  %v5178_v44 = vadd.f32 %v13576_v8, %v13575_v2 }
 0x4fd   : > { %v5084_v24 = vadd.f32 %v5083_v63, %v5082_v35  ;;  %v5121_v60 = vadd.f32 %v5120_v41, %v13574_v26  ;;  %v4903_v36 = vrot.slane %v4902_v48, 1  ;;  %v4908_v47 = vmax.f32 %v4906_v13, %v4907_v29  ;;  %v6756_v40 = vpop.eup %6755  ;;  %v13581_v35 = vld [vmem:[#allocation43_spill] sm:$0xff] }
 0x4fe   : > { %v5130_v46 = vadd.f32 %v5129_v57, %v13577_v51  ;;  %v5170_v12 = vadd.f32 %v5169_v50, %v13578_v42  ;;  %v11782_v11 = vadd.f32 %v5026_v21, %v5025_v19  ;;  %v5179_v7 = vadd.f32 %v5178_v44, %v13579_v39  ;;  %v13582_v50 = vld [vmem:[#allocation146_spill] sm:$0xff]  ;;  %v13589_v39 = vld [vmem:[#allocation51_spill] sm:$0xff] }
 0x4ff   : > { %v5085_v15 = vrot.slane %v5084_v24, 1  ;;  %v5122_v34 = vrot.slane %v5121_v60, 4  ;;  %v4478_v31 = vmul.f32 0.6931472, %v6756_v40  ;;  %v11785_v38 = vmax.f32 %v4902_v48, %v4903_v36  ;;  %v13585_v36 = vld [vmem:[#allocation62_spill] sm:$0xff]  ;;  %v13587_v40 = vld [vmem:[#allocation105_spill] sm:$0xff] }
 0x500   : > { %v4909_v62 = vrot.slane %v4908_v47, 1  ;;  %v5131_v5 = vrot.slane %v5130_v46, 4  ;;  %v6758_v16 = vpop.eup %6757  ;;  %v11787_v32 = vadd.f32 %v5035_v18, %v5034_v30  ;;  %v5171_v6 = vadd.f32 %v5170_v12, %v13580_v25  ;;  %v13586_v12 = vld [vmem:[#allocation175_spill] sm:$0xff] }
 0x501   : > { %v5123_v49 = vadd.f32 %v5122_v34, %v5121_v60  ;;  %v5180_v28 = vadd.f32 %v5179_v7, %v13581_v35  ;;  %v4480_v13 = vmul.f32 0.6931472, %v6758_v16  ;;  %v4911_v21 = vsub.f32 %v11749_v20, %v11785_v38  ;;  %v13588_v34 = vld [vmem:[#allocation52_spill] sm:$0xff] }
 0x502   : > { %v11791_v19 = vmax.f32 %v4908_v47, %v4909_v62  ;;  %v11795_v63 = vadd.f32 %v5076_v53, %v5075_v52  ;;  %v5132_v59 = vadd.f32 %v5131_v5, %v5130_v46  ;;  %v5172_v41 = vrot.slane %v5171_v6, 4  ;;  %v13591_v5 = vld [vmem:[#allocation53_spill] sm:$0xff]  ;;  %v13592_v35 = vld [vmem:[#allocation32_spill] sm:$0xff] }
 0x503   : > { %v5124_v3 = vrot.slane %v5123_v49, 2  ;;  %v5181_v48 = vrot.slane %v5180_v28, 4  ;;  %v11798_v30 = vadd.f32 %v4478_v31, %v11663_v4  ;;  %v4913_v29 = vmul.f32 1.442695, %v4911_v21  ;;  %v13590_v31 = vld [vmem:[#allocation162_spill] sm:$0xff] }
 0x504   : > { %v4912_v18 = vsub.f32 %v11754_v27, %v11791_v19  ;;  %v11802_v55 = vadd.f32 %v5085_v15, %v5084_v24  ;;  %v5133_v57 = vrot.slane %v5132_v59, 2  ;;  %v5173_v54 = vadd.f32 %v5172_v41, %v5171_v6  ;;  %v13583_v27 = vld [vmem:[#allocation100_spill] sm:$0xff]  ;;  %v13594_v41 = vld [vmem:[#allocation86_spill] sm:$0xff] }
 0x505   : > { %v5125_v43 = vadd.f32 %v5124_v3, %v5123_v49  ;;  %v5182_v1 = vadd.f32 %v5181_v48, %v5180_v28  ;;  %v11805_v20 = vadd.f32 %v4480_v13, %v11667_v14  ;;  %6759 = vpow2.f32 %v4913_v29  ;;  %v13584_v24 = vld [vmem:[#allocation20_spill] sm:$0xff]  ;;  %v13593_v3 = vld [vmem:[#allocation99_spill] sm:$0xff] }
 0x506   : > { %v4915_v52 = vmul.f32 1.442695, %v4912_v18  ;;  %v5212_v53 = vmul.f32 0.6931472, %v13582_v50  ;;  %v5134_v4 = vadd.f32 %v5133_v57, %v5132_v59  ;;  %v5174_v60 = vrot.slane %v5173_v54, 2 }
 0x507   : > { %v5126_v26 = vrot.slane %v5125_v43, 1  ;;  %v5183_v2 = vrot.slane %v5182_v1, 2  ;;  %v5214_v8 = vmul.f32 0.6931472, %v13583_v27  ;;  %v5216_v44 = vmul.f32 0.6931472, %v13584_v24 }
 0x508   : > { %6761 = vpow2.f32 %v4915_v52  ;;  %v5218_v47 = vmul.f32 0.6931472, %v13585_v36  ;;  %v5135_v46 = vrot.slane %v5134_v4, 1  ;;  %v5175_v14 = vadd.f32 %v5174_v60, %v5173_v54  ;;  %v13596_v54 = vld [vmem:[#allocation180_spill] sm:$0xff] }
 0x509   : > { %v11811_v51 = vadd.f32 %v5126_v26, %v5125_v43  ;;  %v5184_v42 = vadd.f32 %v5183_v2, %v5182_v1  ;;  %v5219_v15 = vadd.f32 %v13587_v40, %v13586_v12  ;;  %v5228_v7 = vadd.f32 %v13589_v39, %v13588_v34  ;;  %v13595_v43 = vld [vmem:[#allocation87_spill] sm:$0xff]  ;;  %v13597_v26 = vld [vmem:[#allocation181_spill] sm:$0xff]  ;;  %v13600_v36 = vld [vmem:[#allocation136_spill] sm:$0xff] }
 0x50a   : > { %v5254_v62 = vmul.f32 0.6931472, %v13590_v31  ;;  %v5256_v16 = vmul.f32 0.6931472, %v13591_v5  ;;  %v11819_v49 = vadd.f32 %v5135_v46, %v5134_v4  ;;  %v5176_v25 = vrot.slane %v5175_v14, 1  ;;  %v13601_v40 = vld [vmem:[#allocation92_spill] sm:$0xff] }
 0x50b   : > { %v5185_v6 = vrot.slane %v5184_v42, 1  ;;  %v5258_v28 = vmul.f32 0.6931472, %v13592_v35  ;;  %v5220_v13 = vadd.f32 %v5219_v15, %v5212_v53  ;;  %v5229_v21 = vadd.f32 %v5228_v7, %v5214_v8  ;;  %v13598_v53 = vld [vmem:[#allocation36_spill] sm:$0xff]  ;;  %v13602_v39 = vld [vmem:[#allocation151_spill] sm:$0xff]  ;;  %v13604_v31 = vld [vmem:[#allocation10_spill] sm:$0xff] }
 0x50c   : > { %v5260_v59 = vmul.f32 0.6931472, %v13593_v3  ;;  %v5262_v48 = vmul.f32 0.6931472, %v13594_v41  ;;  %v11824_v18 = vadd.f32 %v5176_v25, %v5175_v14  ;;  %v5264_v57 = vmul.f32 0.6931472, %v13595_v43 }
 0x50d   : > { %v11826_v29 = vadd.f32 %v5185_v6, %v5184_v42  ;;  %v5266_v1 = vmul.f32 0.6931472, %v13596_v54  ;;  %v5221_v52 = vadd.f32 %v5220_v13, %v5216_v44  ;;  %v5230_v50 = vadd.f32 %v5229_v21, %v5218_v47  ;;  %v13599_v8 = vld [vmem:[#allocation40_spill] sm:$0xff]  ;;  %v13603_v44 = vld [vmem:[#allocation93_spill] sm:$0xff] }
 0x50e   : > { %v5268_v4 = vmul.f32 0.6931472, %v13597_v26  ;;  %v5269_v60 = vadd.f32 %v5258_v28, %v5254_v62  ;;  %v5278_v2 = vadd.f32 %v5260_v59, %v5256_v16  ;;  %v5304_v27 = vmul.f32 0.6931472, %v13598_v53  ;;  %v13605_v6 = vld [vmem:[#allocation48_spill] sm:$0xff] }
 0x50f   : > { %v5306_v24 = vmul.f32 0.6931472, %v13599_v8  ;;  %v5308_v46 = vmul.f32 0.6931472, %v13600_v36  ;;  %v5222_v14 = vrot.slane %v5221_v52, 4  ;;  %v5231_v12 = vrot.slane %v5230_v50, 4 }
 0x510   : > { %v5270_v42 = vadd.f32 %v5269_v60, %v5262_v48  ;;  %v5310_v15 = vmul.f32 0.6931472, %v13601_v40  ;;  %v5279_v34 = vadd.f32 %v5278_v2, %v5264_v57  ;;  %v5312_v7 = vmul.f32 0.6931472, %v13602_v39 }
 0x511   : > { %v5314_v47 = vmul.f32 0.6931472, %v13603_v44  ;;  %v5316_v5 = vmul.f32 0.6931472, %v13604_v31  ;;  %v5223_v62 = vadd.f32 %v5222_v14, %v5221_v52  ;;  %v5232_v16 = vadd.f32 %v5231_v12, %v5230_v50 }
 0x512   : > { %v5271_v25 = vadd.f32 %v5270_v42, %v5266_v1  ;;  %v5318_v35 = vmul.f32 0.6931472, %v13605_v6  ;;  %v6760_v28 = vpop.eup %6759  ;;  %v5280_v13 = vadd.f32 %v5279_v34, %v5268_v4  ;;  %v5319_v21 = vadd.f32 %v5308_v46, %v5304_v27 }
 0x513   : > { %v5328_v3 = vadd.f32 %v5310_v15, %v5306_v24  ;;  %v5337_v59 = vsel %vm2166_vm0, %v11767_v22, %v11782_v11  ;;  %v4917_v41 = vrot.slane %v6760_v28, 4  ;;  %v5224_v48 = vrot.slane %v5223_v62, 2 }
 0x514   : > { %v5233_v43 = vrot.slane %v5232_v16, 2  ;;  %v5272_v57 = vrot.slane %v5271_v25, 4  ;;  %v5281_v26 = vrot.slane %v5280_v13, 4  ;;  %v5320_v60 = vadd.f32 %v5319_v21, %v5312_v7 }
 0x515   : > { %v6762_v54 = vpop.eup %6761  ;;  %v5329_v52 = vadd.f32 %v5328_v3, %v5314_v47  ;;  %v5338_v1 = vsel %vm2166_vm0, %v11769_v61, %v11787_v32  ;;  %v4918_v50 = vadd.f32 %v6760_v28, %v4917_v41  ;;  %v5225_v2 = vadd.f32 %v5224_v48, %v5223_v62 }
 0x516   : > { %v4923_v4 = vrot.slane %v6762_v54, 4  ;;  %v5234_v53 = vadd.f32 %v5233_v43, %v5232_v16  ;;  %v5273_v27 = vadd.f32 %v5272_v57, %v5271_v25  ;;  %v5282_v8 = vadd.f32 %v5281_v26, %v5280_v13 }
 0x517   : > { %v5321_v24 = vadd.f32 %v5320_v60, %v5316_v5  ;;  %v5330_v22 = vadd.f32 %v5329_v52, %v5318_v35  ;;  %v4919_v11 = vrot.slane %v4918_v50, 2  ;;  %v5226_v46 = vrot.slane %v5225_v2, 1 }
 0x518   : > { %v4924_v36 = vadd.f32 %v6762_v54, %v4923_v4  ;;  %v5235_v14 = vrot.slane %v5234_v53, 1  ;;  %v5274_v12 = vrot.slane %v5273_v27, 2  ;;  %v5283_v42 = vrot.slane %v5282_v8, 2 }
 0x519   : > { %v5322_v40 = vrot.slane %v5321_v24, 4  ;;  %v5331_v15 = vrot.slane %v5330_v22, 4  ;;  %v4920_v34 = vadd.f32 %v4919_v11, %v4918_v50  ;;  %v5227_v7 = vadd.f32 %v5226_v46, %v5225_v2 }
 0x51a   : > { %v4925_v39 = vrot.slane %v4924_v36, 2  ;;  %v5236_v61 = vadd.f32 %v5235_v14, %v5234_v53  ;;  %v5275_v32 = vadd.f32 %v5274_v12, %v5273_v27  ;;  %v5284_v44 = vadd.f32 %v5283_v42, %v5282_v8 }
 0x51b   : > { %v5323_v47 = vadd.f32 %v5322_v40, %v5321_v24  ;;  %v5332_v31 = vadd.f32 %v5331_v15, %v5330_v22  ;;  %v4921_v62 = vrot.slane %v4920_v34, 1  ;;  %v5339_v5 = vsel %vm2169_vm1, %v5337_v59, %v11795_v63 }
 0x51c   : > { %v4926_v16 = vadd.f32 %v4925_v39, %v4924_v36  ;;  %v5340_v25 = vsel %vm2169_vm1, %v5338_v1, %v11802_v55  ;;  %v5276_v6 = vrot.slane %v5275_v32, 1  ;;  %v5285_v35 = vrot.slane %v5284_v44, 1 }
 0x51d   : > { %v5324_v28 = vrot.slane %v5323_v47, 2  ;;  %v5333_v13 = vrot.slane %v5332_v31, 2  ;;  %v4922_v21 = vadd.f32 %v4921_v62, %v4920_v34  ;;  %v5341_v41 = vsel %vm2172_vm2, %v5339_v5, %v11811_v51 }
 0x51e   : > { %v4927_v3 = vrot.slane %v4926_v16, 1  ;;  %v5342_v48 = vsel %vm2172_vm2, %v5340_v25, %v11819_v49  ;;  %v5277_v43 = vadd.f32 %v5276_v6, %v5275_v32  ;;  %v5286_v57 = vadd.f32 %v5285_v35, %v5284_v44 }
 0x51f   : > { %v5325_v54 = vadd.f32 %v5324_v28, %v5323_v47  ;;  %v5334_v26 = vadd.f32 %v5333_v13, %v5332_v31  ;;  %6763 = vlog2.f32 %v4922_v21  ;;  %v5343_v55 = vsel %vm2175_vm3, %v5341_v41, %v11824_v18 }
 0x520   : > { %v4928_v63 = vadd.f32 %v4927_v3, %v4926_v16  ;;  %v5344_v59 = vsel %vm2175_vm3, %v5342_v48, %v11826_v29  ;;  %v5345_v1 = vsel %vm2178_vm4, %v5343_v55, %v5227_v7  ;;  %v5389_v4 = vsel %vm2166_vm0, %v11432_v45, %v11479_v17 }
 0x521   : > { %v5326_v60 = vrot.slane %v5325_v54, 1  ;;  %v5335_v52 = vrot.slane %v5334_v26, 1  ;;  %v5346_v51 = vsel %vm2178_vm4, %v5344_v59, %v5236_v61  ;;  %v5347_v49 = vsel %vm2181_vm5, %v5345_v1, %v5277_v43 }
 0x522   : > { %6765 = vlog2.f32 %v4928_v63  ;;  %v5348_v50 = vsel %vm2181_vm5, %v5346_v51, %v5286_v57  ;;  %v5390_v29 = vsel %vm2166_vm0, %v11439_v58, %v11483_v0  ;;  %v5391_v53 = vsel %vm2169_vm1, %v5389_v4, %v11539_v23 }
 0x523   : > { %v5327_v2 = vadd.f32 %v5326_v60, %v5325_v54  ;;  %v5336_v18 = vadd.f32 %v5335_v52, %v5334_v26  ;;  %v5504_v27 = vadd.f32 -2.0794415, %v11798_v30  ;;  %v5505_v8 = vadd.f32 -2.0794415, %v11805_v20 }
 0x524   : > { %v5392_v24 = vsel %vm2169_vm1, %v5390_v29, %v11547_v56  ;;  %v5393_v22 = vsel %vm2172_vm2, %v5391_v53, %v11625_v9 }
 0x525   : > { %v5349_v45 = vsel %vm2184_vm6, %v5347_v49, %v5327_v2  ;;  %v5350_v17 = vsel %vm2184_vm6, %v5348_v50, %v5336_v18  ;;  %v5394_v58 = vsel %vm2172_vm2, %v5392_v24, %v11643_v33  ;;  %v5395_v0 = vsel %vm2175_vm3, %v5393_v22, %v11758_v37 }
 0x526   : > { %v5351_v23 = vrot.slane %v5349_v45, 4  ;;  %v5357_v30 = vrot.slane %v5350_v17, 4  ;;  %v5396_v20 = vsel %vm2175_vm3, %v5394_v58, %v11763_v10  ;;  %v5397_v56 = vsel %vm2178_vm4, %v5395_v0, %v5504_v27 }
 0x527   : > { %v5398_v11 = vsel %vm2178_vm4, %v5396_v20, %v5505_v8 }
 0x528   : > { %v5352_v9 = vmax.f32 %v5349_v45, %v5351_v23  ;;  %v5358_v36 = vmax.f32 %v5350_v17, %v5357_v30 }
 0x52a   : > { %v5353_v46 = vrot.slane %v5352_v9, 2  ;;  %v5359_v14 = vrot.slane %v5358_v36, 2 }
 0x52c   : > { %v5354_v12 = vmax.f32 %v5352_v9, %v5353_v46  ;;  %v5360_v42 = vmax.f32 %v5358_v36, %v5359_v14  ;;  %v6764_v40 = vpop.eup %6763 }
 0x52d   : > { %v4930_v33 = vmul.f32 0.6931472, %v6764_v40 }
 0x52e   : > { %v5355_v15 = vrot.slane %v5354_v12, 1  ;;  %v5361_v34 = vrot.slane %v5360_v42, 1 }
 0x52f   : > { %v6766_v37 = vpop.eup %6765  ;;  %v4933_v7 = vadd.f32 %v4930_v33, %v11785_v38 }
 0x530   : > { %v4932_v39 = vmul.f32 0.6931472, %v6766_v37  ;;  %v5356_v61 = vmax.f32 %v5354_v12, %v5355_v15  ;;  %v5362_v10 = vmax.f32 %v5360_v42, %v5361_v34 }
 0x531   : > { %v5506_v44 = vadd.f32 -2.0794415, %v4933_v7 }
 0x532   : > { %v4934_v32 = vadd.f32 %v4932_v39, %v11791_v19  ;;  %v5363_v47 = vsub.f32 %v5349_v45, %v5356_v61  ;;  %v5364_v31 = vsub.f32 %v5350_v17, %v5362_v10 }
 0x533   : > { %v5399_v25 = vsel %vm2181_vm5, %v5397_v56, %v5506_v44 }
 0x534   : > { %v5507_v62 = vadd.f32 -2.0794415, %v4934_v32  ;;  %v5365_v16 = vmul.f32 1.442695, %v5363_v47  ;;  %v5367_v5 = vmul.f32 1.442695, %v5364_v31 }
 0x536   : > { %6767 = vpow2.f32 %v5365_v16  ;;  %v5400_v6 = vsel %vm2181_vm5, %v5398_v11, %v5507_v62 }
 0x537   : > { %6769 = vpow2.f32 %v5367_v5 }
 0x543   : > { %v6768_v35 = vpop.eup %6767 }
 0x544   : > { %v6770_v28 = vpop.eup %6769  ;;  %v5369_v38 = vrot.slane %v6768_v35, 4 }
 0x545   : > { %v5375_v13 = vrot.slane %v6770_v28, 4 }
 0x546   : > { %v5370_v21 = vadd.f32 %v6768_v35, %v5369_v38 }
 0x547   : > { %v5376_v3 = vadd.f32 %v6770_v28, %v5375_v13 }
 0x548   : > { %v5371_v19 = vrot.slane %v5370_v21, 2 }
 0x549   : > { %v5377_v41 = vrot.slane %v5376_v3, 2 }
 0x54a   : > { %v5372_v48 = vadd.f32 %v5371_v19, %v5370_v21 }
 0x54b   : > { %v5378_v43 = vadd.f32 %v5377_v41, %v5376_v3 }
 0x54c   : > { %v5373_v57 = vrot.slane %v5372_v48, 1 }
 0x54d   : > { %v5379_v54 = vrot.slane %v5378_v43, 1 }
 0x54e   : > { %v5374_v26 = vadd.f32 %v5373_v57, %v5372_v48 }
 0x54f   : > { %v5380_v63 = vadd.f32 %v5379_v54, %v5378_v43 }
 0x550   : > { %6771 = vlog2.f32 %v5374_v26 }
 0x551   : > { %6773 = vlog2.f32 %v5380_v63 }
 0x55d   : > { %v6772_v55 = vpop.eup %6771 }
 0x55e   : > { %v6774_v59 = vpop.eup %6773  ;;  %v5382_v60 = vmul.f32 0.6931472, %v6772_v55 }
 0x55f   : > { %v5384_v52 = vmul.f32 0.6931472, %v6774_v59 }
 0x560   : > { %v5385_v1 = vadd.f32 %v5382_v60, %v5356_v61 }
 0x561   : > { %v5386_v51 = vadd.f32 %v5384_v52, %v5362_v10 }
 0x562   : > { %v5508_v49 = vadd.f32 -2.0794415, %v5385_v1 }
 0x563   : > { %v5509_v50 = vadd.f32 -2.0794415, %v5386_v51 }
 0x564   : > { %v5401_v4 = vsel %vm2184_vm6, %v5399_v25, %v5508_v49 }
 0x565   : > { %v5402_v2 = vsel %vm2184_vm6, %v5400_v6, %v5509_v50  ;;  %5403 = vst [vmem:[%s283_s17] sm:$0xff] %v5401_v4 }
 0x566   : > { %5404 = vst [vmem:[%s283_s17 + $0x8] sm:$0xff] %v5402_v2 }
 0x567   : > { %6788 = shalt.err (!%p6785_p5)
}
 0x568   : > { %s6789_s12 = scalar_lea.hbm %s11896_s26, 256  ;;  %s6793_s14 = scalar_lea.hbm %s11946_s6, 512 }
 0x569   : > { %p6790_p7 = scmp.ne.s32.totalorder %s11896_s26, %s6789_s12  ;;  %p6794_p12 = scmp.lt.s32.totalorder %s11896_s26, %s11946_s6 }
 0x56a   : > { %p6795_p13 = scmp.lt.s32.totalorder %s6793_s14, %s6789_s12 }
 0x56b   : > { %p6791_p10 = pnand %p6790_p7, %p6912_p6 }
 0x56c   : > { %p6796_p0 = por %p6795_p13, %p6794_p12 }
 0x56d   : > { %p6792_p11 = pneg %p6791_p10 }
 0x56f   : > { %p6797_p1 = pnand %p6796_p0, %p6792_p11 }
 0x571   : > { %6800 = shalt.err (!%p6797_p1)
}
 0x572   : > { %5517 = dma.vmem_to_hbm [thread:$0]  (%p6912_p6), %s11898_s18, 256, %s11896_s26, %s5406_s25  }
 0x573 PF: > { %s5432_s17 = sand.u32 1, %s6823_s21   ;;  %p5520_p2 = pnand %p5487_p9, %p6916_p8 }
 0x574   : > { %s5433_s19 = scalar_lea.sflag [#allocation4], %s5432_s17 }
 0x575   : > { %p5521_p3 = pneg %p5520_p2 }
 0x577   : > { %6818 = dma.done.wait (%p5521_p3), %s5433_s19, 256  }
 0x578   : > { %6820 = vsyncadd (%p5521_p3), %s5433_s19, 4294967040  ;;  %p16_p4 = scmp.ge.s32.totalorder %s6897_s27, 4   ;;  %s13606_s21 = smov %s6827_s22 }
 0x579   : > { %s13607_s22 = smov %s6831_s23  ;;  %s13608_s23 = smov %s6910_s30 }
 0x57a   : > { %s13609_s24 = smov %s6897_s27  ;;  %18 = sbr.rel (!%p16_p4) target bundleno = 3 (0x3), region = 107 }
 0x57f   :  { %5438 = vsyncpa [#allocation4], 1 }
 0x580   :  { %5440 = vsyncpa [#allocation4 + $0x1], 1 }

</bundles_post_ra>
